<compile_context>
chip_gen: v6e
topology: v6e:2x2x1
jax: 0.10.0
libtpu: 0.0.40
codegen_flags: <defaults>
</compile_context>

<pallas_src>
import math
from functools import partial

import numpy as np
import jax
import jax.numpy as jnp
from jax.experimental import pallas as pl
from jax.experimental.pallas import tpu as pltpu


# ----------------------------------------------------------------------------
# DCT filter construction (mirrors MultiSpectralDCTLayer)
# ----------------------------------------------------------------------------
def get_freq_indices(method):
    assert method in ['top1', 'top2', 'top4', 'top8', 'top16', 'top32',
                      'bot1', 'bot2', 'bot4', 'bot8', 'bot16', 'bot32',
                      'low1', 'low2', 'low4', 'low8', 'low16', 'low32']
    num_freq = int(method[3:])
    if 'top' in method:
        all_x = [0, 0, 6, 0, 0, 1, 1, 4, 5, 1, 3, 0, 0, 0, 3, 2,
                 4, 6, 3, 5, 5, 2, 6, 5, 5, 3, 3, 4, 2, 2, 6, 1]
        all_y = [0, 1, 0, 5, 2, 0, 2, 0, 0, 6, 0, 4, 6, 3, 5, 2,
                 6, 3, 3, 3, 5, 1, 1, 2, 4, 2, 1, 1, 3, 0, 5, 3]
    elif 'low' in method:
        all_x = [0, 0, 1, 1, 0, 2, 2, 1, 2, 0, 3, 4, 0, 1, 3, 0,
                 1, 2, 3, 4, 5, 0, 1, 2, 3, 4, 5, 6, 1, 2, 3, 4]
        all_y = [0, 1, 0, 1, 2, 0, 1, 2, 2, 3, 0, 0, 4, 3, 1, 5,
                 4, 3, 2, 1, 0, 6, 5, 4, 3, 2, 1, 0, 6, 5, 4, 3]
    else:
        all_x = [6, 1, 3, 3, 2, 4, 1, 2, 4, 4, 5, 1, 4, 6, 2, 5,
                 6, 1, 6, 2, 2, 4, 3, 3, 5, 5, 6, 2, 5, 5, 3, 6]
        all_y = [6, 4, 4, 6, 6, 3, 1, 4, 4, 5, 6, 5, 2, 2, 5, 1,
                 4, 3, 5, 0, 3, 1, 1, 2, 4, 2, 1, 1, 5, 3, 3, 3]
    return all_x[:num_freq], all_y[:num_freq]


def build_dct_weight(h, w, channel, method='top16'):
    mx, my = get_freq_indices(method)
    mx = [u * (h // 7) for u in mx]
    my = [v * (w // 7) for v in my]

    def bf(pos, freq, POS):
        r = math.cos(math.pi * freq * (pos + 0.5) / POS) / math.sqrt(POS)
        return r if freq == 0 else r * math.sqrt(2)

    f = np.zeros((channel, h, w), np.float32)
    c_part = channel // len(mx)
    for i, (u, v) in enumerate(zip(mx, my)):
        for tx in range(h):
            for ty in range(w):
                f[i * c_part:(i + 1) * c_part, tx, ty] = bf(tx, u, h) * bf(ty, v, w)
    return jnp.asarray(np.transpose(f, (1, 2, 0)))  # (h, w, C) channels-last


# ----------------------------------------------------------------------------
# Static layout constants (flat padded layouts, masks, bf16 0/1 subsampler)
# ----------------------------------------------------------------------------
def _build_layout_consts(H, W):
    assert H % 2 == 0 and W % 2 == 0
    Ho, Wo = H // 2, W // 2
    Wp = ((W + 2 + 7) // 8) * 8            # padded row width, multiple of 8
    Wp2 = ((Wo + 2 + 7) // 8) * 8
    flatA, accA = (H + 3) * Wp, H * Wp     # padded scratch rows / conv acc rows
    flatD, accD = (Ho + 3) * Wp2, Ho * Wp2

    # [::2, ::2] subsample of the stride-1 conv2a result, written DIRECTLY into
    # conv2b's zero-padded flat layout (all-zero rows provide the padding ring).
    sel_down = np.zeros((flatD, accA), np.float32)
    for h2 in range(Ho):
        for w2 in range(Wo):
            sel_down[(h2 + 1) * Wp2 + (w2 + 1), (2 * h2) * Wp + 2 * w2] = 1.0
    # 1.0 on valid columns of flat accumulators, 0 on junk columns.
    maskw = (np.arange(accA) % Wp < W).astype(np.float32)[:, None]
    maskd = (np.arange(accD) % Wp2 < Wo).astype(np.float32)[:, None]
    return dict(Ho=Ho, Wo=Wo, Wp=Wp, Wp2=Wp2,
                flatA=flatA, accA=accA, flatD=flatD, accD=accD,
                sel_down=jnp.asarray(sel_down, jnp.bfloat16),   # 0/1 exact in bf16
                maskw=jnp.asarray(maskw), maskd=jnp.asarray(maskd))


# ----------------------------------------------------------------------------
# Fused Pallas kernel (one batch element per grid step)
# ----------------------------------------------------------------------------
def _aa_block_kernel(
        x_ref, xres_ref, maskw_ref, maskd_ref, seld_ref, dct_ref,
        w1_ref, s1_ref, t1_ref,
        wdw_ref, sdw_ref, tdw_ref,
        w2a_ref, s2a_ref, t2a_ref,
        w2b_ref, b2b_ref,
        wres_ref, bres_ref,
        sew1_ref, sew2_ref, fcw1_ref, fcw2_ref,
        o_ref,
        pB, pC, pD,
        *, H, W, Wp, Wp2, Ho, Wo):
    f32, bf16 = jnp.float32, jnp.bfloat16
    accA, accD, nhw = H * Wp, Ho * Wp2, Ho * Wo
    C = pB.shape[1]

    def sigmoid(v):                         # explicit EUP-friendly form
        return 1.0 / (1.0 + jnp.exp(-v))

    def conv3x3(pref, wref, n_rows, wp):
        """3x3 conv on a flat zero-padded slab: 9 accumulated MXU dots.
        Operands are already bf16 (input / scratches stored bf16)."""
        # TODO(synk): fold into K=9*Cin im2col dots + M-chunking.
        acc = None
        for t in range(9):
            off = (t // 3) * wp + (t % 3)
            c = jnp.dot(pref[pl.ds(off, n_rows), :], wref[t],
                        preferred_element_type=f32)
            acc = c if acc is None else acc + c
        return acc

    def dwconv3x3(pref, wref, n_rows, wp):
        """Depthwise 3x3 conv: 9 accumulated broadcast multiplies (f32 / VPU)."""
        acc = None
        for t in range(9):
            off = (t // 3) * wp + (t % 3)
            c = pref[pl.ds(off, n_rows), :] * wref[t]
            acc = c if acc is None else acc + c
        return acc

    maskw = maskw_ref[...]                  # (accA, 1) valid-column mask
    maskd = maskd_ref[...]                  # (accD, 1) valid-column mask

    # Zero only the halo rows of pB / pC (whole padded rows -> aligned stores);
    # the interior is fully overwritten below with junk columns masked to 0,
    # so the zero padding ring is maintained.  Per-step (not program_id==0) so
    # megacore batch splitting never sees an uninitialized scratch.
    pB[pl.ds(0, 2 * Wp), :] = jnp.zeros((2 * Wp, C), f32)
    pB[pl.ds((H + 1) * Wp, 2 * Wp), :] = jnp.zeros((2 * Wp, C), f32)
    pC[pl.ds(0, 2 * Wp), :] = jnp.zeros((2 * Wp, C), bf16)
    pC[pl.ds((H + 1) * Wp, 2 * Wp), :] = jnp.zeros((2 * Wp, C), bf16)

    # ---- block1: conv3x3 + folded BN + ReLU, then down_conversion SiLU ------
    a = conv3x3(x_ref, w1_ref, accA, Wp)
    a = jnp.maximum(a * s1_ref[...] + t1_ref[...], 0.0)
    a = a * sigmoid(a)
    pB[pl.ds(Wp + 1, accA), :] = a * maskw          # re-centre into padded slab

    # ---- down_conversion: depthwise conv3x3 + folded BN + SiLU (f32 VPU) ----
    a = dwconv3x3(pB, wdw_ref, accA, Wp)
    a = a * sdw_ref[...] + tdw_ref[...]
    a = a * sigmoid(a)
    pC[pl.ds(Wp + 1, accA), :] = (a * maskw).astype(bf16)

    # ---- block2a: conv3x3 stride 2 + folded BN + ReLU -----------------------
    # stride-1 flat result; bf16 0/1 selection matmul performs the [::2, ::2]
    # subsample and writes it straight into conv2b's padded layout (pD).
    a = conv3x3(pC, w2a_ref, accA, Wp)
    a = jnp.maximum(a * s2a_ref[...] + t2a_ref[...], 0.0)
    pD[...] = jnp.dot(seld_ref[...], a.astype(bf16),
                      preferred_element_type=f32).astype(bf16)

    # ---- block2b: conv3x3 (stride 1) + bias, kept in flat (accD, C) layout --
    a = conv3x3(pD, w2b_ref, accD, Wp2)
    z = (a + b2b_ref[...]) * maskd                  # junk columns -> 0

    # ---- MultiAttention: SELayer then MultiSpectralAttention (7x7 DCT) ------
    inv_hw = 1.0 / nhw
    pooled = jnp.sum(z, axis=0, keepdims=True) * inv_hw
    h1 = jnp.maximum(jnp.dot(pooled, sew1_ref[...],
                             preferred_element_type=f32), 0.0)
    y_se = sigmoid(jnp.dot(h1, sew2_ref[...], preferred_element_type=f32))
    x_se = z * y_se
    yd = jnp.sum(x_se * dct_ref[...], axis=0, keepdims=True)
    h2 = jnp.maximum(jnp.dot(yd, fcw1_ref[...],
                             preferred_element_type=f32), 0.0)
    y_fca = sigmoid(jnp.dot(h2, fcw2_ref[...], preferred_element_type=f32))
    attn = x_se * y_fca

    # ---- residual 1x1 stride-2 conv (x[::2, ::2] gathered in the wrapper) ---
    res = jnp.dot(xres_ref[...], wres_ref[...],
                  preferred_element_type=f32) + bres_ref[...]

    # ---- add + InstanceNorm2d (biased var, eps=1e-5, no affine) + ReLU ------
    t = attn + res
    mean = jnp.sum(t * maskd, axis=0, keepdims=True) * inv_hw
    cen = (t - mean) * maskd
    var = jnp.sum(cen * cen, axis=0, keepdims=True) * inv_hw
    y = (t - mean) * jax.lax.rsqrt(var + 1e-5)
    o_ref[...] = jnp.maximum(y, 0.0)     # junk columns sliced away in wrapper


def _const_spec(a):
    nd = a.ndim
    return pl.BlockSpec(a.shape, lambda b, nd=nd: (0,) * nd)


# ----------------------------------------------------------------------------
# Forward wrapper: padding / strided gathers in XLA, one pallas_call over batch
# ----------------------------------------------------------------------------
def anti_aliasing_block_forward(x_nchw, params):
    x = jnp.transpose(x_nchw, (0, 2, 3, 1))                       # NCHW -> NHWC
    N, H, W, Cin = x.shape
    Cout = params['w1'].shape[-1]
    L = _build_layout_consts(H, W)
    Ho, Wo, Wp, Wp2 = L['Ho'], L['Wo'], L['Wp'], L['Wp2']
    accD, flatA = L['accD'], L['flatA']
    # MultiSpectralAttention DCT tile is 7x7 == post-downsample spatial size.
    assert Ho == 7 and Wo == 7
    # TODO(synk): adaptive_avg_pool2d path when post-block2 spatial != 7x7.

    xb = x.astype(jnp.bfloat16)
    # zero-padded flat layout: pixel (h, w) -> flat row (h+1)*Wp + (w+1)
    x_pad = jnp.pad(xb, ((0, 0), (1, 2), (1, Wp - W - 1), (0, 0)))
    x_pad = x_pad.reshape(N, flatA, Cin)
    # residual gather x[:, ::2, ::2, :] in the flat (accD, Cin) layout
    xres = jnp.pad(xb[:, ::2, ::2, :], ((0, 0), (0, 0), (0, Wp2 - Wo), (0, 0)))
    xres = xres.reshape(N, accD, Cin)
    # DCT weights in the flat (accD, C) layout (zeros at junk columns)
    dct_flat = jnp.pad(params['dct'], ((0, 0), (0, Wp2 - Wo), (0, 0)))
    dct_flat = dct_flat.reshape(accD, Cout)

    const_args = [
        L['maskw'], L['maskd'], L['sel_down'], dct_flat,
        params['w1'], params['scale1'], params['shift1'],
        params['wdw'], params['scale_dw'], params['shift_dw'],
        params['w2a'], params['scale2a'], params['shift2a'],
        params['w2b'], params['b2b'],
        params['wres'], params['bres'],
        params['se_w1'], params['se_w2'], params['fca_w1'], params['fca_w2'],
    ]

    kernel = partial(_aa_block_kernel, H=H, W=W, Wp=Wp, Wp2=Wp2, Ho=Ho, Wo=Wo)
    out = pl.pallas_call(
        kernel,
        out_shape=jax.ShapeDtypeStruct((N, accD, Cout), jnp.float32),
        grid=(N,),
        in_specs=[pl.BlockSpec((None, flatA, Cin), lambda b: (b, 0, 0)),
                  pl.BlockSpec((None, accD, Cin), lambda b: (b, 0, 0))]
                 + [_const_spec(a) for a in const_args],
        out_specs=pl.BlockSpec((None, accD, Cout), lambda b: (b, 0, 0)),
        scratch_shapes=[
            pltpu.VMEM((flatA, Cout), jnp.float32),    # pB: padded SiLU(block1)
            pltpu.VMEM((flatA, Cout), jnp.bfloat16),   # pC: padded down_conversion
            pltpu.VMEM((L['flatD'], Cout), jnp.bfloat16),  # pD: padded downsampled
        ],
        compiler_params=pltpu.CompilerParams(dimension_semantics=("parallel",)),
    )(x_pad, xres, *const_args)
    out = out.reshape(N, Ho, Wp2, Cout)[:, :, :Wo, :]              # drop junk cols
    return jnp.transpose(out, (0, 3, 1, 2))                        # NHWC -> NCHW


# ----------------------------------------------------------------------------
# Deterministic parameters (inference-mode BN folded into scale/shift)
# ----------------------------------------------------------------------------
def make_params(key, cin, cout, dct_hw=7, reduction=16):
    key_iter = iter(jax.random.split(key, 32))

    def nrm(shape, s=0.15):
        return (s * jax.random.normal(next(key_iter), shape)).astype(jnp.float32)

    eps = 1e-5

    def bn_fold(bias, gamma, beta, mean, var):
        scale = gamma / jnp.sqrt(var + eps)
        shift = (bias - mean) * scale + beta
        return scale.reshape(1, -1), shift.reshape(1, -1)

    p = {}
    # block1: conv3x3 + BN (folded); weights bf16 for the MXU
    p['w1'] = nrm((3, 3, cin, cout)).reshape(9, cin, cout).astype(jnp.bfloat16)
    p['scale1'], p['shift1'] = bn_fold(nrm((cout,)), 1.0 + nrm((cout,)), nrm((cout,)),
                                       nrm((cout,)), 1.0 + jnp.abs(nrm((cout,))))
    # down_conversion: depthwise conv3x3 + BN (f32, VPU path)
    p['wdw'] = nrm((3, 3, cout)).reshape(9, 1, cout)
    p['scale_dw'], p['shift_dw'] = bn_fold(nrm((cout,)), 1.0 + nrm((cout,)), nrm((cout,)),
                                           nrm((cout,)), 1.0 + jnp.abs(nrm((cout,))))
    # block2
    p['w2a'] = nrm((3, 3, cout, cout)).reshape(9, cout, cout).astype(jnp.bfloat16)
    p['scale2a'], p['shift2a'] = bn_fold(nrm((cout,)), 1.0 + nrm((cout,)), nrm((cout,)),
                                         nrm((cout,)), 1.0 + jnp.abs(nrm((cout,))))
    p['w2b'] = nrm((3, 3, cout, cout)).reshape(9, cout, cout).astype(jnp.bfloat16)
    p['b2b'] = nrm((cout,)).reshape(1, -1)              # conv bias only (no BN)
    # attention fc weights, stored transposed: y = x @ W  (f32, tiny)
    p['se_w1'] = nrm((cout, cout // reduction))
    p['se_w2'] = nrm((cout // reduction, cout))
    p['fca_w1'] = nrm((cout, cout // reduction))
    p['fca_w2'] = nrm((cout // reduction, cout))
    p['dct'] = build_dct_weight(dct_hw, dct_hw, cout, 'top16')      # (7, 7, C)
    # residual 1x1 stride-2 conv
    p['wres'] = nrm((cin, cout)).astype(jnp.bfloat16)
    p['bres'] = nrm((cout,)).reshape(1, -1)
    return p


# ----------------------------------------------------------------------------
# Pure-JAX reference (same folded params, same bf16 rounding points)
# ----------------------------------------------------------------------------
def reference_forward(x_nhwc, p):
    f32 = jnp.float32
    HI = jax.lax.Precision.HIGHEST

    def q(v):                         # mimic the kernel's bf16 MXU operands
        return v.astype(jnp.bfloat16).astype(f32)

    def conv(x, w, stride=1):
        return jax.lax.conv_general_dilated(
            x, w, (stride, stride), ((1, 1), (1, 1)),
            dimension_numbers=('NHWC', 'HWIO', 'NHWC'), precision=HI)

    cin = p['wres'].shape[0]
    C = p['w2a'].shape[-1]
    w1 = p['w1'].astype(f32).reshape(3, 3, cin, C)
    w2a = p['w2a'].astype(f32).reshape(3, 3, C, C)
    w2b = p['w2b'].astype(f32).reshape(3, 3, C, C)
    wdw = p['wdw'].reshape(3, 3, 1, C)
    wres = p['wres'].astype(f32).reshape(1, 1, cin, C)

    h = jnp.maximum(conv(q(x_nhwc), w1) * p['scale1'] + p['shift1'], 0.0)
    h = h * jax.nn.sigmoid(h)
    h = jax.lax.conv_general_dilated(
        h, wdw, (1, 1), ((1, 1), (1, 1)),
        dimension_numbers=('NHWC', 'HWIO', 'NHWC'),
        feature_group_count=C, precision=HI)
    h = h * p['scale_dw'] + p['shift_dw']
    h = h * jax.nn.sigmoid(h)
    h = jnp.maximum(conv(q(h), w2a, stride=2) * p['scale2a'] + p['shift2a'], 0.0)
    z = conv(q(h), w2b) + p['b2b']
    # SE
    pooled = jnp.mean(z, axis=(1, 2))
    y_se = jax.nn.sigmoid(jnp.dot(jnp.maximum(jnp.dot(pooled, p['se_w1'], precision=HI), 0.0),
                                  p['se_w2'], precision=HI))
    x_se = z * y_se[:, None, None, :]
    # FCA
    dct = p['dct'][None]                                # (1, 7, 7, C)
    yd = jnp.sum(x_se * dct, axis=(1, 2))
    y_fca = jax.nn.sigmoid(jnp.dot(jnp.maximum(jnp.dot(yd, p['fca_w1'], precision=HI), 0.0),
                                   p['fca_w2'], precision=HI))
    out = x_se * y_fca[:, None, None, :]
    # residual 1x1 stride-2 conv
    res = jax.lax.conv_general_dilated(
        q(x_nhwc), wres, (2, 2), 'VALID',
        dimension_numbers=('NHWC', 'HWIO', 'NHWC'), precision=HI) + p['bres']
    t = out + res
    mean = jnp.mean(t, axis=(1, 2), keepdims=True)
    var = jnp.mean((t - mean) ** 2, axis=(1, 2), keepdims=True)
    return jnp.maximum((t - mean) * jax.lax.rsqrt(var + 1e-5), 0.0)


# ----------------------------------------------------------------------------
if __name__ == "__main__":
    N, Cin, Cout, H, W = 2, 16, 32, 14, 14     # 14x14 -> 7x7 (DCT tile) after downsample
    params = make_params(jax.random.PRNGKey(0), Cin, Cout)
    x = jax.random.normal(jax.random.PRNGKey(0), (N, Cin, H, W), jnp.float32)

    fwd = jax.jit(anti_aliasing_block_forward)
    out = jax.block_until_ready(fwd(x, params))            # (2, 32, 7, 7) NCHW
    assert out.shape == (N, Cout, H // 2, W // 2)

    ref = reference_forward(jnp.transpose(x, (0, 2, 3, 1)), params)
    ref = jnp.transpose(ref, (0, 3, 1, 2))
    np.testing.assert_allclose(np.asarray(out), np.asarray(ref), rtol=1.5e-2, atol=1e-2)

    print("KERNEL_OK")
</pallas_src>

<mosaic_0001>
module attributes {stable_mosaic.version = 11 : i64} {
  func.func @_aa_block_kernel(%arg0: i32, %arg1: memref<1x272x16xbf16, #tpu.memory_space<vmem>>, %arg2: memref<1x112x16xbf16, #tpu.memory_space<vmem>>, %arg3: memref<224x1xf32, #tpu.memory_space<vmem>>, %arg4: memref<112x1xf32, #tpu.memory_space<vmem>>, %arg5: memref<160x224xbf16, #tpu.memory_space<vmem>>, %arg6: memref<112x32xf32, #tpu.memory_space<vmem>>, %arg7: memref<9x16x32xbf16, #tpu.memory_space<vmem>>, %arg8: memref<1x32xf32, #tpu.memory_space<vmem>>, %arg9: memref<1x32xf32, #tpu.memory_space<vmem>>, %arg10: memref<9x1x32xf32, #tpu.memory_space<vmem>>, %arg11: memref<1x32xf32, #tpu.memory_space<vmem>>, %arg12: memref<1x32xf32, #tpu.memory_space<vmem>>, %arg13: memref<9x32x32xbf16, #tpu.memory_space<vmem>>, %arg14: memref<1x32xf32, #tpu.memory_space<vmem>>, %arg15: memref<1x32xf32, #tpu.memory_space<vmem>>, %arg16: memref<9x32x32xbf16, #tpu.memory_space<vmem>>, %arg17: memref<1x32xf32, #tpu.memory_space<vmem>>, %arg18: memref<16x32xbf16, #tpu.memory_space<vmem>>, %arg19: memref<1x32xf32, #tpu.memory_space<vmem>>, %arg20: memref<32x2xf32, #tpu.memory_space<vmem>>, %arg21: memref<2x32xf32, #tpu.memory_space<vmem>>, %arg22: memref<32x2xf32, #tpu.memory_space<vmem>>, %arg23: memref<2x32xf32, #tpu.memory_space<vmem>>, %arg24: memref<1x112x32xf32, #tpu.memory_space<vmem>>, %arg25: memref<272x32xf32, #tpu.memory_space<vmem>>, %arg26: memref<272x32xbf16, #tpu.memory_space<vmem>>, %arg27: memref<160x32xbf16, #tpu.memory_space<vmem>>) attributes {dimension_semantics = [#tpu.dimension_semantics<parallel>], iteration_bounds = array<i64: 2>, scalar_prefetch = 0 : i64, scratch_operands = 3 : i64, tpu.core_type = #tpu.core_type<tc>, window_params = [{transform_indices = @transform_0, window_bounds = array<i64: 1, 272, 16>}, {transform_indices = @transform_1, window_bounds = array<i64: 1, 112, 16>}, {pipeline_mode = #tpu.pipeline_mode<synchronous>, transform_indices = @transform_2, window_bounds = array<i64: 224, 1>}, {pipeline_mode = #tpu.pipeline_mode<synchronous>, transform_indices = @transform_3, window_bounds = array<i64: 112, 1>}, {pipeline_mode = #tpu.pipeline_mode<synchronous>, transform_indices = @transform_4, window_bounds = array<i64: 160, 224>}, {pipeline_mode = #tpu.pipeline_mode<synchronous>, transform_indices = @transform_5, window_bounds = array<i64: 112, 32>}, {pipeline_mode = #tpu.pipeline_mode<synchronous>, transform_indices = @transform_6, window_bounds = array<i64: 9, 16, 32>}, {pipeline_mode = #tpu.pipeline_mode<synchronous>, transform_indices = @transform_7, window_bounds = array<i64: 1, 32>}, {pipeline_mode = #tpu.pipeline_mode<synchronous>, transform_indices = @transform_8, window_bounds = array<i64: 1, 32>}, {pipeline_mode = #tpu.pipeline_mode<synchronous>, transform_indices = @transform_9, window_bounds = array<i64: 9, 1, 32>}, {pipeline_mode = #tpu.pipeline_mode<synchronous>, transform_indices = @transform_10, window_bounds = array<i64: 1, 32>}, {pipeline_mode = #tpu.pipeline_mode<synchronous>, transform_indices = @transform_11, window_bounds = array<i64: 1, 32>}, {pipeline_mode = #tpu.pipeline_mode<synchronous>, transform_indices = @transform_12, window_bounds = array<i64: 9, 32, 32>}, {pipeline_mode = #tpu.pipeline_mode<synchronous>, transform_indices = @transform_13, window_bounds = array<i64: 1, 32>}, {pipeline_mode = #tpu.pipeline_mode<synchronous>, transform_indices = @transform_14, window_bounds = array<i64: 1, 32>}, {pipeline_mode = #tpu.pipeline_mode<synchronous>, transform_indices = @transform_15, window_bounds = array<i64: 9, 32, 32>}, {pipeline_mode = #tpu.pipeline_mode<synchronous>, transform_indices = @transform_16, window_bounds = array<i64: 1, 32>}, {pipeline_mode = #tpu.pipeline_mode<synchronous>, transform_indices = @transform_17, window_bounds = array<i64: 16, 32>}, {pipeline_mode = #tpu.pipeline_mode<synchronous>, transform_indices = @transform_18, window_bounds = array<i64: 1, 32>}, {pipeline_mode = #tpu.pipeline_mode<synchronous>, transform_indices = @transform_19, window_bounds = array<i64: 32, 2>}, {pipeline_mode = #tpu.pipeline_mode<synchronous>, transform_indices = @transform_20, window_bounds = array<i64: 2, 32>}, {pipeline_mode = #tpu.pipeline_mode<synchronous>, transform_indices = @transform_21, window_bounds = array<i64: 32, 2>}, {pipeline_mode = #tpu.pipeline_mode<synchronous>, transform_indices = @transform_22, window_bounds = array<i64: 2, 32>}, {transform_indices = @transform_23, window_bounds = array<i64: 1, 112, 32>}]} {
    %c0 = arith.constant 0 : index
    %c0_0 = arith.constant 0 : index
    %0 = vector.load %arg3[%c0, %c0_0] : memref<224x1xf32, #tpu.memory_space<vmem>>, vector<224x1xf32>
    %c0_1 = arith.constant 0 : index
    %c0_2 = arith.constant 0 : index
    %1 = vector.load %arg4[%c0_1, %c0_2] : memref<112x1xf32, #tpu.memory_space<vmem>>, vector<112x1xf32>
    %cst = arith.constant 0.000000e+00 : f32
    %2 = vector.broadcast %cst : f32 to vector<32x32xf32>
    %c0_3 = arith.constant 0 : index
    %c0_4 = arith.constant 0 : index
    %3 = vector.load %arg25[%c0_3, %c0_4] : memref<272x32xf32, #tpu.memory_space<vmem>>, vector<32x32xf32>
    tpu.vector_store %arg25[%c0_3, %c0_4], %2 {strides = array<i32>} : memref<272x32xf32, #tpu.memory_space<vmem>>, vector<32x32xf32>,
    %cst_5 = arith.constant 0.000000e+00 : f32
    %4 = vector.broadcast %cst_5 : f32 to vector<32x32xf32>
    %c240 = arith.constant 240 : index
    %c0_6 = arith.constant 0 : index
    %5 = vector.load %arg25[%c240, %c0_6] : memref<272x32xf32, #tpu.memory_space<vmem>>, vector<32x32xf32>
    tpu.vector_store %arg25[%c240, %c0_6], %4 {strides = array<i32>} : memref<272x32xf32, #tpu.memory_space<vmem>>, vector<32x32xf32>,
    %cst_7 = arith.constant 0.000000e+00 : bf16
    %6 = vector.broadcast %cst_7 : bf16 to vector<32x32xbf16>
    %c0_8 = arith.constant 0 : index
    %c0_9 = arith.constant 0 : index
    %7 = vector.load %arg26[%c0_8, %c0_9] : memref<272x32xbf16, #tpu.memory_space<vmem>>, vector<32x32xbf16>
    tpu.vector_store %arg26[%c0_8, %c0_9], %6 {strides = array<i32>} : memref<272x32xbf16, #tpu.memory_space<vmem>>, vector<32x32xbf16>,
    %cst_10 = arith.constant 0.000000e+00 : bf16
    %8 = vector.broadcast %cst_10 : bf16 to vector<32x32xbf16>
    %c240_11 = arith.constant 240 : index
    %c0_12 = arith.constant 0 : index
    %9 = vector.load %arg26[%c240_11, %c0_12] : memref<272x32xbf16, #tpu.memory_space<vmem>>, vector<32x32xbf16>
    tpu.vector_store %arg26[%c240_11, %c0_12], %8 {strides = array<i32>} : memref<272x32xbf16, #tpu.memory_space<vmem>>, vector<32x32xbf16>,
    %c0_13 = arith.constant 0 : index
    %c0_14 = arith.constant 0 : index
    %c0_15 = arith.constant 0 : index
    %10 = vector.load %arg1[%c0_13, %c0_14, %c0_15] : memref<1x272x16xbf16, #tpu.memory_space<vmem>>, vector<1x224x16xbf16>
    %11 = vector.shape_cast %10 : vector<1x224x16xbf16> to vector<224x16xbf16>
    %c0_16 = arith.constant 0 : index
    %c0_17 = arith.constant 0 : index
    %c0_18 = arith.constant 0 : index
    %12 = vector.load %arg7[%c0_16, %c0_17, %c0_18] : memref<9x16x32xbf16, #tpu.memory_space<vmem>>, vector<1x16x32xbf16>
    %13 = vector.shape_cast %12 : vector<1x16x32xbf16> to vector<16x32xbf16>
    %cst_19 = arith.constant dense<0.000000e+00> : vector<224x32xf32>
    %14 = tpu.matmul %11, %13, %cst_19 {dimension_numbers = #tpu.dot_dimension_numbers<[1], [0], [0], [1], [0, 0, 1, 1], [], []>} : vector<224x16xbf16>, vector<16x32xbf16>, vector<224x32xf32> -> vector<224x32xf32>
    %c0_20 = arith.constant 0 : index
    %c1 = arith.constant 1 : index
    %c0_21 = arith.constant 0 : index
    %15 = vector.load %arg1[%c0_20, %c1, %c0_21] : memref<1x272x16xbf16, #tpu.memory_space<vmem>>, vector<1x224x16xbf16>
    %16 = vector.shape_cast %15 : vector<1x224x16xbf16> to vector<224x16xbf16>
    %c1_22 = arith.constant 1 : index
    %c0_23 = arith.constant 0 : index
    %c0_24 = arith.constant 0 : index
    %17 = vector.load %arg7[%c1_22, %c0_23, %c0_24] : memref<9x16x32xbf16, #tpu.memory_space<vmem>>, vector<1x16x32xbf16>
    %18 = vector.shape_cast %17 : vector<1x16x32xbf16> to vector<16x32xbf16>
    %cst_25 = arith.constant dense<0.000000e+00> : vector<224x32xf32>
    %19 = tpu.matmul %16, %18, %cst_25 {dimension_numbers = #tpu.dot_dimension_numbers<[1], [0], [0], [1], [0, 0, 1, 1], [], []>} : vector<224x16xbf16>, vector<16x32xbf16>, vector<224x32xf32> -> vector<224x32xf32>
    %20 = arith.addf %14, %19 : vector<224x32xf32>
    %c0_26 = arith.constant 0 : index
    %c2 = arith.constant 2 : index
    %c0_27 = arith.constant 0 : index
    %21 = vector.load %arg1[%c0_26, %c2, %c0_27] : memref<1x272x16xbf16, #tpu.memory_space<vmem>>, vector<1x224x16xbf16>
    %22 = vector.shape_cast %21 : vector<1x224x16xbf16> to vector<224x16xbf16>
    %c2_28 = arith.constant 2 : index
    %c0_29 = arith.constant 0 : index
    %c0_30 = arith.constant 0 : index
    %23 = vector.load %arg7[%c2_28, %c0_29, %c0_30] : memref<9x16x32xbf16, #tpu.memory_space<vmem>>, vector<1x16x32xbf16>
    %24 = vector.shape_cast %23 : vector<1x16x32xbf16> to vector<16x32xbf16>
    %cst_31 = arith.constant dense<0.000000e+00> : vector<224x32xf32>
    %25 = tpu.matmul %22, %24, %cst_31 {dimension_numbers = #tpu.dot_dimension_numbers<[1], [0], [0], [1], [0, 0, 1, 1], [], []>} : vector<224x16xbf16>, vector<16x32xbf16>, vector<224x32xf32> -> vector<224x32xf32>
    %26 = arith.addf %20, %25 : vector<224x32xf32>
    %c0_32 = arith.constant 0 : index
    %c16 = arith.constant 16 : index
    %c0_33 = arith.constant 0 : index
    %27 = vector.load %arg1[%c0_32, %c16, %c0_33] : memref<1x272x16xbf16, #tpu.memory_space<vmem>>, vector<1x224x16xbf16>
    %28 = vector.shape_cast %27 : vector<1x224x16xbf16> to vector<224x16xbf16>
    %c3 = arith.constant 3 : index
    %c0_34 = arith.constant 0 : index
    %c0_35 = arith.constant 0 : index
    %29 = vector.load %arg7[%c3, %c0_34, %c0_35] : memref<9x16x32xbf16, #tpu.memory_space<vmem>>, vector<1x16x32xbf16>
    %30 = vector.shape_cast %29 : vector<1x16x32xbf16> to vector<16x32xbf16>
    %cst_36 = arith.constant dense<0.000000e+00> : vector<224x32xf32>
    %31 = tpu.matmul %28, %30, %cst_36 {dimension_numbers = #tpu.dot_dimension_numbers<[1], [0], [0], [1], [0, 0, 1, 1], [], []>} : vector<224x16xbf16>, vector<16x32xbf16>, vector<224x32xf32> -> vector<224x32xf32>
    %32 = arith.addf %26, %31 : vector<224x32xf32>
    %c0_37 = arith.constant 0 : index
    %c17 = arith.constant 17 : index
    %c0_38 = arith.constant 0 : index
    %33 = vector.load %arg1[%c0_37, %c17, %c0_38] : memref<1x272x16xbf16, #tpu.memory_space<vmem>>, vector<1x224x16xbf16>
    %34 = vector.shape_cast %33 : vector<1x224x16xbf16> to vector<224x16xbf16>
    %c4 = arith.constant 4 : index
    %c0_39 = arith.constant 0 : index
    %c0_40 = arith.constant 0 : index
    %35 = vector.load %arg7[%c4, %c0_39, %c0_40] : memref<9x16x32xbf16, #tpu.memory_space<vmem>>, vector<1x16x32xbf16>
    %36 = vector.shape_cast %35 : vector<1x16x32xbf16> to vector<16x32xbf16>
    %cst_41 = arith.constant dense<0.000000e+00> : vector<224x32xf32>
    %37 = tpu.matmul %34, %36, %cst_41 {dimension_numbers = #tpu.dot_dimension_numbers<[1], [0], [0], [1], [0, 0, 1, 1], [], []>} : vector<224x16xbf16>, vector<16x32xbf16>, vector<224x32xf32> -> vector<224x32xf32>
    %38 = arith.addf %32, %37 : vector<224x32xf32>
    %c0_42 = arith.constant 0 : index
    %c18 = arith.constant 18 : index
    %c0_43 = arith.constant 0 : index
    %39 = vector.load %arg1[%c0_42, %c18, %c0_43] : memref<1x272x16xbf16, #tpu.memory_space<vmem>>, vector<1x224x16xbf16>
    %40 = vector.shape_cast %39 : vector<1x224x16xbf16> to vector<224x16xbf16>
    %c5 = arith.constant 5 : index
    %c0_44 = arith.constant 0 : index
    %c0_45 = arith.constant 0 : index
    %41 = vector.load %arg7[%c5, %c0_44, %c0_45] : memref<9x16x32xbf16, #tpu.memory_space<vmem>>, vector<1x16x32xbf16>
    %42 = vector.shape_cast %41 : vector<1x16x32xbf16> to vector<16x32xbf16>
    %cst_46 = arith.constant dense<0.000000e+00> : vector<224x32xf32>
    %43 = tpu.matmul %40, %42, %cst_46 {dimension_numbers = #tpu.dot_dimension_numbers<[1], [0], [0], [1], [0, 0, 1, 1], [], []>} : vector<224x16xbf16>, vector<16x32xbf16>, vector<224x32xf32> -> vector<224x32xf32>
    %44 = arith.addf %38, %43 : vector<224x32xf32>
    %c0_47 = arith.constant 0 : index
    %c32 = arith.constant 32 : index
    %c0_48 = arith.constant 0 : index
    %45 = vector.load %arg1[%c0_47, %c32, %c0_48] : memref<1x272x16xbf16, #tpu.memory_space<vmem>>, vector<1x224x16xbf16>
    %46 = vector.shape_cast %45 : vector<1x224x16xbf16> to vector<224x16xbf16>
    %c6 = arith.constant 6 : index
    %c0_49 = arith.constant 0 : index
    %c0_50 = arith.constant 0 : index
    %47 = vector.load %arg7[%c6, %c0_49, %c0_50] : memref<9x16x32xbf16, #tpu.memory_space<vmem>>, vector<1x16x32xbf16>
    %48 = vector.shape_cast %47 : vector<1x16x32xbf16> to vector<16x32xbf16>
    %cst_51 = arith.constant dense<0.000000e+00> : vector<224x32xf32>
    %49 = tpu.matmul %46, %48, %cst_51 {dimension_numbers = #tpu.dot_dimension_numbers<[1], [0], [0], [1], [0, 0, 1, 1], [], []>} : vector<224x16xbf16>, vector<16x32xbf16>, vector<224x32xf32> -> vector<224x32xf32>
    %50 = arith.addf %44, %49 : vector<224x32xf32>
    %c0_52 = arith.constant 0 : index
    %c33 = arith.constant 33 : index
    %c0_53 = arith.constant 0 : index
    %51 = vector.load %arg1[%c0_52, %c33, %c0_53] : memref<1x272x16xbf16, #tpu.memory_space<vmem>>, vector<1x224x16xbf16>
    %52 = vector.shape_cast %51 : vector<1x224x16xbf16> to vector<224x16xbf16>
    %c7 = arith.constant 7 : index
    %c0_54 = arith.constant 0 : index
    %c0_55 = arith.constant 0 : index
    %53 = vector.load %arg7[%c7, %c0_54, %c0_55] : memref<9x16x32xbf16, #tpu.memory_space<vmem>>, vector<1x16x32xbf16>
    %54 = vector.shape_cast %53 : vector<1x16x32xbf16> to vector<16x32xbf16>
    %cst_56 = arith.constant dense<0.000000e+00> : vector<224x32xf32>
    %55 = tpu.matmul %52, %54, %cst_56 {dimension_numbers = #tpu.dot_dimension_numbers<[1], [0], [0], [1], [0, 0, 1, 1], [], []>} : vector<224x16xbf16>, vector<16x32xbf16>, vector<224x32xf32> -> vector<224x32xf32>
    %56 = arith.addf %50, %55 : vector<224x32xf32>
    %c0_57 = arith.constant 0 : index
    %c34 = arith.constant 34 : index
    %c0_58 = arith.constant 0 : index
    %57 = vector.load %arg1[%c0_57, %c34, %c0_58] : memref<1x272x16xbf16, #tpu.memory_space<vmem>>, vector<1x224x16xbf16>
    %58 = vector.shape_cast %57 : vector<1x224x16xbf16> to vector<224x16xbf16>
    %c8 = arith.constant 8 : index
    %c0_59 = arith.constant 0 : index
    %c0_60 = arith.constant 0 : index
    %59 = vector.load %arg7[%c8, %c0_59, %c0_60] : memref<9x16x32xbf16, #tpu.memory_space<vmem>>, vector<1x16x32xbf16>
    %60 = vector.shape_cast %59 : vector<1x16x32xbf16> to vector<16x32xbf16>
    %cst_61 = arith.constant dense<0.000000e+00> : vector<224x32xf32>
    %61 = tpu.matmul %58, %60, %cst_61 {dimension_numbers = #tpu.dot_dimension_numbers<[1], [0], [0], [1], [0, 0, 1, 1], [], []>} : vector<224x16xbf16>, vector<16x32xbf16>, vector<224x32xf32> -> vector<224x32xf32>
    %62 = arith.addf %56, %61 : vector<224x32xf32>
    %c0_62 = arith.constant 0 : index
    %c0_63 = arith.constant 0 : index
    %63 = vector.load %arg8[%c0_62, %c0_63] : memref<1x32xf32, #tpu.memory_space<vmem>>, vector<1x32xf32>
    %64 = vector.broadcast %63 : vector<1x32xf32> to vector<224x32xf32>
    %65 = arith.mulf %62, %64 : vector<224x32xf32>
    %c0_64 = arith.constant 0 : index
    %c0_65 = arith.constant 0 : index
    %66 = vector.load %arg9[%c0_64, %c0_65] : memref<1x32xf32, #tpu.memory_space<vmem>>, vector<1x32xf32>
    %67 = vector.broadcast %66 : vector<1x32xf32> to vector<224x32xf32>
    %68 = arith.addf %65, %67 : vector<224x32xf32>
    %cst_66 = arith.constant 0.000000e+00 : f32
    %69 = vector.broadcast %cst_66 : f32 to vector<224x32xf32>
    %70 = arith.maximumf %68, %69 : vector<224x32xf32>
    %cst_67 = arith.constant 0.000000e+00 : f32
    %71 = vector.broadcast %cst_67 : f32 to vector<224x32xf32>
    %72 = arith.subf %71, %70 : vector<224x32xf32>
    %73 = math.exp %72 : vector<224x32xf32>
    %cst_68 = arith.constant 1.000000e+00 : f32
    %74 = vector.broadcast %cst_68 : f32 to vector<224x32xf32>
    %75 = arith.addf %74, %73 : vector<224x32xf32>
    %cst_69 = arith.constant 1.000000e+00 : f32
    %76 = vector.broadcast %cst_69 : f32 to vector<224x32xf32>
    %77 = arith.divf %76, %75 : vector<224x32xf32>
    %78 = arith.mulf %70, %77 : vector<224x32xf32>
    %79 = vector.broadcast %0 : vector<224x1xf32> to vector<224x32xf32>
    %80 = arith.mulf %78, %79 : vector<224x32xf32>
    %c17_70 = arith.constant 17 : index
    %c0_71 = arith.constant 0 : index
    %81 = vector.load %arg25[%c17_70, %c0_71] : memref<272x32xf32, #tpu.memory_space<vmem>>, vector<224x32xf32>
    tpu.vector_store %arg25[%c17_70, %c0_71], %80 {strides = array<i32>} : memref<272x32xf32, #tpu.memory_space<vmem>>, vector<224x32xf32>,
    %c0_72 = arith.constant 0 : index
    %c0_73 = arith.constant 0 : index
    %82 = vector.load %arg25[%c0_72, %c0_73] : memref<272x32xf32, #tpu.memory_space<vmem>>, vector<224x32xf32>
    %c0_74 = arith.constant 0 : index
    %c0_75 = arith.constant 0 : index
    %c0_76 = arith.constant 0 : index
    %83 = vector.load %arg10[%c0_74, %c0_75, %c0_76] : memref<9x1x32xf32, #tpu.memory_space<vmem>>, vector<1x1x32xf32>
    %84 = vector.shape_cast %83 : vector<1x1x32xf32> to vector<1x32xf32>
    %85 = vector.broadcast %84 : vector<1x32xf32> to vector<224x32xf32>
    %86 = arith.mulf %82, %85 : vector<224x32xf32>
    %c1_77 = arith.constant 1 : index
    %c0_78 = arith.constant 0 : index
    %87 = vector.load %arg25[%c1_77, %c0_78] : memref<272x32xf32, #tpu.memory_space<vmem>>, vector<224x32xf32>
    %c1_79 = arith.constant 1 : index
    %c0_80 = arith.constant 0 : index
    %c0_81 = arith.constant 0 : index
    %88 = vector.load %arg10[%c1_79, %c0_80, %c0_81] : memref<9x1x32xf32, #tpu.memory_space<vmem>>, vector<1x1x32xf32>
    %89 = vector.shape_cast %88 : vector<1x1x32xf32> to vector<1x32xf32>
    %90 = vector.broadcast %89 : vector<1x32xf32> to vector<224x32xf32>
    %91 = arith.mulf %87, %90 : vector<224x32xf32>
    %92 = arith.addf %86, %91 : vector<224x32xf32>
    %c2_82 = arith.constant 2 : index
    %c0_83 = arith.constant 0 : index
    %93 = vector.load %arg25[%c2_82, %c0_83] : memref<272x32xf32, #tpu.memory_space<vmem>>, vector<224x32xf32>
    %c2_84 = arith.constant 2 : index
    %c0_85 = arith.constant 0 : index
    %c0_86 = arith.constant 0 : index
    %94 = vector.load %arg10[%c2_84, %c0_85, %c0_86] : memref<9x1x32xf32, #tpu.memory_space<vmem>>, vector<1x1x32xf32>
    %95 = vector.shape_cast %94 : vector<1x1x32xf32> to vector<1x32xf32>
    %96 = vector.broadcast %95 : vector<1x32xf32> to vector<224x32xf32>
    %97 = arith.mulf %93, %96 : vector<224x32xf32>
    %98 = arith.addf %92, %97 : vector<224x32xf32>
    %c16_87 = arith.constant 16 : index
    %c0_88 = arith.constant 0 : index
    %99 = vector.load %arg25[%c16_87, %c0_88] : memref<272x32xf32, #tpu.memory_space<vmem>>, vector<224x32xf32>
    %c3_89 = arith.constant 3 : index
    %c0_90 = arith.constant 0 : index
    %c0_91 = arith.constant 0 : index
    %100 = vector.load %arg10[%c3_89, %c0_90, %c0_91] : memref<9x1x32xf32, #tpu.memory_space<vmem>>, vector<1x1x32xf32>
    %101 = vector.shape_cast %100 : vector<1x1x32xf32> to vector<1x32xf32>
    %102 = vector.broadcast %101 : vector<1x32xf32> to vector<224x32xf32>
    %103 = arith.mulf %99, %102 : vector<224x32xf32>
    %104 = arith.addf %98, %103 : vector<224x32xf32>
    %c17_92 = arith.constant 17 : index
    %c0_93 = arith.constant 0 : index
    %105 = vector.load %arg25[%c17_92, %c0_93] : memref<272x32xf32, #tpu.memory_space<vmem>>, vector<224x32xf32>
    %c4_94 = arith.constant 4 : index
    %c0_95 = arith.constant 0 : index
    %c0_96 = arith.constant 0 : index
    %106 = vector.load %arg10[%c4_94, %c0_95, %c0_96] : memref<9x1x32xf32, #tpu.memory_space<vmem>>, vector<1x1x32xf32>
    %107 = vector.shape_cast %106 : vector<1x1x32xf32> to vector<1x32xf32>
    %108 = vector.broadcast %107 : vector<1x32xf32> to vector<224x32xf32>
    %109 = arith.mulf %105, %108 : vector<224x32xf32>
    %110 = arith.addf %104, %109 : vector<224x32xf32>
    %c18_97 = arith.constant 18 : index
    %c0_98 = arith.constant 0 : index
    %111 = vector.load %arg25[%c18_97, %c0_98] : memref<272x32xf32, #tpu.memory_space<vmem>>, vector<224x32xf32>
    %c5_99 = arith.constant 5 : index
    %c0_100 = arith.constant 0 : index
    %c0_101 = arith.constant 0 : index
    %112 = vector.load %arg10[%c5_99, %c0_100, %c0_101] : memref<9x1x32xf32, #tpu.memory_space<vmem>>, vector<1x1x32xf32>
    %113 = vector.shape_cast %112 : vector<1x1x32xf32> to vector<1x32xf32>
    %114 = vector.broadcast %113 : vector<1x32xf32> to vector<224x32xf32>
    %115 = arith.mulf %111, %114 : vector<224x32xf32>
    %116 = arith.addf %110, %115 : vector<224x32xf32>
    %c32_102 = arith.constant 32 : index
    %c0_103 = arith.constant 0 : index
    %117 = vector.load %arg25[%c32_102, %c0_103] : memref<272x32xf32, #tpu.memory_space<vmem>>, vector<224x32xf32>
    %c6_104 = arith.constant 6 : index
    %c0_105 = arith.constant 0 : index
    %c0_106 = arith.constant 0 : index
    %118 = vector.load %arg10[%c6_104, %c0_105, %c0_106] : memref<9x1x32xf32, #tpu.memory_space<vmem>>, vector<1x1x32xf32>
    %119 = vector.shape_cast %118 : vector<1x1x32xf32> to vector<1x32xf32>
    %120 = vector.broadcast %119 : vector<1x32xf32> to vector<224x32xf32>
    %121 = arith.mulf %117, %120 : vector<224x32xf32>
    %122 = arith.addf %116, %121 : vector<224x32xf32>
    %c33_107 = arith.constant 33 : index
    %c0_108 = arith.constant 0 : index
    %123 = vector.load %arg25[%c33_107, %c0_108] : memref<272x32xf32, #tpu.memory_space<vmem>>, vector<224x32xf32>
    %c7_109 = arith.constant 7 : index
    %c0_110 = arith.constant 0 : index
    %c0_111 = arith.constant 0 : index
    %124 = vector.load %arg10[%c7_109, %c0_110, %c0_111] : memref<9x1x32xf32, #tpu.memory_space<vmem>>, vector<1x1x32xf32>
    %125 = vector.shape_cast %124 : vector<1x1x32xf32> to vector<1x32xf32>
    %126 = vector.broadcast %125 : vector<1x32xf32> to vector<224x32xf32>
    %127 = arith.mulf %123, %126 : vector<224x32xf32>
    %128 = arith.addf %122, %127 : vector<224x32xf32>
    %c34_112 = arith.constant 34 : index
    %c0_113 = arith.constant 0 : index
    %129 = vector.load %arg25[%c34_112, %c0_113] : memref<272x32xf32, #tpu.memory_space<vmem>>, vector<224x32xf32>
    %c8_114 = arith.constant 8 : index
    %c0_115 = arith.constant 0 : index
    %c0_116 = arith.constant 0 : index
    %130 = vector.load %arg10[%c8_114, %c0_115, %c0_116] : memref<9x1x32xf32, #tpu.memory_space<vmem>>, vector<1x1x32xf32>
    %131 = vector.shape_cast %130 : vector<1x1x32xf32> to vector<1x32xf32>
    %132 = vector.broadcast %131 : vector<1x32xf32> to vector<224x32xf32>
    %133 = arith.mulf %129, %132 : vector<224x32xf32>
    %134 = arith.addf %128, %133 : vector<224x32xf32>
    %c0_117 = arith.constant 0 : index
    %c0_118 = arith.constant 0 : index
    %135 = vector.load %arg11[%c0_117, %c0_118] : memref<1x32xf32, #tpu.memory_space<vmem>>, vector<1x32xf32>
    %136 = vector.broadcast %135 : vector<1x32xf32> to vector<224x32xf32>
    %137 = arith.mulf %134, %136 : vector<224x32xf32>
    %c0_119 = arith.constant 0 : index
    %c0_120 = arith.constant 0 : index
    %138 = vector.load %arg12[%c0_119, %c0_120] : memref<1x32xf32, #tpu.memory_space<vmem>>, vector<1x32xf32>
    %139 = vector.broadcast %138 : vector<1x32xf32> to vector<224x32xf32>
    %140 = arith.addf %137, %139 : vector<224x32xf32>
    %cst_121 = arith.constant 0.000000e+00 : f32
    %141 = vector.broadcast %cst_121 : f32 to vector<224x32xf32>
    %142 = arith.subf %141, %140 : vector<224x32xf32>
    %143 = math.exp %142 : vector<224x32xf32>
    %cst_122 = arith.constant 1.000000e+00 : f32
    %144 = vector.broadcast %cst_122 : f32 to vector<224x32xf32>
    %145 = arith.addf %144, %143 : vector<224x32xf32>
    %cst_123 = arith.constant 1.000000e+00 : f32
    %146 = vector.broadcast %cst_123 : f32 to vector<224x32xf32>
    %147 = arith.divf %146, %145 : vector<224x32xf32>
    %148 = arith.mulf %140, %147 : vector<224x32xf32>
    %149 = vector.broadcast %0 : vector<224x1xf32> to vector<224x32xf32>
    %150 = arith.mulf %148, %149 : vector<224x32xf32>
    %151 = arith.truncf %150 : vector<224x32xf32> to vector<224x32xbf16>
    %c17_124 = arith.constant 17 : index
    %c0_125 = arith.constant 0 : index
    %152 = vector.load %arg26[%c17_124, %c0_125] : memref<272x32xbf16, #tpu.memory_space<vmem>>, vector<224x32xbf16>
    tpu.vector_store %arg26[%c17_124, %c0_125], %151 {strides = array<i32>} : memref<272x32xbf16, #tpu.memory_space<vmem>>, vector<224x32xbf16>,
    %c0_126 = arith.constant 0 : index
    %c0_127 = arith.constant 0 : index
    %153 = vector.load %arg26[%c0_126, %c0_127] : memref<272x32xbf16, #tpu.memory_space<vmem>>, vector<224x32xbf16>
    %c0_128 = arith.constant 0 : index
    %c0_129 = arith.constant 0 : index
    %c0_130 = arith.constant 0 : index
    %154 = vector.load %arg13[%c0_128, %c0_129, %c0_130] : memref<9x32x32xbf16, #tpu.memory_space<vmem>>, vector<1x32x32xbf16>
    %155 = vector.shape_cast %154 : vector<1x32x32xbf16> to vector<32x32xbf16>
    %cst_131 = arith.constant dense<0.000000e+00> : vector<224x32xf32>
    %156 = tpu.matmul %153, %155, %cst_131 {dimension_numbers = #tpu.dot_dimension_numbers<[1], [0], [0], [1], [0, 0, 1, 1], [], []>} : vector<224x32xbf16>, vector<32x32xbf16>, vector<224x32xf32> -> vector<224x32xf32>
    %c1_132 = arith.constant 1 : index
    %c0_133 = arith.constant 0 : index
    %157 = vector.load %arg26[%c1_132, %c0_133] : memref<272x32xbf16, #tpu.memory_space<vmem>>, vector<224x32xbf16>
    %c1_134 = arith.constant 1 : index
    %c0_135 = arith.constant 0 : index
    %c0_136 = arith.constant 0 : index
    %158 = vector.load %arg13[%c1_134, %c0_135, %c0_136] : memref<9x32x32xbf16, #tpu.memory_space<vmem>>, vector<1x32x32xbf16>
    %159 = vector.shape_cast %158 : vector<1x32x32xbf16> to vector<32x32xbf16>
    %cst_137 = arith.constant dense<0.000000e+00> : vector<224x32xf32>
    %160 = tpu.matmul %157, %159, %cst_137 {dimension_numbers = #tpu.dot_dimension_numbers<[1], [0], [0], [1], [0, 0, 1, 1], [], []>} : vector<224x32xbf16>, vector<32x32xbf16>, vector<224x32xf32> -> vector<224x32xf32>
    %161 = arith.addf %156, %160 : vector<224x32xf32>
    %c2_138 = arith.constant 2 : index
    %c0_139 = arith.constant 0 : index
    %162 = vector.load %arg26[%c2_138, %c0_139] : memref<272x32xbf16, #tpu.memory_space<vmem>>, vector<224x32xbf16>
    %c2_140 = arith.constant 2 : index
    %c0_141 = arith.constant 0 : index
    %c0_142 = arith.constant 0 : index
    %163 = vector.load %arg13[%c2_140, %c0_141, %c0_142] : memref<9x32x32xbf16, #tpu.memory_space<vmem>>, vector<1x32x32xbf16>
    %164 = vector.shape_cast %163 : vector<1x32x32xbf16> to vector<32x32xbf16>
    %cst_143 = arith.constant dense<0.000000e+00> : vector<224x32xf32>
    %165 = tpu.matmul %162, %164, %cst_143 {dimension_numbers = #tpu.dot_dimension_numbers<[1], [0], [0], [1], [0, 0, 1, 1], [], []>} : vector<224x32xbf16>, vector<32x32xbf16>, vector<224x32xf32> -> vector<224x32xf32>
    %166 = arith.addf %161, %165 : vector<224x32xf32>
    %c16_144 = arith.constant 16 : index
    %c0_145 = arith.constant 0 : index
    %167 = vector.load %arg26[%c16_144, %c0_145] : memref<272x32xbf16, #tpu.memory_space<vmem>>, vector<224x32xbf16>
    %c3_146 = arith.constant 3 : index
    %c0_147 = arith.constant 0 : index
    %c0_148 = arith.constant 0 : index
    %168 = vector.load %arg13[%c3_146, %c0_147, %c0_148] : memref<9x32x32xbf16, #tpu.memory_space<vmem>>, vector<1x32x32xbf16>
    %169 = vector.shape_cast %168 : vector<1x32x32xbf16> to vector<32x32xbf16>
    %cst_149 = arith.constant dense<0.000000e+00> : vector<224x32xf32>
    %170 = tpu.matmul %167, %169, %cst_149 {dimension_numbers = #tpu.dot_dimension_numbers<[1], [0], [0], [1], [0, 0, 1, 1], [], []>} : vector<224x32xbf16>, vector<32x32xbf16>, vector<224x32xf32> -> vector<224x32xf32>
    %171 = arith.addf %166, %170 : vector<224x32xf32>
    %c17_150 = arith.constant 17 : index
    %c0_151 = arith.constant 0 : index
    %172 = vector.load %arg26[%c17_150, %c0_151] : memref<272x32xbf16, #tpu.memory_space<vmem>>, vector<224x32xbf16>
    %c4_152 = arith.constant 4 : index
    %c0_153 = arith.constant 0 : index
    %c0_154 = arith.constant 0 : index
    %173 = vector.load %arg13[%c4_152, %c0_153, %c0_154] : memref<9x32x32xbf16, #tpu.memory_space<vmem>>, vector<1x32x32xbf16>
    %174 = vector.shape_cast %173 : vector<1x32x32xbf16> to vector<32x32xbf16>
    %cst_155 = arith.constant dense<0.000000e+00> : vector<224x32xf32>
    %175 = tpu.matmul %172, %174, %cst_155 {dimension_numbers = #tpu.dot_dimension_numbers<[1], [0], [0], [1], [0, 0, 1, 1], [], []>} : vector<224x32xbf16>, vector<32x32xbf16>, vector<224x32xf32> -> vector<224x32xf32>
    %176 = arith.addf %171, %175 : vector<224x32xf32>
    %c18_156 = arith.constant 18 : index
    %c0_157 = arith.constant 0 : index
    %177 = vector.load %arg26[%c18_156, %c0_157] : memref<272x32xbf16, #tpu.memory_space<vmem>>, vector<224x32xbf16>
    %c5_158 = arith.constant 5 : index
    %c0_159 = arith.constant 0 : index
    %c0_160 = arith.constant 0 : index
    %178 = vector.load %arg13[%c5_158, %c0_159, %c0_160] : memref<9x32x32xbf16, #tpu.memory_space<vmem>>, vector<1x32x32xbf16>
    %179 = vector.shape_cast %178 : vector<1x32x32xbf16> to vector<32x32xbf16>
    %cst_161 = arith.constant dense<0.000000e+00> : vector<224x32xf32>
    %180 = tpu.matmul %177, %179, %cst_161 {dimension_numbers = #tpu.dot_dimension_numbers<[1], [0], [0], [1], [0, 0, 1, 1], [], []>} : vector<224x32xbf16>, vector<32x32xbf16>, vector<224x32xf32> -> vector<224x32xf32>
    %181 = arith.addf %176, %180 : vector<224x32xf32>
    %c32_162 = arith.constant 32 : index
    %c0_163 = arith.constant 0 : index
    %182 = vector.load %arg26[%c32_162, %c0_163] : memref<272x32xbf16, #tpu.memory_space<vmem>>, vector<224x32xbf16>
    %c6_164 = arith.constant 6 : index
    %c0_165 = arith.constant 0 : index
    %c0_166 = arith.constant 0 : index
    %183 = vector.load %arg13[%c6_164, %c0_165, %c0_166] : memref<9x32x32xbf16, #tpu.memory_space<vmem>>, vector<1x32x32xbf16>
    %184 = vector.shape_cast %183 : vector<1x32x32xbf16> to vector<32x32xbf16>
    %cst_167 = arith.constant dense<0.000000e+00> : vector<224x32xf32>
    %185 = tpu.matmul %182, %184, %cst_167 {dimension_numbers = #tpu.dot_dimension_numbers<[1], [0], [0], [1], [0, 0, 1, 1], [], []>} : vector<224x32xbf16>, vector<32x32xbf16>, vector<224x32xf32> -> vector<224x32xf32>
    %186 = arith.addf %181, %185 : vector<224x32xf32>
    %c33_168 = arith.constant 33 : index
    %c0_169 = arith.constant 0 : index
    %187 = vector.load %arg26[%c33_168, %c0_169] : memref<272x32xbf16, #tpu.memory_space<vmem>>, vector<224x32xbf16>
    %c7_170 = arith.constant 7 : index
    %c0_171 = arith.constant 0 : index
    %c0_172 = arith.constant 0 : index
    %188 = vector.load %arg13[%c7_170, %c0_171, %c0_172] : memref<9x32x32xbf16, #tpu.memory_space<vmem>>, vector<1x32x32xbf16>
    %189 = vector.shape_cast %188 : vector<1x32x32xbf16> to vector<32x32xbf16>
    %cst_173 = arith.constant dense<0.000000e+00> : vector<224x32xf32>
    %190 = tpu.matmul %187, %189, %cst_173 {dimension_numbers = #tpu.dot_dimension_numbers<[1], [0], [0], [1], [0, 0, 1, 1], [], []>} : vector<224x32xbf16>, vector<32x32xbf16>, vector<224x32xf32> -> vector<224x32xf32>
    %191 = arith.addf %186, %190 : vector<224x32xf32>
    %c34_174 = arith.constant 34 : index
    %c0_175 = arith.constant 0 : index
    %192 = vector.load %arg26[%c34_174, %c0_175] : memref<272x32xbf16, #tpu.memory_space<vmem>>, vector<224x32xbf16>
    %c8_176 = arith.constant 8 : index
    %c0_177 = arith.constant 0 : index
    %c0_178 = arith.constant 0 : index
    %193 = vector.load %arg13[%c8_176, %c0_177, %c0_178] : memref<9x32x32xbf16, #tpu.memory_space<vmem>>, vector<1x32x32xbf16>
    %194 = vector.shape_cast %193 : vector<1x32x32xbf16> to vector<32x32xbf16>
    %cst_179 = arith.constant dense<0.000000e+00> : vector<224x32xf32>
    %195 = tpu.matmul %192, %194, %cst_179 {dimension_numbers = #tpu.dot_dimension_numbers<[1], [0], [0], [1], [0, 0, 1, 1], [], []>} : vector<224x32xbf16>, vector<32x32xbf16>, vector<224x32xf32> -> vector<224x32xf32>
    %196 = arith.addf %191, %195 : vector<224x32xf32>
    %c0_180 = arith.constant 0 : index
    %c0_181 = arith.constant 0 : index
    %197 = vector.load %arg14[%c0_180, %c0_181] : memref<1x32xf32, #tpu.memory_space<vmem>>, vector<1x32xf32>
    %198 = vector.broadcast %197 : vector<1x32xf32> to vector<224x32xf32>
    %199 = arith.mulf %196, %198 : vector<224x32xf32>
    %c0_182 = arith.constant 0 : index
    %c0_183 = arith.constant 0 : index
    %200 = vector.load %arg15[%c0_182, %c0_183] : memref<1x32xf32, #tpu.memory_space<vmem>>, vector<1x32xf32>
    %201 = vector.broadcast %200 : vector<1x32xf32> to vector<224x32xf32>
    %202 = arith.addf %199, %201 : vector<224x32xf32>
    %cst_184 = arith.constant 0.000000e+00 : f32
    %203 = vector.broadcast %cst_184 : f32 to vector<224x32xf32>
    %204 = arith.maximumf %202, %203 : vector<224x32xf32>
    %c0_185 = arith.constant 0 : index
    %c0_186 = arith.constant 0 : index
    %205 = vector.load %arg5[%c0_185, %c0_186] : memref<160x224xbf16, #tpu.memory_space<vmem>>, vector<160x224xbf16>
    %206 = arith.truncf %204 : vector<224x32xf32> to vector<224x32xbf16>
    %cst_187 = arith.constant dense<0.000000e+00> : vector<160x32xf32>
    %207 = tpu.matmul %205, %206, %cst_187 {dimension_numbers = #tpu.dot_dimension_numbers<[1], [0], [0], [1], [0, 0, 1, 1], [], []>} : vector<160x224xbf16>, vector<224x32xbf16>, vector<160x32xf32> -> vector<160x32xf32>
    %208 = arith.truncf %207 : vector<160x32xf32> to vector<160x32xbf16>
    %c0_188 = arith.constant 0 : index
    %c0_189 = arith.constant 0 : index
    %209 = vector.load %arg27[%c0_188, %c0_189] : memref<160x32xbf16, #tpu.memory_space<vmem>>, vector<160x32xbf16>
    tpu.vector_store %arg27[%c0_188, %c0_189], %208 {strides = array<i32>} : memref<160x32xbf16, #tpu.memory_space<vmem>>, vector<160x32xbf16>,
    %c0_190 = arith.constant 0 : index
    %c0_191 = arith.constant 0 : index
    %210 = vector.load %arg27[%c0_190, %c0_191] : memref<160x32xbf16, #tpu.memory_space<vmem>>, vector<112x32xbf16>
    %c0_192 = arith.constant 0 : index
    %c0_193 = arith.constant 0 : index
    %c0_194 = arith.constant 0 : index
    %211 = vector.load %arg16[%c0_192, %c0_193, %c0_194] : memref<9x32x32xbf16, #tpu.memory_space<vmem>>, vector<1x32x32xbf16>
    %212 = vector.shape_cast %211 : vector<1x32x32xbf16> to vector<32x32xbf16>
    %cst_195 = arith.constant dense<0.000000e+00> : vector<112x32xf32>
    %213 = tpu.matmul %210, %212, %cst_195 {dimension_numbers = #tpu.dot_dimension_numbers<[1], [0], [0], [1], [0, 0, 1, 1], [], []>} : vector<112x32xbf16>, vector<32x32xbf16>, vector<112x32xf32> -> vector<112x32xf32>
    %c1_196 = arith.constant 1 : index
    %c0_197 = arith.constant 0 : index
    %214 = vector.load %arg27[%c1_196, %c0_197] : memref<160x32xbf16, #tpu.memory_space<vmem>>, vector<112x32xbf16>
    %c1_198 = arith.constant 1 : index
    %c0_199 = arith.constant 0 : index
    %c0_200 = arith.constant 0 : index
    %215 = vector.load %arg16[%c1_198, %c0_199, %c0_200] : memref<9x32x32xbf16, #tpu.memory_space<vmem>>, vector<1x32x32xbf16>
    %216 = vector.shape_cast %215 : vector<1x32x32xbf16> to vector<32x32xbf16>
    %cst_201 = arith.constant dense<0.000000e+00> : vector<112x32xf32>
    %217 = tpu.matmul %214, %216, %cst_201 {dimension_numbers = #tpu.dot_dimension_numbers<[1], [0], [0], [1], [0, 0, 1, 1], [], []>} : vector<112x32xbf16>, vector<32x32xbf16>, vector<112x32xf32> -> vector<112x32xf32>
    %218 = arith.addf %213, %217 : vector<112x32xf32>
    %c2_202 = arith.constant 2 : index
    %c0_203 = arith.constant 0 : index
    %219 = vector.load %arg27[%c2_202, %c0_203] : memref<160x32xbf16, #tpu.memory_space<vmem>>, vector<112x32xbf16>
    %c2_204 = arith.constant 2 : index
    %c0_205 = arith.constant 0 : index
    %c0_206 = arith.constant 0 : index
    %220 = vector.load %arg16[%c2_204, %c0_205, %c0_206] : memref<9x32x32xbf16, #tpu.memory_space<vmem>>, vector<1x32x32xbf16>
    %221 = vector.shape_cast %220 : vector<1x32x32xbf16> to vector<32x32xbf16>
    %cst_207 = arith.constant dense<0.000000e+00> : vector<112x32xf32>
    %222 = tpu.matmul %219, %221, %cst_207 {dimension_numbers = #tpu.dot_dimension_numbers<[1], [0], [0], [1], [0, 0, 1, 1], [], []>} : vector<112x32xbf16>, vector<32x32xbf16>, vector<112x32xf32> -> vector<112x32xf32>
    %223 = arith.addf %218, %222 : vector<112x32xf32>
    %c16_208 = arith.constant 16 : index
    %c0_209 = arith.constant 0 : index
    %224 = vector.load %arg27[%c16_208, %c0_209] : memref<160x32xbf16, #tpu.memory_space<vmem>>, vector<112x32xbf16>
    %c3_210 = arith.constant 3 : index
    %c0_211 = arith.constant 0 : index
    %c0_212 = arith.constant 0 : index
    %225 = vector.load %arg16[%c3_210, %c0_211, %c0_212] : memref<9x32x32xbf16, #tpu.memory_space<vmem>>, vector<1x32x32xbf16>
    %226 = vector.shape_cast %225 : vector<1x32x32xbf16> to vector<32x32xbf16>
    %cst_213 = arith.constant dense<0.000000e+00> : vector<112x32xf32>
    %227 = tpu.matmul %224, %226, %cst_213 {dimension_numbers = #tpu.dot_dimension_numbers<[1], [0], [0], [1], [0, 0, 1, 1], [], []>} : vector<112x32xbf16>, vector<32x32xbf16>, vector<112x32xf32> -> vector<112x32xf32>
    %228 = arith.addf %223, %227 : vector<112x32xf32>
    %c17_214 = arith.constant 17 : index
    %c0_215 = arith.constant 0 : index
    %229 = vector.load %arg27[%c17_214, %c0_215] : memref<160x32xbf16, #tpu.memory_space<vmem>>, vector<112x32xbf16>
    %c4_216 = arith.constant 4 : index
    %c0_217 = arith.constant 0 : index
    %c0_218 = arith.constant 0 : index
    %230 = vector.load %arg16[%c4_216, %c0_217, %c0_218] : memref<9x32x32xbf16, #tpu.memory_space<vmem>>, vector<1x32x32xbf16>
    %231 = vector.shape_cast %230 : vector<1x32x32xbf16> to vector<32x32xbf16>
    %cst_219 = arith.constant dense<0.000000e+00> : vector<112x32xf32>
    %232 = tpu.matmul %229, %231, %cst_219 {dimension_numbers = #tpu.dot_dimension_numbers<[1], [0], [0], [1], [0, 0, 1, 1], [], []>} : vector<112x32xbf16>, vector<32x32xbf16>, vector<112x32xf32> -> vector<112x32xf32>
    %233 = arith.addf %228, %232 : vector<112x32xf32>
    %c18_220 = arith.constant 18 : index
    %c0_221 = arith.constant 0 : index
    %234 = vector.load %arg27[%c18_220, %c0_221] : memref<160x32xbf16, #tpu.memory_space<vmem>>, vector<112x32xbf16>
    %c5_222 = arith.constant 5 : index
    %c0_223 = arith.constant 0 : index
    %c0_224 = arith.constant 0 : index
    %235 = vector.load %arg16[%c5_222, %c0_223, %c0_224] : memref<9x32x32xbf16, #tpu.memory_space<vmem>>, vector<1x32x32xbf16>
    %236 = vector.shape_cast %235 : vector<1x32x32xbf16> to vector<32x32xbf16>
    %cst_225 = arith.constant dense<0.000000e+00> : vector<112x32xf32>
    %237 = tpu.matmul %234, %236, %cst_225 {dimension_numbers = #tpu.dot_dimension_numbers<[1], [0], [0], [1], [0, 0, 1, 1], [], []>} : vector<112x32xbf16>, vector<32x32xbf16>, vector<112x32xf32> -> vector<112x32xf32>
    %238 = arith.addf %233, %237 : vector<112x32xf32>
    %c32_226 = arith.constant 32 : index
    %c0_227 = arith.constant 0 : index
    %239 = vector.load %arg27[%c32_226, %c0_227] : memref<160x32xbf16, #tpu.memory_space<vmem>>, vector<112x32xbf16>
    %c6_228 = arith.constant 6 : index
    %c0_229 = arith.constant 0 : index
    %c0_230 = arith.constant 0 : index
    %240 = vector.load %arg16[%c6_228, %c0_229, %c0_230] : memref<9x32x32xbf16, #tpu.memory_space<vmem>>, vector<1x32x32xbf16>
    %241 = vector.shape_cast %240 : vector<1x32x32xbf16> to vector<32x32xbf16>
    %cst_231 = arith.constant dense<0.000000e+00> : vector<112x32xf32>
    %242 = tpu.matmul %239, %241, %cst_231 {dimension_numbers = #tpu.dot_dimension_numbers<[1], [0], [0], [1], [0, 0, 1, 1], [], []>} : vector<112x32xbf16>, vector<32x32xbf16>, vector<112x32xf32> -> vector<112x32xf32>
    %243 = arith.addf %238, %242 : vector<112x32xf32>
    %c33_232 = arith.constant 33 : index
    %c0_233 = arith.constant 0 : index
    %244 = vector.load %arg27[%c33_232, %c0_233] : memref<160x32xbf16, #tpu.memory_space<vmem>>, vector<112x32xbf16>
    %c7_234 = arith.constant 7 : index
    %c0_235 = arith.constant 0 : index
    %c0_236 = arith.constant 0 : index
    %245 = vector.load %arg16[%c7_234, %c0_235, %c0_236] : memref<9x32x32xbf16, #tpu.memory_space<vmem>>, vector<1x32x32xbf16>
    %246 = vector.shape_cast %245 : vector<1x32x32xbf16> to vector<32x32xbf16>
    %cst_237 = arith.constant dense<0.000000e+00> : vector<112x32xf32>
    %247 = tpu.matmul %244, %246, %cst_237 {dimension_numbers = #tpu.dot_dimension_numbers<[1], [0], [0], [1], [0, 0, 1, 1], [], []>} : vector<112x32xbf16>, vector<32x32xbf16>, vector<112x32xf32> -> vector<112x32xf32>
    %248 = arith.addf %243, %247 : vector<112x32xf32>
    %c34_238 = arith.constant 34 : index
    %c0_239 = arith.constant 0 : index
    %249 = vector.load %arg27[%c34_238, %c0_239] : memref<160x32xbf16, #tpu.memory_space<vmem>>, vector<112x32xbf16>
    %c8_240 = arith.constant 8 : index
    %c0_241 = arith.constant 0 : index
    %c0_242 = arith.constant 0 : index
    %250 = vector.load %arg16[%c8_240, %c0_241, %c0_242] : memref<9x32x32xbf16, #tpu.memory_space<vmem>>, vector<1x32x32xbf16>
    %251 = vector.shape_cast %250 : vector<1x32x32xbf16> to vector<32x32xbf16>
    %cst_243 = arith.constant dense<0.000000e+00> : vector<112x32xf32>
    %252 = tpu.matmul %249, %251, %cst_243 {dimension_numbers = #tpu.dot_dimension_numbers<[1], [0], [0], [1], [0, 0, 1, 1], [], []>} : vector<112x32xbf16>, vector<32x32xbf16>, vector<112x32xf32> -> vector<112x32xf32>
    %253 = arith.addf %248, %252 : vector<112x32xf32>
    %c0_244 = arith.constant 0 : index
    %c0_245 = arith.constant 0 : index
    %254 = vector.load %arg17[%c0_244, %c0_245] : memref<1x32xf32, #tpu.memory_space<vmem>>, vector<1x32xf32>
    %255 = vector.broadcast %254 : vector<1x32xf32> to vector<112x32xf32>
    %256 = arith.addf %253, %255 : vector<112x32xf32>
    %257 = vector.broadcast %1 : vector<112x1xf32> to vector<112x32xf32>
    %258 = arith.mulf %256, %257 : vector<112x32xf32>
    %cst_246 = arith.constant dense<0.000000e+00> : vector<32xf32>
    %259 = vector.multi_reduction <add>, %258, %cst_246 [0] : vector<112x32xf32> to vector<32xf32>
    %260 = vector.shape_cast %259 : vector<32xf32> to vector<1x32xf32>
    %cst_247 = arith.constant 0.0204081628 : f32
    %261 = vector.broadcast %cst_247 : f32 to vector<1x32xf32>
    %262 = arith.mulf %260, %261 : vector<1x32xf32>
    %c0_248 = arith.constant 0 : index
    %c0_249 = arith.constant 0 : index
    %263 = vector.load %arg20[%c0_248, %c0_249] : memref<32x2xf32, #tpu.memory_space<vmem>>, vector<32x2xf32>
    %cst_250 = arith.constant dense<0.000000e+00> : vector<1x2xf32>
    %264 = tpu.matmul %262, %263, %cst_250 {dimension_numbers = #tpu.dot_dimension_numbers<[1], [0], [0], [1], [0, 0, 1, 1], [], []>} : vector<1x32xf32>, vector<32x2xf32>, vector<1x2xf32> -> vector<1x2xf32>
    %cst_251 = arith.constant 0.000000e+00 : f32
    %265 = vector.broadcast %cst_251 : f32 to vector<1x2xf32>
    %266 = arith.maximumf %264, %265 : vector<1x2xf32>
    %c0_252 = arith.constant 0 : index
    %c0_253 = arith.constant 0 : index
    %267 = vector.load %arg21[%c0_252, %c0_253] : memref<2x32xf32, #tpu.memory_space<vmem>>, vector<2x32xf32>
    %cst_254 = arith.constant dense<0.000000e+00> : vector<1x32xf32>
    %268 = tpu.matmul %266, %267, %cst_254 {dimension_numbers = #tpu.dot_dimension_numbers<[1], [0], [0], [1], [0, 0, 1, 1], [], []>} : vector<1x2xf32>, vector<2x32xf32>, vector<1x32xf32> -> vector<1x32xf32>
    %cst_255 = arith.constant 0.000000e+00 : f32
    %269 = vector.broadcast %cst_255 : f32 to vector<1x32xf32>
    %270 = arith.subf %269, %268 : vector<1x32xf32>
    %271 = math.exp %270 : vector<1x32xf32>
    %cst_256 = arith.constant 1.000000e+00 : f32
    %272 = vector.broadcast %cst_256 : f32 to vector<1x32xf32>
    %273 = arith.addf %272, %271 : vector<1x32xf32>
    %cst_257 = arith.constant 1.000000e+00 : f32
    %274 = vector.broadcast %cst_257 : f32 to vector<1x32xf32>
    %275 = arith.divf %274, %273 : vector<1x32xf32>
    %276 = vector.broadcast %275 : vector<1x32xf32> to vector<112x32xf32>
    %277 = arith.mulf %258, %276 : vector<112x32xf32>
    %c0_258 = arith.constant 0 : index
    %c0_259 = arith.constant 0 : index
    %278 = vector.load %arg6[%c0_258, %c0_259] : memref<112x32xf32, #tpu.memory_space<vmem>>, vector<112x32xf32>
    %279 = arith.mulf %277, %278 : vector<112x32xf32>
    %cst_260 = arith.constant dense<0.000000e+00> : vector<32xf32>
    %280 = vector.multi_reduction <add>, %279, %cst_260 [0] : vector<112x32xf32> to vector<32xf32>
    %281 = vector.shape_cast %280 : vector<32xf32> to vector<1x32xf32>
    %c0_261 = arith.constant 0 : index
    %c0_262 = arith.constant 0 : index
    %282 = vector.load %arg22[%c0_261, %c0_262] : memref<32x2xf32, #tpu.memory_space<vmem>>, vector<32x2xf32>
    %cst_263 = arith.constant dense<0.000000e+00> : vector<1x2xf32>
    %283 = tpu.matmul %281, %282, %cst_263 {dimension_numbers = #tpu.dot_dimension_numbers<[1], [0], [0], [1], [0, 0, 1, 1], [], []>} : vector<1x32xf32>, vector<32x2xf32>, vector<1x2xf32> -> vector<1x2xf32>
    %cst_264 = arith.constant 0.000000e+00 : f32
    %284 = vector.broadcast %cst_264 : f32 to vector<1x2xf32>
    %285 = arith.maximumf %283, %284 : vector<1x2xf32>
    %c0_265 = arith.constant 0 : index
    %c0_266 = arith.constant 0 : index
    %286 = vector.load %arg23[%c0_265, %c0_266] : memref<2x32xf32, #tpu.memory_space<vmem>>, vector<2x32xf32>
    %cst_267 = arith.constant dense<0.000000e+00> : vector<1x32xf32>
    %287 = tpu.matmul %285, %286, %cst_267 {dimension_numbers = #tpu.dot_dimension_numbers<[1], [0], [0], [1], [0, 0, 1, 1], [], []>} : vector<1x2xf32>, vector<2x32xf32>, vector<1x32xf32> -> vector<1x32xf32>
    %cst_268 = arith.constant 0.000000e+00 : f32
    %288 = vector.broadcast %cst_268 : f32 to vector<1x32xf32>
    %289 = arith.subf %288, %287 : vector<1x32xf32>
    %290 = math.exp %289 : vector<1x32xf32>
    %cst_269 = arith.constant 1.000000e+00 : f32
    %291 = vector.broadcast %cst_269 : f32 to vector<1x32xf32>
    %292 = arith.addf %291, %290 : vector<1x32xf32>
    %cst_270 = arith.constant 1.000000e+00 : f32
    %293 = vector.broadcast %cst_270 : f32 to vector<1x32xf32>
    %294 = arith.divf %293, %292 : vector<1x32xf32>
    %295 = vector.broadcast %294 : vector<1x32xf32> to vector<112x32xf32>
    %296 = arith.mulf %277, %295 : vector<112x32xf32>
    %c0_271 = arith.constant 0 : index
    %c0_272 = arith.constant 0 : index
    %c0_273 = arith.constant 0 : index
    %297 = vector.load %arg2[%c0_271, %c0_272, %c0_273] : memref<1x112x16xbf16, #tpu.memory_space<vmem>>, vector<1x112x16xbf16>
    %298 = vector.shape_cast %297 : vector<1x112x16xbf16> to vector<112x16xbf16>
    %c0_274 = arith.constant 0 : index
    %c0_275 = arith.constant 0 : index
    %299 = vector.load %arg18[%c0_274, %c0_275] : memref<16x32xbf16, #tpu.memory_space<vmem>>, vector<16x32xbf16>
    %cst_276 = arith.constant dense<0.000000e+00> : vector<112x32xf32>
    %300 = tpu.matmul %298, %299, %cst_276 {dimension_numbers = #tpu.dot_dimension_numbers<[1], [0], [0], [1], [0, 0, 1, 1], [], []>} : vector<112x16xbf16>, vector<16x32xbf16>, vector<112x32xf32> -> vector<112x32xf32>
    %c0_277 = arith.constant 0 : index
    %c0_278 = arith.constant 0 : index
    %301 = vector.load %arg19[%c0_277, %c0_278] : memref<1x32xf32, #tpu.memory_space<vmem>>, vector<1x32xf32>
    %302 = vector.broadcast %301 : vector<1x32xf32> to vector<112x32xf32>
    %303 = arith.addf %300, %302 : vector<112x32xf32>
    %304 = arith.addf %296, %303 : vector<112x32xf32>
    %305 = vector.broadcast %1 : vector<112x1xf32> to vector<112x32xf32>
    %306 = arith.mulf %304, %305 : vector<112x32xf32>
    %cst_279 = arith.constant dense<0.000000e+00> : vector<32xf32>
    %307 = vector.multi_reduction <add>, %306, %cst_279 [0] : vector<112x32xf32> to vector<32xf32>
    %308 = vector.shape_cast %307 : vector<32xf32> to vector<1x32xf32>
    %cst_280 = arith.constant 0.0204081628 : f32
    %309 = vector.broadcast %cst_280 : f32 to vector<1x32xf32>
    %310 = arith.mulf %308, %309 : vector<1x32xf32>
    %311 = vector.broadcast %310 : vector<1x32xf32> to vector<112x32xf32>
    %312 = arith.subf %304, %311 : vector<112x32xf32>
    %313 = vector.broadcast %1 : vector<112x1xf32> to vector<112x32xf32>
    %314 = arith.mulf %312, %313 : vector<112x32xf32>
    %315 = arith.mulf %314, %314 : vector<112x32xf32>
    %cst_281 = arith.constant dense<0.000000e+00> : vector<32xf32>
    %316 = vector.multi_reduction <add>, %315, %cst_281 [0] : vector<112x32xf32> to vector<32xf32>
    %317 = vector.shape_cast %316 : vector<32xf32> to vector<1x32xf32>
    %cst_282 = arith.constant 0.0204081628 : f32
    %318 = vector.broadcast %cst_282 : f32 to vector<1x32xf32>
    %319 = arith.mulf %317, %318 : vector<1x32xf32>
    %320 = vector.broadcast %310 : vector<1x32xf32> to vector<112x32xf32>
    %321 = arith.subf %304, %320 : vector<112x32xf32>
    %cst_283 = arith.constant 9.99999974E-6 : f32
    %322 = vector.broadcast %cst_283 : f32 to vector<1x32xf32>
    %323 = arith.addf %319, %322 : vector<1x32xf32>
    %324 = math.rsqrt %323 : vector<1x32xf32>
    %325 = vector.broadcast %324 : vector<1x32xf32> to vector<112x32xf32>
    %326 = arith.mulf %321, %325 : vector<112x32xf32>
    %cst_284 = arith.constant 0.000000e+00 : f32
    %327 = vector.broadcast %cst_284 : f32 to vector<112x32xf32>
    %328 = arith.maximumf %326, %327 : vector<112x32xf32>
    %c0_285 = arith.constant 0 : index
    %c0_286 = arith.constant 0 : index
    %c0_287 = arith.constant 0 : index
    %329 = vector.load %arg24[%c0_285, %c0_286, %c0_287] : memref<1x112x32xf32, #tpu.memory_space<vmem>>, vector<1x112x32xf32>
    %330 = vector.shape_cast %329 : vector<1x112x32xf32> to vector<112x32xf32>
    %331 = vector.shape_cast %328 : vector<112x32xf32> to vector<1x112x32xf32>
    tpu.vector_store %arg24[%c0_285, %c0_286, %c0_287], %331 {strides = array<i32>} : memref<1x112x32xf32, #tpu.memory_space<vmem>>, vector<1x112x32xf32>,
    return
  }
  func.func @transform_0(%arg0: i32) -> (i32, i32, i32) {
    %c0_i32 = arith.constant 0 : i32
    %c0_i32_0 = arith.constant 0 : i32
    %c0_i32_1 = arith.constant 0 : i32
    return %arg0, %c0_i32, %c0_i32_0 : i32, i32, i32
  }
  func.func @transform_1(%arg0: i32) -> (i32, i32, i32) {
    %c0_i32 = arith.constant 0 : i32
    %c0_i32_0 = arith.constant 0 : i32
    %c0_i32_1 = arith.constant 0 : i32
    return %arg0, %c0_i32, %c0_i32_0 : i32, i32, i32
  }
  func.func @transform_2(%arg0: i32) -> (i32, i32) {
    %c0_i32 = arith.constant 0 : i32
    %c0_i32_0 = arith.constant 0 : i32
    %c0_i32_1 = arith.constant 0 : i32
    return %c0_i32, %c0_i32_0 : i32, i32
  }
  func.func @transform_3(%arg0: i32) -> (i32, i32) {
    %c0_i32 = arith.constant 0 : i32
    %c0_i32_0 = arith.constant 0 : i32
    %c0_i32_1 = arith.constant 0 : i32
    return %c0_i32, %c0_i32_0 : i32, i32
  }
  func.func @transform_4(%arg0: i32) -> (i32, i32) {
    %c0_i32 = arith.constant 0 : i32
    %c0_i32_0 = arith.constant 0 : i32
    %c0_i32_1 = arith.constant 0 : i32
    return %c0_i32, %c0_i32_0 : i32, i32
  }
  func.func @transform_5(%arg0: i32) -> (i32, i32) {
    %c0_i32 = arith.constant 0 : i32
    %c0_i32_0 = arith.constant 0 : i32
    %c0_i32_1 = arith.constant 0 : i32
    return %c0_i32, %c0_i32_0 : i32, i32
  }
  func.func @transform_6(%arg0: i32) -> (i32, i32, i32) {
    %c0_i32 = arith.constant 0 : i32
    %c0_i32_0 = arith.constant 0 : i32
    %c0_i32_1 = arith.constant 0 : i32
    %c0_i32_2 = arith.constant 0 : i32
    return %c0_i32, %c0_i32_0, %c0_i32_1 : i32, i32, i32
  }
  func.func @transform_7(%arg0: i32) -> (i32, i32) {
    %c0_i32 = arith.constant 0 : i32
    %c0_i32_0 = arith.constant 0 : i32
    %c0_i32_1 = arith.constant 0 : i32
    return %c0_i32, %c0_i32_0 : i32, i32
  }
  func.func @transform_8(%arg0: i32) -> (i32, i32) {
    %c0_i32 = arith.constant 0 : i32
    %c0_i32_0 = arith.constant 0 : i32
    %c0_i32_1 = arith.constant 0 : i32
    return %c0_i32, %c0_i32_0 : i32, i32
  }
  func.func @transform_9(%arg0: i32) -> (i32, i32, i32) {
    %c0_i32 = arith.constant 0 : i32
    %c0_i32_0 = arith.constant 0 : i32
    %c0_i32_1 = arith.constant 0 : i32
    %c0_i32_2 = arith.constant 0 : i32
    return %c0_i32, %c0_i32_0, %c0_i32_1 : i32, i32, i32
  }
  func.func @transform_10(%arg0: i32) -> (i32, i32) {
    %c0_i32 = arith.constant 0 : i32
    %c0_i32_0 = arith.constant 0 : i32
    %c0_i32_1 = arith.constant 0 : i32
    return %c0_i32, %c0_i32_0 : i32, i32
  }
  func.func @transform_11(%arg0: i32) -> (i32, i32) {
    %c0_i32 = arith.constant 0 : i32
    %c0_i32_0 = arith.constant 0 : i32
    %c0_i32_1 = arith.constant 0 : i32
    return %c0_i32, %c0_i32_0 : i32, i32
  }
  func.func @transform_12(%arg0: i32) -> (i32, i32, i32) {
    %c0_i32 = arith.constant 0 : i32
    %c0_i32_0 = arith.constant 0 : i32
    %c0_i32_1 = arith.constant 0 : i32
    %c0_i32_2 = arith.constant 0 : i32
    return %c0_i32, %c0_i32_0, %c0_i32_1 : i32, i32, i32
  }
  func.func @transform_13(%arg0: i32) -> (i32, i32) {
    %c0_i32 = arith.constant 0 : i32
    %c0_i32_0 = arith.constant 0 : i32
    %c0_i32_1 = arith.constant 0 : i32
    return %c0_i32, %c0_i32_0 : i32, i32
  }
  func.func @transform_14(%arg0: i32) -> (i32, i32) {
    %c0_i32 = arith.constant 0 : i32
    %c0_i32_0 = arith.constant 0 : i32
    %c0_i32_1 = arith.constant 0 : i32
    return %c0_i32, %c0_i32_0 : i32, i32
  }
  func.func @transform_15(%arg0: i32) -> (i32, i32, i32) {
    %c0_i32 = arith.constant 0 : i32
    %c0_i32_0 = arith.constant 0 : i32
    %c0_i32_1 = arith.constant 0 : i32
    %c0_i32_2 = arith.constant 0 : i32
    return %c0_i32, %c0_i32_0, %c0_i32_1 : i32, i32, i32
  }
  func.func @transform_16(%arg0: i32) -> (i32, i32) {
    %c0_i32 = arith.constant 0 : i32
    %c0_i32_0 = arith.constant 0 : i32
    %c0_i32_1 = arith.constant 0 : i32
    return %c0_i32, %c0_i32_0 : i32, i32
  }
  func.func @transform_17(%arg0: i32) -> (i32, i32) {
    %c0_i32 = arith.constant 0 : i32
    %c0_i32_0 = arith.constant 0 : i32
    %c0_i32_1 = arith.constant 0 : i32
    return %c0_i32, %c0_i32_0 : i32, i32
  }
  func.func @transform_18(%arg0: i32) -> (i32, i32) {
    %c0_i32 = arith.constant 0 : i32
    %c0_i32_0 = arith.constant 0 : i32
    %c0_i32_1 = arith.constant 0 : i32
    return %c0_i32, %c0_i32_0 : i32, i32
  }
  func.func @transform_19(%arg0: i32) -> (i32, i32) {
    %c0_i32 = arith.constant 0 : i32
    %c0_i32_0 = arith.constant 0 : i32
    %c0_i32_1 = arith.constant 0 : i32
    return %c0_i32, %c0_i32_0 : i32, i32
  }
  func.func @transform_20(%arg0: i32) -> (i32, i32) {
    %c0_i32 = arith.constant 0 : i32
    %c0_i32_0 = arith.constant 0 : i32
    %c0_i32_1 = arith.constant 0 : i32
    return %c0_i32, %c0_i32_0 : i32, i32
  }
  func.func @transform_21(%arg0: i32) -> (i32, i32) {
    %c0_i32 = arith.constant 0 : i32
    %c0_i32_0 = arith.constant 0 : i32
    %c0_i32_1 = arith.constant 0 : i32
    return %c0_i32, %c0_i32_0 : i32, i32
  }
  func.func @transform_22(%arg0: i32) -> (i32, i32) {
    %c0_i32 = arith.constant 0 : i32
    %c0_i32_0 = arith.constant 0 : i32
    %c0_i32_1 = arith.constant 0 : i32
    return %c0_i32, %c0_i32_0 : i32, i32
  }
  func.func @transform_23(%arg0: i32) -> (i32, i32, i32) {
    %c0_i32 = arith.constant 0 : i32
    %c0_i32_0 = arith.constant 0 : i32
    %c0_i32_1 = arith.constant 0 : i32
    return %arg0, %c0_i32, %c0_i32_0 : i32, i32, i32
  }
}

</mosaic_0001>

<bundles_post_ra>
// kernel: anti_aliasing_block_forward.1
= control target key start
LH: loop header
LB: loop body
LE: loop exit
PB: predicated region body
PF: predicated region fallthrough
CT: control target
= control target key end

     0   :  { %s20077_s0 = inlined_call_operand.vmem [shape: bf16[2,272,16], index: 0, kind: input, shape index: {}]   ;;  %s20078_s1 = inlined_call_operand.vmem [shape: bf16[2,112,16], index: 1, kind: input, shape index: {}]   ;;  %s20079_s2 = inlined_call_operand.vmem [shape: f32[224,1], index: 2, kind: input, shape index: {}]   ;;  %s20080_s3 = inlined_call_operand.vmem [shape: f32[112,1], index: 3, kind: input, shape index: {}]   ;;  %s20081_s4 = inlined_call_operand.vmem [shape: bf16[160,224], index: 4, kind: input, shape index: {}]   ;;  %s20082_s5 = inlined_call_operand.vmem [shape: f32[112,32], index: 5, kind: input, shape index: {}]   ;;  %s20083_s6 = inlined_call_operand.vmem [shape: bf16[9,16,32], index: 6, kind: input, shape index: {}]   ;;  %s20084_s7 = inlined_call_operand.vmem [shape: f32[1,32], index: 7, kind: input, shape index: {}]   ;;  %s20085_s8 = inlined_call_operand.vmem [shape: f32[1,32], index: 8, kind: input, shape index: {}]   ;;  %s20086_s9 = inlined_call_operand.vmem [shape: f32[9,1,32], index: 9, kind: input, shape index: {}]   ;;  %s20087_s10 = inlined_call_operand.vmem [shape: f32[1,32], index: 10, kind: input, shape index: {}]   ;;  %s20088_s11 = inlined_call_operand.vmem [shape: f32[1,32], index: 11, kind: input, shape index: {}]   ;;  %s20089_s12 = inlined_call_operand.vmem [shape: bf16[9,32,32], index: 12, kind: input, shape index: {}]   ;;  %s20090_s13 = inlined_call_operand.vmem [shape: f32[1,32], index: 13, kind: input, shape index: {}]   ;;  %s20091_s14 = inlined_call_operand.vmem [shape: f32[1,32], index: 14, kind: input, shape index: {}]   ;;  %s20092_s15 = inlined_call_operand.vmem [shape: bf16[9,32,32], index: 15, kind: input, shape index: {}]   ;;  %s20093_s16 = inlined_call_operand.vmem [shape: f32[1,32], index: 16, kind: input, shape index: {}]   ;;  %s20094_s17 = inlined_call_operand.vmem [shape: bf16[16,32], index: 17, kind: input, shape index: {}]   ;;  %s20095_s18 = inlined_call_operand.vmem [shape: f32[1,32], index: 18, kind: input, shape index: {}]   ;;  %s20096_s19 = inlined_call_operand.vmem [shape: f32[32,2], index: 19, kind: input, shape index: {}]   ;;  %s20097_s20 = inlined_call_operand.vmem [shape: f32[2,32], index: 20, kind: input, shape index: {}]   ;;  %s20098_s21 = inlined_call_operand.vmem [shape: f32[32,2], index: 21, kind: input, shape index: {}]   ;;  %s20099_s22 = inlined_call_operand.vmem [shape: f32[2,32], index: 22, kind: input, shape index: {}]   ;;  %s20100_s23 = inlined_call_operand.vmem [shape: f32[2,112,32], index: 23, kind: output, shape index: {}]  }
   0x1   :  { %20192 = sst [smem:[#allocation57_spill]] %s20077_s0 }
   0x2   :  { %20193 = sst [smem:[#allocation58_spill]] %s20078_s1 }
   0x3   :  { %20194 = sst [smem:[#allocation59_spill]] %s20079_s2 }
   0x4   :  { %20195 = sst [smem:[#allocation60_spill]] %s20080_s3 }
   0x5   :  { %20196 = sst [smem:[#allocation61_spill]] %s20081_s4  ;;  %s14451_s4 = smov 0  }
   0x6   :  { %20197 = sst [smem:[#allocation62_spill]] %s20082_s5 }
   0x7   :  { %20198 = sst [smem:[#allocation63_spill]] %s20083_s6 }
   0x8   :  { %20199 = sst [smem:[#allocation64_spill]] %s20084_s7 }
   0x9 LB: > { %s11663_s30 = sadd.s32 4294967295, %s14326_s4   ;;  %p11667_p0 = scmp.ge.s32.totalorder %s14326_s4, 1  ;;  %s14326_s4 = sphi %s14451_s4, %s33_s4  }
   0xa   : > { %p647_p1 = scmp.lt.s32.totalorder %s14326_s4, 3 }
   0xc   : > { %p648_p2 = pnand %p11667_p0, %p647_p1 }
   0xe   : > { %651 = sbr.rel (%p648_p2) target bundleno = 3055 (0xbef), region = 112 }
  0x13   : > { %s20200_s5 = sld [smem:[#allocation63_spill]]  ;;  %p716_p3 = scmp.lt.s32.totalorder %s11663_s30, 1  ;;  %vm899_vm0 = vsmask.f32 7424  ;;  %vm1022_vm1 = vcmask 130048   ;;  %vm1396_vm2 = vcmask 1046528  }
  0x14   : > { %s20201_s29 = sld [smem:[#allocation57_spill]]  ;;  %vm783_vm3 = vcmask 257024   ;;  %vm774_vm4 = vcmask 261120   ;;  %vm5200_vm5 = vsmask.f32 256  ;;  %vm5516_vm10 = vcmask 253952  }
  0x15   : > { %s20604_s30 = smov (!%p716_p3, %s11663_s30), 1  ;;  %s20202_s1 = sld [smem:[#allocation59_spill]]  ;;  %vm5201_vm6 = vsmask.f32 4368  ;;  %vm5484_vm7 = vsmask.f32 7938  ;;  %vm17624_vm11 = vmand %vm5516_vm10, %vm5200_vm5 }
  0x16   : > { %s13770_s2 = smul.u32 136, %s20604_s30  ;;  %s20264_s27 = sld [smem:[#allocation64_spill]]  ;;  %vm16973_vm8 = vmor %vm5200_vm5, %vm5201_vm6  ;;  %vm8709_vm12 = vcmask 785408   ;;  %vm14330_vm13 = vmmov 0   ;;  %vm10902_vm14 = vcmask 1041408   ;;  %vm10898_vm15 = vcmask 15360  }
  0x17   : > { %vm16985_vm9 = vmand %vm783_vm3, %vm5484_vm7  ;;  %s20538_s25 = sld [smem:[#allocation61_spill]]  ;;  %s13771_s28 = smul.u32 56, %s20604_s30 }
  0x18   : > { %s20602_s26 = sld [smem:[#allocation58_spill]]  ;;  %s13772_s6 = smul.u32 112, %s20604_s30 }
  0x19   : > { %v13786_v0 = vld [vmem:[%s20200_s5 + $0x8] sm:$0xff]   ;;  %v13790_v1 = vld [vmem:[%s20200_s5] sm:$0xff]   ;;  %v13804_v2 = vld [vmem:[%s20200_s5 + $0x18] sm:$0xff]  }
  0x1a   : > { %12860 = vmatprep.subr.bf16.mxu0 %v13786_v0  ;;  %13768 = vmatprep.subr.bf16.mxu1 %v13790_v1  ;;  %s14474_s3 = scalar_lea.vmem %s20201_s29, %s13770_s2  ;;  %v14509_v24 = vld [vmem:[%s20200_s5 + $0x10] sm:$0xff]   ;;  %s20203_s29 = sld [smem:[#allocation60_spill]] }
  0x1b   : > { %12861 = vmatpush3.bf16.msra.mxu0 %v13786_v0  ;;  %13769 = vmatpush3.bf16.msra.mxu1 %v13790_v1  ;;  %v792_v3 = vld [vmem:[%s14474_s3] sm:$0xf]  ;;  %v14478_v4 = vld [vmem:[%s14474_s3 + $0x4] sm:$0xf]  ;;  %v14484_v6 = vld [vmem:[%s14474_s3 + $0x8] sm:$0xff]   ;;  %s20042_s30 = scalar_lea.vmem %s20100_s23, %s13772_s6 }
  0x1c   : > { %12890 = vmatprep.subr.bf16.mxu0 %v13790_v1  ;;  %12950 = vmatprep.subr.bf16.mxu1 %v13804_v2  ;;  %v14481_v5 = vcombine.low %v792_v3, %v14478_v4  ;;  %v14487_v7 = vld [vmem:[%s14474_s3 + $0x10] sm:$0xff]   ;;  %v908_v10 = vshll.u32 %v14484_v6, 16  ;;  %v912_v11 = vshrl.u32 %v14484_v6, 16  ;;  %v14495_v13 = vld [vmem:[%s14474_s3 + $0x18] sm:$0xff]   ;;  %v14499_v15 = vld [vmem:[%s14474_s3 + $0x20] sm:$0xff]   ;;  %v1398_v59 = vrot.slane %v14484_v6, 1 }
  0x1d   : > { %v916_v12 = vshll.u32 %v14487_v7, 16  ;;  %v920_v14 = vshrl.u32 %v14487_v7, 16  ;;  %v924_v19 = vshll.u32 %v14495_v13, 16  ;;  %v932_v22 = vshll.u32 %v14499_v15, 16  ;;  %v14504_v23 = vld [vmem:[%s14474_s3 + $0x28] sm:$0xff]   ;;  %v14514_v29 = vld [vmem:[%s14474_s3 + $0x30] sm:$0xff]  }
  0x1e   : > { %v901_v8 = vshrl.u32 %v14481_v5, 16  ;;  %v903_v9 = vshll.u32 %v14481_v5, 16  ;;  %v910_v17 = vrot.slane %v908_v10, 1  ;;  %v928_v27 = vshrl.u32 %v14495_v13, 16  ;;  %v14520_v33 = vld [vmem:[%s14474_s3 + $0x38] sm:$0xff]   ;;  %12904 = vmatprep.mubr.msk.bf16.mxu1 %vm1022_vm1, %v14514_v29  ;;  %v14528_v36 = vld [vmem:[%s14474_s3 + $0x40] sm:$0xff]   ;;  %s725_s2 = scalar_lea.vmem %s20602_s26, %s13771_s28 }
  0x1f   : > { %v918_v18 = vrot.slane %v916_v12, 1  ;;  %v926_v26 = vrot.slane %v924_v19, 1  ;;  %v936_v28 = vshrl.u32 %v14499_v15, 16  ;;  %v940_v32 = vshll.u32 %v14504_v23, 16  ;;  %12905 = vmatmul.mubr.msk.bf16.vlgmr.msra.gmra.mxu1 %vm1022_vm1, %v14520_v33  ;;  %v14540_v43 = vld [vmem:[%s14474_s3 + $0x48] sm:$0xff]   ;;  %v14547_v48 = vld [vmem:[%s14474_s3 + $0x50] sm:$0xff]  }
  0x20   : > { %v905_v16 = vrot.slane %v903_v9, 1  ;;  %v914_v21 = vor.u32 %v912_v11, %v910_v17  ;;  %v934_v35 = vrot.slane %v932_v22, 1  ;;  %12908 = vmatprep.mubr.msk.bf16.mxu1 %vm1022_vm1, %v14528_v36  ;;  %12951 = vmatpush3.bf16.msra.mxu1 %v13804_v2  ;;  %v944_v40 = vshrl.u32 %v14504_v23, 16  ;;  %v1389_v53 = vld [vmem:[%s14474_s3] sm:$0xe]  ;;  %v14558_v55 = vld [vmem:[%s14474_s3 + $0x58] sm:$0xff]  }
  0x21   : > { %v922_v25 = vor.u32 %v920_v14, %v918_v18  ;;  %v930_v37 = vor.u32 %v928_v27, %v926_v26  ;;  %v942_v39 = vrot.slane %v940_v32, 1  ;;  %v948_v41 = vshll.u32 %v14514_v29, 16  ;;  %v13800_v11 = vld [vmem:[%s14474_s3 + $0x60] sm:$0xff]  }
  0x22   : > { %v906_v20 = vor.u32 %v905_v16, %v901_v8  ;;  %v919_v31 = vsel %vm899_vm0, %v914_v21, %v918_v18  ;;  %v938_v38 = vor.u32 %v936_v28, %v934_v35  ;;  %v952_v45 = vshrl.u32 %v14514_v29, 16  ;;  %v13802_v18 = vld [vmem:[%s14474_s3 + $0x70] ss:$0 sps:$4 sm:$0x11]  }
  0x23   : > { %v927_v34 = vsel %vm899_vm0, %v922_v25, %v926_v26  ;;  %v935_v42 = vsel %vm899_vm0, %v930_v37, %v934_v35  ;;  %v956_v46 = vshll.u32 %v14520_v33, 16  ;;  %v964_v47 = vshll.u32 %v14528_v36, 16  ;;  %v13801_v26 = vld [vmem:[%s14474_s3 + $0x68] sm:$0xff]  }
  0x24   : > { %v911_v30 = vsel %vm899_vm0, %v906_v20, %v910_v17  ;;  %v943_v44 = vsel %vm899_vm0, %v938_v38, %v942_v39  ;;  %v946_v49 = vor.u32 %v944_v40, %v942_v39  ;;  %v950_v50 = vrot.slane %v948_v41, 1  ;;  %v13821_v41 = vld [vmem:[%s20200_s5 + $0x28] sm:$0xff]  }
  0x25   : > { %12862 = vmatprep.mubr.msk.bf16.mxu0 %vm1022_vm1, %v911_v30  ;;  %v960_v51 = vshrl.u32 %v14520_v33, 16  ;;  %v968_v52 = vshrl.u32 %v14528_v36, 16  ;;  %v972_v54 = vshll.u32 %v14540_v43, 16  ;;  %v958_v57 = vrot.slane %v956_v46, 1  ;;  %13010 = vmatprep.subr.bf16.mxu1 %v13821_v41 }
  0x26   : > { %12863 = vmatmul.mubr.msk.bf16.vlgmr.msra.gmra.mxu0 %vm1022_vm1, %v919_v31  ;;  %v954_v56 = vor.u32 %v952_v45, %v950_v50  ;;  %v11720_v58 = vcombine.low %v1389_v53, %v14478_v4  ;;  %v966_v60 = vrot.slane %v964_v47, 1  ;;  %v1400_v61 = vrot.slane %v14487_v7, 1  ;;  %v13808_v47 = vld [vmem:[%s14474_s3 + $0x10] sm:$0xff]  }
  0x27   : > { %12891 = vmatpush3.bf16.msra.mxu0 %v13790_v1  ;;  %12866 = vmatprep.mubr.msk.bf16.mxu0 %vm1022_vm1, %v927_v34  ;;  %v951_v62 = vsel %vm899_vm0, %v946_v49, %v950_v50  ;;  %v976_v63 = vshrl.u32 %v14540_v43, 16  ;;  %v980_v0 = vshll.u32 %v14547_v48, 16  ;;  %v974_v2 = vrot.slane %v972_v54, 1  ;;  %v13809_v50 = vld [vmem:[%s14474_s3 + $0x18] sm:$0xff]  }
  0x28   : > { %12920 = vmatprep.subr.bf16.mxu0 %v14509_v24  ;;  %12909 = vmatmul.mubr.msk.bf16.gmra.mxu1 %vm1022_vm1, %v14540_v43  ;;  %v1397_v1 = vrot.slane %v11720_v58, 1  ;;  %v984_v3 = vshrl.u32 %v14547_v48, 16  ;;  %v988_v8 = vshll.u32 %v14558_v55, 16  ;;  %v14573_v4 = vsel %vm1396_vm2, %v1398_v59, %v1400_v61  ;;  %v13810_v58 = vld [vmem:[%s14474_s3 + $0x20] sm:$0xff]  }
  0x29   : > { %12912 = vmatprep.mubr.msk.bf16.mxu1 %vm1022_vm1, %v14547_v48  ;;  %v959_v9 = vsel %vm899_vm0, %v954_v56, %v958_v57  ;;  %v1408_v12 = vrot.slane %v14514_v29, 1  ;;  %v1410_v14 = vrot.slane %v14520_v33, 1  ;;  %v1412_v16 = vrot.slane %v14528_v36, 1  ;;  %v13807_v33 = vld [vmem:[%s14474_s3 + $0x8] sm:$0xff]  }
  0x2a   : > { %v14577_v10 = vsel %vm1396_vm2, %v1397_v1, %v1398_v59  ;;  %v962_v17 = vor.u32 %v960_v51, %v958_v57  ;;  %v1414_v21 = vrot.slane %v14540_v43, 1  ;;  %v1416_v22 = vrot.slane %v14547_v48, 1 }
  0x2b   : > { %v14592_v19 = vsel %vm1396_vm2, %v1408_v12, %v1410_v14  ;;  %v14595_v20 = vsel %vm1396_vm2, %v1410_v14, %v1412_v16  ;;  %v970_v25 = vor.u32 %v968_v52, %v966_v60  ;;  %v1418_v30 = vrot.slane %v14558_v55, 1  ;;  %v13806_v14 = vld [vmem:[%s20200_s5 + $0x20] sm:$0xff]  }
  0x2c   : > { %v14601_v27 = vsel %vm1396_vm2, %v1412_v16, %v1414_v21  ;;  %v14604_v28 = vsel %vm1396_vm2, %v1414_v21, %v1416_v22  ;;  %v1420_v31 = vrot.slane %v13800_v11, 1  ;;  %v967_v32 = vsel %vm899_vm0, %v962_v17, %v966_v60  ;;  %v13815_v16 = vld [vmem:[%s14474_s3 + $0x48] sm:$0xff]   ;;  %v13816_v17 = vld [vmem:[%s14474_s3 + $0x50] sm:$0xff]  }
  0x2d   : > { %v14610_v34 = vsel %vm1396_vm2, %v1416_v22, %v1418_v30  ;;  %v1422_v36 = vrot.slane %v13801_v26, 1  ;;  %v1424_v37 = vrot.slane %v13802_v18, 1  ;;  %v975_v38 = vsel %vm899_vm0, %v970_v25, %v974_v2  ;;  %v13819_v21 = vld [vmem:[%s14474_s3 + $0x68] sm:$0xff]  }
  0x2e   : > { %12867 = vmatmul.mubr.msk.bf16.gmra.mxu0 %vm1022_vm1, %v935_v42  ;;  %v14613_v35 = vsel %vm1396_vm2, %v1418_v30, %v1420_v31  ;;  %v982_v42 = vrot.slane %v980_v0, 1  ;;  %v978_v43 = vor.u32 %v976_v63, %v974_v2  ;;  %v990_v45 = vrot.slane %v988_v8, 1  ;;  %v13811_v63 = vld [vmem:[%s14474_s3 + $0x28] sm:$0xff]   ;;  %v13813_v8 = vld [vmem:[%s14474_s3 + $0x38] sm:$0xff]   ;;  %v14692_v30 = vld [vmem:[%s14474_s3 + $0x10] sm:$0xff]  }
  0x2f   : > { %12870 = vmatprep.mubr.msk.bf16.mxu0 %vm1022_vm1, %v943_v44  ;;  %v14617_v39 = vsel %vm1396_vm2, %v1420_v31, %v1422_v36  ;;  %v14620_v40 = vsel %vm1396_vm2, %v1422_v36, %v1424_v37  ;;  %v996_v46 = vshll.u32 %v13800_v11, 16  ;;  %v992_v49 = vshrl.u32 %v14558_v55, 16  ;;  %v14681_v22 = vld [vmem:[%s14474_s3 + $0xc] sm:$0xf]  ;;  %v13820_v31 = vld [vmem:[%s14474_s3 + $0x70] sm:$0xff]   ;;  %v14697_v36 = vld [vmem:[%s14474_s3 + $0x18] sm:$0xff]  }
  0x30   : > { %12913 = vmatmul.mubr.msk.bf16.gmra.mxu1 %vm1022_vm1, %v14558_v55  ;;  %v986_v44 = vor.u32 %v984_v3, %v982_v42  ;;  %v983_v48 = vsel %vm899_vm0, %v978_v43, %v982_v42  ;;  %v1000_v52 = vshrl.u32 %v13800_v11, 16  ;;  %v1004_v53 = vshll.u32 %v13801_v26, 16  ;;  %v13812_v3 = vld [vmem:[%s14474_s3 + $0x30] sm:$0xff]  }
  0x31   : > { %12916 = vmatprep.mubr.msk.bf16.mxu1 %vm1022_vm1, %v13800_v11  ;;  %v998_v54 = vrot.slane %v996_v46, 1  ;;  %v994_v56 = vor.u32 %v992_v49, %v990_v45  ;;  %v1008_v60 = vshrl.u32 %v13801_v26, 16  ;;  %v13814_v11 = vld [vmem:[%s14474_s3 + $0x40] sm:$0xff]   ;;  %v14702_v37 = vld [vmem:[%s20200_s5 + $0x30] sm:$0xff]  }
  0x32   : > { %v991_v51 = vsel %vm899_vm0, %v986_v44, %v990_v45  ;;  %v1006_v55 = vrot.slane %v1004_v53, 1  ;;  %v14729_v45 = vld [vmem:[%s14474_s3 + $0x30] sm:$0xff]  }
  0x33   : > { %v1002_v57 = vor.u32 %v1000_v52, %v998_v54  ;;  %v999_v59 = vsel %vm899_vm0, %v994_v56, %v998_v54  ;;  %v14746_v52 = vld [vmem:[%s14474_s3 + $0x40] sm:$0xff]   ;;  %v14757_v54 = vld [vmem:[%s14474_s3 + $0x48] sm:$0xff]  }
  0x34   : > { %v1010_v1 = vor.u32 %v1008_v60, %v1006_v55 }
  0x35   : > { %v1007_v0 = vsel %vm899_vm0, %v1002_v57, %v1006_v55  ;;  %v14761_v57 = vld [vmem:[%s14474_s3 + $0x50] sm:$0xff]  }
  0x36   : > { %12871 = vmatmul.mubr.msk.bf16.gmra.mxu0 %vm1022_vm1, %v951_v62  ;;  %v1012_v62 = vshll.u32 %v13802_v18, 16  ;;  %v2411_v18 = vld [vmem:[%s14474_s3 + $0x8] sm:$0xe]  ;;  %v2435_v55 = vrot.slane %v14761_v57, 1 }
  0x37   : > { %12874 = vmatprep.mubr.msk.bf16.mxu0 %vm1022_vm1, %v959_v9  ;;  %v11801_v25 = vcombine.low %v2411_v18, %v14681_v22 }
  0x38   : > { %12917 = vmatmul.mubr.msk.bf16.gmra.mxu1 %vm1022_vm1, %v13801_v26  ;;  %v1014_v2 = vrot.slane %v1012_v62, 1  ;;  %v1402_v26 = vrot.slane %v14495_v13, 1  ;;  %v14776_v62 = vld [vmem:[%s14474_s3 + $0x58] sm:$0xff]  }
  0x39   : > { %12952 = vmatprep.mubr.msk.bf16.mxu1 %vm1022_vm1, %v13807_v33  ;;  %v2419_v33 = vrot.slane %v14692_v30, 1 }
  0x3a   : > { %v1015_v9 = vsel %vm899_vm0, %v1010_v1, %v1014_v2  ;;  %v3432_v1 = vld [vmem:[%s14474_s3 + $0x10] sm:$0xe] }
  0x3e   : > { %12875 = vmatmul.mubr.msk.bf16.gmra.mxu0 %vm1022_vm1, %v967_v32  ;;  %v2418_v32 = vrot.slane %v11801_v25, 1 }
  0x3f   : > { %12878 = vmatprep.mubr.msk.bf16.mxu0 %vm1022_vm1, %v975_v38  ;;  %v14709_v38 = vld [vmem:[%s14474_s3 + $0x20] sm:$0xff]  }
  0x40   : > { %12953 = vmatmul.mubr.msk.bf16.vlgmr.msra.gmra.mxu1 %vm1022_vm1, %v13808_v47  ;;  %v2420_v42 = vsel %vm1396_vm2, %v2418_v32, %v2419_v33  ;;  %v2427_v47 = vrot.slane %v14729_v45, 1 }
  0x41   : > { %12956 = vmatprep.mubr.msk.bf16.mxu1 %vm1022_vm1, %v13809_v50  ;;  %13011 = vmatpush3.bf16.msra.mxu1 %v13821_v41  ;;  %v1406_v41 = vrot.slane %v14504_v23, 1  ;;  %v14742_v50 = vld [vmem:[%s14474_s3 + $0x38] sm:$0xff]  }
  0x42   : > { %v2429_v29 = vrot.slane %v14742_v50, 1 }
  0x44   : > { %v2430_v53 = vsel %vm1396_vm2, %v2427_v47, %v2429_v29 }
  0x46   : > { %12879 = vmatmul.mubr.msk.bf16.gmra.mxu0 %vm1022_vm1, %v983_v48  ;;  %v1409_v48 = vsel %vm1396_vm2, %v1406_v41, %v1408_v12  ;;  %v2431_v12 = vrot.slane %v14746_v52, 1 }
  0x47   : > { %12882 = vmatprep.mubr.msk.bf16.mxu0 %vm1022_vm1, %v991_v51 }
  0x48   : > { %12957 = vmatmul.mubr.msk.bf16.gmra.mxu1 %vm1022_vm1, %v13810_v58  ;;  %v2432_v56 = vsel %vm1396_vm2, %v2429_v29, %v2431_v12  ;;  %v1969_v58 = vld [vmem:[%s14474_s3 + $0x8] sm:$0xf] }
  0x49   : > { %12960 = vmatprep.mubr.msk.bf16.mxu1 %vm1022_vm1, %v13811_v63  ;;  %v2437_v63 = vrot.slane %v14776_v62, 1 }
  0x4e   : > { %12883 = vmatmul.mubr.msk.bf16.gmra.mxu0 %vm1022_vm1, %v999_v59 }
  0x4f   : > { %12886 = vmatprep.mubr.msk.bf16.mxu0 %vm1022_vm1, %v1007_v0  ;;  %v2991_v0 = vld [vmem:[%s14474_s3 + $0x14] sm:$0xf] }
  0x50   : > { %12961 = vmatmul.mubr.msk.bf16.gmra.mxu1 %vm1022_vm1, %v13812_v3 }
  0x51   : > { %12964 = vmatprep.mubr.msk.bf16.mxu1 %vm1022_vm1, %v13813_v8  ;;  %v14792_v8 = vld [vmem:[%s14474_s3 + $0x18] sm:$0xff]  }
  0x56   : > { %12887 = vmatmul.mubr.msk.bf16.gmra.mxu0 %vm1022_vm1, %v1015_v9  ;;  %v14795_v9 = vld [vmem:[%s14474_s3 + $0x20] sm:$0xff]  }
  0x57   : > { %12892 = vmatprep.mubr.msk.bf16.mxu0 %vm1022_vm1, %v14481_v5  ;;  %v13839_v5 = vld [vmem:[%s20200_s5 + $0x38] sm:$0xff]  }
  0x58   : > { %12965 = vmatmul.mubr.msk.bf16.gmra.mxu1 %vm1022_vm1, %v13814_v11  ;;  %13070 = vmatprep.subr.bf16.mxu1 %v13839_v5  ;;  %v2990_v11 = vld [vmem:[%s14474_s3 + $0x10] sm:$0xf] }
  0x59   : > { %12968 = vmatprep.mubr.msk.bf16.mxu1 %vm1022_vm1, %v13815_v16  ;;  %v11850_v25 = vcombine.low %v2990_v11, %v2991_v0 }
  0x5e   : > { %12893 = vmatmul.mubr.msk.bf16.vlgmr.msra.gmra.mxu0 %vm1022_vm1, %v14484_v6  ;;  %v13817_v6 = vld [vmem:[%s14474_s3 + $0x58] sm:$0xff]  }
  0x5f   : > { %12921 = vmatpush3.bf16.msra.mxu0 %v14509_v24  ;;  %12896 = vmatprep.mubr.msk.bf16.mxu0 %vm1022_vm1, %v14487_v7  ;;  %v13818_v24 = vld [vmem:[%s14474_s3 + $0x60] sm:$0xff]   ;;  %v2421_v7 = vrot.slane %v14697_v36, 1 }
  0x60   : > { %12980 = vmatprep.subr.bf16.mxu0 %v13806_v14  ;;  %12969 = vmatmul.mubr.msk.bf16.gmra.mxu1 %vm1022_vm1, %v13816_v17  ;;  %v3442_v17 = vrot.slane %v14795_v9, 1 }
  0x61   : > { %12972 = vmatprep.mubr.msk.bf16.mxu1 %vm1022_vm1, %v13817_v6 }
  0x66   : > { %12897 = vmatmul.mubr.msk.bf16.gmra.mxu0 %vm1022_vm1, %v14495_v13  ;;  %v1403_v13 = vsel %vm1396_vm2, %v1400_v61, %v1402_v26  ;;  %v2423_v61 = vrot.slane %v14709_v38, 1 }
  0x67   : > { %12900 = vmatprep.mubr.msk.bf16.mxu0 %vm1022_vm1, %v14499_v15 }
  0x68   : > { %12973 = vmatmul.mubr.msk.bf16.gmra.mxu1 %vm1022_vm1, %v13818_v24  ;;  %v2424_v44 = vsel %vm1396_vm2, %v2421_v7, %v2423_v61  ;;  %v2082_v24 = vshll.u32 %v14692_v30, 16 }
  0x69   : > { %12976 = vmatprep.mubr.msk.bf16.mxu1 %vm1022_vm1, %v13819_v21 }
  0x6e   : > { %12901 = vmatmul.mubr.msk.bf16.gmra.mxu0 %vm1022_vm1, %v14504_v23  ;;  %v2422_v23 = vsel %vm1396_vm2, %v2419_v33, %v2421_v7  ;;  %v2086_v7 = vshrl.u32 %v14692_v30, 16  ;;  %v14842_v30 = vld [vmem:[%s14474_s3 + $0x78] ss:$0 sps:$4 sm:$0x11]  }
  0x6f   : > { %12922 = vmatprep.mubr.msk.bf16.mxu0 %vm1022_vm1, %v14577_v10  ;;  %v1404_v10 = vrot.slane %v14499_v15, 1 }
  0x70   : > { %12977 = vmatmul.mubr.msk.bf16.gmra.mxu1 %vm1022_vm1, %v13820_v31  ;;  %v14816_v31 = vld [vmem:[%s14474_s3 + $0x70] sm:$0xff]  }
  0x71   : > { %13012 = vmatprep.mubr.msk.bf16.mxu1 %vm1022_vm1, %v2420_v42  ;;  %v1405_v15 = vsel %vm1396_vm2, %v1402_v26, %v1404_v10  ;;  %v1407_v43 = vsel %vm1396_vm2, %v1404_v10, %v1406_v41  ;;  %v2443_v10 = vrot.slane %v14816_v31, 1  ;;  %v14824_v41 = vld [vmem:[%s14474_s3 + $0x28] sm:$0xff]   ;;  %v3098_v42 = vshll.u32 %v11850_v25, 16 }
  0x76   : > { %12923 = vmatmul.mubr.msk.bf16.vlgmr.msra.gmra.mxu0 %vm1022_vm1, %v14573_v4  ;;  %v14724_v4 = vld [vmem:[%s14474_s3 + $0x28] sm:$0xff]  }
  0x77   : > { %12981 = vmatpush3.bf16.msra.mxu0 %v13806_v14  ;;  %12926 = vmatprep.mubr.msk.bf16.mxu0 %vm1022_vm1, %v1403_v13  ;;  %v2425_v46 = vrot.slane %v14724_v4, 1  ;;  %v2084_v13 = vrot.slane %v2082_v24, 1 }
  0x78   : > { %13040 = vmatprep.subr.bf16.mxu0 %v14702_v37  ;;  %13013 = vmatmul.mubr.msk.bf16.vlgmr.msra.gmra.mxu1 %vm1022_vm1, %v2422_v23 }
  0x79   : > { %13016 = vmatprep.mubr.msk.bf16.mxu1 %vm1022_vm1, %v2424_v44  ;;  %13071 = vmatpush3.bf16.msra.mxu1 %v13839_v5  ;;  %v2426_v49 = vsel %vm1396_vm2, %v2423_v61, %v2425_v46  ;;  %v2428_v51 = vsel %vm1396_vm2, %v2425_v46, %v2427_v47  ;;  %v2438_v5 = vsel %vm1396_vm2, %v2435_v55, %v2437_v63  ;;  %v2090_v61 = vshll.u32 %v14697_v36, 16 }
  0x7a   : > { %v2098_v46 = vshll.u32 %v14709_v38, 16 }
  0x7e   : > { %12927 = vmatmul.mubr.msk.bf16.gmra.mxu0 %vm1022_vm1, %v1405_v15  ;;  %v2094_v15 = vshrl.u32 %v14697_v36, 16  ;;  %v3103_v36 = vshll.u32 %v14792_v8, 16 }
  0x7f   : > { %12930 = vmatprep.mubr.msk.bf16.mxu0 %vm1022_vm1, %v1407_v43 }
  0x80   : > { %13017 = vmatmul.mubr.msk.bf16.gmra.mxu1 %vm1022_vm1, %v2426_v49  ;;  %v3096_v49 = vshrl.u32 %v11850_v25, 16 }
  0x81   : > { %13020 = vmatprep.mubr.msk.bf16.mxu1 %vm1022_vm1, %v2428_v51  ;;  %v3100_v51 = vrot.slane %v3098_v42, 1  ;;  %v14892_v42 = vld [vmem:[%s14474_s3 + $0x48] sm:$0xff]  }
  0x86   : > { %12931 = vmatmul.mubr.msk.bf16.gmra.mxu0 %vm1022_vm1, %v1409_v48 }
  0x87   : > { %12934 = vmatprep.mubr.msk.bf16.mxu0 %vm1022_vm1, %v14592_v19  ;;  %v2433_v19 = vrot.slane %v14757_v54, 1 }
  0x88   : > { %13021 = vmatmul.mubr.msk.bf16.gmra.mxu1 %vm1022_vm1, %v2430_v53  ;;  %v2092_v53 = vrot.slane %v2090_v61, 1  ;;  %v2118_v61 = vshrl.u32 %v14729_v45, 16 }
  0x89   : > { %13024 = vmatprep.mubr.msk.bf16.mxu1 %vm1022_vm1, %v2432_v56  ;;  %v2434_v59 = vsel %vm1396_vm2, %v2431_v12, %v2433_v19  ;;  %v2436_v60 = vsel %vm1396_vm2, %v2433_v19, %v2435_v55  ;;  %v2088_v12 = vor.u32 %v2086_v7, %v2084_v13  ;;  %v2445_v56 = vrot.slane %v14842_v30, 1 }
  0x8a   : > { %v2096_v19 = vor.u32 %v2094_v15, %v2092_v53  ;;  %v2100_v55 = vrot.slane %v2098_v46, 1  ;;  %v2126_v15 = vshrl.u32 %v14742_v50, 16 }
  0x8b   : > { %v2446_v11 = vsel %vm1396_vm2, %v2443_v10, %v2445_v56  ;;  %v2138_v56 = vshll.u32 %v14757_v54, 16 }
  0x8e   : > { %12935 = vmatmul.mubr.msk.bf16.gmra.mxu0 %vm1022_vm1, %v14595_v20  ;;  %v11769_v20 = vcombine.low %v1969_v58, %v14681_v22  ;;  %v14807_v22 = vld [vmem:[%s14474_s3 + $0x68] sm:$0xff]   ;;  %v14855_v58 = vld [vmem:[%s14474_s3 + $0x38] sm:$0xff]  }
  0x8f   : > { %12938 = vmatprep.mubr.msk.bf16.mxu0 %vm1022_vm1, %v14601_v27  ;;  %v14782_v27 = vld [vmem:[%s14474_s3 + $0x60] sm:$0xff]   ;;  %v2441_v32 = vrot.slane %v14807_v22, 1 }
  0x90   : > { %13025 = vmatmul.mubr.msk.bf16.gmra.mxu1 %vm1022_vm1, %v2434_v59  ;;  %v2077_v2 = vshll.u32 %v11769_v20, 16  ;;  %v2439_v3 = vrot.slane %v14782_v27, 1  ;;  %v2075_v16 = vshrl.u32 %v11769_v20, 16  ;;  %v2102_v59 = vshrl.u32 %v14709_v38, 16 }
  0x91   : > { %13028 = vmatprep.mubr.msk.bf16.mxu1 %vm1022_vm1, %v2436_v60  ;;  %v2444_v47 = vsel %vm1396_vm2, %v2441_v32, %v2443_v10  ;;  %v2106_v20 = vshll.u32 %v14724_v4, 16  ;;  %v3101_v60 = vor.u32 %v3100_v51, %v3096_v49  ;;  %v3107_v38 = vshrl.u32 %v14792_v8, 16 }
  0x92   : > { %v2079_v6 = vrot.slane %v2077_v2, 1  ;;  %v2440_v18 = vsel %vm1396_vm2, %v2437_v63, %v2439_v3  ;;  %v2442_v23 = vsel %vm1396_vm2, %v2439_v3, %v2441_v32  ;;  %v14860_v63 = vld [vmem:[%s14474_s3 + $0x40] sm:$0xff]   ;;  %v3111_v2 = vshll.u32 %v14795_v9, 16 }
  0x93   : > { %v3448_v3 = vrot.slane %v14855_v58, 1  ;;  %v2108_v24 = vrot.slane %v2106_v20, 1  ;;  %v3123_v49 = vshrl.u32 %v14824_v41, 16 }
  0x94   : > { %v2080_v33 = vor.u32 %v2079_v6, %v2075_v16  ;;  %v14874_v16 = vld [vmem:[%s20200_s5 + $0x40] sm:$0xff]   ;;  %v2104_v6 = vor.u32 %v2102_v59, %v2100_v55  ;;  %v3113_v25 = vrot.slane %v3111_v2, 1  ;;  %v2140_v2 = vrot.slane %v2138_v56, 1 }
  0x95   : > { %v3155_v56 = vshrl.u32 %v14892_v42, 16 }
  0x96   : > { %12939 = vmatmul.mubr.msk.bf16.gmra.mxu0 %vm1022_vm1, %v14604_v28  ;;  %v11882_v28 = vcombine.low %v3432_v1, %v2991_v0  ;;  %v2085_v44 = vsel %vm899_vm0, %v2080_v33, %v2084_v13  ;;  %v2093_v0 = vsel %vm899_vm0, %v2088_v12, %v2092_v53  ;;  %v2110_v1 = vshrl.u32 %v14724_v4, 16 }
  0x97   : > { %12942 = vmatprep.mubr.msk.bf16.mxu0 %vm1022_vm1, %v14610_v34  ;;  %v3440_v34 = vrot.slane %v14792_v8, 1  ;;  %v3115_v4 = vshrl.u32 %v14795_v9, 16  ;;  %v2109_v7 = vsel %vm899_vm0, %v2104_v6, %v2108_v24  ;;  %v3139_v6 = vshrl.u32 %v14855_v58, 16 }
  0x98   : > { %v3439_v14 = vrot.slane %v11882_v28, 1  ;;  %13029 = vmatmul.mubr.msk.bf16.gmra.mxu1 %vm1022_vm1, %v2438_v5  ;;  %v2114_v28 = vshll.u32 %v14729_v45, 16  ;;  %v3119_v5 = vshll.u32 %v14824_v41, 16  ;;  %v2112_v9 = vor.u32 %v2110_v1, %v2108_v24 }
  0x99   : > { %v14810_v26 = vsel %vm1396_vm2, %v3440_v34, %v3442_v17  ;;  %13032 = vmatprep.mubr.msk.bf16.mxu1 %vm1022_vm1, %v2440_v18  ;;  %v3117_v13 = vor.u32 %v3115_v4, %v3113_v25  ;;  %v2134_v1 = vshrl.u32 %v14746_v52, 16  ;;  %v3147_v24 = vshrl.u32 %v14860_v63, 16 }
  0x9a   : > { %v14804_v21 = vsel %vm1396_vm2, %v3439_v14, %v3440_v34  ;;  %v3450_v14 = vrot.slane %v14860_v63, 1  ;;  %v2101_v34 = vsel %vm899_vm0, %v2096_v19, %v2100_v55  ;;  %v2116_v32 = vrot.slane %v2114_v28, 1  ;;  %v14928_v28 = vld [vmem:[%s14474_s3 + $0x60] sm:$0xff]  }
  0x9b   : > { %v3121_v10 = vrot.slane %v3119_v5, 1 }
  0x9c   : > { %v14883_v18 = vsel %vm1396_vm2, %v3448_v3, %v3450_v14  ;;  %v2117_v46 = vsel %vm899_vm0, %v2112_v9, %v2116_v32 }
  0x9d   : > { %v3122_v51 = vsel %vm899_vm0, %v3117_v13, %v3121_v10  ;;  %v3125_v20 = vor.u32 %v3123_v49, %v3121_v10 }
  0x9e   : > { %12943 = vmatmul.mubr.msk.bf16.gmra.mxu0 %vm1022_vm1, %v14613_v35  ;;  %v14827_v35 = vld [vmem:[%s14474_s3 + $0x30] sm:$0xff]  }
  0x9f   : > { %12946 = vmatprep.mubr.msk.bf16.mxu0 %vm1022_vm1, %v14617_v39  ;;  %v3444_v39 = vrot.slane %v14824_v41, 1  ;;  %v3446_v43 = vrot.slane %v14827_v35, 1  ;;  %v2120_v41 = vor.u32 %v2118_v61, %v2116_v32 }
  0xa0   : > { %13033 = vmatmul.mubr.msk.bf16.gmra.mxu1 %vm1022_vm1, %v2442_v23  ;;  %v2130_v23 = vshll.u32 %v14746_v52, 16  ;;  %v3458_v52 = vrot.slane %v14928_v28, 1 }
  0xa1   : > { %v14839_v48 = vsel %vm1396_vm2, %v3442_v17, %v3444_v39  ;;  %v14846_v29 = vsel %vm1396_vm2, %v3444_v39, %v3446_v43  ;;  %13036 = vmatprep.mubr.msk.bf16.mxu1 %vm1022_vm1, %v2444_v47  ;;  %v14879_v17 = vsel %vm1396_vm2, %v3446_v43, %v3448_v3  ;;  %v2122_v39 = vshll.u32 %v14742_v50, 16 }
  0xa2   : > { %v3127_v43 = vshll.u32 %v14827_v35, 16  ;;  %v3135_v50 = vshll.u32 %v14855_v58, 16  ;;  %v2132_v59 = vrot.slane %v2130_v23, 1  ;;  %v2142_v3 = vshrl.u32 %v14757_v54, 16  ;;  %v732_v23 = vld [vmem:[%s20202_s1] sm:$0xff] }
  0xa3   : > { %v2124_v53 = vrot.slane %v2122_v39, 1  ;;  %v14953_v39 = vld [vmem:[%s14474_s3 + $0x68] sm:$0xff]  }
  0xa4   : > { %v3129_v55 = vrot.slane %v3127_v43, 1  ;;  %v2136_v9 = vor.u32 %v2134_v1, %v2132_v59 }
  0xa6   : > { %12947 = vmatmul.mubr.msk.bf16.gmra.mxu0 %vm1022_vm1, %v14620_v40  ;;  %v3105_v40 = vrot.slane %v3103_v36, 1  ;;  %v3131_v36 = vshrl.u32 %v14827_v35, 16  ;;  %v2128_v35 = vor.u32 %v2126_v15, %v2124_v53  ;;  %v3130_v5 = vsel %vm899_vm0, %v3125_v20, %v3129_v55 }
  0xa7   : > { %12982 = vmatprep.mubr.msk.bf16.mxu0 %vm1022_vm1, %v2085_v44  ;;  %v3452_v44 = vrot.slane %v14892_v42, 1  ;;  %v20107_v15 = vmov 0   ;;  %v2141_v43 = vsel %vm899_vm0, %v2136_v9, %v2140_v2 }
  0xa8   : > { %v3106_v8 = vsel %vm899_vm0, %v3101_v60, %v3105_v40  ;;  %13037 = vmatmul.mubr.msk.bf16.gmra.mxu1 %vm1022_vm1, %v2446_v11  ;;  %v3109_v33 = vor.u32 %v3107_v38, %v3105_v40  ;;  %v3133_v60 = vor.u32 %v3131_v36, %v3129_v55  ;;  %v3137_v40 = vrot.slane %v3135_v50, 1  ;;  %13784 = vset.pattern.permute.xlu0 %v20107_v15 }
  0xa9   : > { %13072 = vmatprep.mubr.msk.bf16.mxu1 %vm1022_vm1, %v3106_v8  ;;  %v14912_v12 = vsel %vm1396_vm2, %v3450_v14, %v3452_v44  ;;  %v2125_v11 = vsel %vm899_vm0, %v2120_v41, %v2124_v53  ;;  %v2146_v38 = vshll.u32 %v14761_v57, 16  ;;  %v3143_v14 = vshll.u32 %v14860_v63, 16  ;;  %784 = vst.msk [vmem:[#allocation3] sm:$0xf] %vm783_vm3, %v20107_v15  ;;  %785 = vst.msk [vmem:[#allocation3 + $0x4] sm:$0xf] %vm783_vm3, %v20107_v15 }
  0xaa   : > { %v3114_v47 = vsel %vm899_vm0, %v3109_v33, %v3113_v25  ;;  %v2133_v4 = vsel %vm899_vm0, %v2128_v35, %v2132_v59  ;;  %v3138_v54 = vsel %vm899_vm0, %v3133_v60, %v3137_v40  ;;  %v3151_v8 = vshll.u32 %v14892_v42, 16  ;;  %786 = vst.msk [vmem:[#allocation3 + $0x8] sm:$0xf] %vm783_vm3, %v20107_v15  ;;  %787 = vst.msk [vmem:[#allocation3 + $0xc] sm:$0xf] %vm783_vm3, %v20107_v15  ;;  %v734_v35 = vld [vmem:[%s20202_s1 + $0x10] sm:$0xff] }
  0xab   : > { %v2144_v33 = vor.u32 %v2142_v3, %v2140_v2  ;;  %v2148_v58 = vrot.slane %v2146_v38, 1  ;;  %v3145_v13 = vrot.slane %v3143_v14, 1  ;;  %v2154_v63 = vshll.u32 %v14776_v62, 16  ;;  %788 = vst.msk [vmem:[#allocation3 + $0x78] sm:$0xf] %vm783_vm3, %v20107_v15  ;;  %13785 = vset.pattern.permute.xlu1 %v20107_v15  ;;  %3985 = vperm.xlu0 %13784, %v732_v23   ;;  %v733_v59 = vld [vmem:[%s20202_s1 + $0x8] sm:$0xff] }
  0xac   : > { %v3141_v10 = vor.u32 %v3139_v6, %v3137_v40  ;;  %v3153_v61 = vrot.slane %v3151_v8, 1  ;;  %789 = vst.msk [vmem:[#allocation3 + $0x7c] sm:$0xf] %vm783_vm3, %v20107_v15  ;;  %790 = vst.msk [vmem:[#allocation3 + $0x80] sm:$0xf] %vm783_vm3, %v20107_v15  ;;  %v3460_v36 = vrot.slane %v14953_v39, 1  ;;  %3995 = vperm.xlu1 %13785, %v734_v35  }
  0xad   : > { %v2149_v49 = vsel %vm899_vm0, %v2144_v33, %v2148_v58  ;;  %v2156_v50 = vrot.slane %v2154_v63, 1  ;;  %v15007_v38 = vld [vmem:[%s14474_s3 + $0x78] sm:$0xff]   ;;  %v2170_v6 = vshll.u32 %v14807_v22, 16  ;;  %v3175_v8 = vshll.u32 %v14928_v28, 16 }
  0xae   : > { %12983 = vmatmul.mubr.msk.bf16.vlgmr.msra.gmra.mxu0 %vm1022_vm1, %v2093_v0  ;;  %v14923_v0 = vld [vmem:[%s14474_s3 + $0x58] sm:$0xff]   ;;  %v3146_v53 = vsel %vm899_vm0, %v3141_v10, %v3145_v13  ;;  %v14997_v20 = vsel %vm1396_vm2, %v3458_v52, %v3460_v36  ;;  %v3157_v2 = vor.u32 %v3155_v56, %v3153_v61  ;;  %v3464_v9 = vrot.slane %v15007_v38, 1 }
  0xaf   : > { %13041 = vmatpush3.bf16.msra.mxu0 %v14702_v37  ;;  %12986 = vmatprep.mubr.msk.bf16.mxu0 %vm1022_vm1, %v2101_v34  ;;  %v14898_v37 = vld [vmem:[%s14474_s3 + $0x50] sm:$0xff]   ;;  %v3456_v34 = vrot.slane %v14923_v0, 1  ;;  %v3167_v55 = vshll.u32 %v14923_v0, 16  ;;  %v735_v14 = vld [vmem:[%s20202_s1 + $0x18] sm:$0xff]  ;;  %v2178_v33 = vshll.u32 %v14816_v31, 16  ;;  %v3179_v10 = vshrl.u32 %v14928_v28, 16 }
  0xb0   : > { %13100 = vmatprep.subr.bf16.mxu0 %v14874_v16  ;;  %v3454_v45 = vrot.slane %v14898_v37, 1  ;;  %13073 = vmatmul.mubr.msk.bf16.vlgmr.msra.gmra.mxu1 %vm1022_vm1, %v3114_v47  ;;  %v14978_v47 = vld [vmem:[%s14474_s3 + $0x70] sm:$0xff]   ;;  %v3163_v41 = vshrl.u32 %v14898_v37, 16  ;;  %v2172_v28 = vrot.slane %v2170_v6, 1  ;;  %v2182_v56 = vshrl.u32 %v14816_v31, 16  ;;  %v741_v31 = vld [vmem:[%s20202_s1 + $0x48] sm:$0xff] }
  0xb1   : > { %13076 = vmatprep.mubr.msk.bf16.mxu1 %vm1022_vm1, %v3122_v51  ;;  %v14945_v32 = vsel %vm1396_vm2, %v3456_v34, %v3458_v52  ;;  %v3159_v51 = vshll.u32 %v14898_v37, 16  ;;  %3990 = vperm.xlu0 %13784, %v733_v59   ;;  %v15019_v52 = vld [vmem:[%s14474_s3 + $0x80] ss:$0 sps:$4 sm:$0x11]   ;;  %v3187_v35 = vshrl.u32 %v14953_v39, 16 }
  0xb2   : > { %v14916_v19 = vsel %vm1396_vm2, %v3452_v44, %v3454_v45  ;;  %v14942_v25 = vsel %vm1396_vm2, %v3454_v45, %v3456_v34  ;;  %v2150_v44 = vshrl.u32 %v14761_v57, 16  ;;  %v2162_v45 = vshll.u32 %v14782_v27, 16  ;;  %v736_v34 = vld [vmem:[%s20202_s1 + $0x20] sm:$0xff]  ;;  %4000 = vperm.xlu1 %13785, %v735_v14   ;;  %v743_v14 = vld [vmem:[%s20202_s1 + $0x58] sm:$0xff] }
  0xb3   : > { %v3462_v57 = vrot.slane %v14978_v47, 1  ;;  %v3161_v1 = vrot.slane %v3159_v51, 1 }
  0xb4   : > { %v2152_v42 = vor.u32 %v2150_v44, %v2148_v58  ;;  %v2164_v40 = vrot.slane %v2162_v45, 1  ;;  %v2180_v45 = vrot.slane %v2178_v33, 1  ;;  %v746_v33 = vld [vmem:[%s20202_s1 + $0x70] sm:$0xff] }
  0xb5   : > { %v15000_v60 = vsel %vm1396_vm2, %v3460_v36, %v3462_v57  ;;  %v3165_v3 = vor.u32 %v3163_v41, %v3161_v1  ;;  %4005 = vperm.xlu0 %13784, %v736_v34   ;;  %v3162_v58 = vsel %vm899_vm0, %v3157_v2, %v3161_v1  ;;  %v15039_v23 = vsel %vm1396_vm2, %v3462_v57, %v3464_v9  ;;  %v744_v34 = vld [vmem:[%s20202_s1 + $0x60] sm:$0xff] }
  0xb6   : > { %12987 = vmatmul.mubr.msk.bf16.gmra.mxu0 %vm1022_vm1, %v2109_v7  ;;  %v3149_v7 = vor.u32 %v3147_v24, %v3145_v13  ;;  %v2174_v24 = vshrl.u32 %v14807_v22, 16  ;;  %v3466_v13 = vrot.slane %v15019_v52, 1  ;;  %v737_v22 = vld [vmem:[%s20202_s1 + $0x28] sm:$0xff]  ;;  %v3191_v57 = vshll.u32 %v14978_v47, 16 }
  0xb7   : > { %12990 = vmatprep.mubr.msk.bf16.mxu0 %vm1022_vm1, %v2117_v46  ;;  %v2158_v46 = vshrl.u32 %v14776_v62, 16  ;;  %4010 = vperm.xlu1 %13785, %v737_v22   ;;  %v2186_v41 = vshll.u32 %v14842_v30, 16  ;;  %v742_v30 = vld [vmem:[%s20202_s1 + $0x50] sm:$0xff] }
  0xb8   : > { %13077 = vmatmul.mubr.msk.bf16.gmra.mxu1 %vm1022_vm1, %v3130_v5  ;;  %v3154_v62 = vsel %vm899_vm0, %v3149_v7, %v3153_v61  ;;  %v2166_v5 = vshrl.u32 %v14782_v27, 16  ;;  %v3171_v27 = vshrl.u32 %v14923_v0, 16  ;;  %v3183_v7 = vshll.u32 %v14953_v39, 16  ;;  %v738_v61 = vld [vmem:[%s20202_s1 + $0x30] sm:$0xff] }
  0xb9   : > { %13080 = vmatprep.mubr.msk.bf16.mxu1 %vm1022_vm1, %v3138_v54  ;;  %v2160_v37 = vor.u32 %v2158_v46, %v2156_v50  ;;  %4015 = vperm.xlu0 %13784, %v738_v61   ;;  %v15042_v0 = vsel %vm1396_vm2, %v3464_v9, %v3466_v13  ;;  %v3193_v39 = vrot.slane %v3191_v57, 1  ;;  %v2188_v1 = vrot.slane %v2186_v41, 1  ;;  %v745_v9 = vld [vmem:[%s20202_s1 + $0x68] sm:$0xff]  ;;  %v13841_v13 = vld [vmem:[%s14474_s3 + $0x18] sm:$0xff]   ;;  %v750_v22 = vld [vmem:[%s20202_s1 + $0x90] sm:$0xff] }
  0xba   : > { %v2168_v44 = vor.u32 %v2166_v5, %v2164_v40  ;;  %v3185_v36 = vrot.slane %v3183_v7, 1  ;;  %v13840_v5 = vld [vmem:[%s14474_s3 + $0x10] sm:$0xff]   ;;  %v749_v7 = vld [vmem:[%s20202_s1 + $0x88] sm:$0xff] }
  0xbb   : > { %v2165_v54 = vsel %vm899_vm0, %v2160_v37, %v2164_v40  ;;  %v3195_v37 = vshrl.u32 %v14978_v47, 16  ;;  %v3199_v40 = vshll.u32 %v15007_v38, 16  ;;  %v2184_v47 = vor.u32 %v2182_v56, %v2180_v45  ;;  %v753_v56 = vld [vmem:[%s20202_s1 + $0xa8] sm:$0xff]  ;;  %v754_v57 = vld [vmem:[%s20202_s1 + $0xb0] sm:$0xff] }
  0xbc   : > { %v3189_v2 = vor.u32 %v3187_v35, %v3185_v36 }
  0xbe   : > { %12991 = vmatmul.mubr.msk.bf16.gmra.mxu0 %vm1022_vm1, %v2125_v11  ;;  %v3169_v11 = vrot.slane %v3167_v55, 1  ;;  %v3194_v6 = vsel %vm899_vm0, %v3189_v2, %v3193_v39  ;;  %v758_v2 = vld [vmem:[%s20202_s1 + $0xd0] sm:$0xff] }
  0xbf   : > { %12994 = vmatprep.mubr.msk.bf16.mxu0 %vm1022_vm1, %v2133_v4  ;;  %v2157_v4 = vsel %vm899_vm0, %v2152_v42, %v2156_v50  ;;  %v739_v50 = vld [vmem:[%s20202_s1 + $0x38] sm:$0xff] }
  0xc0   : > { %13081 = vmatmul.mubr.msk.bf16.gmra.mxu1 %vm1022_vm1, %v3146_v53  ;;  %v3170_v63 = vsel %vm899_vm0, %v3165_v3, %v3169_v11  ;;  %v3173_v46 = vor.u32 %v3171_v27, %v3169_v11  ;;  %v740_v53 = vld [vmem:[%s20202_s1 + $0x40] sm:$0xff]  ;;  %4020 = vperm.xlu1 %13785, %v739_v50   ;;  %v3197_v3 = vor.u32 %v3195_v37, %v3193_v39  ;;  %v3201_v11 = vrot.slane %v3199_v40, 1  ;;  %v13851_v40 = vld [vmem:[%s14474_s3 + $0x38] sm:$0xff]  }
  0xc1   : > { %13084 = vmatprep.mubr.msk.bf16.mxu1 %vm1022_vm1, %v3154_v62  ;;  %4025 = vperm.xlu0 %13784, %v740_v53   ;;  %v2173_v62 = vsel %vm899_vm0, %v2168_v44, %v2172_v28  ;;  %v748_v27 = vld [vmem:[%s20202_s1 + $0x80] sm:$0xff] }
  0xc4   : > { %4030 = vperm.xlu1 %13785, %v741_v31  }
  0xc5   : > { %4035 = vperm.xlu0 %13784, %v742_v30   ;;  %v13854_v30 = vld [vmem:[%s14474_s3 + $0x40] sm:$0xff]  }
  0xc6   : > { %12995 = vmatmul.mubr.msk.bf16.gmra.mxu0 %vm1022_vm1, %v2141_v43  ;;  %v3177_v43 = vrot.slane %v3175_v8, 1  ;;  %v3202_v8 = vsel %vm899_vm0, %v3197_v3, %v3201_v11 }
  0xc7   : > { %12998 = vmatprep.mubr.msk.bf16.mxu0 %vm1022_vm1, %v2149_v49  ;;  %v2176_v49 = vor.u32 %v2174_v24, %v2172_v28  ;;  %v3207_v24 = vshll.u32 %v15019_v52, 16 }
  0xc8   : > { %13085 = vmatmul.mubr.msk.bf16.gmra.mxu1 %vm1022_vm1, %v3162_v58  ;;  %v3181_v51 = vor.u32 %v3179_v10, %v3177_v43  ;;  %v3178_v55 = vsel %vm899_vm0, %v3173_v46, %v3177_v43  ;;  %4040 = vperm.xlu1 %13785, %v743_v14   ;;  %v747_v58 = vld [vmem:[%s20202_s1 + $0x78] sm:$0xff] }
  0xc9   : > { %13088 = vmatprep.mubr.msk.bf16.mxu1 %vm1022_vm1, %v3170_v63  ;;  %v2181_v59 = vsel %vm899_vm0, %v2176_v49, %v2180_v45  ;;  %4045 = vperm.xlu0 %13784, %v744_v34   ;;  %v3209_v52 = vrot.slane %v3207_v24, 1  ;;  %v13846_v63 = vld [vmem:[%s14474_s3 + $0x20] sm:$0xff]   ;;  %v751_v46 = vld [vmem:[%s20202_s1 + $0x98] sm:$0xff] }
  0xca   : > { %v3186_v42 = vsel %vm899_vm0, %v3181_v51, %v3185_v36  ;;  %v752_v49 = vld [vmem:[%s20202_s1 + $0xa0] sm:$0xff]  ;;  %v13847_v51 = vld [vmem:[%s14474_s3 + $0x28] sm:$0xff]   ;;  %v13850_v36 = vld [vmem:[%s14474_s3 + $0x30] sm:$0xff]  }
  0xcc   : > { %4050 = vperm.xlu1 %13785, %v745_v9  }
  0xcd   : > { %4055 = vperm.xlu0 %13784, %v746_v33  }
  0xce   : > { %12999 = vmatmul.mubr.msk.bf16.gmra.mxu0 %vm1022_vm1, %v2157_v4  ;;  %v2189_v4 = vsel %vm899_vm0, %v2184_v47, %v2188_v1  ;;  %v757_v1 = vld [vmem:[%s20202_s1 + $0xc8] sm:$0xff] }
  0xcf   : > { %13002 = vmatprep.mubr.msk.bf16.mxu0 %vm1022_vm1, %v2165_v54  ;;  %v3203_v54 = vshrl.u32 %v15007_v38, 16 }
  0xd0   : > { %13089 = vmatmul.mubr.msk.bf16.gmra.mxu1 %vm1022_vm1, %v3178_v55  ;;  %4060 = vperm.xlu1 %13785, %v747_v58  }
  0xd1   : > { %13092 = vmatprep.mubr.msk.bf16.mxu1 %vm1022_vm1, %v3186_v42  ;;  %v3205_v38 = vor.u32 %v3203_v54, %v3201_v11  ;;  %4065 = vperm.xlu0 %13784, %v748_v27   ;;  %v756_v42 = vld [vmem:[%s20202_s1 + $0xc0] sm:$0xff]  ;;  %v13855_v54 = vld [vmem:[%s14474_s3 + $0x48] sm:$0xff]  }
  0xd3   : > { %v3210_v10 = vsel %vm899_vm0, %v3205_v38, %v3209_v52  ;;  %v761_v38 = vld [vmem:[%s20203_s29 + $0x8] sm:$0xff]  ;;  %v762_v52 = vld [vmem:[%s20203_s29 + $0x10] sm:$0xff] }
  0xd4   : > { %4070 = vperm.xlu1 %13785, %v749_v7   ;;  %v763_v7 = vld [vmem:[%s20203_s29 + $0x18] sm:$0xff] }
  0xd5   : > { %4075 = vperm.xlu0 %13784, %v750_v22   ;;  %v764_v22 = vld [vmem:[%s20203_s29 + $0x20] sm:$0xff] }
  0xd6   : > { %13003 = vmatmul.mubr.msk.bf16.gmra.mxu0 %vm1022_vm1, %v2173_v62 }
  0xd7   : > { %13006 = vmatprep.mubr.msk.bf16.mxu0 %vm1022_vm1, %v2181_v59  ;;  %v755_v59 = vld [vmem:[%s20202_s1 + $0xb8] sm:$0xff] }
  0xd8   : > { %13093 = vmatmul.mubr.msk.bf16.gmra.mxu1 %vm1022_vm1, %v3194_v6  ;;  %4080 = vperm.xlu1 %13785, %v751_v46  }
  0xd9   : > { %13096 = vmatprep.mubr.msk.bf16.mxu1 %vm1022_vm1, %v3202_v8  ;;  %4085 = vperm.xlu0 %13784, %v752_v49   ;;  %v13858_v8 = vld [vmem:[%s14474_s3 + $0x50] sm:$0xff]   ;;  %v13859_v49 = vld [vmem:[%s14474_s3 + $0x58] sm:$0xff]  }
  0xdc   : > { %4090 = vperm.xlu1 %13785, %v753_v56   ;;  %v13862_v56 = vld [vmem:[%s14474_s3 + $0x60] sm:$0xff]  }
  0xdd   : > { %4095 = vperm.xlu0 %13784, %v754_v57  }
  0xde   : > { %13007 = vmatmul.mubr.msk.bf16.gmra.mxu0 %vm1022_vm1, %v2189_v4  ;;  %v759_v4 = vld [vmem:[%s20202_s1 + $0xd8] sm:$0xff] }
  0xdf   : > { %13042 = vmatprep.mubr.msk.bf16.mxu0 %vm1022_vm1, %v13840_v5  ;;  %v15114_v28 = vpop.f32.mrf.mxu1  ;;  %v760_v5 = vld [vmem:[%s20203_s29] sm:$0xff] }
  0xe0   : > { %13097 = vmatmul.mubr.msk.bf16.gmra.mxu1 %vm1022_vm1, %v3210_v10  ;;  %4100 = vperm.xlu1 %13785, %v755_v59  }
  0xe1   : > { %v15121_v44 = vpop.f32.mrf.mxu1  ;;  %4105 = vperm.xlu0 %13784, %v756_v42   ;;  %v765_v42 = vld [vmem:[%s20203_s29 + $0x28] sm:$0xff] }
  0xe4   : > { %4110 = vperm.xlu1 %13785, %v757_v1  }
  0xe5   : > { %4115 = vperm.xlu0 %13784, %v758_v2  }
  0xe6   : > { %v15111_v61 = vpop.f32.mrf.mxu0  ;;  %13043 = vmatmul.mubr.msk.bf16.vlgmr.msra.gmra.mxu0 %vm1022_vm1, %v13841_v13 }
  0xe7   : > { %13101 = vmatpush3.bf16.msra.mxu0 %v14874_v16  ;;  %13046 = vmatprep.mubr.msk.bf16.mxu0 %vm1022_vm1, %v13846_v63  ;;  %v15132_v16 = vpop.f32.mrf.mxu1 }
  0xe8   : > { %v15119_v43 = vpop.f32.mrf.mxu0  ;;  %4120 = vperm.xlu1 %13785, %v759_v4   ;;  %v767_v4 = vld [vmem:[%s20203_s29 + $0x38] sm:$0xff] }
  0xe9   : > { %v15137_v53 = vpop.f32.mrf.mxu1  ;;  %10703 = vperm.xlu0 %13784, %v760_v5   ;;  %v768_v5 = vld [vmem:[%s20203_s29 + $0x40] sm:$0xff] }
  0xea   : > { %v15129_v45 = vpop.f32.mrf.mxu0 }
  0xeb   : > { %v15148_v41 = vpop.f32.mrf.mxu1 }
  0xec   : > { %v15135_v50 = vpop.f32.mrf.mxu0  ;;  %10708 = vperm.xlu1 %13785, %v761_v38  }
  0xed   : > { %v15153_v35 = vpop.f32.mrf.mxu1  ;;  %10713 = vperm.xlu0 %13784, %v762_v52  }
  0xee   : > { %v15145_v62 = vpop.f32.mrf.mxu0  ;;  %13047 = vmatmul.mubr.msk.bf16.gmra.mxu0 %vm1022_vm1, %v13847_v51 }
  0xef   : > { %13050 = vmatprep.mubr.msk.bf16.mxu0 %vm1022_vm1, %v13850_v36  ;;  %v15164_v31 = vpop.f32.mrf.mxu1 }
  0xf0   : > { %v15151_v55 = vpop.f32.mrf.mxu0  ;;  %10718 = vperm.xlu1 %13785, %v763_v7  }
  0xf1   : > { %v15169_v47 = vpop.f32.mrf.mxu1  ;;  %10723 = vperm.xlu0 %13784, %v764_v22   ;;  %v769_v22 = vld [vmem:[%s20203_s29 + $0x48] sm:$0xff] }
  0xf2   : > { %v15161_v37 = vpop.f32.mrf.mxu0 }
  0xf3   : > { %v15180_v11 = vpop.f32.mrf.mxu1 }
  0xf4   : > { %v15167_v39 = vpop.f32.mrf.mxu0  ;;  %10728 = vperm.xlu1 %13785, %v765_v42  }
  0xf5   : > { %v15185_v34 = vpop.f32.mrf.mxu1 }
  0xf6   : > { %v15177_v3 = vpop.f32.mrf.mxu0  ;;  %13051 = vmatmul.mubr.msk.bf16.gmra.mxu0 %vm1022_vm1, %v13851_v40 }
  0xf7   : > { %13054 = vmatprep.mubr.msk.bf16.mxu0 %vm1022_vm1, %v13854_v30  ;;  %v15196_v24 = vpop.f32.mrf.mxu1 }
  0xf8   : > { %v15183_v14 = vpop.f32.mrf.mxu0  ;;  %10738 = vperm.xlu1 %13785, %v767_v4   ;;  %v13867_v4 = vld [vmem:[%s14474_s3 + $0x78] sm:$0xff]  }
  0xf9   : > { %v15201_v33 = vpop.f32.mrf.mxu1 }
  0xfa   : > { %v15193_v6 = vpop.f32.mrf.mxu0 }
  0xfb   : > { %v15210_v27 = vpop.f32.mrf.mxu1 }
  0xfc   : > { %v15199_v9 = vpop.f32.mrf.mxu0  ;;  %10748 = vperm.xlu1 %13785, %v769_v22   ;;  %v773_v22 = vld [vmem:[%s20203_s29 + $0x68] sm:$0xff] }
  0xfd   : > { %v15216_v10 = vpop.f32.mrf.mxu1 }
  0xfe   : > { %v12876_v58 = vpop.f32.mrf.mxu0  ;;  %13055 = vmatmul.mubr.msk.bf16.gmra.mxu0 %vm1022_vm1, %v13855_v54 }
  0xff   : > { %v15213_v13 = vadd.f32 %v15114_v28, %v12876_v58  ;;  %13058 = vmatprep.mubr.msk.bf16.mxu0 %vm1022_vm1, %v13858_v8  ;;  %v12919_v51 = vpop.f32.mrf.mxu1  ;;  %v13863_v8 = vld [vmem:[%s14474_s3 + $0x68] sm:$0xff]   ;;  %v13866_v58 = vld [vmem:[%s14474_s3 + $0x70] sm:$0xff]   ;;  %s20601_s3 = sld [smem:[#allocation62_spill]] }
 0x100   : > { %v1147_v63 = vpop.f32.mrf.mxu0 }
 0x101   : > { %v15225_v46 = vadd.f32 %v15121_v44, %v1147_v63  ;;  %v15234_v59 = vpop.f32.mrf.mxu1  ;;  %v766_v44 = vld [vmem:[%s20203_s29 + $0x30] sm:$0xff] }
 0x102   : > { %v12877_v28 = vpop.f32.mrf.mxu0  ;;  %20204 = vst [vmem:[#allocation5_spill] sm:$0xff] %v15234_v59  ;;  %10733 = vperm.xlu0 %13784, %v766_v44   ;;  %v771_v44 = vld [vmem:[%s20203_s29 + $0x58] sm:$0xff] }
 0x103   : > { %v15229_v36 = vadd.f32 %v15132_v16, %v12877_v28  ;;  %v15243_v16 = vpop.f32.mrf.mxu1  ;;  %10758 = vperm.xlu1 %13785, %v771_v44  }
 0x104   : > { %v15232_v57 = vpop.f32.mrf.mxu0 }
 0x105   : > { %v15249_v2 = vpop.f32.mrf.mxu1 }
 0x106   : > { %v12880_v40 = vpop.f32.mrf.mxu0  ;;  %13059 = vmatmul.mubr.msk.bf16.gmra.mxu0 %vm1022_vm1, %v13859_v49  ;;  %10743 = vperm.xlu0 %13784, %v768_v5  }
 0x107   : > { %v15246_v30 = vadd.f32 %v15148_v41, %v12880_v40  ;;  %13062 = vmatprep.mubr.msk.bf16.mxu0 %vm1022_vm1, %v13862_v56  ;;  %v15261_v38 = vpop.f32.mrf.mxu1  ;;  %v772_v40 = vld [vmem:[%s20203_s29 + $0x60] sm:$0xff]  ;;  %10768 = vperm.xlu1 %13785, %v773_v22  }
 0x108   : > { %v1163_v1 = vpop.f32.mrf.mxu0 }
 0x109   : > { %v15258_v54 = vadd.f32 %v15153_v35, %v1163_v1  ;;  %v15269_v7 = vpop.f32.mrf.mxu1  ;;  %v770_v35 = vld [vmem:[%s20203_s29 + $0x50] sm:$0xff] }
 0x10a   : > { %v12881_v41 = vpop.f32.mrf.mxu0  ;;  %20205 = vst [vmem:[#allocation6_spill] sm:$0xff] %v15269_v7  ;;  %10753 = vperm.xlu0 %13784, %v770_v35  }
 0x10b   : > { %v15264_v52 = vadd.f32 %v15164_v31, %v12881_v41  ;;  %v15278_v31 = vpop.f32.mrf.mxu1 }
 0x10c   : > { %v15267_v63 = vpop.f32.mrf.mxu0 }
 0x10d   : > { %v15284_v42 = vpop.f32.mrf.mxu1 }
 0x10e   : > { %v12884_v28 = vpop.f32.mrf.mxu0  ;;  %13063 = vmatmul.mubr.msk.bf16.gmra.mxu0 %vm1022_vm1, %v13863_v8  ;;  %10763 = vperm.xlu0 %13784, %v772_v40  }
 0x10f   : > { %v15281_v49 = vadd.f32 %v15180_v11, %v12884_v28  ;;  %13066 = vmatprep.mubr.msk.bf16.mxu0 %vm1022_vm1, %v13866_v58  ;;  %v15296_v5 = vpop.f32.mrf.mxu1 }
 0x110   : > { %v1179_v56 = vpop.f32.mrf.mxu0 }
 0x111   : > { %v15293_v1 = vadd.f32 %v15185_v34, %v1179_v56  ;;  %v15303_v58 = vpop.f32.mrf.mxu1 }
 0x112   : > { %v12885_v11 = vpop.f32.mrf.mxu0  ;;  %20206 = vst [vmem:[#allocation7_spill] sm:$0xff] %v15303_v58 }
 0x113   : > { %v15299_v41 = vadd.f32 %v15196_v24, %v12885_v11  ;;  %v15309_v35 = vpop.f32.mrf.mxu1 }
 0x114   : > { %v15301_v8 = vpop.f32.mrf.mxu0 }
 0x115   : > { %v15316_v56 = vpop.f32.mrf.mxu1 }
 0x116   : > { %v12888_v34 = vpop.f32.mrf.mxu0  ;;  %13067 = vmatmul.mubr.msk.bf16.gmra.mxu0 %vm1022_vm1, %v13867_v4 }
 0x117   : > { %v15312_v28 = vadd.f32 %v15210_v27, %v12888_v34  ;;  %13102 = vmatprep.mubr.msk.bf16.mxu0 %vm1022_vm1, %v14804_v21  ;;  %v15321_v11 = vpop.f32.mrf.mxu1 }
 0x118   : > { %v1195_v24 = vpop.f32.mrf.mxu0 }
 0x119   : > { %v15319_v44 = vadd.f32 %v15216_v10, %v1195_v24  ;;  %v15327_v15 = vpop.f32.mrf.mxu1 }
 0x11a   : > { %v12889_v40 = vpop.f32.mrf.mxu0  ;;  %20208 = vst [vmem:[#allocation9_spill] sm:$0xff] %v15327_v15 }
 0x11b   : > { %v15323_v22 = vadd.f32 %v12919_v51, %v12889_v40  ;;  %v15331_v21 = vpop.f32.mrf.mxu1 }
 0x11c   : > { %v15325_v4 = vpop.f32.mrf.mxu0 }
 0x11d   : > { %20207 = vst [vmem:[#allocation8_spill] sm:$0xff] %v15325_v4  ;;  %v15336_v24 = vpop.f32.mrf.mxu1 }
 0x11e   : > { %v12894_v27 = vpop.f32.mrf.mxu0  ;;  %13103 = vmatmul.mubr.msk.bf16.vlgmr.msra.gmra.mxu0 %vm1022_vm1, %v14810_v26 }
 0x11f   : > { %v1287_v34 = vadd.f32 %v12894_v27, %v15111_v61  ;;  %13106 = vmatprep.mubr.msk.bf16.mxu0 %vm1022_vm1, %v14839_v48  ;;  %v15339_v58 = vpop.f32.mrf.mxu1 }
 0x120   : > { %v1278_v10 = vpop.f32.mrf.mxu0 }
 0x121   : > { %v1279_v51 = vadd.f32 %v1278_v10, %v15119_v43  ;;  %v15342_v59 = vpop.f32.mrf.mxu1 }
 0x122   : > { %v12895_v40 = vpop.f32.mrf.mxu0  ;;  %20209 = vst [vmem:[#allocation10_spill] sm:$0xff] %v15342_v59 }
 0x123   : > { %v1290_v15 = vadd.f32 %v12895_v40, %v15129_v45  ;;  %v15349_v48 = vpop.f32.mrf.mxu1 }
 0x124   : > { %v1281_v7 = vpop.f32.mrf.mxu0 }
 0x125   : > { %v15345_v26 = vadd.f32 %v1281_v7, %v15135_v50  ;;  %v15354_v10 = vpop.f32.mrf.mxu1 }
 0x126   : > { %v12898_v61 = vpop.f32.mrf.mxu0  ;;  %13107 = vmatmul.mubr.msk.bf16.gmra.mxu0 %vm1022_vm1, %v14846_v29 }
 0x127   : > { %v1303_v27 = vadd.f32 %v12898_v61, %v15145_v62  ;;  %13110 = vmatprep.mubr.msk.bf16.mxu0 %vm1022_vm1, %v14879_v17  ;;  %v15357_v59 = vpop.f32.mrf.mxu1 }
 0x128   : > { %v1294_v43 = vpop.f32.mrf.mxu0 }
 0x129   : > { %v1295_v45 = vadd.f32 %v1294_v43, %v15151_v55  ;;  %v15360_v4 = vpop.f32.mrf.mxu1 }
 0x12a   : > { %v12899_v40 = vpop.f32.mrf.mxu0  ;;  %20210 = vst [vmem:[#allocation11_spill] sm:$0xff] %v15360_v4 }
 0x12b   : > { %v1306_v50 = vadd.f32 %v12899_v40, %v15161_v37  ;;  %v15367_v17 = vpop.f32.mrf.mxu1 }
 0x12c   : > { %v1297_v7 = vpop.f32.mrf.mxu0 }
 0x12d   : > { %v15363_v29 = vadd.f32 %v1297_v7, %v15167_v39  ;;  %v15372_v43 = vpop.f32.mrf.mxu1 }
 0x12e   : > { %v12902_v62 = vpop.f32.mrf.mxu0  ;;  %13111 = vmatmul.mubr.msk.bf16.gmra.mxu0 %vm1022_vm1, %v14883_v18 }
 0x12f   : > { %20211 = vst [vmem:[#allocation12_spill] sm:$0xff] %v15363_v29  ;;  %v1319_v61 = vadd.f32 %v12902_v62, %v15177_v3  ;;  %13114 = vmatprep.mubr.msk.bf16.mxu0 %vm1022_vm1, %v14912_v12  ;;  %v15375_v4 = vpop.f32.mrf.mxu1 }
 0x130   : > { %v1310_v55 = vpop.f32.mrf.mxu0 }
 0x131   : > { %v1311_v37 = vadd.f32 %v1310_v55, %v15183_v14  ;;  %v15378_v29 = vpop.f32.mrf.mxu1 }
 0x132   : > { %v12903_v40 = vpop.f32.mrf.mxu0  ;;  %20212 = vst [vmem:[#allocation13_spill] sm:$0xff] %v15378_v29 }
 0x133   : > { %v1322_v39 = vadd.f32 %v12903_v40, %v15193_v6  ;;  %v15385_v12 = vpop.f32.mrf.mxu1 }
 0x134   : > { %v1313_v7 = vpop.f32.mrf.mxu0 }
 0x135   : > { %v15381_v18 = vadd.f32 %v1313_v7, %v15199_v9  ;;  %v15389_v55 = vpop.f32.mrf.mxu1 }
 0x136   : > { %v12924_v3 = vpop.f32.mrf.mxu0  ;;  %13115 = vmatmul.mubr.msk.bf16.gmra.mxu0 %vm1022_vm1, %v14916_v19 }
 0x137   : > { %20213 = vst [vmem:[#allocation14_spill] sm:$0xff] %v15381_v18  ;;  %v1621_v62 = vadd.f32 %v12924_v3, %v1287_v34  ;;  %13118 = vmatprep.mubr.msk.bf16.mxu0 %vm1022_vm1, %v14942_v25  ;;  %v15394_v9 = vpop.f32.mrf.mxu1 }
 0x138   : > { %v1508_v14 = vpop.f32.mrf.mxu0 }
 0x139   : > { %v1619_v6 = vadd.f32 %v1508_v14, %v1279_v51  ;;  %v15392_v40 = vadd.f32 %v15243_v16, %v1621_v62  ;;  %v15401_v34 = vpop.f32.mrf.mxu1 }
 0x13a   : > { %v12925_v29 = vpop.f32.mrf.mxu0 }
 0x13b   : > { %v1622_v7 = vadd.f32 %v12925_v29, %v1290_v15  ;;  %v15397_v18 = vadd.f32 %v15249_v2, %v1619_v6  ;;  %v15408_v16 = vpop.f32.mrf.mxu1 }
 0x13c   : > { %v15399_v19 = vpop.f32.mrf.mxu0 }
 0x13d   : > { %v15404_v25 = vadd.f32 %v15261_v38, %v1622_v7  ;;  %v15412_v2 = vpop.f32.mrf.mxu1 }
 0x13e   : > { %v12928_v3 = vpop.f32.mrf.mxu0  ;;  %13119 = vmatmul.mubr.msk.bf16.gmra.mxu0 %vm1022_vm1, %v14945_v32 }
 0x13f   : > { %v1625_v51 = vadd.f32 %v12928_v3, %v1303_v27  ;;  %13122 = vmatprep.mubr.msk.bf16.mxu0 %vm1022_vm1, %v14997_v20  ;;  %v15417_v38 = vpop.f32.mrf.mxu1 }
 0x140   : > { %v1524_v15 = vpop.f32.mrf.mxu0 }
 0x141   : > { %v1623_v29 = vadd.f32 %v1524_v15, %v1295_v45  ;;  %v15415_v62 = vadd.f32 %v15278_v31, %v1625_v51  ;;  %v15424_v27 = vpop.f32.mrf.mxu1 }
 0x142   : > { %v12929_v14 = vpop.f32.mrf.mxu0 }
 0x143   : > { %v1626_v6 = vadd.f32 %v12929_v14, %v1306_v50  ;;  %v15420_v7 = vadd.f32 %v15284_v42, %v1623_v29  ;;  %v15431_v31 = vpop.f32.mrf.mxu1 }
 0x144   : > { %v15422_v32 = vpop.f32.mrf.mxu0 }
 0x145   : > { %v15427_v20 = vadd.f32 %v15296_v5, %v1626_v6  ;;  %v15435_v42 = vpop.f32.mrf.mxu1 }
 0x146   : > { %v12932_v3 = vpop.f32.mrf.mxu0  ;;  %13123 = vmatmul.mubr.msk.bf16.gmra.mxu0 %vm1022_vm1, %v15000_v60  ;;  %20214 = vst [vmem:[#allocation15_spill] sm:$0xff] %v15435_v42 }
 0x147   : > { %v1629_v45 = vadd.f32 %v12932_v3, %v1319_v61  ;;  %13126 = vmatprep.mubr.msk.bf16.mxu0 %vm1022_vm1, %v15039_v23  ;;  %v15440_v5 = vpop.f32.mrf.mxu1 }
 0x148   : > { %v1540_v50 = vpop.f32.mrf.mxu0  ;;  %20215 = vst [vmem:[#allocation16_spill] sm:$0xff] %v15440_v5 }
 0x149   : > { %v1627_v51 = vadd.f32 %v1540_v50, %v1311_v37  ;;  %v15438_v15 = vadd.f32 %v15309_v35, %v1629_v45  ;;  %v15447_v61 = vpop.f32.mrf.mxu1 }
 0x14a   : > { %v12933_v29 = vpop.f32.mrf.mxu0  ;;  %20216 = vst [vmem:[#allocation17_spill] sm:$0xff] %v15447_v61 }
 0x14b   : > { %v1630_v14 = vadd.f32 %v12933_v29, %v1322_v39  ;;  %v15443_v6 = vadd.f32 %v15316_v56, %v1627_v51  ;;  %v15454_v35 = vpop.f32.mrf.mxu1 }
 0x14c   : > { %v15445_v60 = vpop.f32.mrf.mxu0 }
 0x14d   : > { %v15450_v23 = vadd.f32 %v15321_v11, %v1630_v14  ;;  %v15461_v50 = vpop.f32.mrf.mxu1 }
 0x14e   : > { %v12936_v3 = vpop.f32.mrf.mxu0  ;;  %13127 = vmatmul.mubr.msk.bf16.gmra.mxu0 %vm1022_vm1, %v15042_v0 }
 0x14f   : > { %v1633_v37 = vadd.f32 %v12936_v3, %v15213_v13  ;;  %v15472_v13 = vpop.f32.mrf.mxu1 }
 0x150   : > { %v1556_v45 = vpop.f32.mrf.mxu0 }
 0x151   : > { %v1631_v39 = vadd.f32 %v1556_v45, %v15225_v46  ;;  %v15459_v56 = vadd.f32 %v15331_v21, %v1633_v37 }
 0x152   : > { %v12937_v51 = vpop.f32.mrf.mxu0 }
 0x153   : > { %v1634_v11 = vadd.f32 %v12937_v51, %v15229_v36  ;;  %v15465_v29 = vadd.f32 %v15336_v24, %v1631_v39  ;;  %v15479_v36 = vpop.f32.mrf.mxu1 }
 0x154   : > { %v15467_v14 = vpop.f32.mrf.mxu0  ;;  %20217 = vst [vmem:[#allocation18_spill] sm:$0xff] %v15479_v36 }
 0x155   : > { %v15470_v0 = vadd.f32 %v15339_v58, %v1634_v11 }
 0x156   : > { %v12940_v3 = vpop.f32.mrf.mxu0 }
 0x157   : > { %v1637_v46 = vadd.f32 %v12940_v3, %v15246_v30  ;;  %v13026_v30 = vpop.f32.mrf.mxu1 }
 0x158   : > { %v1572_v21 = vpop.f32.mrf.mxu0 }
 0x159   : > { %v1635_v37 = vadd.f32 %v1572_v21, %v15258_v54  ;;  %v15477_v45 = vadd.f32 %v15349_v48, %v1637_v46  ;;  %v15495_v36 = vpop.f32.mrf.mxu1 }
 0x15a   : > { %v12941_v24 = vpop.f32.mrf.mxu0  ;;  %20218 = vst [vmem:[#allocation19_spill] sm:$0xff] %v15495_v36 }
 0x15b   : > { %v1638_v39 = vadd.f32 %v12941_v24, %v15264_v52  ;;  %v15483_v51 = vadd.f32 %v15354_v10, %v1635_v37 }
 0x15c   : > { %v15485_v58 = vpop.f32.mrf.mxu0 }
 0x15d   : > { %v15488_v11 = vadd.f32 %v15357_v59, %v1638_v39 }
 0x15e   : > { %v12944_v3 = vpop.f32.mrf.mxu0 }
 0x15f   : > { %v1641_v54 = vadd.f32 %v12944_v3, %v15281_v49  ;;  %v13027_v49 = vpop.f32.mrf.mxu1 }
 0x160   : > { %v1588_v21 = vpop.f32.mrf.mxu0 }
 0x161   : > { %v1639_v48 = vadd.f32 %v1588_v21, %v15293_v1  ;;  %v15493_v46 = vadd.f32 %v15367_v17, %v1641_v54  ;;  %v15511_v21 = vpop.f32.mrf.mxu1 }
 0x162   : > { %v12945_v52 = vpop.f32.mrf.mxu0  ;;  %20219 = vst [vmem:[#allocation20_spill] sm:$0xff] %v15511_v21 }
 0x163   : > { %v1642_v10 = vadd.f32 %v12945_v52, %v15299_v41  ;;  %v15499_v37 = vadd.f32 %v15372_v43, %v1639_v48 }
 0x164   : > { %v15501_v59 = vpop.f32.mrf.mxu0 }
 0x165   : > { %v15504_v24 = vadd.f32 %v15375_v4, %v1642_v10 }
 0x166   : > { %v12948_v39 = vpop.f32.mrf.mxu0 }
 0x167   : > { %v1645_v1 = vadd.f32 %v12948_v39, %v15312_v28  ;;  %v13030_v28 = vpop.f32.mrf.mxu1 }
 0x168   : > { %v1604_v3 = vpop.f32.mrf.mxu0 }
 0x169   : > { %v1643_v17 = vadd.f32 %v1604_v3, %v15319_v44  ;;  %v15509_v54 = vadd.f32 %v15385_v12, %v1645_v1  ;;  %v2593_v1 = vpop.f32.mrf.mxu1 }
 0x16a   : > { %v12949_v41 = vpop.f32.mrf.mxu0 }
 0x16b   : > { %v1646_v43 = vadd.f32 %v12949_v41, %v15323_v22  ;;  %v15515_v48 = vadd.f32 %v15389_v55, %v1643_v17  ;;  %v13031_v17 = vpop.f32.mrf.mxu1 }
 0x16c   : > { %v15517_v4 = vpop.f32.mrf.mxu0 }
 0x16d   : > { %v15520_v52 = vadd.f32 %v15394_v9, %v1646_v43 }
 0x16e   : > { %v12984_v10 = vpop.f32.mrf.mxu0 }
 0x16f   : > { %v15523_v44 = vadd.f32 %v12984_v10, %v15392_v40  ;;  %v15539_v10 = vpop.f32.mrf.mxu1 }
 0x170   : > { %v2272_v12 = vpop.f32.mrf.mxu0  ;;  %20221 = vst [vmem:[#allocation22_spill] sm:$0xff] %v15539_v10 }
 0x171   : > { %v15526_v39 = vadd.f32 %v2272_v12, %v15397_v18 }
 0x172   : > { %v12985_v3 = vpop.f32.mrf.mxu0 }
 0x173   : > { %v15529_v22 = vadd.f32 %v12985_v3, %v15404_v25  ;;  %v13034_v25 = vpop.f32.mrf.mxu1 }
 0x174   : > { %v15531_v55 = vpop.f32.mrf.mxu0 }
 0x176   : > { %v12988_v41 = vpop.f32.mrf.mxu0 }
 0x177   : > { %v15534_v9 = vadd.f32 %v12988_v41, %v15415_v62 }
 0x178   : > { %v2288_v43 = vpop.f32.mrf.mxu0 }
 0x179   : > { %v15537_v40 = vadd.f32 %v2288_v43, %v15420_v7  ;;  %v2609_v7 = vpop.f32.mrf.mxu1 }
 0x17a   : > { %v12989_v18 = vpop.f32.mrf.mxu0 }
 0x17b   : > { %20220 = vst [vmem:[#allocation21_spill] sm:$0xff] %v15537_v40  ;;  %v15542_v12 = vadd.f32 %v12989_v18, %v15427_v20 }
 0x17c   : > { %v15544_v21 = vpop.f32.mrf.mxu0 }
 0x17d   : > { %20222 = vst [vmem:[#allocation23_spill] sm:$0xff] %v15542_v12  ;;  %v13035_v12 = vpop.f32.mrf.mxu1 }
 0x17e   : > { %v12992_v3 = vpop.f32.mrf.mxu0 }
 0x17f   : > { %v2393_v36 = vadd.f32 %v12992_v3, %v15438_v15 }
 0x180   : > { %v2304_v61 = vpop.f32.mrf.mxu0 }
 0x181   : > { %v2391_v62 = vadd.f32 %v2304_v61, %v15443_v6  ;;  %v15549_v41 = vadd.f32 %v15454_v35, %v2393_v36 }
 0x182   : > { %v12993_v43 = vpop.f32.mrf.mxu0 }
 0x183   : > { %v2394_v10 = vadd.f32 %v12993_v43, %v15450_v23  ;;  %v15553_v5 = vadd.f32 %v15461_v50, %v2391_v62  ;;  %v15566_v23 = vpop.f32.mrf.mxu1  ;;  %v20109_v62 = vmov 0.0  }
 0x184   : > { %v15555_v20 = vpop.f32.mrf.mxu0  ;;  %20224 = vst [vmem:[#allocation25_spill] sm:$0xff] %v15566_v23  ;;  %775 = vst.msk [vmem:[#allocation2] sm:$0xff] %vm774_vm4, %v20109_v62 }
 0x185   : > { %v15558_v18 = vadd.f32 %v15472_v13, %v2394_v10  ;;  %776 = vst.msk [vmem:[#allocation2 + $0x8] sm:$0xff] %vm774_vm4, %v20109_v62  ;;  %777 = vst.msk [vmem:[#allocation2 + $0x10] sm:$0xff] %vm774_vm4, %v20109_v62 }
 0x186   : > { %v12996_v15 = vpop.f32.mrf.mxu0  ;;  %778 = vst.msk [vmem:[#allocation2 + $0x18] sm:$0xff] %vm774_vm4, %v20109_v62  ;;  %779 = vst.msk [vmem:[#allocation2 + $0xf0] sm:$0xff] %vm774_vm4, %v20109_v62 }
 0x187   : > { %v2397_v3 = vadd.f32 %v12996_v15, %v15459_v56  ;;  %780 = vst.msk [vmem:[#allocation2 + $0xf8] sm:$0xff] %vm774_vm4, %v20109_v62  ;;  %781 = vst.msk [vmem:[#allocation2 + $0x100] sm:$0xff] %vm774_vm4, %v20109_v62 }
 0x188   : > { %v2320_v6 = vpop.f32.mrf.mxu0 }
 0x189   : > { %v15562_v61 = vadd.f32 %v2320_v6, %v15465_v29  ;;  %v15564_v35 = vadd.f32 %v13026_v30, %v2397_v3 }
 0x18a   : > { %v12997_v50 = vpop.f32.mrf.mxu0 }
 0x18b   : > { %20223 = vst [vmem:[#allocation24_spill] sm:$0xff] %v15562_v61  ;;  %v2398_v36 = vadd.f32 %v12997_v50, %v15470_v0  ;;  %v13038_v0 = vpop.f32.mrf.mxu1 }
 0x18c   : > { %v15583_v56 = vpop.f32.mrf.mxu0 }
 0x18d   : > { %20225 = vst [vmem:[#allocation26_spill] sm:$0xff] %v15583_v56  ;;  %v15585_v29 = vadd.f32 %v13027_v49, %v2398_v36  ;;  %v2625_v3 = vpop.f32.mrf.mxu1 }
 0x18e   : > { %v13000_v13 = vpop.f32.mrf.mxu0 }
 0x18f   : > { %v2401_v30 = vadd.f32 %v13000_v13, %v15477_v45  ;;  %v13039_v42 = vpop.f32.mrf.mxu1 }
 0x190   : > { %v2336_v10 = vpop.f32.mrf.mxu0 }
 0x191   : > { %v2399_v43 = vadd.f32 %v2336_v10, %v15483_v51  ;;  %v2658_v15 = vadd.f32 %v13030_v28, %v2401_v30  ;;  %v15594_v13 = vpop.f32.mrf.mxu1 }
 0x192   : > { %v13001_v6 = vpop.f32.mrf.mxu0  ;;  %20226 = vst [vmem:[#allocation27_spill] sm:$0xff] %v15594_v13 }
 0x193   : > { %v2402_v50 = vadd.f32 %v13001_v6, %v15488_v11  ;;  %v2656_v23 = vadd.f32 %v2593_v1, %v2399_v43 }
 0x194   : > { %v15590_v61 = vpop.f32.mrf.mxu0 }
 0x195   : > { %v2659_v62 = vadd.f32 %v13031_v17, %v2402_v50  ;;  %v15603_v17 = vpop.f32.mrf.mxu1 }
 0x196   : > { %v13004_v56 = vpop.f32.mrf.mxu0 }
 0x197   : > { %v2405_v49 = vadd.f32 %v13004_v56, %v15493_v46  ;;  %v15609_v43 = vpop.f32.mrf.mxu1 }
 0x198   : > { %v2352_v36 = vpop.f32.mrf.mxu0 }
 0x199   : > { %v2403_v40 = vadd.f32 %v2352_v36, %v15499_v37  ;;  %v2662_v45 = vadd.f32 %v13034_v25, %v2405_v49  ;;  %v15618_v50 = vpop.f32.mrf.mxu1 }
 0x19a   : > { %v13005_v51 = vpop.f32.mrf.mxu0  ;;  %20227 = vst [vmem:[#allocation28_spill] sm:$0xff] %v15618_v50 }
 0x19b   : > { %v2406_v28 = vadd.f32 %v13005_v51, %v15504_v24  ;;  %v15597_v30 = vadd.f32 %v2609_v7, %v2403_v40 }
 0x19c   : > { %v15599_v11 = vpop.f32.mrf.mxu0 }
 0x19d   : > { %v15601_v1 = vadd.f32 %v13035_v12, %v2406_v28 }
 0x19e   : > { %v13008_v10 = vpop.f32.mrf.mxu0 }
 0x19f   : > { %v2409_v46 = vadd.f32 %v13008_v10, %v15509_v54 }
 0x1a0   : > { %v2368_v56 = vpop.f32.mrf.mxu0 }
 0x1a1   : > { %v2407_v37 = vadd.f32 %v2368_v56, %v15515_v48  ;;  %v15607_v25 = vadd.f32 %v13038_v0, %v2409_v46  ;;  %v15624_v48 = vpop.f32.mrf.mxu1 }
 0x1a2   : > { %v13009_v6 = vpop.f32.mrf.mxu0  ;;  %20228 = vst [vmem:[#allocation29_spill] sm:$0xff] %v15624_v48 }
 0x1a3   : > { %v2410_v24 = vadd.f32 %v13009_v6, %v15520_v52  ;;  %v15612_v40 = vadd.f32 %v2625_v3, %v2407_v37  ;;  %v15630_v51 = vpop.f32.mrf.mxu1 }
 0x1a4   : > { %v15614_v7 = vpop.f32.mrf.mxu0  ;;  %20229 = vst [vmem:[#allocation30_spill] sm:$0xff] %v15630_v51 }
 0x1a5   : > { %v15616_v12 = vadd.f32 %v13039_v42, %v2410_v24  ;;  %v15636_v42 = vpop.f32.mrf.mxu1 }
 0x1a6   : > { %v15620_v49 = vpop.f32.mrf.mxu0  ;;  %20230 = vst [vmem:[#allocation31_spill] sm:$0xff] %v15636_v42 }
 0x1a7   : > { %v15642_v46 = vpop.f32.mrf.mxu1 }
 0x1a8   : > { %v15622_v54 = vpop.f32.mrf.mxu0  ;;  %20232 = vst [vmem:[#allocation33_spill] sm:$0xff] %v15642_v46 }
 0x1a9   : > { %v15647_v24 = vpop.f32.mrf.mxu1 }
 0x1aa   : > { %v15626_v0 = vpop.f32.mrf.mxu0 }
 0x1ab   : > { %v15657_v13 = vpop.f32.mrf.mxu1 }
 0x1ac   : > { %v15628_v36 = vpop.f32.mrf.mxu0  ;;  %20236 = vst [vmem:[#allocation37_spill] sm:$0xff] %v15657_v13 }
 0x1ae   : > { %v15632_v52 = vpop.f32.mrf.mxu0 }
 0x1b0   : > { %v15634_v3 = vpop.f32.mrf.mxu0 }
 0x1b2   : > { %v15638_v28 = vpop.f32.mrf.mxu0 }
 0x1b4   : > { %v15640_v10 = vpop.f32.mrf.mxu0 }
 0x1b5   : > { %20231 = vst [vmem:[#allocation32_spill] sm:$0xff] %v15640_v10 }
 0x1b6   : > { %v13052_v56 = vpop.f32.mrf.mxu0 }
 0x1b7   : > { %v15645_v37 = vadd.f32 %v13052_v56, %v15549_v41  ;;  %v15664_v56 = vpop.f32.mrf.mxu1 }
 0x1b8   : > { %v2883_v6 = vpop.f32.mrf.mxu0  ;;  %20239 = vst [vmem:[#allocation40_spill] sm:$0xff] %v15664_v56 }
 0x1b9   : > { %20233 = vst [vmem:[#allocation34_spill] sm:$0xff] %v15645_v37  ;;  %v15650_v51 = vadd.f32 %v2883_v6, %v15553_v5 }
 0x1ba   : > { %v13053_v48 = vpop.f32.mrf.mxu0 }
 0x1bb   : > { %20234 = vst [vmem:[#allocation35_spill] sm:$0xff] %v15650_v51  ;;  %v15653_v50 = vadd.f32 %v13053_v48, %v15558_v18  ;;  %v15671_v18 = vpop.f32.mrf.mxu1 }
 0x1bc   : > { %v15655_v42 = vpop.f32.mrf.mxu0 }
 0x1bd   : > { %20235 = vst [vmem:[#allocation36_spill] sm:$0xff] %v15653_v50  ;;  %v15675_v13 = vpop.f32.mrf.mxu1 }
 0x1be   : > { %v13056_v10 = vpop.f32.mrf.mxu0 }
 0x1bf   : > { %v15660_v46 = vadd.f32 %v13056_v10, %v15564_v35 }
 0x1c0   : > { %v15662_v41 = vpop.f32.mrf.mxu0 }
 0x1c1   : > { %20237 = vst [vmem:[#allocation38_spill] sm:$0xff] %v15660_v46  ;;  %20238 = vst [vmem:[#allocation39_spill] sm:$0xff] %v15662_v41  ;;  %v15683_v41 = vpop.f32.mrf.mxu1 }
 0x1c2   : > { %v13057_v37 = vpop.f32.mrf.mxu0 }
 0x1c3   : > { %v15667_v5 = vadd.f32 %v13057_v37, %v15585_v29  ;;  %v1620_v29 = vadd.f32 %v15399_v19, %v15345_v26  ;;  %v20246_v26 = vld [vmem:[#allocation8_spill] sm:$0xff]  ;;  %v20247_v19 = vld [vmem:[#allocation5_spill] sm:$0xff] }
 0x1c4   : > { %v15669_v6 = vpop.f32.mrf.mxu0 }
 0x1c6   : > { %v13060_v48 = vpop.f32.mrf.mxu0 }
 0x1c7   : > { %v15673_v50 = vadd.f32 %v13060_v48, %v2658_v15  ;;  %v1330_v15 = vadd.f32 %v15137_v53, %v15232_v57  ;;  %v15702_v57 = vpop.f32.mrf.mxu1 }
 0x1c8   : > { %v2915_v51 = vpop.f32.mrf.mxu0 }
 0x1c9   : > { %20240 = vst [vmem:[#allocation41_spill] sm:$0xff] %v15673_v50  ;;  %v15677_v35 = vadd.f32 %v2915_v51, %v2656_v23  ;;  %v1346_v23 = vadd.f32 %v15169_v47, %v15267_v63  ;;  %v20244_v51 = vld [vmem:[#allocation12_spill] sm:$0xff]  ;;  %v1378_v50 = vadd.f32 %v20247_v19, %v20246_v26  ;;  %v1632_v53 = vadd.f32 %v15467_v14, %v1330_v15  ;;  %v20248_v47 = vld [vmem:[#allocation6_spill] sm:$0xff]  ;;  %v20250_v14 = vld [vmem:[#allocation9_spill] sm:$0xff] }
 0x1ca   : > { %v13061_v10 = vpop.f32.mrf.mxu0  ;;  %v1942_v63 = vadd.f32 %v20248_v47, %v1620_v29  ;;  %v15725_v29 = vpop.f32.mrf.mxu1 }
 0x1cb   : > { %20241 = vst [vmem:[#allocation42_spill] sm:$0xff] %v15677_v35  ;;  %v15679_v46 = vadd.f32 %v13061_v10, %v2659_v62  ;;  %v1362_v62 = vadd.f32 %v15201_v33, %v15301_v8  ;;  %v1624_v10 = vadd.f32 %v15422_v32, %v20244_v51  ;;  %v1636_v33 = vadd.f32 %v15485_v58, %v1346_v23  ;;  %v15722_v58 = vld [vmem:[%s20086_s9 + $0x1] ss:$0 sm:$0xff]  ;;  %v20253_v23 = vld [vmem:[#allocation13_spill] sm:$0xff] }
 0x1cc   : > { %v15681_v56 = vpop.f32.mrf.mxu0  ;;  %v2384_v26 = vadd.f32 %v15531_v55, %v1942_v63  ;;  %v2642_v63 = vadd.f32 %v15408_v16, %v15523_v44  ;;  %v2646_v16 = vadd.f32 %v15431_v31, %v15534_v9  ;;  %v20254_v44 = vld [vmem:[#allocation21_spill] sm:$0xff] }
 0x1cd   : > { %20242 = vst [vmem:[#allocation43_spill] sm:$0xff] %v15679_v46  ;;  %20243 = vst [vmem:[#allocation44_spill] sm:$0xff] %v15681_v56  ;;  %v20245_v46 = vld [vmem:[#allocation14_spill] sm:$0xff]  ;;  %v1640_v8 = vadd.f32 %v15501_v59, %v1362_v62  ;;  %v20258_v9 = vld [vmem:[#allocation17_spill] sm:$0xff] }
 0x1ce   : > { %v13064_v37 = vpop.f32.mrf.mxu0  ;;  %v1628_v56 = vadd.f32 %v15445_v60, %v20245_v46  ;;  %v1644_v60 = vadd.f32 %v15517_v4, %v1378_v50  ;;  %v20251_v59 = vld [vmem:[#allocation10_spill] sm:$0xff]  ;;  %v4179_v4 = vld [vmem:[#allocation2] sm:$0xff] }
 0x1cf   : > { %v15689_v48 = vadd.f32 %v13064_v37, %v2662_v45  ;;  %v20249_v37 = vld [vmem:[#allocation7_spill] sm:$0xff]  ;;  %v4242_v50 = vld [vmem:[#allocation2 + $0x1] sm:$0xff]  ;;  %v1962_v62 = vadd.f32 %v20253_v23, %v1640_v8  ;;  %v2641_v8 = vadd.f32 %v15424_v27, %v2384_v26 }
 0x1d0   : > { %v2931_v35 = vpop.f32.mrf.mxu0  ;;  %v1946_v51 = vadd.f32 %v20249_v37, %v1624_v10  ;;  %v1950_v15 = vadd.f32 %v20250_v14, %v1628_v56  ;;  %v20252_v56 = vld [vmem:[#allocation11_spill] sm:$0xff]  ;;  %v4334_v27 = vld [vmem:[#allocation2 + $0x2] sm:$0xff] }
 0x1d1   : > { %v15705_v45 = vadd.f32 %v2931_v35, %v15597_v30  ;;  %v1954_v35 = vadd.f32 %v20251_v59, %v1632_v53  ;;  %v1958_v55 = vadd.f32 %v20252_v56, %v1636_v33  ;;  %v1966_v53 = vadd.f32 %v15401_v34, %v1644_v60  ;;  %v20255_v60 = vld [vmem:[#allocation15_spill] sm:$0xff]  ;;  %v4180_v14 = vld [vmem:[#allocation2 + $0x8] sm:$0xff]  ;;  %v20257_v26 = vld [vmem:[#allocation16_spill] sm:$0xff] }
 0x1d2   : > { %v13065_v32 = vpop.f32.mrf.mxu0  ;;  %v2388_v10 = vadd.f32 %v15544_v21, %v1946_v51  ;;  %v2392_v19 = vadd.f32 %v15555_v20, %v1950_v15  ;;  %v2643_v33 = vadd.f32 %v15417_v38, %v15529_v22  ;;  %v4243_v51 = vld [vmem:[#allocation2 + $0x9] sm:$0xff]  ;;  %v4278_v34 = vmul.f32 %v15722_v58, %v4242_v50  ;;  %v15762_v22 = vld [vmem:[%s20086_s9 + $0x2] ss:$0 sm:$0xff]  ;;  %v20256_v15 = vld [vmem:[#allocation23_spill] sm:$0xff] }
 0x1d3   : > { %v15712_v46 = vadd.f32 %v13065_v32, %v15601_v1  ;;  %v15730_v1 = vld [vmem:[%s20086_s9] ss:$0 sm:$0xff]  ;;  %v2640_v32 = vadd.f32 %v15412_v2, %v15526_v39  ;;  %v2644_v2 = vadd.f32 %v20255_v60, %v20254_v44  ;;  %v2964_v39 = vadd.f32 %v15620_v49, %v2642_v63  ;;  %v20260_v49 = vld [vmem:[#allocation26_spill] sm:$0xff] }
 0x1d4   : > { %v15717_v30 = vpop.f32.mrf.mxu0  ;;  %v4214_v20 = vmul.f32 %v15730_v1, %v4179_v4  ;;  %v2647_v31 = vadd.f32 %v20257_v26, %v20256_v15  ;;  %v2645_v59 = vadd.f32 %v20258_v9, %v2388_v10  ;;  %v20259_v4 = vld [vmem:[#allocation18_spill] sm:$0xff]  ;;  %v2396_v56 = vadd.f32 %v20260_v49, %v1954_v35  ;;  %v20261_v35 = vld [vmem:[#allocation24_spill] sm:$0xff]  ;;  %v20262_v26 = vld [vmem:[#allocation19_spill] sm:$0xff] }
 0x1d5   : > { %v2649_v50 = vadd.f32 %v20259_v4, %v2392_v19  ;;  %v2404_v44 = vadd.f32 %v15599_v11, %v1962_v62  ;;  %v4370_v10 = vmul.f32 %v15762_v22, %v4334_v27  ;;  %v4215_v19 = vmul.f32 %v15730_v1, %v4180_v14  ;;  %v15792_v27 = vld [vmem:[%s20264_s27] ss:$0 sm:$0xff]  ;;  %v20269_v4 = vld [vmem:[#allocation27_spill] sm:$0xff] }
 0x1d6   : > { %v13068_v47 = vpop.f32.mrf.mxu0  ;;  %v4306_v15 = vadd.f32 %v4278_v34, %v4214_v20  ;;  %v2652_v9 = vadd.f32 %v20262_v26, %v20261_v35  ;;  %v2963_v11 = vadd.f32 %v15628_v36, %v2641_v8  ;;  %v2968_v62 = vadd.f32 %v15632_v52, %v2646_v16  ;;  %v20267_v36 = vld [vmem:[#allocation32_spill] sm:$0xff]  ;;  %v20273_v35 = vld [vmem:[#allocation31_spill] sm:$0xff] }
 0x1d7   : > { %v15742_v37 = vadd.f32 %v13068_v47, %v15607_v25  ;;  %v15754_v25 = vpop.f32.mrf.mxu1  ;;  %v2962_v47 = vadd.f32 %v15622_v54, %v2640_v32  ;;  %v3406_v54 = vadd.f32 %v15603_v17, %v2964_v39  ;;  %v20263_v32 = vld [vmem:[#allocation20_spill] sm:$0xff]  ;;  %v2966_v20 = vadd.f32 %v15634_v3, %v2644_v2  ;;  %v20266_v39 = vld [vmem:[#allocation25_spill] sm:$0xff] }
 0x1d8   : > { %v2947_v21 = vpop.f32.mrf.mxu0  ;;  %v15798_v14 = vadd.f32 %v20266_v39, %v2404_v44  ;;  %v2967_v52 = vadd.f32 %v20267_v36, %v2645_v59  ;;  %v15804_v3 = vld [vmem:[%s20085_s8] ss:$0 sm:$0xff]  ;;  %v15806_v16 = vadd.f32 %v4370_v10, %v4306_v15  ;;  %v20271_v59 = vld [vmem:[#allocation29_spill] sm:$0xff]  ;;  %v2971_v15 = vadd.f32 %v15655_v42, %v2649_v50 }
 0x1d9   : > { %v15757_v38 = vadd.f32 %v2947_v21, %v15612_v40  ;;  %v2400_v40 = vadd.f32 %v15590_v61, %v1958_v55  ;;  %v4279_v21 = vmul.f32 %v15722_v58, %v4243_v51  ;;  %v2408_v61 = vadd.f32 %v15614_v7, %v1966_v53  ;;  %v13090_v55 = vpop.f32.mrf.mxu1  ;;  %v20265_v7 = vld [vmem:[#allocation22_spill] sm:$0xff]  ;;  %20268 = vst [vmem:[#allocation12_spill] sm:$0xff] %v15804_v3 }
 0x1da   : > { %v13069_v23 = vpop.f32.mrf.mxu0  ;;  %v2653_v51 = vadd.f32 %v20263_v32, %v2396_v56  ;;  %v3404_v17 = vadd.f32 %v15609_v43, %v2962_v47  ;;  %v20272_v47 = vld [vmem:[#allocation30_spill] sm:$0xff]  ;;  %v3408_v26 = vadd.f32 %v20273_v35, %v2966_v20  ;;  %v3409_v32 = vadd.f32 %v15647_v24, %v2967_v52  ;;  %v20280_v52 = vld [vmem:[#allocation36_spill] sm:$0xff] }
 0x1db   : > { %v15772_v63 = vadd.f32 %v13069_v23, %v15616_v12  ;;  %v2965_v12 = vadd.f32 %v15626_v0, %v2643_v33  ;;  %v2657_v53 = vadd.f32 %v20265_v7, %v2400_v40  ;;  %v2969_v0 = vadd.f32 %v15638_v28, %v2647_v31  ;;  %v20270_v28 = vld [vmem:[#allocation28_spill] sm:$0xff]  ;;  %v3357_v49 = vpop.f32.mrf.mxu1  ;;  %v20276_v7 = vld [vmem:[#allocation37_spill] sm:$0xff] }
 0x1dc   : > { %v15776_v60 = vpop.f32.mrf.mxu0  ;;  %v15808_v2 = vadd.f32 %v4279_v21, %v4215_v19  ;;  %v15811_v43 = vadd.f32 %v20269_v4, %v2408_v61  ;;  %v3405_v40 = vadd.f32 %v20271_v59, %v2963_v11  ;;  %v3410_v44 = vadd.f32 %v20272_v47, %v2968_v62  ;;  %v20274_v21 = vld [vmem:[#allocation33_spill] sm:$0xff]  ;;  %v20279_v4 = vld [vmem:[#allocation40_spill] sm:$0xff] }
 0x1dd   : > { %v3407_v31 = vadd.f32 %v20270_v28, %v2965_v12  ;;  %v3411_v19 = vadd.f32 %v20274_v21, %v2969_v0  ;;  %v2975_v20 = vadd.f32 %v15669_v6, %v2653_v51  ;;  %v13091_v42 = vpop.f32.mrf.mxu1  ;;  %v15838_v28 = vadd.f32 %v15671_v18, %v20280_v52  ;;  %v20281_v6 = vld [vmem:[#allocation38_spill] sm:$0xff] }
 0x1de   : > { %v13104_v34 = vpop.f32.mrf.mxu0  ;;  %v15845_v51 = vadd.f32 %v15683_v41, %v20281_v6 }
 0x1df   : > { %v3663_v33 = vadd.f32 %v13104_v34, %v3406_v54  ;;  %v20275_v34 = vld [vmem:[#allocation34_spill] sm:$0xff]  ;;  %v15862_v41 = vadd.f32 %v15754_v25, %v2975_v20 }
 0x1e0   : > { %v3550_v8 = vpop.f32.mrf.mxu0  ;;  %v3414_v11 = vadd.f32 %v20276_v7, %v20275_v34 }
 0x1e1   : > { %v3698_v56 = vmul.f32 %v15792_v27, %v3663_v33  ;;  %v3661_v23 = vadd.f32 %v3550_v8, %v3404_v17  ;;  %v20277_v17 = vld [vmem:[#allocation39_spill] sm:$0xff] }
 0x1e2   : > { %v13105_v10 = vpop.f32.mrf.mxu0  ;;  %v2974_v62 = vadd.f32 %v20277_v17, %v2652_v9  ;;  %v20278_v8 = vld [vmem:[#allocation35_spill] sm:$0xff]  ;;  %v15841_v9 = vadd.f32 %v15675_v13, %v2971_v15  ;;  %v15859_v13 = vadd.f32 %v15725_v29, %v15667_v5  ;;  %v3360_v15 = vpop.f32.mrf.mxu1  ;;  %v20283_v5 = vld [vmem:[#allocation42_spill] sm:$0xff] }
 0x1e3   : > { %v15821_v61 = vadd.f32 %v15804_v3, %v3698_v56  ;;  %v3696_v54 = vmul.f32 %v15792_v27, %v3661_v23  ;;  %v3664_v12 = vadd.f32 %v13105_v10, %v3407_v31  ;;  %v3412_v24 = vadd.f32 %v20279_v4, %v20278_v8 }
 0x1e4   : > { %v3553_v33 = vpop.f32.mrf.mxu0  ;;  %v15855_v18 = vadd.f32 %v15702_v57, %v2974_v62  ;;  %v20282_v57 = vld [vmem:[#allocation41_spill] sm:$0xff]  ;;  %v15874_v29 = vadd.f32 %v3357_v49, %v20283_v5  ;;  %v13094_v4 = vpop.f32.mrf.mxu1 }
 0x1e5   : > { %v3761_v50 = vmax.f32 %v15821_v61, 0.0  ;;  %v15831_v0 = vadd.f32 %v15804_v3, %v3696_v54  ;;  %v3699_v39 = vmul.f32 %v15792_v27, %v3664_v12  ;;  %v3662_v36 = vadd.f32 %v3553_v33, %v3405_v40  ;;  %v20284_v33 = vld [vmem:[#allocation44_spill] sm:$0xff] }
 0x1e6   : > { %v13108_v31 = vpop.f32.mrf.mxu0  ;;  %v15871_v34 = vadd.f32 %v13090_v55, %v20282_v57 }
 0x1e7   : > { %v3789_v56 = vsub.f32 0.0, %v3761_v50  ;;  %v3759_v23 = vmax.f32 %v15831_v0, 0.0  ;;  %v15851_v59 = vadd.f32 %v15804_v3, %v3699_v39  ;;  %v3697_v40 = vmul.f32 %v15792_v27, %v3662_v36 }
 0x1e8   : > { %v3667_v47 = vadd.f32 %v13108_v31, %v3410_v44  ;;  %v3566_v35 = vpop.f32.mrf.mxu0  ;;  %v2979_v39 = vadd.f32 %v20284_v33, %v2657_v53  ;;  %v20285_v31 = vld [vmem:[#allocation43_spill] sm:$0xff] }
 0x1e9   : > { %v3819_v10 = vmul.f32 1.442695, %v3789_v56  ;;  %v3787_v21 = vsub.f32 0.0, %v3759_v23  ;;  %v3762_v54 = vmax.f32 %v15851_v59, 0.0  ;;  %v15868_v12 = vadd.f32 %v15804_v3, %v3697_v40 }
 0x1ea   : > { %v3702_v25 = vmul.f32 %v15792_v27, %v3667_v47  ;;  %v3665_v44 = vadd.f32 %v3566_v35, %v3408_v26  ;;  %v13109_v7 = vpop.f32.mrf.mxu0  ;;  %v15888_v56 = vadd.f32 %v13091_v42, %v20285_v31  ;;  %v15896_v57 = vadd.f32 %v3360_v15, %v2979_v39 }
 0x1eb   : > { %14060 = vpow2.f32 %v3819_v10  ;;  %v3815_v17 = vmul.f32 1.442695, %v3787_v21  ;;  %v3790_v62 = vsub.f32 0.0, %v3762_v54  ;;  %v3760_v20 = vmax.f32 %v15868_v12, 0.0 }
 0x1ec   : > { %v15882_v36 = vadd.f32 %v15804_v3, %v3702_v25  ;;  %v3700_v55 = vmul.f32 %v15792_v27, %v3665_v44  ;;  %v3668_v49 = vadd.f32 %v13109_v7, %v3411_v19  ;;  %v3569_v8 = vpop.f32.mrf.mxu0  ;;  %v3373_v44 = vpop.f32.mrf.mxu1 }
 0x1ed   : > { %14062 = vpow2.f32 %v3815_v17  ;;  %v3821_v26 = vmul.f32 1.442695, %v3790_v62  ;;  %v3788_v52 = vsub.f32 0.0, %v3760_v20  ;;  %v3666_v6 = vadd.f32 %v3569_v8, %v3409_v32 }
 0x1ee   : > { %v3765_v40 = vmax.f32 %v15882_v36, 0.0  ;;  %v15892_v53 = vadd.f32 %v15804_v3, %v3700_v55  ;;  %v3703_v47 = vmul.f32 %v15792_v27, %v3668_v49  ;;  %v13112_v35 = vpop.f32.mrf.mxu0  ;;  %v13095_v31 = vpop.f32.mrf.mxu1 }
 0x1ef   : > { %14064 = vpow2.f32 %v3821_v26  ;;  %v3817_v19 = vmul.f32 1.442695, %v3788_v52  ;;  %v3701_v10 = vmul.f32 %v15792_v27, %v3666_v6  ;;  %v3671_v21 = vadd.f32 %v13112_v35, %v3414_v11 }
 0x1f0   : > { %v3793_v32 = vsub.f32 0.0, %v3765_v40  ;;  %v20122_v42 = vmax.f32 %v15892_v53, 0.0  ;;  %v15902_v5 = vadd.f32 %v15804_v3, %v3703_v47  ;;  %v3582_v25 = vpop.f32.mrf.mxu0  ;;  %v15909_v11 = vadd.f32 %v13094_v4, %v15689_v48 }
 0x1f1   : > { %14066 = vpow2.f32 %v3817_v19  ;;  %v15905_v7 = vadd.f32 %v15804_v3, %v3701_v10  ;;  %v3706_v17 = vmul.f32 %v15792_v27, %v3671_v21  ;;  %v3669_v62 = vadd.f32 %v3582_v25, %v3412_v24 }
 0x1f2   : > { %v3827_v15 = vmul.f32 1.442695, %v3793_v32  ;;  %v3791_v33 = vsub.f32 0.0, %v20122_v42  ;;  %v20121_v39 = vmax.f32 %v15902_v5, 0.0  ;;  %v13113_v55 = vpop.f32.mrf.mxu0  ;;  %v15921_v24 = vadd.f32 %v3373_v44, %v15705_v45 }
 0x1f3   : > { %v20118_v49 = vmax.f32 %v15905_v7, 0.0  ;;  %v15916_v8 = vadd.f32 %v15804_v3, %v3706_v17  ;;  %v3704_v26 = vmul.f32 %v15792_v27, %v3669_v62  ;;  %v3672_v52 = vadd.f32 %v13113_v55, %v15838_v28 }
 0x1f4   : > { %14068 = vpow2.f32 %v3827_v15  ;;  %v3823_v48 = vmul.f32 1.442695, %v3791_v33  ;;  %v3794_v4 = vsub.f32 0.0, %v20121_v39  ;;  %v3585_v6 = vpop.f32.mrf.mxu0  ;;  %v15934_v45 = vadd.f32 %v15717_v30, %v15798_v14 }
 0x1f5   : > { %v3792_v47 = vsub.f32 0.0, %v20118_v49  ;;  %v20116_v35 = vmax.f32 %v15916_v8, 0.0  ;;  %v15929_v19 = vadd.f32 %v15804_v3, %v3704_v26  ;;  %v3707_v28 = vmul.f32 %v15792_v27, %v3672_v52 }
 0x1f6   : > { %14070 = vpow2.f32 %v3823_v48  ;;  %v3829_v10 = vmul.f32 1.442695, %v3794_v4  ;;  %v3670_v21 = vadd.f32 %v3585_v6, %v15841_v9  ;;  %v13116_v32 = vpop.f32.mrf.mxu0  ;;  %v15944_v33 = vadd.f32 %v13095_v31, %v15712_v46 }
 0x1f7   : > { %v3825_v25 = vmul.f32 1.442695, %v3792_v47  ;;  %v3797_v44 = vsub.f32 0.0, %v20116_v35  ;;  %v20114_v17 = vmax.f32 %v15929_v19, 0.0  ;;  %v15941_v62 = vadd.f32 %v15804_v3, %v3707_v28 }
 0x1f8   : > { %v14061_v15 = vpop.eup %14060  ;;  %14072 = vpow2.f32 %v3829_v10  ;;  %v3705_v30 = vmul.f32 %v15792_v27, %v3670_v21  ;;  %v3675_v14 = vadd.f32 %v13116_v32, %v15845_v51  ;;  %v3598_v9 = vpop.f32.mrf.mxu0 }
 0x1f9   : > { %v3873_v55 = vadd.f32 1.0, %v14061_v15  ;;  %14074 = vpow2.f32 %v3825_v25  ;;  %v3835_v26 = vmul.f32 1.442695, %v3797_v44  ;;  %v3795_v52 = vsub.f32 0.0, %v20114_v17 }
 0x1fa   : > { %v14063_v48 = vpop.eup %14062  ;;  %v20113_v4 = vmax.f32 %v15941_v62, 0.0  ;;  %v15952_v6 = vadd.f32 %v15804_v3, %v3705_v30  ;;  %v3710_v46 = vmul.f32 %v15792_v27, %v3675_v14  ;;  %v3673_v31 = vadd.f32 %v3598_v9, %v15855_v18  ;;  %v13117_v47 = vpop.f32.mrf.mxu0 }
 0x1fb   : > { %14076 = vrcp.f32 %v3873_v55  ;;  %v3871_v51 = vadd.f32 1.0, %v14063_v48  ;;  %v3831_v28 = vmul.f32 1.442695, %v3795_v52  ;;  %v3676_v10 = vadd.f32 %v13117_v47, %v15859_v13 }
 0x1fc   : > { %v14065_v21 = vpop.eup %14064  ;;  %14078 = vpow2.f32 %v3835_v26  ;;  %v3798_v32 = vsub.f32 0.0, %v20113_v4  ;;  %v20111_v25 = vmax.f32 %v15952_v6, 0.0  ;;  %v15961_v44 = vadd.f32 %v15804_v3, %v3710_v46  ;;  %v3601_v15 = vpop.f32.mrf.mxu0 }
 0x1fd   : > { %14080 = vrcp.f32 %v3871_v51  ;;  %v3874_v30 = vadd.f32 1.0, %v14065_v21  ;;  %v3708_v18 = vmul.f32 %v15792_v27, %v3673_v31  ;;  %v3711_v14 = vmul.f32 %v15792_v27, %v3676_v10 }
 0x1fe   : > { %v14067_v9 = vpop.eup %14066  ;;  %14082 = vpow2.f32 %v3831_v28  ;;  %v3837_v13 = vmul.f32 1.442695, %v3798_v32  ;;  %v3796_v55 = vsub.f32 0.0, %v20111_v25  ;;  %v20112_v26 = vmax.f32 %v15961_v44, 0.0  ;;  %v13120_v52 = vpop.f32.mrf.mxu0 }
 0x1ff   : > { %14084 = vrcp.f32 %v3874_v30  ;;  %v3872_v48 = vadd.f32 1.0, %v14067_v9  ;;  %v15969_v46 = vadd.f32 %v15804_v3, %v3708_v18  ;;  %v15972_v47 = vadd.f32 %v15804_v3, %v3711_v14  ;;  %v15977_v32 = vpop.permute.xlu0 %3985  ;;  %v3376_v14 = vpop.f32.mrf.mxu1 }
 0x200   : > { %14086 = vpow2.f32 %v3837_v13  ;;  %v3833_v31 = vmul.f32 1.442695, %v3796_v55  ;;  %v3801_v51 = vsub.f32 0.0, %v20112_v26  ;;  %v3674_v28 = vadd.f32 %v3601_v15, %v15862_v41  ;;  %v3614_v10 = vpop.f32.mrf.mxu0  ;;  %20287 = vst [vmem:[#allocation8_spill] sm:$0xff] %v15977_v32 }
 0x201   : > { %20286 = vst [vmem:[#allocation14_spill] sm:$0xff] %v15972_v47  ;;  %v14069_v21 = vpop.eup %14068  ;;  %14088 = vrcp.f32 %v3872_v48  ;;  %v20115_v30 = vmax.f32 %v15969_v46, 0.0  ;;  %v20117_v18 = vmax.f32 %v15972_v47, 0.0  ;;  %v3679_v9 = vadd.f32 %v13120_v52, %v15871_v34  ;;  %v13098_v49 = vpop.f32.mrf.mxu1 }
 0x202   : > { %v3877_v25 = vadd.f32 1.0, %v14069_v21  ;;  %14090 = vpow2.f32 %v3833_v31  ;;  %v3843_v13 = vmul.f32 1.442695, %v3801_v51  ;;  %v3709_v55 = vmul.f32 %v15792_v27, %v3674_v28  ;;  %v13121_v26 = vpop.f32.mrf.mxu0  ;;  %v15993_v21 = vpop.permute.xlu1 %3995 }
 0x203   : > { %v14071_v4 = vpop.eup %14070  ;;  %v3799_v41 = vsub.f32 0.0, %v20115_v30  ;;  %v3802_v15 = vsub.f32 0.0, %v20117_v18  ;;  %v3714_v48 = vmul.f32 %v15792_v27, %v3679_v9  ;;  %v3677_v17 = vadd.f32 %v3614_v10, %v15874_v29  ;;  %20289 = vst [vmem:[#allocation6_spill] sm:$0xff] %v15993_v21  ;;  %v16000_v10 = vpop.permute.xlu0 %3990 }
 0x204   : > { %14092 = vrcp.f32 %v3877_v25  ;;  %v3875_v34 = vadd.f32 1.0, %v14071_v4  ;;  %v15990_v52 = vadd.f32 %v15804_v3, %v3709_v55  ;;  %v3680_v31 = vadd.f32 %v13121_v26, %v15888_v56  ;;  %v3617_v51 = vpop.f32.mrf.mxu0  ;;  %20291 = vst [vmem:[#allocation9_spill] sm:$0xff] %v16000_v10 }
 0x205   : > { %v14073_v28 = vpop.eup %14072  ;;  %14094 = vpow2.f32 %v3843_v13  ;;  %v3839_v30 = vmul.f32 1.442695, %v3799_v41  ;;  %v3845_v35 = vmul.f32 1.442695, %v3802_v15  ;;  %v15996_v18 = vadd.f32 %v15804_v3, %v3714_v48 }
 0x206   : > { %20288 = vst [vmem:[#allocation5_spill] sm:$0xff] %v15990_v52  ;;  %v14075_v9 = vpop.eup %14074  ;;  %14096 = vrcp.f32 %v3875_v34  ;;  %v3878_v29 = vadd.f32 1.0, %v14073_v28  ;;  %v20119_v4 = vmax.f32 %v15990_v52, 0.0  ;;  %v3712_v25 = vmul.f32 %v15792_v27, %v3677_v17  ;;  %v13124_v55 = vpop.f32.mrf.mxu0 }
 0x207   : > { %20290 = vst [vmem:[#allocation7_spill] sm:$0xff] %v15996_v18  ;;  %v3876_v56 = vadd.f32 1.0, %v14075_v9  ;;  %14098 = vpow2.f32 %v3839_v30  ;;  %v20120_v26 = vmax.f32 %v15996_v18, 0.0  ;;  %v3715_v13 = vmul.f32 %v15792_v27, %v3680_v31  ;;  %v16033_v42 = vpop.permute.xlu0 %4005 }
 0x208   : > { %v14077_v41 = vpop.eup %14076  ;;  %14100 = vrcp.f32 %v3878_v29  ;;  %v3800_v15 = vsub.f32 0.0, %v20119_v4  ;;  %v16007_v48 = vadd.f32 %v15804_v3, %v3712_v25  ;;  %v3678_v34 = vadd.f32 %v3617_v51, %v15896_v57  ;;  %v3389_v25 = vpop.f32.mrf.mxu1  ;;  %20297 = vst [vmem:[#allocation23_spill] sm:$0xff] %v16033_v42 }
 0x209   : > { %v14079_v17 = vpop.eup %14078  ;;  %v16011_v28 = vadd.f32 %v3376_v14, %v15934_v45  ;;  %v3957_v30 = vmul.f32 %v14077_v41, %v3761_v50  ;;  %v3805_v31 = vsub.f32 0.0, %v20120_v26  ;;  %v16018_v9 = vadd.f32 %v15804_v3, %v3715_v13  ;;  %v16024_v14 = vpop.permute.xlu1 %4000 }
 0x20a   : > { %20292 = vst [vmem:[#allocation10_spill] sm:$0xff] %v16007_v48  ;;  %v14081_v29 = vpop.eup %14080  ;;  %v16021_v4 = vadd.f32 %v13098_v49, %v15742_v37  ;;  %14102 = vrcp.f32 %v3876_v56  ;;  %v3881_v57 = vadd.f32 1.0, %v14079_v17  ;;  %v20123_v51 = vmax.f32 %v16007_v48, 0.0  ;;  %20296 = vst [vmem:[#allocation15_spill] sm:$0xff] %v16024_v14  ;;  %v3630_v26 = vpop.f32.mrf.mxu0 }
 0x20b   : > { %20293 = vst [vmem:[#allocation11_spill] sm:$0xff] %v16011_v28  ;;  %20294 = vst [vmem:[#allocation13_spill] sm:$0xff] %v16018_v9  ;;  %v14083_v45 = vpop.eup %14082  ;;  %v4125_v61 = vmul.f32 %v15993_v21, %v3957_v30  ;;  %v3955_v50 = vmul.f32 %v14081_v29, %v3759_v23  ;;  %v3841_v41 = vmul.f32 1.442695, %v3800_v15  ;;  %v20125_v13 = vmax.f32 %v16018_v9, 0.0 }
 0x20c   : > { %20295 = vst [vmem:[#allocation21_spill] sm:$0xff] %v16021_v4  ;;  %v14085_v39 = vpop.eup %14084  ;;  %v3879_v37 = vadd.f32 1.0, %v14083_v45  ;;  %14104 = vpow2.f32 %v3845_v35  ;;  %v3803_v49 = vsub.f32 0.0, %v20123_v51  ;;  %v3713_v56 = vmul.f32 %v15792_v27, %v3678_v34  ;;  %v13099_v45 = vpop.f32.mrf.mxu1  ;;  %v16156_v21 = vld [vmem:[%s20086_s9 + $0x5] ss:$0 sm:$0xff] }
 0x20d   : > { %v14087_v17 = vpop.eup %14086  ;;  %4153 = vst.msk [vmem:[#allocation2 + $0x21] sm:$0xff] %vm774_vm4, %v4125_v61  ;;  %v4123_v0 = vmul.f32 %v15977_v32, %v3955_v50  ;;  %v3958_v23 = vmul.f32 %v14085_v39, %v3762_v54  ;;  %v3851_v15 = vmul.f32 1.442695, %v3805_v31  ;;  %v3806_v30 = vsub.f32 0.0, %v20125_v13  ;;  %v13125_v31 = vpop.f32.mrf.mxu0 }
 0x20e   : > { %v14089_v35 = vpop.eup %14088  ;;  %v2987_v29 = vadd.f32 %v15776_v60, %v15811_v43  ;;  %14106 = vrcp.f32 %v3881_v57  ;;  %v3882_v34 = vadd.f32 1.0, %v14087_v17  ;;  %v16044_v51 = vadd.f32 %v15804_v3, %v3713_v56  ;;  %v16052_v56 = vpop.permute.xlu1 %4010 }
 0x20f   : > { %v14091_v61 = vpop.eup %14090  ;;  %4151 = vst.msk [vmem:[#allocation2 + $0x11] sm:$0xff] %vm774_vm4, %v4123_v0  ;;  %v4126_v59 = vmul.f32 %v16024_v14, %v3958_v23  ;;  %v3956_v54 = vmul.f32 %v14089_v35, %v3760_v20  ;;  %14108 = vpow2.f32 %v3841_v41  ;;  %v3847_v39 = vmul.f32 1.442695, %v3803_v49  ;;  %20299 = vst [vmem:[#allocation17_spill] sm:$0xff] %v16052_v56  ;;  %v3392_v41 = vpop.f32.mrf.mxu1 }
 0x210   : > { %20298 = vst [vmem:[#allocation16_spill] sm:$0xff] %v16044_v51  ;;  %14110 = vrcp.f32 %v3879_v37  ;;  %v3880_v50 = vadd.f32 1.0, %v14091_v61  ;;  %v20124_v60 = vmax.f32 %v16044_v51, 0.0  ;;  %v3683_v43 = vadd.f32 %v13124_v55, %v15909_v11  ;;  %v16062_v23 = vpop.permute.xlu0 %4015  ;;  %v16090_v61 = vld [vmem:[%s20086_s9 + $0x7] ss:$0 sm:$0xff] }
 0x211   : > { %v14093_v57 = vpop.eup %14092  ;;  %4154 = vst.msk [vmem:[#allocation2 + $0x29] sm:$0xff] %vm774_vm4, %v4126_v59  ;;  %v4124_v17 = vmul.f32 %v16000_v10, %v3956_v54  ;;  %14112 = vpow2.f32 %v3851_v15  ;;  %v3853_v0 = vmul.f32 1.442695, %v3806_v30  ;;  %v3681_v12 = vadd.f32 %v3630_v26, %v15921_v24  ;;  %20300 = vst [vmem:[#allocation18_spill] sm:$0xff] %v16062_v23  ;;  %v16161_v51 = vld [vmem:[%s20086_s9 + $0x6] ss:$0 sm:$0xff] }
 0x212   : > { %v14095_v20 = vpop.eup %14094  ;;  %v3961_v37 = vmul.f32 %v14093_v57, %v3765_v40  ;;  %14114 = vrcp.f32 %v3882_v34  ;;  %v3804_v11 = vsub.f32 0.0, %v20124_v60  ;;  %v3684_v55 = vadd.f32 %v13125_v31, %v15944_v33  ;;  %v16075_v33 = vld [vmem:[%s20086_s9 + $0x4] ss:$0 sm:$0xff] }
 0x213   : > { %v14097_v49 = vpop.eup %14096  ;;  %v16065_v35 = vadd.f32 %v3389_v25, %v15757_v38  ;;  %v16068_v15 = vadd.f32 %v13099_v45, %v15772_v63  ;;  %4152 = vst.msk [vmem:[#allocation2 + $0x19] sm:$0xff] %vm774_vm4, %v4124_v17  ;;  %14116 = vpow2.f32 %v3847_v39  ;;  %v3718_v36 = vmul.f32 %v15792_v27, %v3683_v43  ;;  %v16080_v38 = vld [vmem:[%s20086_s9 + $0x3] ss:$0 sm:$0xff] }
 0x214   : > { %v14099_v40 = vpop.eup %14098  ;;  %v4246_v24 = vld [vmem:[#allocation2 + $0x21] sm:$0xff]  ;;  %v4129_v63 = vmul.f32 %v16062_v23, %v3961_v37  ;;  %v20303_v26 = vmax.f32 %v15892_v53, 0.0  ;;  %14118 = vrcp.f32 %v3880_v50  ;;  %v3885_v30 = vadd.f32 1.0, %v14095_v20 }
 0x215   : > { %20301 = vst [vmem:[#allocation26_spill] sm:$0xff] %v16065_v35  ;;  %20302 = vst [vmem:[#allocation24_spill] sm:$0xff] %v16068_v15  ;;  %v14101_v45 = vpop.eup %14100  ;;  %v16085_v34 = vadd.f32 %v3392_v41, %v2987_v29  ;;  %14120 = vpow2.f32 %v3853_v0  ;;  %v3849_v59 = vmul.f32 1.442695, %v3804_v11  ;;  %v16093_v54 = vmul.f32 %v15792_v27, %v3681_v12  ;;  %v16102_v0 = vpop.permute.xlu1 %4020 }
 0x216   : > { %v3959_v25 = vmul.f32 %v14097_v49, %v20303_v26  ;;  %v4181_v39 = vld [vmem:[#allocation2 + $0x10] sm:$0xff]  ;;  %4157 = vst.msk [vmem:[#allocation2 + $0x41] sm:$0xff] %vm774_vm4, %v4129_v63  ;;  %v20305_v29 = vmax.f32 %v15902_v5, 0.0  ;;  %v3883_v57 = vadd.f32 1.0, %v14099_v40  ;;  %v16100_v17 = vmul.f32 %v15792_v27, %v3684_v55  ;;  %20307 = vst [vmem:[#allocation22_spill] sm:$0xff] %v16102_v0 }
 0x217   : > { %20304 = vst [vmem:[#allocation19_spill] sm:$0xff] %v16085_v34  ;;  %v4244_v31 = vld [vmem:[#allocation2 + $0x11] sm:$0xff]  ;;  %v14103_v20 = vpop.eup %14102  ;;  %v4282_v12 = vmul.f32 %v15722_v58, %v4246_v24  ;;  %v16106_v41 = vmul.f32 %v16075_v33, %v4246_v24  ;;  %v4436_v37 = vmul.f32 %v16080_v38, %v4181_v39  ;;  %v16110_v11 = vadd.f32 %v15804_v3, %v3718_v36 }
 0x218   : > { %v4335_v43 = vld [vmem:[#allocation2 + $0xa] sm:$0xff]  ;;  %v4127_v53 = vmul.f32 %v16033_v42, %v3959_v25  ;;  %v3962_v50 = vmul.f32 %v14101_v45, %v20305_v29  ;;  %20306 = vst [vmem:[#allocation20_spill] sm:$0xff] %v16100_v17  ;;  %v4216_v5 = vmul.f32 %v15730_v1, %v4181_v39  ;;  %v4280_v49 = vmul.f32 %v15722_v58, %v4244_v31  ;;  %v16116_v55 = vld [vmem:[#allocation2 + $0x22] sm:$0xff] }
 0x219   : > { %20308 = vst [vmem:[#allocation25_spill] sm:$0xff] %v16110_v11  ;;  %v4184_v40 = vld [vmem:[#allocation2 + $0x28] sm:$0xff]  ;;  %14122 = vrcp.f32 %v3885_v30  ;;  %v16120_v26 = vpop.eup %14104  ;;  %v16123_v25 = vmul.f32 %v16090_v61, %v4246_v24  ;;  %v4371_v36 = vmul.f32 %v15762_v22, %v4335_v43  ;;  %v4502_v45 = vmul.f32 %v16075_v33, %v4244_v31 }
 0x21a   : > { %v16114_v27 = vld [vmem:[#allocation2 + $0x29] sm:$0xff]  ;;  %4155 = vst.msk [vmem:[#allocation2 + $0x31] sm:$0xff] %vm774_vm4, %v4127_v53  ;;  %v4130_v63 = vmul.f32 %v16102_v0, %v3962_v50  ;;  %14124 = vpow2.f32 %v3849_v59  ;;  %v4464_v39 = vadd.f32 %v4436_v37, %v15806_v16  ;;  %v4219_v29 = vmul.f32 %v15730_v1, %v4184_v40  ;;  %v4182_v60 = vld [vmem:[#allocation2 + $0x18] sm:$0xff]  ;;  %v4183_v13 = vld [vmem:[#allocation2 + $0x20] sm:$0xff] }
 0x21b   : > { %v4245_v53 = vld [vmem:[#allocation2 + $0x19] sm:$0xff]  ;;  %v20309_v30 = vmax.f32 %v15905_v7, 0.0  ;;  %14126 = vrcp.f32 %v3883_v57  ;;  %v16134_v24 = vpop.eup %14106  ;;  %v4283_v31 = vmul.f32 %v15722_v58, %v16114_v27  ;;  %v4374_v16 = vmul.f32 %v15762_v22, %v16116_v55  ;;  %v16144_v7 = vpop.permute.xlu0 %4025 }
 0x21c   : > { %4158 = vst.msk [vmem:[#allocation2 + $0x49] sm:$0xff] %vm774_vm4, %v4130_v63  ;;  %v4439_v59 = vmul.f32 %v16080_v38, %v4184_v40  ;;  %v4217_v43 = vmul.f32 %v15730_v1, %v4182_v60  ;;  %v4336_v37 = vld [vmem:[#allocation2 + $0x12] sm:$0xff]  ;;  %v4337_v0 = vld [vmem:[#allocation2 + $0x1a] sm:$0xff]  ;;  %v16142_v63 = vpop.eup %14108  ;;  %20310 = vst [vmem:[#allocation32_spill] sm:$0xff] %v16144_v7  ;;  %v4218_v57 = vmul.f32 %v15730_v1, %v4183_v13 }
 0x21d   : > { %v16132_v50 = vmul.f32 %v14103_v20, %v20309_v30  ;;  %v4281_v20 = vmul.f32 %v15722_v58, %v4245_v53  ;;  %v4308_v30 = vadd.f32 %v4280_v49, %v4216_v5  ;;  %v4372_v23 = vmul.f32 %v15762_v22, %v4336_v37  ;;  %v16149_v42 = vpop.eup %14110 }
 0x21e   : > { %v4505_v14 = vmul.f32 %v16075_v33, %v16114_v27  ;;  %v4373_v9 = vmul.f32 %v15762_v22, %v4337_v0  ;;  %v4399_v5 = vadd.f32 %v4371_v36, %v15808_v2  ;;  %v4437_v49 = vmul.f32 %v16080_v38, %v4182_v60  ;;  %v16166_v48 = vpop.eup %14112 }
 0x21f   : > { %v4309_v34 = vadd.f32 %v4281_v20, %v4217_v43  ;;  %v4310_v15 = vadd.f32 %v4282_v12, %v4218_v57  ;;  %v4400_v18 = vadd.f32 %v4372_v23, %v4308_v30  ;;  %v4438_v52 = vmul.f32 %v16080_v38, %v4183_v13  ;;  %v16169_v47 = vpop.eup %14114 }
 0x220   : > { %v4465_v10 = vadd.f32 %v4437_v49, %v4399_v5  ;;  %v4503_v32 = vmul.f32 %v16075_v33, %v4245_v53  ;;  %v4530_v35 = vadd.f32 %v4502_v45, %v4464_v39  ;;  %v4568_v4 = vmul.f32 %v16156_v21, %v4336_v37  ;;  %v16173_v2 = vpop.eup %14116  ;;  %v16183_v53 = vld [vmem:[%s20086_s9 + $0x8] ss:$0 sm:$0xff]  ;;  %v16189_v5 = vpop.permute.xlu0 %4035 }
 0x221   : > { %v4185_v28 = vld [vmem:[#allocation2 + $0x30] sm:$0xff]  ;;  %v4570_v60 = vmul.f32 %v16156_v21, %v16116_v55  ;;  %v4635_v12 = vmul.f32 %v16161_v51, %v4184_v40  ;;  %v4401_v23 = vadd.f32 %v4373_v9, %v4309_v34  ;;  %v4466_v36 = vadd.f32 %v4438_v52, %v4400_v18  ;;  %v16178_v43 = vpop.eup %14118  ;;  %20311 = vst [vmem:[#allocation27_spill] sm:$0xff] %v16189_v5  ;;  %v4250_v18 = vld [vmem:[#allocation2 + $0x41] sm:$0xff] }
 0x222   : > { %v4248_v17 = vld [vmem:[#allocation2 + $0x31] sm:$0xff]  ;;  %v4531_v45 = vadd.f32 %v4503_v32, %v4465_v10  ;;  %v4569_v39 = vmul.f32 %v16156_v21, %v4337_v0  ;;  %v4596_v37 = vadd.f32 %v4568_v4, %v4530_v35  ;;  %v4634_v57 = vmul.f32 %v16161_v51, %v4183_v13  ;;  %v16187_v30 = vpop.eup %14120 }
 0x223   : > { %v4339_v20 = vld [vmem:[#allocation2 + $0x2a] sm:$0xff]  ;;  %v4311_v9 = vadd.f32 %v4283_v31, %v4219_v29  ;;  %v4220_v52 = vmul.f32 %v15730_v1, %v4185_v28  ;;  %v4284_v34 = vmul.f32 %v15722_v58, %v4248_v17  ;;  %v4402_v40 = vadd.f32 %v4374_v16, %v4310_v15 }
 0x224   : > { %v4597_v49 = vadd.f32 %v4569_v39, %v4531_v45  ;;  %v4662_v3 = vadd.f32 %v4634_v57, %v4596_v37  ;;  %v4440_v32 = vmul.f32 %v16080_v38, %v4185_v28  ;;  %v4467_v10 = vadd.f32 %v4439_v59, %v4401_v23  ;;  %v4188_v57 = vld [vmem:[#allocation2 + $0x48] sm:$0xff] }
 0x225   : > { %v4701_v4 = vmul.f32 %v16090_v61, %v16114_v27  ;;  %v4766_v13 = vmul.f32 %v16183_v53, %v16116_v55  ;;  %v4375_v35 = vmul.f32 %v15762_v22, %v4339_v20  ;;  %v4532_v0 = vadd.f32 %v16106_v41, %v4466_v36  ;;  %v16209_v27 = vld [vmem:[%s20087_s10] ss:$0 sm:$0xff] }
 0x226   : > { %v14123_v29 = vpop.eup %14122  ;;  %v4728_v31 = vadd.f32 %v16123_v25, %v4662_v3  ;;  %v16202_v15 = vmul.f32 %v15722_v58, %v4250_v18  ;;  %v4468_v16 = vadd.f32 %v4440_v32, %v4402_v40  ;;  %v4533_v45 = vadd.f32 %v4505_v14, %v4467_v10  ;;  %v4251_v40 = vld [vmem:[#allocation2 + $0x49] sm:$0xff]  ;;  %v16221_v32 = vpop.permute.xlu1 %4030 }
 0x227   : > { %v16204_v39 = vpop.eup %14124  ;;  %v16212_v55 = vmul.f32 %v16075_v33, %v4250_v18  ;;  %v16215_v41 = vmul.f32 %v16090_v61, %v4250_v18  ;;  %v4598_v59 = vadd.f32 %v4570_v60, %v4532_v0  ;;  %v4663_v3 = vadd.f32 %v4635_v12, %v4597_v49  ;;  %20316 = vst [vmem:[#allocation33_spill] sm:$0xff] %v16221_v32  ;;  %v16223_v10 = vpop.permute.xlu0 %4045  ;;  %v16228_v18 = vld [vmem:[%s20088_s11] ss:$0 sm:$0xff]  ;;  %v4342_v49 = vld [vmem:[#allocation2 + $0x42] sm:$0xff] }
 0x228   : > { %20312 = vst [vmem:[#allocation28_spill] sm:$0xff] %v16202_v15  ;;  %v14127_v25 = vpop.eup %14126  ;;  %v4794_v23 = vadd.f32 %v4766_v13, %v4728_v31  ;;  %v16217_v36 = vadd.f32 %v4284_v34, %v4220_v52  ;;  %v4506_v14 = vmul.f32 %v16075_v33, %v4248_v17  ;;  %v4571_v37 = vmul.f32 %v16156_v21, %v4339_v20 }
 0x229   : > { %20313 = vst [vmem:[#allocation29_spill] sm:$0xff] %v16212_v55  ;;  %20314 = vst [vmem:[#allocation30_spill] sm:$0xff] %v16215_v41  ;;  %v16230_v60 = vadd.f32 %v4375_v35, %v4311_v9  ;;  %v4636_v12 = vmul.f32 %v16161_v51, %v4185_v28  ;;  %v4729_v52 = vadd.f32 %v4701_v4, %v4663_v3  ;;  %v3633_v3 = vpop.f32.mrf.mxu0 }
 0x22a   : > { %20315 = vst [vmem:[#allocation31_spill] sm:$0xff] %v16217_v36  ;;  %20317 = vst [vmem:[#allocation34_spill] sm:$0xff] %v16223_v10  ;;  %v4767_v34 = vmul.f32 %v16183_v53, %v4339_v20  ;;  %v4829_v13 = vmul.f32 %v16209_v27, %v4794_v23  ;;  %v16235_v0 = vadd.f32 %v4506_v14, %v4468_v16  ;;  %v20320_v14 = vmax.f32 %v15941_v62, 0.0 }
 0x22b   : > { %v16237_v31 = vadd.f32 %v4571_v37, %v4533_v45  ;;  %v4702_v55 = vmul.f32 %v16090_v61, %v4248_v17  ;;  %v4664_v41 = vadd.f32 %v4636_v12, %v4598_v59  ;;  %v4223_v36 = vmul.f32 %v15730_v1, %v4188_v57 }
 0x22c   : > { %v4795_v15 = vadd.f32 %v4767_v34, %v4729_v52  ;;  %v4287_v9 = vmul.f32 %v15722_v58, %v4251_v40  ;;  %v16243_v28 = vadd.f32 %v16228_v18, %v4829_v13  ;;  %v16246_v20 = vmul.f32 %v15762_v22, %v4342_v49  ;;  %v16272_v52 = vpop.permute.xlu1 %4040 }
 0x22d   : > { %v16249_v4 = vmul.f32 %v16080_v38, %v4188_v57  ;;  %v16252_v35 = vmul.f32 %v16075_v33, %v4251_v40  ;;  %v4128_v16 = vmul.f32 %v16052_v56, %v16132_v50  ;;  %v20318_v1 = vmax.f32 %v15916_v8, 0.0  ;;  %20323 = vst [vmem:[#allocation37_spill] sm:$0xff] %v16272_v52 }
 0x22e   : > { %v4830_v17 = vmul.f32 %v16209_v27, %v4795_v15  ;;  %v20319_v45 = vmax.f32 %v15929_v19, 0.0  ;;  %v4892_v23 = vsub.f32 0.0, %v16243_v28  ;;  %v3966_v37 = vmul.f32 %v16169_v47, %v20320_v14 }
 0x22f   : > { %v3965_v58 = vmul.f32 %v16134_v24, %v20318_v1  ;;  %v20321_v15 = vmax.f32 %v15952_v6, 0.0  ;;  %v20322_v50 = vmax.f32 %v15961_v44, 0.0  ;;  %v16274_v24 = vpop.permute.xlu0 %4055  ;;  %4156 = vst.msk [vmem:[#allocation2 + $0x39] sm:$0xff] %vm774_vm4, %v4128_v16  ;;  %v20325_v6 = vmax.f32 %v15969_v46, 0.0 }
 0x230   : > { %v3963_v59 = vmul.f32 %v16149_v42, %v20319_v45  ;;  %20324 = vst [vmem:[#allocation39_spill] sm:$0xff] %v16274_v24  ;;  %v16277_v42 = vadd.f32 %v16228_v18, %v4830_v17  ;;  %v4134_v44 = vmul.f32 %v16272_v52, %v3966_v37  ;;  %v3886_v16 = vadd.f32 1.0, %v16120_v26 }
 0x231   : > { %v3964_v12 = vmul.f32 %v16178_v43, %v20321_v15  ;;  %v3969_v8 = vmul.f32 %v14123_v29, %v20322_v50  ;;  %v4133_v19 = vmul.f32 %v16189_v5, %v3965_v58  ;;  %v3967_v47 = vmul.f32 %v14127_v25, %v20325_v6  ;;  %v13128_v25 = vpop.f32.mrf.mxu0 }
 0x232   : > { %v4131_v62 = vmul.f32 %v16144_v7, %v3963_v59  ;;  %v4920_v43 = vmul.f32 1.442695, %v4892_v23  ;;  %v4893_v13 = vsub.f32 0.0, %v16277_v42  ;;  %v3884_v46 = vadd.f32 1.0, %v16142_v63  ;;  %4162 = vst.msk [vmem:[#allocation2 + $0x69] sm:$0xff] %vm774_vm4, %v4134_v44  ;;  %v20331_v44 = vld [vmem:[#allocation21_spill] sm:$0xff] }
 0x233   : > { %v4132_v29 = vmul.f32 %v16221_v32, %v3964_v12  ;;  %v4137_v34 = vmul.f32 %v16274_v24, %v3969_v8  ;;  %4161 = vst.msk [vmem:[#allocation2 + $0x61] sm:$0xff] %vm774_vm4, %v4133_v19  ;;  %v4135_v17 = vmul.f32 %v16223_v10, %v3967_v47  ;;  %v16293_v1 = vadd.f32 %v4702_v55, %v4664_v41  ;;  %v3646_v14 = vpop.f32.mrf.mxu0 }
 0x234   : > { %4159 = vst.msk [vmem:[#allocation2 + $0x51] sm:$0xff] %vm774_vm4, %v4131_v62  ;;  %14128 = vpow2.f32 %v4920_v43  ;;  %v16295_v58 = vadd.f32 %v4287_v9, %v4223_v36  ;;  %v16298_v45 = vmul.f32 %v16156_v21, %v4342_v49  ;;  %v4922_v59 = vmul.f32 1.442695, %v4893_v13  ;;  %v16346_v62 = vld [vmem:[%s20086_s9 + $0x1] ss:$0 sm:$0xff] }
 0x235   : > { %4160 = vst.msk [vmem:[#allocation2 + $0x59] sm:$0xff] %vm774_vm4, %v4132_v29  ;;  %4165 = vst.msk [vmem:[#allocation2 + $0x81] sm:$0xff] %vm774_vm4, %v4137_v34  ;;  %v16304_v26 = vmul.f32 %v16161_v51, %v4188_v57  ;;  %14130 = vrcp.f32 %v3886_v16  ;;  %v20141_v63 = vmax.f32 %v16110_v11, 0.0  ;;  %v16309_v55 = vmul.f32 %v16090_v61, %v4251_v40  ;;  %v16358_v13 = vld [vmem:[%s20086_s9 + $0x2] ss:$0 sm:$0xff]  ;;  %v20333_v16 = vld [vmem:[#allocation26_spill] sm:$0xff] }
 0x236   : > { %4163 = vst.msk [vmem:[#allocation2 + $0x71] sm:$0xff] %vm774_vm4, %v4135_v17  ;;  %v16312_v41 = vmul.f32 %v16183_v53, %v4342_v49  ;;  %14132 = vrcp.f32 %v3884_v46  ;;  %v3889_v36 = vadd.f32 1.0, %v16166_v48  ;;  %v16316_v9 = vadd.f32 1.0, %v16173_v2  ;;  %v4186_v37 = vld [vmem:[#allocation2 + $0x38] sm:$0xff]  ;;  %v4187_v40 = vld [vmem:[#allocation2 + $0x40] sm:$0xff] }
 0x237   : > { %14134 = vpow2.f32 %v4922_v59  ;;  %v16319_v57 = vadd.f32 1.0, %v16187_v30  ;;  %v16322_v23 = vadd.f32 1.0, %v16204_v39  ;;  %v4249_v15 = vld [vmem:[#allocation2 + $0x39] sm:$0xff]  ;;  %v16326_v49 = vsub.f32 0.0, %v20141_v63 }
 0x238   : > { %v20328_v48 = vld [vmem:[#allocation12_spill] sm:$0xff]  ;;  %v20330_v30 = vld [vmem:[#allocation11_spill] sm:$0xff]  ;;  %v4441_v43 = vmul.f32 %v16080_v38, %v4186_v37  ;;  %v16362_v46 = vadd.f32 %v3646_v14, %v20333_v16  ;;  %v4637_v63 = vmul.f32 %v16161_v51, %v4186_v37  ;;  %14136 = vrcp.f32 %v3889_v36 }
 0x239   : > { %20326 = vst [vmem:[#allocation35_spill] sm:$0xff] %v16319_v57  ;;  %20327 = vst [vmem:[#allocation40_spill] sm:$0xff] %v16322_v23  ;;  %v16330_v12 = vadd.f32 %v20328_v48, %v16093_v54  ;;  %v20329_v2 = vld [vmem:[#allocation20_spill] sm:$0xff]  ;;  %v3682_v8 = vadd.f32 %v3633_v3, %v20330_v30  ;;  %v4285_v54 = vmul.f32 %v16346_v62, %v4249_v15  ;;  %v4340_v6 = vld [vmem:[#allocation2 + $0x32] sm:$0xff] }
 0x23a   : > { %v16334_v50 = vadd.f32 %v20328_v48, %v20329_v2  ;;  %v16340_v39 = vld [vmem:[%s20086_s9] ss:$0 sm:$0xff]  ;;  %v16351_v3 = vadd.f32 %v13128_v25, %v20331_v44  ;;  %v4376_v34 = vmul.f32 %v15762_v22, %v4340_v6  ;;  %20334 = vst [vmem:[#allocation38_spill] sm:$0xff] %v16362_v46  ;;  %v4469_v48 = vadd.f32 %v4441_v43, %v16230_v60  ;;  %v20335_v30 = vld [vmem:[#allocation31_spill] sm:$0xff]  ;;  %v4346_v32 = vld [vmem:[#allocation2 + $0x62] sm:$0xff] }
 0x23b   : > { %v4221_v19 = vmul.f32 %v16340_v39, %v4186_v37  ;;  %v4341_v47 = vld [vmem:[#allocation2 + $0x3a] sm:$0xff]  ;;  %v4222_v29 = vmul.f32 %v16340_v39, %v4187_v40  ;;  %v4507_v25 = vmul.f32 %v16075_v33, %v4249_v15  ;;  %v4572_v2 = vmul.f32 %v16156_v21, %v4340_v6 }
 0x23c   : > { %20332 = vst [vmem:[#allocation36_spill] sm:$0xff] %v16351_v3  ;;  %v4377_v17 = vmul.f32 %v16358_v13, %v4341_v47  ;;  %v4404_v44 = vadd.f32 %v4376_v34, %v20335_v30  ;;  %v4442_v22 = vmul.f32 %v16080_v38, %v4187_v40  ;;  %v4638_v14 = vmul.f32 %v16161_v51, %v4187_v40  ;;  %v20336_v34 = vld [vmem:[#allocation28_spill] sm:$0xff]  ;;  %v20345_v3 = vld [vmem:[#allocation9_spill] sm:$0xff] }
 0x23d   : > { %v4313_v59 = vadd.f32 %v4285_v54, %v4221_v19  ;;  %v4535_v10 = vadd.f32 %v4507_v25, %v4469_v48  ;;  %v4600_v52 = vadd.f32 %v4572_v2, %v16235_v0  ;;  %v4665_v19 = vadd.f32 %v4637_v63, %v16237_v31  ;;  %v20337_v48 = vld [vmem:[#allocation30_spill] sm:$0xff] }
 0x23e   : > { %v4703_v60 = vmul.f32 %v16090_v61, %v4249_v15  ;;  %v4768_v54 = vmul.f32 %v16183_v53, %v4340_v6  ;;  %v4314_v16 = vadd.f32 %v20336_v34, %v4222_v29  ;;  %v4470_v30 = vadd.f32 %v4442_v22, %v4404_v44  ;;  %v4189_v2 = vld [vmem:[#allocation2 + $0x50] sm:$0xff]  ;;  %v16386_v29 = vld [vmem:[%s20264_s27] ss:$0 sm:$0xff] }
 0x23f   : > { %v4405_v24 = vadd.f32 %v4377_v17, %v4313_v59  ;;  %v4573_v37 = vmul.f32 %v16156_v21, %v4341_v47  ;;  %v4666_v36 = vadd.f32 %v4638_v14, %v4600_v52  ;;  %v4254_v17 = vld [vmem:[#allocation2 + $0x61] sm:$0xff]  ;;  %v4769_v0 = vmul.f32 %v16183_v53, %v4341_v47  ;;  %20338 = vst [vmem:[#allocation41_spill] sm:$0xff] %v16386_v29 }
 0x240   : > { %v4731_v59 = vadd.f32 %v4703_v60, %v4665_v19  ;;  %v4796_v40 = vadd.f32 %v4768_v54, %v16293_v1  ;;  %v16389_v52 = vmul.f32 %v16386_v29, %v3682_v8  ;;  %v16402_v60 = vmul.f32 %v16075_v33, %v4254_v17  ;;  %v4252_v8 = vld [vmem:[#allocation2 + $0x51] sm:$0xff] }
 0x241   : > { %v14129_v63 = vpop.eup %14128  ;;  %v4471_v15 = vadd.f32 %v16249_v4, %v4405_v24  ;;  %v4601_v6 = vadd.f32 %v4573_v37, %v4535_v10  ;;  %v4732_v25 = vadd.f32 %v20337_v48, %v4666_v36  ;;  %v16395_v4 = vmul.f32 %v16346_v62, %v4254_v17  ;;  %v20339_v24 = vld [vmem:[#allocation29_spill] sm:$0xff] }
 0x242   : > { %v16391_v47 = vpop.eup %14130  ;;  %v4976_v1 = vadd.f32 1.0, %v14129_v63  ;;  %v4797_v44 = vadd.f32 %v4769_v0, %v4731_v59  ;;  %v4831_v22 = vmul.f32 %v16209_v27, %v4796_v40  ;;  %v4536_v14 = vadd.f32 %v20339_v24, %v4470_v30  ;;  %v4343_v59 = vld [vmem:[#allocation2 + $0x4a] sm:$0xff] }
 0x243   : > { %v16397_v10 = vpop.eup %14132  ;;  %v4798_v19 = vadd.f32 %v16312_v41, %v4732_v25  ;;  %v4406_v54 = vadd.f32 %v16246_v20, %v4314_v16  ;;  %v4444_v0 = vmul.f32 %v16080_v38, %v4189_v2  ;;  %v4667_v30 = vadd.f32 %v16304_v26, %v4601_v6 }
 0x244   : > { %v14135_v34 = vpop.eup %14134  ;;  %14138 = vrcp.f32 %v4976_v1  ;;  %v4832_v37 = vmul.f32 %v16209_v27, %v4797_v44  ;;  %v16407_v36 = vadd.f32 %v16228_v18, %v4831_v22  ;;  %v16413_v63 = vmul.f32 %v16090_v61, %v4254_v17 }
 0x245   : > { %v4977_v40 = vadd.f32 1.0, %v14135_v34  ;;  %v4833_v41 = vmul.f32 %v16209_v27, %v4798_v19  ;;  %v4224_v48 = vmul.f32 %v16340_v39, %v4189_v2  ;;  %v4288_v25 = vmul.f32 %v16346_v62, %v4252_v8  ;;  %v4192_v19 = vld [vmem:[#allocation2 + $0x68] sm:$0xff] }
 0x246   : > { %20340 = vst [vmem:[#allocation42_spill] sm:$0xff] %v16407_v36  ;;  %v16416_v20 = vadd.f32 %v16228_v18, %v4832_v37  ;;  %v4894_v16 = vsub.f32 0.0, %v16407_v36  ;;  %v4379_v26 = vmul.f32 %v16358_v13, %v4343_v59  ;;  %v4602_v6 = vadd.f32 %v16298_v45, %v4536_v14  ;;  %v4255_v34 = vld [vmem:[#allocation2 + $0x69] sm:$0xff]  ;;  %v16428_v37 = vpop.eup %14136 }
 0x247   : > { %14140 = vrcp.f32 %v4977_v40  ;;  %v16422_v1 = vadd.f32 %v16228_v18, %v4833_v41  ;;  %v4472_v22 = vadd.f32 %v4444_v0, %v4406_v54  ;;  %v4640_v24 = vmul.f32 %v16161_v51, %v4189_v2 }
 0x248   : > { %20341 = vst [vmem:[#allocation44_spill] sm:$0xff] %v16416_v20  ;;  %v4895_v17 = vsub.f32 0.0, %v16416_v20  ;;  %v4924_v44 = vmul.f32 1.442695, %v4894_v16  ;;  %v4510_v40 = vmul.f32 %v16075_v33, %v4252_v8  ;;  %v4537_v41 = vadd.f32 %v16252_v35, %v4471_v15  ;;  %v4190_v15 = vld [vmem:[#allocation2 + $0x58] sm:$0xff] }
 0x249   : > { %20342 = vst [vmem:[#allocation43_spill] sm:$0xff] %v16422_v1  ;;  %v4896_v31 = vsub.f32 0.0, %v16422_v1  ;;  %v4733_v43 = vadd.f32 %v16309_v55, %v4667_v30  ;;  %v4668_v14 = vadd.f32 %v4640_v24, %v4602_v6  ;;  %v4771_v16 = vmul.f32 %v16183_v53, %v4343_v59  ;;  %v4253_v55 = vld [vmem:[#allocation2 + $0x59] sm:$0xff] }
 0x24a   : > { %14142 = vpow2.f32 %v4924_v44  ;;  %v4926_v45 = vmul.f32 1.442695, %v4895_v17  ;;  %v4575_v2 = vmul.f32 %v16156_v21, %v4343_v59  ;;  %v4227_v0 = vmul.f32 %v16340_v39, %v4192_v19  ;;  %v4344_v30 = vld [vmem:[#allocation2 + $0x52] sm:$0xff] }
 0x24b   : > { %v4928_v54 = vmul.f32 1.442695, %v4896_v31  ;;  %v4291_v5 = vmul.f32 %v16346_v62, %v4255_v34  ;;  %v4316_v7 = vadd.f32 %v4288_v25, %v4224_v48  ;;  %v4706_v56 = vmul.f32 %v16090_v61, %v4252_v8 }
 0x24c   : > { %14144 = vpow2.f32 %v4926_v45  ;;  %v4799_v35 = vadd.f32 %v4771_v16, %v4733_v43  ;;  %v4407_v6 = vadd.f32 %v4379_v26, %v16295_v58  ;;  %v4538_v17 = vadd.f32 %v4510_v40, %v4472_v22  ;;  %v4191_v22 = vld [vmem:[#allocation2 + $0x60] sm:$0xff] }
 0x24d   : > { %14146 = vpow2.f32 %v4928_v54  ;;  %v4603_v31 = vadd.f32 %v4575_v2, %v4537_v41  ;;  %v4734_v44 = vadd.f32 %v4706_v56, %v4668_v14  ;;  %v16442_v24 = vmul.f32 %v16358_v13, %v4346_v32  ;;  %v4345_v40 = vld [vmem:[#allocation2 + $0x5a] sm:$0xff] }
 0x24e   : > { %v4834_v59 = vmul.f32 %v16209_v27, %v4799_v35  ;;  %v4447_v45 = vmul.f32 %v16080_v38, %v4192_v19  ;;  %v16445_v48 = vadd.f32 %v4291_v5, %v4227_v0  ;;  %v4225_v43 = vmul.f32 %v16340_v39, %v4190_v15 }
 0x24f   : > { %v4289_v8 = vmul.f32 %v16346_v62, %v4253_v55  ;;  %v4380_v25 = vmul.f32 %v16358_v13, %v4344_v30  ;;  %v16454_v56 = vmul.f32 %v16075_v33, %v4255_v34  ;;  %v16457_v26 = vmul.f32 %v16156_v21, %v4346_v32 }
 0x250   : > { %v16451_v58 = vadd.f32 %v16228_v18, %v4834_v59  ;;  %v4445_v5 = vmul.f32 %v16080_v38, %v4190_v15  ;;  %v4643_v14 = vmul.f32 %v16161_v51, %v4192_v19  ;;  %v4511_v2 = vmul.f32 %v16075_v33, %v4253_v55 }
 0x251   : > { %v14139_v41 = vpop.eup %14138  ;;  %v4317_v16 = vadd.f32 %v4289_v8, %v4225_v43  ;;  %v4408_v54 = vadd.f32 %v4380_v25, %v4316_v7  ;;  %v4576_v1 = vmul.f32 %v16156_v21, %v4344_v30  ;;  %v16466_v20 = vmul.f32 %v16090_v61, %v4255_v34  ;;  %v20344_v7 = vld [vmem:[#allocation8_spill] sm:$0xff] }
 0x252   : > { %20343 = vst [vmem:[#allocation12_spill] sm:$0xff] %v16451_v58  ;;  %v5060_v0 = vmul.f32 %v14139_v41, %v16243_v28  ;;  %v4897_v35 = vsub.f32 0.0, %v16451_v58  ;;  %v4473_v59 = vadd.f32 %v4445_v5, %v4407_v6  ;;  %v4381_v11 = vmul.f32 %v16358_v13, %v4345_v40 }
 0x253   : > { %v4446_v36 = vmul.f32 %v16080_v38, %v4191_v22  ;;  %v4641_v19 = vmul.f32 %v16161_v51, %v4190_v15  ;;  %v4604_v28 = vadd.f32 %v4576_v1, %v4538_v17  ;;  %v4226_v6 = vmul.f32 %v16340_v39, %v4191_v22 }
 0x254   : > { %v14141_v43 = vpop.eup %14140  ;;  %v5088_v8 = vmul.f32 %v5060_v0, %v20344_v7  ;;  %v4930_v25 = vmul.f32 1.442695, %v4897_v35  ;;  %v4539_v23 = vadd.f32 %v4511_v2, %v4473_v59  ;;  %v4409_v5 = vadd.f32 %v4381_v11, %v4317_v16 }
 0x255   : > { %v5061_v41 = vmul.f32 %v14141_v43, %v16277_v42  ;;  %v4642_v34 = vmul.f32 %v16161_v51, %v4191_v22  ;;  %v4474_v58 = vadd.f32 %v4446_v36, %v4408_v54  ;;  %v4577_v46 = vmul.f32 %v16156_v21, %v4345_v40 }
 0x256   : > { %14148 = vpow2.f32 %v4930_v25  ;;  %v4669_v57 = vadd.f32 %v4641_v19, %v4603_v31  ;;  %v16476_v15 = vpack.c.bf16 %v5088_v8, %v5088_v8  ;;  %v4707_v1 = vmul.f32 %v16090_v61, %v4253_v55  ;;  %v4256_v25 = vld [vmem:[#allocation2 + $0x71] sm:$0xff] }
 0x257   : > { %v14143_v29 = vpop.eup %14142  ;;  %v5089_v0 = vmul.f32 %v5061_v41, %v20345_v3  ;;  %v4670_v35 = vadd.f32 %v4642_v34, %v4604_v28  ;;  %v4774_v42 = vmul.f32 %v16183_v53, %v4346_v32  ;;  %v4605_v2 = vadd.f32 %v4577_v46, %v4539_v23  ;;  %v4347_v28 = vld [vmem:[#allocation2 + $0x6a] sm:$0xff] }
 0x258   : > { %v4978_v17 = vadd.f32 1.0, %v14143_v29  ;;  %v4772_v11 = vmul.f32 %v16183_v53, %v4344_v30  ;;  %v4735_v36 = vadd.f32 %v4707_v1, %v4669_v57  ;;  %v4773_v31 = vmul.f32 %v16183_v53, %v4345_v40  ;;  %v4258_v29 = vld [vmem:[#allocation2 + $0x81] sm:$0xff]  ;;  %v4193_v40 = vld [vmem:[#allocation2 + $0x70] sm:$0xff] }
 0x259   : > { %v14145_v22 = vpop.eup %14144  ;;  %v12431_v16 = vpack.c.bf16 %v5089_v0, %v5089_v0  ;;  %v4736_v54 = vadd.f32 %v16413_v63, %v4670_v35  ;;  %v4318_v19 = vadd.f32 %v16395_v4, %v4226_v6  ;;  %v4475_v3 = vadd.f32 %v4447_v45, %v4409_v5 }
 0x25a   : > { %v14147_v59 = vpop.eup %14146  ;;  %v4540_v43 = vadd.f32 %v16402_v60, %v4474_v58  ;;  %v4800_v55 = vadd.f32 %v4772_v11, %v4734_v44  ;;  %v4801_v30 = vadd.f32 %v4773_v31, %v4735_v36  ;;  %v4979_v7 = vadd.f32 1.0, %v14145_v22 }
 0x25b   : > { %v5212_v46 = vshrl.u32 %v12431_v16, 16  ;;  %v4671_v57 = vadd.f32 %v4643_v14, %v4605_v2  ;;  %v4802_v8 = vadd.f32 %v4774_v42, %v4736_v54  ;;  %v4980_v4 = vadd.f32 1.0, %v14147_v59  ;;  %v16512_v42 = vpop.permute.xlu1 %4050 }
 0x25c   : > { %v4835_v63 = vmul.f32 %v16209_v27, %v4800_v55  ;;  %14150 = vrcp.f32 %v4978_v17  ;;  %v4836_v60 = vmul.f32 %v16209_v27, %v4801_v30  ;;  %v16491_v44 = vmul.f32 %v16346_v62, %v4258_v29  ;;  %20350 = vst [vmem:[#allocation31_spill] sm:$0xff] %v16512_v42 }
 0x25d   : > { %v16493_v45 = vrot.slane %v5212_v46, 7  ;;  %v5215_v58 = vshll.u32 %v12431_v16, 16  ;;  %v4837_v41 = vmul.f32 %v16209_v27, %v4802_v8  ;;  %v4228_v5 = vmul.f32 %v16340_v39, %v4193_v40  ;;  %v16517_v16 = vpop.permute.xlu0 %4065 }
 0x25e   : > { %v16497_v14 = vadd.f32 %v16228_v18, %v4835_v63  ;;  %v16500_v6 = vadd.f32 %v16228_v18, %v4836_v60  ;;  %v4292_v34 = vmul.f32 %v16346_v62, %v4256_v25  ;;  %v4383_v0 = vmul.f32 %v16358_v13, %v4347_v28  ;;  %20351 = vst [vmem:[#allocation28_spill] sm:$0xff] %v16517_v16 }
 0x25f   : > { %20346 = vst [vmem:[#allocation20_spill] sm:$0xff] %v16493_v45  ;;  %14152 = vrcp.f32 %v4979_v7  ;;  %v16506_v35 = vadd.f32 %v16228_v18, %v4837_v41  ;;  %v16510_v17 = vmul.f32 %v16075_v33, %v4258_v29  ;;  %v4410_v11 = vadd.f32 %v16442_v24, %v4318_v19  ;;  %v20353_v41 = vld [vmem:[#allocation14_spill] sm:$0xff] }
 0x260   : > { %20347 = vst [vmem:[#allocation11_spill] sm:$0xff] %v16497_v14  ;;  %20348 = vst [vmem:[#allocation21_spill] sm:$0xff] %v16500_v6  ;;  %v4898_v1 = vsub.f32 0.0, %v16497_v14  ;;  %14154 = vrcp.f32 %v4980_v4  ;;  %v4899_v2 = vsub.f32 0.0, %v16500_v6  ;;  %v4448_v22 = vmul.f32 %v16080_v38, %v4193_v40 }
 0x261   : > { %20349 = vst [vmem:[#allocation26_spill] sm:$0xff] %v16506_v35  ;;  %v16520_v36 = vor.u32 %v5215_v58, %v16493_v45  ;;  %v4900_v54 = vsub.f32 0.0, %v16506_v35  ;;  %v16524_v59 = vmul.f32 %v16090_v61, %v4258_v29  ;;  %v16526_v30 = vadd.f32 %v4292_v34, %v4228_v5  ;;  %v20355_v34 = vld [vmem:[#allocation5_spill] sm:$0xff] }
 0x262   : > { %v4932_v31 = vmul.f32 1.442695, %v4898_v1  ;;  %v4934_v46 = vmul.f32 1.442695, %v4899_v2  ;;  %v16529_v7 = vadd.f32 %v4383_v0, %v16445_v48  ;;  %v4514_v24 = vmul.f32 %v16075_v33, %v4256_v25  ;;  %v16542_v2 = vpop.permute.xlu1 %4060 }
 0x263   : > { %20352 = vst [vmem:[#allocation30_spill] sm:$0xff] %v16520_v36  ;;  %v14149_v55 = vpop.eup %14148  ;;  %v4936_v8 = vmul.f32 1.442695, %v4900_v54  ;;  %v4541_v63 = vadd.f32 %v16454_v56, %v4475_v3  ;;  %v4476_v4 = vadd.f32 %v4448_v22, %v4410_v11  ;;  %v4579_v60 = vmul.f32 %v16156_v21, %v4347_v28  ;;  %20357 = vst [vmem:[#allocation29_spill] sm:$0xff] %v16542_v2  ;;  %v20358_v11 = vld [vmem:[#allocation7_spill] sm:$0xff] }
 0x264   : > { %v4981_v19 = vadd.f32 1.0, %v14149_v55  ;;  %14156 = vpow2.f32 %v4932_v31  ;;  %v4737_v29 = vadd.f32 %v16466_v20, %v4671_v57  ;;  %v4775_v58 = vmul.f32 %v16183_v53, %v4347_v28  ;;  %v16549_v28 = vpop.permute.xlu0 %4075 }
 0x265   : > { %14158 = vpow2.f32 %v4934_v46  ;;  %v20354_v5 = vmax.f32 %v20353_v41, 0.0  ;;  %v20356_v0 = vmax.f32 %v20355_v34, 0.0  ;;  %v4606_v56 = vadd.f32 %v16457_v26, %v4540_v43  ;;  %20360 = vst [vmem:[#allocation8_spill] sm:$0xff] %v16549_v28 }
 0x266   : > { %14160 = vrcp.f32 %v4981_v19  ;;  %v4644_v3 = vmul.f32 %v16161_v51, %v4193_v40  ;;  %v20359_v20 = vmax.f32 %v20358_v11, 0.0  ;;  %v4710_v22 = vmul.f32 %v16090_v61, %v4256_v25 }
 0x267   : > { %v3970_v48 = vmul.f32 %v16391_v47, %v20354_v5  ;;  %v3968_v1 = vmul.f32 %v16397_v10, %v20356_v0  ;;  %14162 = vpow2.f32 %v4936_v8  ;;  %v4803_v47 = vadd.f32 %v4775_v58, %v4737_v29  ;;  %v20364_v29 = vld [vmem:[#allocation36_spill] sm:$0xff]  ;;  %v20365_v58 = vld [vmem:[#allocation41_spill] sm:$0xff]  ;;  %v20367_v0 = vld [vmem:[#allocation38_spill] sm:$0xff] }
 0x268   : > { %v3973_v57 = vmul.f32 %v16428_v37, %v20359_v20  ;;  %v3859_v55 = vmul.f32 1.442695, %v16326_v49  ;;  %v20361_v26 = vmax.f32 %v16330_v12, 0.0  ;;  %v20362_v40 = vmax.f32 %v16334_v50, 0.0  ;;  %v13129_v37 = vpop.f32.mrf.mxu0  ;;  %v16569_v49 = vld [vmem:[%s20085_s8] ss:$0 sm:$0xff] }
 0x269   : > { %v4138_v54 = vmul.f32 %v16542_v2, %v3970_v48  ;;  %v4136_v10 = vmul.f32 %v16512_v42, %v3968_v1  ;;  %v16560_v19 = vpop.eup %14150  ;;  %v4838_v25 = vmul.f32 %v16209_v27, %v4803_v47  ;;  %14164 = vrcp.f32 %v16316_v9  ;;  %v20366_v48 = vld [vmem:[#allocation35_spill] sm:$0xff]  ;;  %v20369_v20 = vld [vmem:[#allocation24_spill] sm:$0xff] }
 0x26a   : > { %v4141_v31 = vmul.f32 %v16549_v28, %v3973_v57  ;;  %v3807_v43 = vsub.f32 0.0, %v20361_v26  ;;  %v3810_v46 = vsub.f32 0.0, %v20362_v40  ;;  %v16573_v8 = vadd.f32 %v16569_v49, %v16389_v52  ;;  %v3649_v26 = vpop.f32.mrf.mxu0 }
 0x26b   : > { %4166 = vst.msk [vmem:[#allocation2 + $0x89] sm:$0xff] %vm774_vm4, %v4138_v54  ;;  %4164 = vst.msk [vmem:[#allocation2 + $0x79] sm:$0xff] %vm774_vm4, %v4136_v10  ;;  %v3722_v41 = vmul.f32 %v20365_v58, %v20364_v29  ;;  %v4672_v5 = vadd.f32 %v4644_v3, %v4606_v56  ;;  %14166 = vrcp.f32 %v20366_v48  ;;  %v3720_v9 = vmul.f32 %v20365_v58, %v20367_v0  ;;  %v20371_v3 = vld [vmem:[#allocation40_spill] sm:$0xff] }
 0x26c   : > { %20363 = vst [vmem:[#allocation9_spill] sm:$0xff] %v16573_v8  ;;  %4169 = vst.msk [vmem:[#allocation2 + $0xa1] sm:$0xff] %vm774_vm4, %v4141_v31  ;;  %v3855_v34 = vmul.f32 1.442695, %v3807_v43  ;;  %v16582_v1 = vadd.f32 %v16228_v18, %v4838_v25  ;;  %v20156_v11 = vmax.f32 %v16573_v8, 0.0  ;;  %v3688_v57 = vadd.f32 %v13129_v37, %v20369_v20  ;;  %v16589_v47 = vpop.eup %14152  ;;  %v4690_v31 = vld [vmem:[#allocation2 + $0xf1] sm:$0xff] }
 0x26d   : > { %v16586_v52 = vadd.f32 %v16569_v49, %v3722_v41  ;;  %20370 = vst [vmem:[#allocation5_spill] sm:$0xff] %v16589_v47  ;;  %v16591_v56 = vadd.f32 %v4514_v24, %v4476_v4  ;;  %14168 = vrcp.f32 %v20371_v3  ;;  %v3861_v54 = vmul.f32 1.442695, %v3810_v46  ;;  %v16597_v43 = vpop.eup %14154  ;;  %v4756_v24 = vld [vmem:[#allocation2 + $0xf2] sm:$0xff]  ;;  %v13873_v20 = vld [vmem:[%s20089_s12 + $0x8] sm:$0xff]  }
 0x26e   : > { %v16595_v10 = vadd.f32 %v16569_v49, %v3720_v9  ;;  %20373 = vst [vmem:[#allocation36_spill] sm:$0xff] %v16597_v43  ;;  %v16599_v40 = vadd.f32 %v4579_v60, %v4541_v63  ;;  %v4901_v25 = vsub.f32 0.0, %v16582_v1  ;;  %14170 = vpow2.f32 %v3859_v55  ;;  %v4625_v4 = vld [vmem:[#allocation2 + $0xf8] sm:$0xff]  ;;  %13162 = vmatprep.subr.bf16.mxu0 %v13873_v20  ;;  %v16700_v8 = vld [vmem:[%s20086_s9 + $0x7] ss:$0 sm:$0xff] }
 0x26f   : > { %20368 = vst [vmem:[#allocation14_spill] sm:$0xff] %v16586_v52  ;;  %v3808_v37 = vsub.f32 0.0, %v20156_v11  ;;  %v16604_v29 = vadd.f32 %v4710_v22, %v4672_v5  ;;  %14172 = vpow2.f32 %v3855_v34  ;;  %v3723_v0 = vmul.f32 %v20365_v58, %v3688_v57  ;;  %v20375_v60 = vld [vmem:[#allocation19_spill] sm:$0xff]  ;;  %13163 = vmatpush3.bf16.msra.mxu0 %v13873_v20 }
 0x270   : > { %20372 = vst [vmem:[#allocation7_spill] sm:$0xff] %v16595_v10  ;;  %v4938_v48 = vmul.f32 1.442695, %v4901_v25  ;;  %v16610_v63 = vmul.f32 %v16090_v61, %v4690_v31  ;;  %v3686_v55 = vadd.f32 %v3649_v26, %v20375_v60  ;;  %v4691_v9 = vld [vmem:[#allocation2 + $0xf9] sm:$0xff]  ;;  %14174 = vpow2.f32 %v3861_v54 }
 0x271   : > { %v14157_v22 = vpop.eup %14156  ;;  %v16616_v11 = vmul.f32 1.442695, %v3808_v37  ;;  %v16619_v25 = vmul.f32 %v16183_v53, %v4756_v24  ;;  %v16622_v57 = vmul.f32 %v16161_v51, %v4625_v4  ;;  %v20378_v37 = vmax.f32 %v16586_v52, 0.0 }
 0x272   : > { %20374 = vst [vmem:[#allocation41_spill] sm:$0xff] %v16610_v63  ;;  %v4196_v5 = vld [vmem:[#allocation2 + $0x88] sm:$0xff]  ;;  %v14159_v31 = vpop.eup %14158  ;;  %v4982_v26 = vadd.f32 1.0, %v14157_v22  ;;  %14176 = vpow2.f32 %v4938_v48  ;;  %v4194_v46 = vld [vmem:[#allocation2 + $0x78] sm:$0xff]  ;;  %v20379_v24 = vmax.f32 %v16595_v10, 0.0  ;;  %v16635_v22 = vmul.f32 %v16090_v61, %v4691_v9  ;;  %v20382_v9 = vld [vmem:[#allocation12_spill] sm:$0xff] }
 0x273   : > { %v4259_v34 = vld [vmem:[#allocation2 + $0x89] sm:$0xff]  ;;  %20376 = vst [vmem:[#allocation35_spill] sm:$0xff] %v16619_v25  ;;  %20377 = vst [vmem:[#allocation38_spill] sm:$0xff] %v16622_v57  ;;  %v4231_v60 = vmul.f32 %v16340_v39, %v4196_v5  ;;  %v14161_v32 = vpop.eup %14160  ;;  %v4983_v41 = vadd.f32 1.0, %v14159_v31  ;;  %v4257_v54 = vld [vmem:[#allocation2 + $0x79] sm:$0xff]  ;;  %v16628_v28 = vsub.f32 0.0, %v20378_v37  ;;  %v4451_v31 = vmul.f32 %v16080_v38, %v4196_v5 }
 0x274   : > { %v4350_v3 = vld [vmem:[#allocation2 + $0x82] sm:$0xff]  ;;  %v4295_v23 = vmul.f32 %v16346_v62, %v4259_v34  ;;  %v16632_v4 = vsub.f32 0.0, %v20379_v24  ;;  %20380 = vst [vmem:[#allocation24_spill] sm:$0xff] %v16635_v22  ;;  %v14163_v48 = vpop.eup %14162  ;;  %v4348_v42 = vld [vmem:[#allocation2 + $0x72] sm:$0xff]  ;;  %v16642_v25 = vadd.f32 %v16569_v49, %v3723_v0  ;;  %v16645_v37 = vmul.f32 %v20365_v58, %v3686_v55  ;;  %v4349_v63 = vld [vmem:[#allocation2 + $0x7a] sm:$0xff] }
 0x275   : > { %v16638_v2 = vmul.f32 %v16358_v13, %v4350_v3  ;;  %v13874_v24 = vld [vmem:[%s20089_s12] sm:$0xff]   ;;  %v16651_v22 = vmul.f32 %v14161_v32, %v20382_v9  ;;  %14178 = vrcp.f32 %v4982_v26  ;;  %v16656_v57 = vmul.f32 %v16075_v33, %v4259_v34 }
 0x276   : > { %20381 = vst [vmem:[#allocation40_spill] sm:$0xff] %v16642_v25  ;;  %v16653_v20 = vadd.f32 %v4295_v23, %v4231_v60  ;;  %v4195_v38 = vld [vmem:[#allocation2 + $0x80] sm:$0xff]  ;;  %v4984_v0 = vadd.f32 1.0, %v14163_v48  ;;  %v16659_v35 = vmul.f32 %v16156_v21, %v4350_v3  ;;  %v4229_v58 = vmul.f32 %v16340_v39, %v4194_v46  ;;  %13164 = vmatprep.subr.bf16.mxu0 %v13874_v24  ;;  %v14165_v6 = vpop.eup %14164 }
 0x277   : > { %20383 = vst [vmem:[#allocation19_spill] sm:$0xff] %v16651_v22  ;;  %v4293_v55 = vmul.f32 %v16346_v62, %v4257_v54  ;;  %14180 = vrcp.f32 %v4983_v41  ;;  %v16664_v32 = vmul.f32 %v16161_v51, %v4196_v5  ;;  %v4384_v23 = vmul.f32 %v16358_v13, %v4348_v42  ;;  %v16670_v33 = vld [vmem:[%s20086_s9 + $0x3] ss:$0 sm:$0xff]  ;;  %13165 = vmatpush3.bf16.msra.mxu0 %v13874_v24  ;;  %v13871_v24 = vld [vmem:[%s20089_s12 + $0x18] sm:$0xff]  }
 0x278   : > { %v4449_v26 = vmul.f32 %v16670_v33, %v4194_v46  ;;  %v14167_v60 = vpop.eup %14166  ;;  %v16674_v48 = vmul.f32 %v16090_v61, %v4259_v34  ;;  %v4230_v9 = vmul.f32 %v16340_v39, %v4195_v38  ;;  %v4385_v5 = vmul.f32 %v16358_v13, %v4349_v63  ;;  %13130 = vmatprep.subr.bf16.mxu1 %v13871_v24 }
 0x279   : > { %v4321_v41 = vadd.f32 %v4293_v55, %v4229_v58  ;;  %v4412_v14 = vadd.f32 %v4384_v23, %v16526_v30  ;;  %v4450_v10 = vmul.f32 %v16670_v33, %v4195_v38  ;;  %v4580_v43 = vmul.f32 %v16156_v21, %v4348_v42  ;;  %v16689_v58 = vld [vmem:[%s20086_s9 + $0x4] ss:$0 sm:$0xff]  ;;  %13131 = vmatpush3.bf16.msra.mxu1 %v13871_v24 }
 0x27a   : > { %v4477_v22 = vadd.f32 %v4449_v26, %v16529_v7  ;;  %v14169_v45 = vpop.eup %14168  ;;  %v4778_v61 = vmul.f32 %v16183_v53, %v4350_v3  ;;  %v4515_v30 = vmul.f32 %v16689_v58, %v4257_v54  ;;  %v4645_v55 = vmul.f32 %v16161_v51, %v4194_v46 }
 0x27b   : > { %v4413_v34 = vadd.f32 %v4385_v5, %v4321_v41  ;;  %v14171_v7 = vpop.eup %14170  ;;  %v4478_v23 = vadd.f32 %v4450_v10, %v4412_v14  ;;  %v4608_v26 = vadd.f32 %v4580_v43, %v16591_v56  ;;  %v4646_v36 = vmul.f32 %v16161_v51, %v4195_v38  ;;  %v4262_v14 = vld [vmem:[#allocation2 + $0xa1] sm:$0xff]  ;;  %v16703_v56 = vpop.permute.xlu1 %4070 }
 0x27c   : > { %v4776_v52 = vmul.f32 %v16183_v53, %v4348_v42  ;;  %v14173_v3 = vpop.eup %14172  ;;  %14182 = vrcp.f32 %v4984_v0  ;;  %v4543_v41 = vadd.f32 %v4515_v30, %v4477_v22  ;;  %v4673_v5 = vadd.f32 %v4645_v55, %v16599_v40  ;;  %20384 = vst [vmem:[#allocation12_spill] sm:$0xff] %v16703_v56  ;;  %v13872_v40 = vld [vmem:[%s20089_s12 + $0x10] sm:$0xff]  }
 0x27d   : > { %v4711_v46 = vmul.f32 %v16700_v8, %v4257_v54  ;;  %v4322_v51 = vadd.f32 %v16491_v44, %v4230_v9  ;;  %v4581_v42 = vmul.f32 %v16156_v21, %v4349_v63  ;;  %v4674_v10 = vadd.f32 %v4646_v36, %v4608_v26  ;;  %v14175_v22 = vpop.eup %14174  ;;  %v20385_v30 = vld [vmem:[#allocation10_spill] sm:$0xff]  ;;  %13132 = vmatprep.subr.bf16.mxu1 %v13872_v40  ;;  %v20389_v26 = vld [vmem:[#allocation13_spill] sm:$0xff] }
 0x27e   : > { %v4804_v43 = vadd.f32 %v4776_v52, %v16604_v29  ;;  %v4479_v38 = vadd.f32 %v4451_v31, %v4413_v34  ;;  %v4777_v54 = vmul.f32 %v16183_v53, %v4349_v63  ;;  %v20386_v24 = vmax.f32 %v20385_v30, 0.0  ;;  %v13879_v29 = vld [vmem:[%s20089_s12 + $0x28] sm:$0xff]   ;;  %13133 = vmatpush3.bf16.msra.mxu1 %v13872_v40 }
 0x27f   : > { %v4739_v0 = vadd.f32 %v4711_v46, %v4673_v5  ;;  %v14177_v47 = vpop.eup %14176  ;;  %v4544_v44 = vadd.f32 %v16510_v17, %v4478_v23  ;;  %v4740_v21 = vadd.f32 %v16524_v59, %v4674_v10  ;;  %v16718_v52 = vmul.f32 %v16346_v62, %v4262_v14  ;;  %13194 = vmatprep.subr.bf16.mxu1 %v13879_v29  ;;  %v20391_v5 = vld [vmem:[#allocation16_spill] sm:$0xff]  ;;  %v16741_v10 = vpop.permute.xlu1 %4080 }
 0x280   : > { %v3971_v55 = vmul.f32 %v14165_v6, %v20386_v24  ;;  %v4839_v36 = vmul.f32 %v16209_v27, %v4804_v43  ;;  %v4985_v31 = vadd.f32 1.0, %v14177_v47  ;;  %v4609_v53 = vadd.f32 %v4581_v42, %v4543_v41  ;;  %20393 = vst [vmem:[#allocation13_spill] sm:$0xff] %v16741_v10 }
 0x281   : > { %v4805_v63 = vadd.f32 %v4777_v54, %v4739_v0  ;;  %v4806_v9 = vadd.f32 %v4778_v61, %v4740_v21  ;;  %v16728_v59 = vmul.f32 %v16689_v58, %v4262_v14  ;;  %v16731_v34 = vmul.f32 %v16700_v8, %v4262_v14  ;;  %v5521_v21 = vld [vmem:[#allocation3] sm:$0xf] }
 0x282   : > { %v4139_v6 = vmul.f32 %v16517_v16, %v3971_v55  ;;  %v16725_v17 = vadd.f32 %v16228_v18, %v4839_v36  ;;  %v16733_v23 = vpop.eup %14178  ;;  %14184 = vrcp.f32 %v4985_v31  ;;  %v20390_v41 = vmax.f32 %v20389_v26, 0.0 }
 0x283   : > { %20388 = vst [vmem:[#allocation45_spill] sm:$0xff] %v16733_v23  ;;  %v4840_v47 = vmul.f32 %v16209_v27, %v4805_v63  ;;  %v20392_v46 = vmax.f32 %v20391_v5, 0.0  ;;  %v4841_v43 = vmul.f32 %v16209_v27, %v4806_v9  ;;  %v3893_v40 = vadd.f32 1.0, %v14171_v7 }
 0x284   : > { %20387 = vst [vmem:[#allocation10_spill] sm:$0xff] %v16725_v17  ;;  %4167 = vst.msk [vmem:[#allocation2 + $0x91] sm:$0xff] %vm774_vm4, %v4139_v6  ;;  %v3974_v61 = vmul.f32 %v14167_v60, %v20390_v41  ;;  %v4902_v14 = vsub.f32 0.0, %v16725_v17  ;;  %v3891_v0 = vadd.f32 1.0, %v14173_v3  ;;  %v16745_v54 = vpop.eup %14180  ;;  %v3894_v55 = vadd.f32 1.0, %v14175_v22 }
 0x285   : > { %v3972_v42 = vmul.f32 %v14169_v45, %v20392_v46  ;;  %20394 = vst [vmem:[#allocation16_spill] sm:$0xff] %v16745_v54  ;;  %v16748_v30 = vadd.f32 %v16228_v18, %v4840_v47  ;;  %v5522_v45 = vld [vmem:[#allocation3 + $0x4] sm:$0xf]  ;;  %v4675_v36 = vadd.f32 %v16664_v32, %v4609_v53  ;;  %v16754_v27 = vadd.f32 %v16228_v18, %v4841_v43 }
 0x286   : > { %v4142_v24 = vmul.f32 %v16741_v10, %v3974_v61  ;;  %v4940_v29 = vmul.f32 1.442695, %v4902_v14  ;;  %14186 = vrcp.f32 %v3893_v40  ;;  %v4414_v3 = vadd.f32 %v16638_v2, %v4322_v51  ;;  %v20398_v46 = vld [vmem:[#allocation42_spill] sm:$0xff]  ;;  %v16803_v14 = vld [vmem:[%s20086_s9 + $0x5] ss:$0 sm:$0xff] }
 0x287   : > { %20395 = vst [vmem:[#allocation46_spill] sm:$0xff] %v16748_v30  ;;  %v4140_v60 = vmul.f32 %v16703_v56, %v3972_v42  ;;  %20396 = vst [vmem:[#allocation47_spill] sm:$0xff] %v16754_v27  ;;  %v4903_v7 = vsub.f32 0.0, %v16748_v30  ;;  %v4545_v31 = vadd.f32 %v16656_v57, %v4479_v38  ;;  %14188 = vrcp.f32 %v3891_v0  ;;  %v16809_v0 = vld [vmem:[%s20086_s9 + $0x8] ss:$0 sm:$0xff]  ;;  %v16860_v30 = vpop.permute.xlu0 %4085 }
 0x288   : > { %4170 = vst.msk [vmem:[#allocation2 + $0xa9] sm:$0xff] %vm774_vm4, %v4142_v24  ;;  %v4904_v22 = vsub.f32 0.0, %v16754_v27  ;;  %14190 = vpow2.f32 %v4940_v29  ;;  %v20167_v32 = vmax.f32 %v16642_v25, 0.0  ;;  %v16763_v18 = vcombine.low %v5521_v21, %v5522_v45  ;;  %20401 = vst [vmem:[#allocation50_spill] sm:$0xff] %v16860_v30 }
 0x289   : > { %4168 = vst.msk [vmem:[#allocation2 + $0x99] sm:$0xff] %vm774_vm4, %v4140_v60  ;;  %v4942_v53 = vmul.f32 1.442695, %v4903_v7  ;;  %14192 = vrcp.f32 %v3894_v55  ;;  %v3867_v63 = vmul.f32 1.442695, %v16628_v28  ;;  %v16768_v2 = vadd.f32 %v16569_v49, %v16645_v37  ;;  %v16770_v57 = vpop.eup %14182 }
 0x28a   : > { %20397 = vst [vmem:[#allocation48_spill] sm:$0xff] %v16770_v57  ;;  %v4944_v51 = vmul.f32 1.442695, %v4904_v22  ;;  %v4610_v47 = vadd.f32 %v16659_v35, %v4544_v44  ;;  %v4741_v26 = vadd.f32 %v16674_v48, %v4675_v36  ;;  %14194 = vpow2.f32 %v16616_v11  ;;  %13166 = vmatprep.mubr.msk.bf16.mxu0 %vm774_vm4, %v16763_v18  ;;  %v16792_v48 = vld [vmem:[%s20086_s9 + $0x6] ss:$0 sm:$0xff] }
 0x28b   : > { %v4197_v38 = vld [vmem:[#allocation2 + $0x90] sm:$0xff]  ;;  %14196 = vpow2.f32 %v4942_v53  ;;  %v16782_v61 = vmul.f32 1.442695, %v16632_v4  ;;  %v16786_v35 = vsub.f32 0.0, %v20167_v32  ;;  %v16798_v42 = vmul.f32 %v16560_v19, %v20398_v46 }
 0x28c   : > { %v4260_v6 = vld [vmem:[#allocation2 + $0x91] sm:$0xff]  ;;  %v4232_v28 = vmul.f32 %v16340_v39, %v4197_v38  ;;  %14198 = vpow2.f32 %v4944_v51  ;;  %v4452_v41 = vmul.f32 %v16670_v33, %v4197_v38  ;;  %v4648_v44 = vmul.f32 %v16792_v48, %v4197_v38 }
 0x28d   : > { %v4351_v9 = vld [vmem:[#allocation2 + $0x8a] sm:$0xff]  ;;  %v4296_v49 = vmul.f32 %v16346_v62, %v4260_v6  ;;  %v4518_v11 = vmul.f32 %v16689_v58, %v4260_v6  ;;  %v4714_v53 = vmul.f32 %v16700_v8, %v4260_v6  ;;  %14200 = vpow2.f32 %v3867_v63  ;;  %v16831_v6 = vld [vmem:[%s20087_s10] ss:$0 sm:$0xff] }
 0x28e   : > { %v4387_v37 = vmul.f32 %v16358_v13, %v4351_v9  ;;  %v4480_v43 = vadd.f32 %v4452_v41, %v4414_v3  ;;  %v4583_v40 = vmul.f32 %v16803_v14, %v4351_v9  ;;  %v4779_v24 = vmul.f32 %v16809_v0, %v4351_v9 }
 0x28f   : > { %v4324_v4 = vadd.f32 %v4296_v49, %v4232_v28  ;;  %v4200_v60 = vld [vmem:[#allocation2 + $0xa8] sm:$0xff]  ;;  %v4676_v45 = vadd.f32 %v4648_v44, %v4610_v47  ;;  %v14185_v3 = vpop.eup %14184 }
 0x290   : > { %v4263_v55 = vld [vmem:[#allocation2 + $0xa9] sm:$0xff]  ;;  %v4415_v21 = vadd.f32 %v4387_v37, %v16653_v20  ;;  %v4235_v36 = vmul.f32 %v16340_v39, %v4200_v60  ;;  %v4198_v7 = vld [vmem:[#allocation2 + $0x98] sm:$0xff]  ;;  %v4611_v22 = vadd.f32 %v4583_v40, %v4545_v31  ;;  %v4807_v51 = vadd.f32 %v4779_v24, %v4741_v26  ;;  %v4199_v38 = vld [vmem:[#allocation2 + $0xa0] sm:$0xff] }
 0x291   : > { %v4354_v19 = vld [vmem:[#allocation2 + $0xa2] sm:$0xff]  ;;  %v4299_v29 = vmul.f32 %v16346_v62, %v4263_v55  ;;  %v4261_v28 = vld [vmem:[#allocation2 + $0x99] sm:$0xff]  ;;  %v4546_v9 = vadd.f32 %v4518_v11, %v4480_v43  ;;  %v16820_v20 = vmul.f32 %v16670_v33, %v4200_v60  ;;  %v16823_v47 = vmul.f32 %v16689_v58, %v4263_v55 }
 0x292   : > { %v4352_v49 = vld [vmem:[#allocation2 + $0x92] sm:$0xff]  ;;  %v16817_v41 = vmul.f32 %v16358_v13, %v4354_v19  ;;  %v16826_v37 = vmul.f32 %v14185_v3, %v16582_v1  ;;  %v4742_v31 = vadd.f32 %v4714_v53, %v4676_v45  ;;  %v4842_v63 = vmul.f32 %v16831_v6, %v4807_v51  ;;  %v16843_v24 = vld [vmem:[%s20088_s11] ss:$0 sm:$0xff] }
 0x293   : > { %v16834_v26 = vadd.f32 %v4299_v29, %v4235_v36  ;;  %v14187_v11 = vpop.eup %14186  ;;  %v4233_v44 = vmul.f32 %v16340_v39, %v4198_v7  ;;  %v4234_v46 = vmul.f32 %v16340_v39, %v4199_v38  ;;  %v4297_v43 = vmul.f32 %v16346_v62, %v4261_v28  ;;  %v4353_v3 = vld [vmem:[#allocation2 + $0x9a] sm:$0xff] }
 0x294   : > { %20399 = vst [vmem:[#allocation42_spill] sm:$0xff] %v16826_v37  ;;  %v4388_v1 = vmul.f32 %v16358_v13, %v4352_v49  ;;  %v14189_v40 = vpop.eup %14188  ;;  %v16846_v45 = vadd.f32 %v16843_v24, %v4842_v63  ;;  %v16849_v36 = vmul.f32 %v16803_v14, %v4354_v19  ;;  %v4651_v29 = vmul.f32 %v16792_v48, %v4200_v60 }
 0x295   : > { %v4453_v39 = vmul.f32 %v16670_v33, %v4198_v7  ;;  %v14191_v62 = vpop.eup %14190  ;;  %v16854_v53 = vmul.f32 %v16700_v8, %v4263_v55  ;;  %v4782_v51 = vmul.f32 %v16809_v0, %v4354_v19  ;;  %v4325_v32 = vadd.f32 %v4297_v43, %v4233_v44 }
 0x296   : > { %20400 = vst [vmem:[#allocation49_spill] sm:$0xff] %v16846_v45  ;;  %v4416_v5 = vadd.f32 %v4388_v1, %v4324_v4  ;;  %v14193_v10 = vpop.eup %14192  ;;  %v4905_v63 = vsub.f32 0.0, %v16846_v45  ;;  %v4519_v56 = vmul.f32 %v16689_v58, %v4261_v28  ;;  %v4584_v27 = vmul.f32 %v16803_v14, %v4352_v49 }
 0x297   : > { %v4481_v16 = vadd.f32 %v4453_v39, %v4415_v21  ;;  %v14195_v60 = vpop.eup %14194  ;;  %v4986_v17 = vadd.f32 1.0, %v14191_v62  ;;  %v4326_v37 = vadd.f32 %v16718_v52, %v4234_v46  ;;  %v4389_v55 = vmul.f32 %v16358_v13, %v4353_v3  ;;  %v16868_v13 = vpop.permute.xlu1 %4090 }
 0x298   : > { %v4454_v19 = vmul.f32 %v16670_v33, %v4199_v38  ;;  %v14197_v44 = vpop.eup %14196  ;;  %v4946_v4 = vmul.f32 1.442695, %v4905_v63  ;;  %v4612_v1 = vadd.f32 %v4584_v27, %v4546_v9  ;;  %v4649_v21 = vmul.f32 %v16792_v48, %v4198_v7  ;;  %20402 = vst [vmem:[#allocation51_spill] sm:$0xff] %v16868_v13  ;;  %v16875_v63 = vpop.permute.xlu0 %4095 }
 0x299   : > { %v4547_v43 = vadd.f32 %v4519_v56, %v4481_v16  ;;  %v14199_v39 = vpop.eup %14198  ;;  %v4987_v57 = vadd.f32 1.0, %v14197_v44  ;;  %v4417_v54 = vadd.f32 %v4389_v55, %v4325_v32  ;;  %v4650_v25 = vmul.f32 %v16792_v48, %v4199_v38 }
 0x29a   : > { %v4482_v23 = vadd.f32 %v4454_v19, %v4416_v5  ;;  %v4988_v45 = vadd.f32 1.0, %v14199_v39  ;;  %14202 = vpow2.f32 %v4946_v4  ;;  %v4585_v52 = vmul.f32 %v16803_v14, %v4353_v3  ;;  %v20403_v5 = vld [vmem:[#allocation25_spill] sm:$0xff]  ;;  %v14201_v9 = vpop.eup %14200 }
 0x29b   : > { %v4677_v46 = vadd.f32 %v4649_v21, %v4611_v22  ;;  %14204 = vrcp.f32 %v4986_v17  ;;  %v4678_v62 = vadd.f32 %v4650_v25, %v4612_v1  ;;  %v4715_v16 = vmul.f32 %v16700_v8, %v4261_v28  ;;  %20405 = vst [vmem:[#allocation25_spill] sm:$0xff] %v16875_v63 }
 0x29c   : > { %v4780_v56 = vmul.f32 %v16809_v0, %v4352_v49  ;;  %14206 = vrcp.f32 %v4987_v57  ;;  %v4613_v27 = vadd.f32 %v4585_v52, %v4547_v43  ;;  %v4781_v32 = vmul.f32 %v16809_v0, %v4353_v3 }
 0x29d   : > { %v20404_v7 = vmax.f32 %v20403_v5, 0.0  ;;  %v4743_v55 = vadd.f32 %v4715_v16, %v4677_v46  ;;  %v4744_v22 = vadd.f32 %v16731_v34, %v4678_v62  ;;  %v20406_v25 = vmax.f32 %v16330_v12, 0.0 }
 0x29e   : > { %v4808_v19 = vadd.f32 %v4780_v56, %v4742_v31  ;;  %14208 = vrcp.f32 %v4988_v45  ;;  %v4483_v28 = vadd.f32 %v16820_v20, %v4417_v54  ;;  %v4548_v57 = vadd.f32 %v16728_v59, %v4482_v23  ;;  %v16888_v45 = vpop.permute.xlu1 %4100 }
 0x29f   : > { %v3977_v38 = vmul.f32 %v14187_v11, %v20404_v7  ;;  %v3975_v17 = vmul.f32 %v14189_v40, %v20406_v25  ;;  %v4809_v3 = vadd.f32 %v4781_v32, %v4743_v55  ;;  %v4810_v44 = vadd.f32 %v4782_v51, %v4744_v22  ;;  %20408 = vst [vmem:[#allocation52_spill] sm:$0xff] %v16888_v45  ;;  %v20416_v25 = vld [vmem:[#allocation44_spill] sm:$0xff] }
 0x2a0   : > { %v4843_v11 = vmul.f32 %v16831_v6, %v4808_v19  ;;  %v4679_v43 = vadd.f32 %v4651_v29, %v4613_v27  ;;  %v20407_v34 = vmax.f32 %v16334_v50, 0.0  ;;  %v3892_v31 = vadd.f32 1.0, %v14195_v60 }
 0x2a1   : > { %v4145_v49 = vmul.f32 %v16875_v63, %v3977_v38  ;;  %v4143_v4 = vmul.f32 %v16860_v30, %v3975_v17  ;;  %v3897_v40 = vadd.f32 1.0, %v14201_v9  ;;  %v4844_v59 = vmul.f32 %v16831_v6, %v4809_v3  ;;  %v20417_v17 = vld [vmem:[#allocation5_spill] sm:$0xff] }
 0x2a2   : > { %v3978_v12 = vmul.f32 %v14193_v10, %v20407_v34  ;;  %v4845_v23 = vmul.f32 %v16831_v6, %v4810_v44  ;;  %v16893_v54 = vadd.f32 %v16843_v24, %v4843_v11  ;;  %14210 = vpow2.f32 %v16782_v61  ;;  %v20419_v44 = vld [vmem:[#allocation6_spill] sm:$0xff] }
 0x2a3   : > { %4173 = vst.msk [vmem:[#allocation2 + $0xc1] sm:$0xff] %vm774_vm4, %v4145_v49  ;;  %4171 = vst.msk [vmem:[#allocation2 + $0xb1] sm:$0xff] %vm774_vm4, %v4143_v4  ;;  %14212 = vrcp.f32 %v3892_v31  ;;  %v3869_v50 = vmul.f32 1.442695, %v16786_v35  ;;  %v20410_v10 = vmax.f32 %v16768_v2, 0.0  ;;  %v16902_v51 = vadd.f32 %v16843_v24, %v4844_v59 }
 0x2a4   : > { %20409 = vst [vmem:[#allocation53_spill] sm:$0xff] %v16893_v54  ;;  %v4146_v20 = vmul.f32 %v16888_v45, %v3978_v12  ;;  %v16905_v60 = vadd.f32 %v16843_v24, %v4845_v23  ;;  %v4906_v1 = vsub.f32 0.0, %v16893_v54  ;;  %14214 = vrcp.f32 %v3897_v40 }
 0x2a5   : > { %v3812_v29 = vsub.f32 0.0, %v20410_v10  ;;  %20411 = vst [vmem:[#allocation54_spill] sm:$0xff] %v16902_v51  ;;  %v4418_v61 = vadd.f32 %v16817_v41, %v4326_v37  ;;  %14216 = vpow2.f32 %v3869_v50  ;;  %v20413_v35 = vshrl.u32 %v16476_v15, 16  ;;  %v16962_v50 = vpop.permute.xlu0 %4105 }
 0x2a6   : > { %20412 = vst [vmem:[#allocation55_spill] sm:$0xff] %v16905_v60  ;;  %4174 = vst.msk [vmem:[#allocation2 + $0xc9] sm:$0xff] %vm774_vm4, %v4146_v20  ;;  %v4907_v52 = vsub.f32 0.0, %v16902_v51  ;;  %v4908_v46 = vsub.f32 0.0, %v16905_v60  ;;  %v4948_v62 = vmul.f32 1.442695, %v4906_v1  ;;  %v4549_v16 = vadd.f32 %v16823_v47, %v4483_v28 }
 0x2a7   : > { %v3865_v21 = vmul.f32 1.442695, %v3812_v29  ;;  %v16912_v39 = vrot.slane %v20413_v35, 7  ;;  %v4614_v56 = vadd.f32 %v16849_v36, %v4548_v57  ;;  %v14203_v41 = vpop.eup %14202  ;;  %v4745_v5 = vadd.f32 %v16854_v53, %v4679_v43  ;;  %v16932_v53 = vld [vmem:[%s20086_s9] ss:$0 sm:$0xff]  ;;  %20421 = vst [vmem:[#allocation6_spill] sm:$0xff] %v16962_v50 }
 0x2a8   : > { %v4950_v37 = vmul.f32 1.442695, %v4907_v52  ;;  %v4952_v27 = vmul.f32 1.442695, %v4908_v46  ;;  %v16919_v7 = vpop.eup %14204  ;;  %v4989_v38 = vadd.f32 1.0, %v14203_v41  ;;  %v20415_v47 = vshll.u32 %v16476_v15, 16 }
 0x2a9   : > { %14218 = vpow2.f32 %v3865_v21  ;;  %20414 = vst [vmem:[#allocation56_spill] sm:$0xff] %v16919_v7  ;;  %v5210_v19 = vrot.slane %v16912_v39, 4  ;;  %v5063_v28 = vmul.f32 %v20417_v17, %v20416_v25  ;;  %v16927_v57 = vpop.eup %14206  ;;  %v16938_v15 = vld [vmem:[%s20086_s9 + $0x1] ss:$0 sm:$0xff]  ;;  %v5090_v11 = vmul.f32 %v16798_v42, %v20419_v44  ;;  %v16949_v43 = vld [vmem:[%s20086_s9 + $0x2] ss:$0 sm:$0xff] }
 0x2aa   : > { %14220 = vpow2.f32 %v4948_v62  ;;  %v4266_v32 = vld [vmem:[#allocation2 + $0xc1] sm:$0xff]  ;;  %v4201_v9 = vld [vmem:[#allocation2 + $0xb0] sm:$0xff]  ;;  %v5209_v36 = vor.u32 %v20415_v47, %v16912_v39  ;;  %20418 = vst [vmem:[#allocation44_spill] sm:$0xff] %v16927_v57 }
 0x2ab   : > { %v4264_v55 = vld [vmem:[#allocation2 + $0xb1] sm:$0xff]  ;;  %14222 = vpow2.f32 %v4950_v37  ;;  %v4236_v49 = vmul.f32 %v16932_v53, %v4201_v9  ;;  %v16944_v4 = vmul.f32 %v16938_v15, %v4266_v32  ;;  %v4456_v12 = vmul.f32 %v16670_v33, %v4201_v9  ;;  %v16953_v31 = vpop.eup %14208 }
 0x2ac   : > { %v4355_v22 = vld [vmem:[#allocation2 + $0xaa] sm:$0xff]  ;;  %v4300_v3 = vmul.f32 %v16938_v15, %v4264_v55  ;;  %14224 = vrcp.f32 %v4989_v38  ;;  %20420 = vst [vmem:[#allocation5_spill] sm:$0xff] %v16953_v31  ;;  %v16956_v40 = vmul.f32 %v16689_v58, %v4266_v32  ;;  %v16959_v42 = vmul.f32 %v16700_v8, %v4266_v32 }
 0x2ad   : > { %v4391_v34 = vmul.f32 %v16949_v43, %v4355_v22  ;;  %14226 = vpow2.f32 %v4952_v27  ;;  %v4652_v59 = vmul.f32 %v16792_v48, %v4201_v9  ;;  %v4204_v23 = vld [vmem:[#allocation2 + $0xc8] sm:$0xff]  ;;  %v4484_v10 = vadd.f32 %v4456_v12, %v4418_v61  ;;  %v5486_v9 = vld [vmem:[#allocation3 + $0x8] sm:$0xf] }
 0x2ae   : > { %v4267_v20 = vld [vmem:[#allocation2 + $0xc9] sm:$0xff]  ;;  %v4522_v29 = vmul.f32 %v16689_v58, %v4264_v55  ;;  %v4587_v1 = vmul.f32 %v16803_v14, %v4355_v22  ;;  %v4783_v21 = vmul.f32 %v16809_v0, %v4355_v22  ;;  %v16967_v39 = vadd.f32 %v4300_v3, %v4236_v49 }
 0x2af   : > { %v4358_v35 = vld [vmem:[#allocation2 + $0xc2] sm:$0xff]  ;;  %v4680_v52 = vadd.f32 %v4652_v59, %v4614_v56  ;;  %v4239_v46 = vmul.f32 %v16932_v53, %v4204_v23  ;;  %v4303_v62 = vmul.f32 %v16938_v15, %v4267_v20  ;;  %v14211_v61 = vpop.eup %14210  ;;  %v16978_v37 = vadd.f32 %v4391_v34, %v16834_v26  ;;  %v20428_v59 = vld [vmem:[#allocation14_spill] sm:$0xff] }
 0x2b0   : > { %v16980_v27 = vadd.f32 %v4587_v1, %v4549_v16  ;;  %v4718_v32 = vmul.f32 %v16700_v8, %v4264_v55  ;;  %v4811_v38 = vadd.f32 %v4783_v21, %v4745_v5  ;;  %v14213_v22 = vpop.eup %14212  ;;  %v16989_v47 = vadd.f32 %v4522_v29, %v4484_v10  ;;  %v20426_v3 = vld [vmem:[#allocation9_spill] sm:$0xff]  ;;  %v20430_v21 = vld [vmem:[#allocation30_spill] sm:$0xff] }
 0x2b1   : > { %v16992_v25 = vmul.f32 %v16949_v43, %v4358_v35  ;;  %v16995_v26 = vmul.f32 %v16670_v33, %v4204_v23  ;;  %v16998_v16 = vmul.f32 %v16689_v58, %v4267_v20  ;;  %v14215_v5 = vpop.eup %14214  ;;  %v17003_v49 = vadd.f32 %v4303_v62, %v4239_v46  ;;  %v17017_v46 = vld [vmem:[%s20089_s12 + $0x38] sm:$0xff]   ;;  %v17019_v62 = vpop.permute.xlu0 %4115 }
 0x2b2   : > { %v17000_v55 = vadd.f32 %v4718_v32, %v4680_v52  ;;  %v4846_v17 = vmul.f32 %v16831_v6, %v4811_v38  ;;  %v20427_v44 = vmax.f32 %v20426_v3, 0.0  ;;  %v14217_v12 = vpop.eup %14216  ;;  %v20429_v10 = vmax.f32 %v20428_v59, 0.0  ;;  %20431 = vst [vmem:[#allocation9_spill] sm:$0xff] %v17019_v62  ;;  %13226 = vmatprep.subr.bf16.mxu0 %v17017_v46 }
 0x2b3   : > { %v3895_v1 = vadd.f32 1.0, %v14211_v61  ;;  %v5218_v45 = vsel %vm16973_vm8, %v5210_v19, %v20430_v21  ;;  %v5487_v52 = vsel %vm16985_vm9, %v5209_v36, %v5486_v9  ;;  %v3898_v61 = vadd.f32 1.0, %v14217_v12  ;;  %v20432_v19 = vld [vmem:[#allocation15_spill] sm:$0xff] }
 0x2b4   : > { %v3976_v34 = vmul.f32 %v14213_v22, %v20427_v44  ;;  %v3981_v29 = vmul.f32 %v14215_v5, %v20429_v10  ;;  %v17022_v32 = vadd.f32 %v16843_v24, %v4846_v17  ;;  %5488 = vst [vmem:[#allocation3 + $0x8] sm:$0xf] %v5487_v52  ;;  %5489 = vst.msk [vmem:[#allocation3 + $0xc] sm:$0xf] %vm783_vm3, %v5218_v45 }
 0x2b5   : > { %v5091_v22 = vmul.f32 %v5063_v28, %v20432_v19  ;;  %v17028_v36 = vmul.f32 %v16803_v14, %v4358_v35  ;;  %v17031_v9 = vmul.f32 %v16792_v48, %v4204_v23  ;;  %v12432_v3 = vpack.c.bf16 %v5090_v11, %v5090_v11 }
 0x2b6   : > { %v4144_v38 = vmul.f32 %v16868_v13, %v3976_v34  ;;  %v14219_v56 = vpop.eup %14218  ;;  %v4149_v5 = vmul.f32 %v17019_v62, %v3981_v29  ;;  %v4909_v44 = vsub.f32 0.0, %v17022_v32  ;;  %14228 = vrcp.f32 %v3895_v1  ;;  %v20433_v29 = vld [vmem:[#allocation20_spill] sm:$0xff]  ;;  %v20440_v62 = vld [vmem:[#allocation19_spill] sm:$0xff] }
 0x2b7   : > { %v14221_v17 = vpop.eup %14220  ;;  %v3896_v45 = vadd.f32 1.0, %v14219_v56  ;;  %v12433_v28 = vpack.c.bf16 %v5091_v22, %v5091_v22  ;;  %v17038_v12 = vmul.f32 %v16700_v8, %v4267_v20  ;;  %v17041_v23 = vmul.f32 %v16809_v0, %v4358_v35  ;;  %v20439_v35 = vld [vmem:[#allocation17_spill] sm:$0xff] }
 0x2b8   : > { %4172 = vst.msk [vmem:[#allocation2 + $0xb9] sm:$0xff] %vm774_vm4, %v4144_v38  ;;  %v4990_v34 = vadd.f32 1.0, %v14221_v17  ;;  %4177 = vst.msk [vmem:[#allocation2 + $0xe1] sm:$0xff] %vm774_vm4, %v4149_v5  ;;  %v5221_v11 = vshrl.u32 %v12432_v3, 16  ;;  %v14223_v59 = vpop.eup %14222  ;;  %v4954_v10 = vmul.f32 1.442695, %v4909_v44  ;;  %14230 = vrcp.f32 %v3898_v61 }
 0x2b9   : > { %v5219_v21 = vrot.slane %v20433_v29, 4  ;;  %v5230_v52 = vshrl.u32 %v12433_v28, 16  ;;  %v14225_v38 = vpop.eup %14224  ;;  %v4991_v1 = vadd.f32 1.0, %v14223_v59  ;;  %14232 = vrcp.f32 %v3896_v45  ;;  %v13893_v61 = vld [vmem:[%s20089_s12 + $0x30] sm:$0xff]   ;;  %v20435_v17 = vld [vmem:[#allocation49_spill] sm:$0xff]  ;;  %v20438_v29 = vld [vmem:[#allocation36_spill] sm:$0xff] }
 0x2ba   : > { %v17045_v19 = vrot.slane %v5221_v11, 7  ;;  %v5224_v22 = vshll.u32 %v12432_v3, 16  ;;  %v14227_v20 = vpop.eup %14226  ;;  %14234 = vpow2.f32 %v4954_v10  ;;  %v5635_v5 = vshll.u32 %v16763_v18, 16  ;;  %v20437_v10 = vld [vmem:[#allocation43_spill] sm:$0xff] }
 0x2bb   : > { %v17047_v56 = vrot.slane %v5230_v52, 7  ;;  %v17055_v44 = vmul.f32 %v14225_v38, %v20435_v17  ;;  %14236 = vrcp.f32 %v4990_v34  ;;  %v17057_v45 = vld [vmem:[#allocation3 + $0x8] sm:$0xff]   ;;  %v5233_v11 = vshll.u32 %v12433_v28, 16 }
 0x2bc   : > { %v5226_v3 = vor.u32 %v5224_v22, %v17045_v19  ;;  %v4992_v59 = vadd.f32 1.0, %v14227_v20  ;;  %14238 = vrcp.f32 %v4991_v1  ;;  %v17062_v52 = vmul.f32 %v20438_v29, %v20437_v10  ;;  %13167 = vmatmul.mubr.msk.bf16.vlgmr.msra.gmra.mxu0 %vm774_vm4, %v17057_v45 }
 0x2bd   : > { %20434 = vst [vmem:[#allocation14_spill] sm:$0xff] %v17047_v56  ;;  %20436 = vst [vmem:[#allocation30_spill] sm:$0xff] %v17055_v44  ;;  %v17066_v63 = vmul.f32 %v20440_v62, %v20439_v35  ;;  %v17074_v1 = vor.u32 %v5233_v11, %v17047_v56  ;;  %v5637_v29 = vrot.slane %v5635_v5, 1  ;;  %13227 = vmatpush3.bf16.msra.mxu0 %v17017_v46  ;;  %v17098_v56 = vpop.permute.xlu1 %4110 }
 0x2be   : > { %v5227_v34 = vsel %vm16973_vm8, %v5219_v21, %v5226_v3  ;;  %13228 = vmatprep.subr.bf16.mxu0 %v13893_v61  ;;  %20441 = vst [vmem:[#allocation15_spill] sm:$0xff] %v17098_v56  ;;  %14240 = vrcp.f32 %v4992_v59 }
 0x2bf   : > { %v4202_v13 = vld [vmem:[#allocation2 + $0xb8] sm:$0xff]  ;;  %v4203_v30 = vld [vmem:[#allocation2 + $0xc0] sm:$0xff]  ;;  %5490 = vst.msk [vmem:[#allocation3 + $0x10] sm:$0xf] %vm783_vm3, %v5227_v34 }
 0x2c0   : > { %v4265_v38 = vld [vmem:[#allocation2 + $0xb9] sm:$0xff]  ;;  %v4237_v20 = vmul.f32 %v16932_v53, %v4202_v13  ;;  %v4457_v10 = vmul.f32 %v16670_v33, %v4202_v13  ;;  %v4238_v21 = vmul.f32 %v16932_v53, %v4203_v30  ;;  %v4458_v46 = vmul.f32 %v16670_v33, %v4203_v30 }
 0x2c1   : > { %v4301_v62 = vmul.f32 %v16938_v15, %v4265_v38  ;;  %v4356_v35 = vld [vmem:[#allocation2 + $0xb2] sm:$0xff]  ;;  %v4357_v17 = vld [vmem:[#allocation2 + $0xba] sm:$0xff]  ;;  %v4523_v51 = vmul.f32 %v16689_v58, %v4265_v38  ;;  %v4653_v44 = vmul.f32 %v16792_v48, %v4202_v13  ;;  %13229 = vmatpush3.bf16.msra.mxu0 %v13893_v61  ;;  %v4719_v7 = vmul.f32 %v16700_v8, %v4265_v38 }
 0x2c2   : > { %v4392_v3 = vmul.f32 %v16949_v43, %v4356_v35  ;;  %v4393_v11 = vmul.f32 %v16949_v43, %v4357_v17  ;;  %v4485_v60 = vadd.f32 %v4457_v10, %v16978_v37  ;;  %v4588_v54 = vmul.f32 %v16803_v14, %v4356_v35 }
 0x2c3   : > { %v4329_v28 = vadd.f32 %v4301_v62, %v4237_v20  ;;  %v4589_v34 = vmul.f32 %v16803_v14, %v4357_v17  ;;  %v4654_v20 = vmul.f32 %v16792_v48, %v4203_v30  ;;  %v14229_v37 = vpop.eup %14228  ;;  %v4681_v10 = vadd.f32 %v4653_v44, %v16980_v27 }
 0x2c4   : > { %v4420_v5 = vadd.f32 %v4392_v3, %v16967_v39  ;;  %v4551_v57 = vadd.f32 %v4523_v51, %v4485_v60  ;;  %v4616_v22 = vadd.f32 %v4588_v54, %v16989_v47  ;;  %v4784_v39 = vmul.f32 %v16809_v0, %v4356_v35  ;;  %v4492_v3 = vld [vmem:[#allocation2 + $0xe1] sm:$0xff] }
 0x2c5   : > { %v4421_v31 = vadd.f32 %v4393_v11, %v4329_v28  ;;  %v4330_v13 = vadd.f32 %v16944_v4, %v4238_v21  ;;  %v5644_v54 = vshrl.u32 %v17057_v45, 16  ;;  %v14231_v60 = vpop.eup %14230  ;;  %v4747_v30 = vadd.f32 %v4719_v7, %v4681_v10  ;;  %v20442_v4 = vld [vmem:[#allocation7_spill] sm:$0xff] }
 0x2c6   : > { %v4486_v62 = vadd.f32 %v4458_v46, %v4420_v5  ;;  %v4617_v28 = vadd.f32 %v4589_v34, %v4551_v57  ;;  %v4682_v51 = vadd.f32 %v4654_v20, %v4616_v22  ;;  %v4785_v47 = vmul.f32 %v16809_v0, %v4357_v17  ;;  %v14233_v61 = vpop.eup %14232  ;;  %v20444_v20 = vld [vmem:[#allocation40_spill] sm:$0xff] }
 0x2c7   : > { %v4812_v27 = vadd.f32 %v4784_v39, %v17000_v55  ;;  %v4487_v44 = vadd.f32 %v16995_v26, %v4421_v31  ;;  %v17107_v35 = vmul.f32 %v16689_v58, %v4492_v3  ;;  %v20443_v57 = vmax.f32 %v20442_v4, 0.0  ;;  %v14235_v21 = vpop.eup %14234  ;;  %v17134_v39 = vpop.permute.xlu1 %4120 }
 0x2c8   : > { %v4748_v38 = vadd.f32 %v16959_v42, %v4682_v51  ;;  %v4552_v11 = vadd.f32 %v16956_v40, %v4486_v62  ;;  %v4813_v59 = vadd.f32 %v4785_v47, %v4747_v30  ;;  %v17114_v17 = vmul.f32 %v16700_v8, %v4492_v3  ;;  %v17116_v55 = vpop.eup %14236  ;;  %20447 = vst [vmem:[#allocation20_spill] sm:$0xff] %v17134_v39 }
 0x2c9   : > { %v3979_v22 = vmul.f32 %v14229_v37, %v20443_v57  ;;  %v4847_v7 = vmul.f32 %v16831_v6, %v4812_v27  ;;  %v4683_v31 = vadd.f32 %v17031_v9, %v4617_v28  ;;  %v17122_v5 = vadd.f32 %v16992_v25, %v4330_v13  ;;  %v17124_v46 = vpop.eup %14238 }
 0x2ca   : > { %v4814_v42 = vadd.f32 %v17041_v23, %v4748_v38  ;;  %v4848_v40 = vmul.f32 %v16831_v6, %v4813_v59  ;;  %v20445_v37 = vmax.f32 %v20444_v20, 0.0  ;;  %v20446_v10 = vmax.f32 %v16768_v2, 0.0  ;;  %v20453_v59 = vld [vmem:[#allocation11_spill] sm:$0xff] }
 0x2cb   : > { %v4147_v26 = vmul.f32 %v16962_v50, %v3979_v22  ;;  %v17128_v34 = vadd.f32 %v16843_v24, %v4847_v7  ;;  %v4993_v23 = vadd.f32 1.0, %v14235_v21  ;;  %v20448_v25 = vrot.slane %v17045_v19, 4 }
 0x2cc   : > { %v3982_v62 = vmul.f32 %v14231_v60, %v20445_v37  ;;  %v3980_v9 = vmul.f32 %v14233_v61, %v20446_v10  ;;  %v4849_v3 = vmul.f32 %v16831_v6, %v4814_v42  ;;  %v20449_v28 = vshrl.u32 %v16763_v18, 16  ;;  %v20452_v61 = vld [vmem:[#allocation23_spill] sm:$0xff] }
 0x2cd   : > { %4175 = vst.msk [vmem:[#allocation2 + $0xd1] sm:$0xff] %vm774_vm4, %v4147_v26  ;;  %v5236_v13 = vsel %vm16973_vm8, %v20448_v25, %v17074_v1  ;;  %v17146_v60 = vadd.f32 %v16843_v24, %v4848_v40  ;;  %v4910_v2 = vsub.f32 0.0, %v17128_v34  ;;  %v20451_v19 = vshll.u32 %v17057_v45, 16  ;;  %v20456_v40 = vld [vmem:[#allocation16_spill] sm:$0xff] }
 0x2ce   : > { %v5638_v51 = vor.u32 %v5637_v29, %v20449_v28  ;;  %v4150_v30 = vmul.f32 %v17134_v39, %v3982_v62  ;;  %v4148_v47 = vmul.f32 %v17098_v56, %v3980_v9  ;;  %5491 = vst.msk [vmem:[#allocation3 + $0x14] sm:$0xf] %vm783_vm3, %v5236_v13  ;;  %v17153_v27 = vadd.f32 %v16843_v24, %v4849_v3  ;;  %v20457_v28 = vld [vmem:[#allocation18_spill] sm:$0xff] }
 0x2cf   : > { %v5642_v1 = vrot.slane %v20451_v19, 1  ;;  %v5092_v18 = vmul.f32 %v17062_v52, %v20452_v61  ;;  %v17161_v29 = vpack.c.bf16 %v17066_v63, %v17066_v63  ;;  %v4911_v38 = vsub.f32 0.0, %v17146_v60  ;;  %v20454_v63 = vld [vmem:[#allocation45_spill] sm:$0xff] }
 0x2d0   : > { %20450 = vst [vmem:[#allocation49_spill] sm:$0xff] %v17153_v27  ;;  %v4956_v4 = vmul.f32 1.442695, %v4910_v2  ;;  %v4553_v57 = vadd.f32 %v16998_v16, %v4487_v44  ;;  %v4618_v22 = vadd.f32 %v17028_v36, %v4552_v11  ;;  %4178 = vst.msk [vmem:[#allocation2 + $0xe9] sm:$0xff] %vm774_vm4, %v4150_v30  ;;  %v4912_v45 = vsub.f32 0.0, %v17153_v27  ;;  %v20455_v11 = vld [vmem:[#allocation21_spill] sm:$0xff] }
 0x2d1   : > { %4176 = vst.msk [vmem:[#allocation2 + $0xd9] sm:$0xff] %vm774_vm4, %v4148_v47  ;;  %v5643_v21 = vsel %vm899_vm0, %v5638_v51, %v5642_v1  ;;  %v17170_v52 = vpack.c.bf16 %v5092_v18, %v5092_v18  ;;  %v5066_v7 = vmul.f32 %v20454_v63, %v20453_v59  ;;  %v4958_v42 = vmul.f32 1.442695, %v4911_v38  ;;  %v20460_v59 = vld [vmem:[#allocation48_spill] sm:$0xff] }
 0x2d2   : > { %14242 = vpow2.f32 %v4956_v4  ;;  %v4749_v26 = vadd.f32 %v17038_v12, %v4683_v31  ;;  %13134 = vmatprep.mubr.msk.bf16.mxu1 %vm774_vm4, %v5643_v21  ;;  %v5248_v16 = vshrl.u32 %v17161_v29, 16  ;;  %v4960_v36 = vmul.f32 1.442695, %v4912_v45  ;;  %v17184_v31 = vpop.eup %14240  ;;  %v20458_v4 = vld [vmem:[#allocation22_spill] sm:$0xff] }
 0x2d3   : > { %14244 = vrcp.f32 %v4993_v23  ;;  %v17177_v44 = vor.u32 %v5644_v54, %v5642_v1  ;;  %v5067_v20 = vmul.f32 %v20456_v40, %v20455_v11  ;;  %v17192_v51 = vmul.f32 %v5066_v7, %v20457_v28  ;;  %v20459_v21 = vld [vmem:[#allocation26_spill] sm:$0xff] }
 0x2d4   : > { %14246 = vpow2.f32 %v4958_v42  ;;  %v4205_v37 = vld [vmem:[#allocation2 + $0xd0] sm:$0xff]  ;;  %v17196_v47 = vrot.slane %v5248_v16, 7  ;;  %v17207_v63 = vmul.f32 %v20460_v59, %v20459_v21 }
 0x2d5   : > { %v4268_v62 = vld [vmem:[#allocation2 + $0xd1] sm:$0xff]  ;;  %v4240_v23 = vmul.f32 %v16932_v53, %v4205_v37  ;;  %v17189_v13 = vld [vmem:[#allocation3 + $0x10] sm:$0xff]   ;;  %14248 = vpow2.f32 %v4960_v36  ;;  %v4460_v2 = vmul.f32 %v16670_v33, %v4205_v37  ;;  %v4656_v30 = vmul.f32 %v16792_v48, %v4205_v37 }
 0x2d6   : > { %v4359_v10 = vld [vmem:[#allocation2 + $0xca] sm:$0xff]  ;;  %v4304_v54 = vmul.f32 %v16938_v15, %v4268_v62  ;;  %13170 = vmatprep.mubr.msk.bf16.mxu0 %vm774_vm4, %v17189_v13  ;;  %v17203_v45 = vmul.f32 %v5067_v20, %v20458_v4  ;;  %v4526_v16 = vmul.f32 %v16689_v58, %v4268_v62  ;;  %v4722_v28 = vmul.f32 %v16700_v8, %v4268_v62 }
 0x2d7   : > { %v4395_v25 = vmul.f32 %v16949_v43, %v4359_v10  ;;  %v4591_v19 = vmul.f32 %v16803_v14, %v4359_v10  ;;  %v4787_v1 = vmul.f32 %v16809_v0, %v4359_v10  ;;  %v4427_v61 = vld [vmem:[#allocation2 + $0xe8] sm:$0xff]  ;;  %v4488_v42 = vadd.f32 %v4460_v2, %v17122_v5  ;;  %v4624_v40 = vld [vmem:[#allocation2 + $0xf0] sm:$0xff] }
 0x2d8   : > { %v4493_v18 = vld [vmem:[#allocation2 + $0xe9] sm:$0xff]  ;;  %v4332_v7 = vadd.f32 %v4304_v54, %v4240_v23  ;;  %v4684_v36 = vadd.f32 %v4656_v30, %v4618_v22  ;;  %v4206_v20 = vld [vmem:[#allocation2 + $0xd8] sm:$0xff]  ;;  %v4463_v21 = vmul.f32 %v16670_v33, %v4427_v61  ;;  %v4426_v62 = vld [vmem:[#allocation2 + $0xe0] sm:$0xff] }
 0x2d9   : > { %v4558_v38 = vld [vmem:[#allocation2 + $0xe2] sm:$0xff]  ;;  %v4559_v11 = vld [vmem:[#allocation2 + $0xea] sm:$0xff]  ;;  %v4423_v37 = vadd.f32 %v4395_v25, %v17003_v49  ;;  %v4619_v10 = vadd.f32 %v4591_v19, %v4553_v57  ;;  %v4815_v3 = vadd.f32 %v4787_v1, %v4749_v26  ;;  %v4269_v4 = vld [vmem:[#allocation2 + $0xd9] sm:$0xff]  ;;  %v4529_v23 = vmul.f32 %v16689_v58, %v4493_v18 }
 0x2da   : > { %v4360_v12 = vld [vmem:[#allocation2 + $0xd2] sm:$0xff]  ;;  %v4594_v5 = vmul.f32 %v16803_v14, %v4558_v38  ;;  %v4595_v54 = vmul.f32 %v16803_v14, %v4559_v11  ;;  %v4361_v22 = vld [vmem:[#allocation2 + $0xda] sm:$0xff]  ;;  %v4554_v2 = vadd.f32 %v4526_v16, %v4488_v42  ;;  %v4750_v30 = vadd.f32 %v4722_v28, %v4684_v36 }
 0x2db   : > { %v4850_v49 = vmul.f32 %v16831_v6, %v4815_v3  ;;  %v4659_v57 = vmul.f32 %v16792_v48, %v4427_v61  ;;  %v4660_v26 = vmul.f32 %v16792_v48, %v4624_v40  ;;  %v4241_v25 = vmul.f32 %v16932_v53, %v4206_v20  ;;  %v14310_v3 = vld [vmem:[%s20086_s9 + $0x3] ss:$0 sm:$0xff] }
 0x2dc   : > { %v4305_v33 = vmul.f32 %v16938_v15, %v4269_v4  ;;  %v4396_v58 = vmul.f32 %v16949_v43, %v4360_v12  ;;  %v4725_v1 = vmul.f32 %v16700_v8, %v4493_v18  ;;  %v4397_v59 = vmul.f32 %v16949_v43, %v4361_v22  ;;  %v14311_v8 = vld [vmem:[%s20086_s9 + $0x4] ss:$0 sm:$0xff] }
 0x2dd   : > { %v17224_v19 = vadd.f32 %v16843_v24, %v4850_v49  ;;  %v4461_v61 = vmul.f32 %v14310_v3, %v4206_v20  ;;  %v4462_v36 = vmul.f32 %v14310_v3, %v4426_v62  ;;  %v4592_v53 = vmul.f32 %v16803_v14, %v4360_v12 }
 0x2de   : > { %v4333_v42 = vadd.f32 %v4305_v33, %v4241_v25  ;;  %v4424_v16 = vadd.f32 %v4396_v58, %v4332_v7  ;;  %v4527_v18 = vmul.f32 %v14311_v8, %v4269_v4  ;;  %v4593_v43 = vmul.f32 %v16803_v14, %v4361_v22 }
 0x2df   : > { %20461 = vst [vmem:[#allocation43_spill] sm:$0xff] %v17224_v19  ;;  %v14243_v15 = vpop.eup %14242  ;;  %v4913_v40 = vsub.f32 0.0, %v17224_v19  ;;  %v4489_v28 = vadd.f32 %v4461_v61, %v4423_v37  ;;  %v4620_v56 = vadd.f32 %v4592_v53, %v4554_v2  ;;  %v4657_v7 = vmul.f32 %v16792_v48, %v4206_v20 }
 0x2e0   : > { %v14245_v49 = vpop.eup %14244  ;;  %v4425_v9 = vadd.f32 %v4397_v59, %v4333_v42  ;;  %v4490_v39 = vadd.f32 %v4462_v36, %v4424_v16  ;;  %v4994_v33 = vadd.f32 1.0, %v14243_v15  ;;  %v4658_v50 = vmul.f32 %v16792_v48, %v4426_v62  ;;  %v14312_v36 = vld [vmem:[%s20086_s9 + $0x7] ss:$0 sm:$0xff]  ;;  %v20462_v62 = vld [vmem:[#allocation41_spill] sm:$0xff] }
 0x2e1   : > { %v14247_v25 = vpop.eup %14246  ;;  %v4962_v58 = vmul.f32 1.442695, %v4913_v40  ;;  %v4555_v3 = vadd.f32 %v4527_v18, %v4489_v28  ;;  %v4790_v37 = vmul.f32 %v16809_v0, %v4558_v38  ;;  %v4685_v8 = vadd.f32 %v4657_v7, %v4619_v10 }
 0x2e2   : > { %v4491_v61 = vadd.f32 %v4463_v21, %v4425_v9  ;;  %v4556_v19 = vadd.f32 %v17107_v35, %v4490_v39  ;;  %v14249_v27 = vpop.eup %14248  ;;  %v4995_v14 = vadd.f32 1.0, %v14247_v25  ;;  %v4686_v42 = vadd.f32 %v4658_v50, %v4620_v56  ;;  %v20468_v25 = vld [vmem:[#allocation14_spill] sm:$0xff] }
 0x2e3   : > { %14250 = vpow2.f32 %v4962_v58  ;;  %v4621_v59 = vadd.f32 %v4593_v43, %v4555_v3  ;;  %v4791_v2 = vmul.f32 %v16809_v0, %v4559_v11  ;;  %v4723_v48 = vmul.f32 %v14312_v36, %v4269_v4 }
 0x2e4   : > { %v4557_v20 = vadd.f32 %v4529_v23, %v4491_v61  ;;  %v4622_v16 = vadd.f32 %v4594_v5, %v4556_v19  ;;  %14252 = vrcp.f32 %v4994_v33  ;;  %v4752_v9 = vadd.f32 %v17114_v17, %v4686_v42 }
 0x2e5   : > { %v4687_v38 = vadd.f32 %v4659_v57, %v4621_v59  ;;  %v4788_v35 = vmul.f32 %v16809_v0, %v4360_v12  ;;  %v4996_v39 = vadd.f32 1.0, %v14249_v27  ;;  %v4751_v21 = vadd.f32 %v4723_v48, %v4685_v8 }
 0x2e6   : > { %v4688_v10 = vadd.f32 %v4660_v26, %v4622_v16  ;;  %v4789_v50 = vmul.f32 %v16809_v0, %v4361_v22  ;;  %14254 = vrcp.f32 %v4995_v14  ;;  %v4818_v23 = vadd.f32 %v4790_v37, %v4752_v9 }
 0x2e7   : > { %v4753_v56 = vadd.f32 %v4725_v1, %v4687_v38  ;;  %v4816_v11 = vadd.f32 %v4788_v35, %v4750_v30  ;;  %v4623_v5 = vadd.f32 %v4595_v54, %v4557_v20  ;;  %v20463_v4 = vshrl.u32 %v17170_v52, 16 }
 0x2e8   : > { %v4754_v19 = vadd.f32 %v20462_v62, %v4688_v10  ;;  %v4817_v53 = vadd.f32 %v4789_v50, %v4751_v21  ;;  %v4853_v27 = vmul.f32 %v16831_v6, %v4818_v23  ;;  %v20464_v12 = vshll.u32 %v17161_v29, 16  ;;  %v20466_v29 = vld [vmem:[#allocation38_spill] sm:$0xff] }
 0x2e9   : > { %v5241_v57 = vrot.slane %v20463_v4, 7  ;;  %v4819_v15 = vadd.f32 %v4791_v2, %v4753_v56  ;;  %v4851_v17 = vmul.f32 %v16831_v6, %v4816_v11  ;;  %v17257_v22 = vmul.f32 %v14245_v49, %v17022_v32  ;;  %v20467_v32 = vld [vmem:[#allocation35_spill] sm:$0xff] }
 0x2ea   : > { %v5253_v0 = vor.u32 %v20464_v12, %v17196_v47  ;;  %14256 = vrcp.f32 %v4996_v39  ;;  %v4852_v54 = vmul.f32 %v16831_v6, %v4817_v53  ;;  %v20465_v30 = vshll.u32 %v17170_v52, 16  ;;  %v14313_v53 = vld [vmem:[%s20089_s12 + $0x28] sm:$0xff]  }
 0x2eb   : > { %v4854_v1 = vmul.f32 %v16831_v6, %v4819_v15  ;;  %v17264_v40 = vadd.f32 %v16843_v24, %v4851_v17  ;;  %v17267_v28 = vadd.f32 %v16843_v24, %v4853_v27  ;;  %v5246_v18 = vrot.slane %v5241_v57, 4  ;;  %v20472_v15 = vld [vmem:[#allocation42_spill] sm:$0xff]  ;;  %v13899_v27 = vld [vmem:[%s20089_s12 + $0x48] sm:$0xff]  }
 0x2ec   : > { %v5244_v26 = vor.u32 %v20465_v30, %v5241_v57  ;;  %v17270_v43 = vadd.f32 %v20466_v29, %v4623_v5  ;;  %v4820_v49 = vadd.f32 %v20467_v32, %v4754_v19  ;;  %v17274_v7 = vadd.f32 %v16843_v24, %v4852_v54  ;;  %v20470_v5 = vld [vmem:[#allocation32_spill] sm:$0xff]  ;;  %v20471_v57 = vld [vmem:[#allocation33_spill] sm:$0xff] }
 0x2ed   : > { %v20469_v52 = vrot.slane %v20468_v25, 4  ;;  %v17281_v58 = vadd.f32 %v16843_v24, %v4854_v1  ;;  %v4914_v3 = vsub.f32 0.0, %v17264_v40  ;;  %v4916_v37 = vsub.f32 0.0, %v17267_v28  ;;  %v20474_v29 = vld [vmem:[#allocation56_spill] sm:$0xff] }
 0x2ee   : > { %v5254_v61 = vsel %vm16973_vm8, %v5246_v18, %v5253_v0  ;;  %v4915_v8 = vsub.f32 0.0, %v17274_v7  ;;  %v5648_v14 = vshll.u32 %v17189_v13, 16  ;;  %v12436_v59 = vpack.c.bf16 %v17192_v51, %v17192_v51  ;;  %v13887_v51 = vld [vmem:[%s20089_s12 + $0x20] sm:$0xff]   ;;  %v20473_v18 = vld [vmem:[#allocation10_spill] sm:$0xff] }
 0x2ef   : > { %v5245_v33 = vsel %vm16973_vm8, %v20469_v52, %v5244_v26  ;;  %5493 = vst.msk [vmem:[#allocation3 + $0x1c] sm:$0xf] %vm783_vm3, %v5254_v61  ;;  %v12437_v24 = vpack.c.bf16 %v17203_v45, %v17203_v45  ;;  %v4917_v42 = vsub.f32 0.0, %v17281_v58  ;;  %v4964_v2 = vmul.f32 1.442695, %v4914_v3  ;;  %v20476_v3 = vld [vmem:[#allocation44_spill] sm:$0xff] }
 0x2f0   : > { %5492 = vst.msk [vmem:[#allocation3 + $0x18] sm:$0xf] %vm783_vm3, %v5245_v33  ;;  %v4968_v20 = vmul.f32 1.442695, %v4916_v37  ;;  %v5255_v16 = vrot.slane %v17196_v47, 4  ;;  %v14251_v36 = vpop.eup %14250  ;;  %v5650_v38 = vrot.slane %v5648_v14, 1  ;;  %v5096_v62 = vmul.f32 %v17207_v63, %v20470_v5 }
 0x2f1   : > { %v4966_v48 = vmul.f32 1.442695, %v4915_v8  ;;  %v5257_v9 = vshrl.u32 %v12436_v59, 16  ;;  %v5260_v35 = vshll.u32 %v12436_v59, 16  ;;  %v4997_v39 = vadd.f32 1.0, %v14251_v36  ;;  %v17300_v45 = vpop.eup %14252  ;;  %v20475_v33 = vld [vmem:[#allocation46_spill] sm:$0xff] }
 0x2f2   : > { %14258 = vpow2.f32 %v4964_v2  ;;  %v4970_v10 = vmul.f32 1.442695, %v4917_v42  ;;  %v5266_v21 = vshrl.u32 %v12437_v24, 16  ;;  %v5651_v50 = vsel %vm899_vm0, %v17177_v44, %v5650_v38  ;;  %v20477_v2 = vld [vmem:[#allocation27_spill] sm:$0xff] }
 0x2f3   : > { %14260 = vpow2.f32 %v4966_v48  ;;  %v5259_v47 = vrot.slane %v5257_v9, 7  ;;  %v5269_v56 = vshll.u32 %v12437_v24, 16  ;;  %13135 = vmatmul.mubr.msk.bf16.vlgmr.msra.gmra.mxu1 %vm774_vm4, %v5651_v50  ;;  %v5652_v23 = vshrl.u32 %v17189_v13, 16  ;;  %v17308_v19 = vpop.eup %14254  ;;  %v20479_v9 = vld [vmem:[#allocation47_spill] sm:$0xff] }
 0x2f4   : > { %14262 = vrcp.f32 %v4997_v39  ;;  %v5268_v11 = vrot.slane %v5266_v21, 7  ;;  %13195 = vmatpush3.bf16.msra.mxu1 %v14313_v53  ;;  %v5097_v17 = vmul.f32 %v20472_v15, %v20471_v57  ;;  %v17319_v12 = vmul.f32 %v16831_v6, %v4820_v49  ;;  %v20482_v21 = vld [vmem:[#allocation30_spill] sm:$0xff] }
 0x2f5   : > { %14264 = vpow2.f32 %v4968_v20  ;;  %v5262_v44 = vor.u32 %v5260_v35, %v5259_v47  ;;  %v5264_v4 = vrot.slane %v5259_v47, 4  ;;  %13196 = vmatprep.subr.bf16.mxu1 %v13887_v51  ;;  %v12438_v26 = vpack.c.bf16 %v5096_v62, %v5096_v62  ;;  %v20480_v35 = vld [vmem:[#allocation5_spill] sm:$0xff] }
 0x2f6   : > { %14266 = vpow2.f32 %v4970_v10  ;;  %v5271_v0 = vor.u32 %v5269_v56, %v5268_v11  ;;  %v5273_v54 = vrot.slane %v5268_v11, 4  ;;  %v12439_v1 = vpack.c.bf16 %v5097_v17, %v5097_v17  ;;  %v20481_v10 = vld [vmem:[#allocation31_spill] sm:$0xff] }
 0x2f7   : > { %v17321_v63 = vld [vmem:[#allocation3 + $0x18] sm:$0xff]   ;;  %v5263_v30 = vsel %vm16973_vm8, %v5255_v16, %v5262_v44  ;;  %v5070_v32 = vmul.f32 %v20474_v29, %v20473_v18  ;;  %v17327_v25 = vpop.eup %14256  ;;  %v5654_v49 = vor.u32 %v5652_v23, %v5650_v38  ;;  %v5071_v37 = vmul.f32 %v20476_v3, %v20475_v33 }
 0x2f8   : > { %13171 = vmatmul.mubr.msk.bf16.gmra.mxu0 %vm774_vm4, %v17321_v63  ;;  %v5272_v6 = vsel %vm16973_vm8, %v5264_v4, %v5271_v0  ;;  %5494 = vst.msk [vmem:[#allocation3 + $0x20] sm:$0xf] %vm783_vm3, %v5263_v30  ;;  %v5656_v52 = vshll.u32 %v17321_v63, 16  ;;  %v5275_v61 = vshrl.u32 %v12438_v26, 16  ;;  %v5278_v8 = vshll.u32 %v12438_v26, 16  ;;  %13197 = vmatpush3.bf16.msra.mxu1 %v13887_v51  ;;  %v20478_v16 = vld [vmem:[#allocation37_spill] sm:$0xff] }
 0x2f9   : > { %5495 = vst.msk [vmem:[#allocation3 + $0x24] sm:$0xf] %vm783_vm3, %v5272_v6  ;;  %v5284_v14 = vshrl.u32 %v12439_v1, 16  ;;  %v5660_v59 = vshrl.u32 %v17321_v63, 16  ;;  %v5287_v42 = vshll.u32 %v12439_v1, 16  ;;  %v5098_v20 = vmul.f32 %v5070_v32, %v20477_v2  ;;  %13258 = vmatprep.subr.bf16.mxu1 %v13899_v27  ;;  %v20483_v51 = vld [vmem:[#allocation53_spill] sm:$0xff] }
 0x2fa   : > { %v5658_v24 = vrot.slane %v5656_v52, 1  ;;  %v5099_v36 = vmul.f32 %v5071_v37, %v20478_v16  ;;  %v5277_v48 = vrot.slane %v5275_v61, 7  ;;  %v5072_v39 = vmul.f32 %v20480_v35, %v20479_v9  ;;  %v20484_v26 = vld [vmem:[#allocation34_spill] sm:$0xff] }
 0x2fb   : > { %v5286_v38 = vrot.slane %v5284_v14, 7  ;;  %v5101_v50 = vmul.f32 %v20482_v21, %v20481_v10  ;;  %v12440_v56 = vpack.c.bf16 %v5098_v20, %v5098_v20  ;;  %v5074_v23 = vmul.f32 %v17116_v55, %v20483_v51  ;;  %v20485_v61 = vld [vmem:[#allocation54_spill] sm:$0xff] }
 0x2fc   : > { %v5659_v47 = vsel %vm899_vm0, %v5654_v49, %v5658_v24  ;;  %v12441_v11 = vpack.c.bf16 %v5099_v36, %v5099_v36  ;;  %v5280_v5 = vor.u32 %v5278_v8, %v5277_v48  ;;  %v5282_v62 = vrot.slane %v5277_v48, 4 }
 0x2fd   : > { %13138 = vmatprep.mubr.msk.bf16.mxu1 %vm774_vm4, %v5659_v47  ;;  %v5289_v53 = vor.u32 %v5287_v42, %v5286_v38  ;;  %v5291_v44 = vrot.slane %v5286_v38, 4  ;;  %v5293_v4 = vshrl.u32 %v12440_v56, 16  ;;  %v5296_v57 = vshll.u32 %v12440_v56, 16 }
 0x2fe   : > { %v5302_v15 = vshrl.u32 %v12441_v11, 16  ;;  %v5305_v17 = vshll.u32 %v12441_v11, 16  ;;  %v5281_v0 = vsel %vm16973_vm8, %v5273_v54, %v5280_v5  ;;  %v5100_v1 = vmul.f32 %v5072_v39, %v20484_v26  ;;  %v20486_v5 = vld [vmem:[#allocation39_spill] sm:$0xff] }
 0x2ff   : > { %v14259_v27 = vpop.eup %14258  ;;  %v5290_v30 = vsel %vm16973_vm8, %v5282_v62, %v5289_v53  ;;  %v12443_v55 = vpack.c.bf16 %v5101_v50, %v5101_v50  ;;  %5496 = vst.msk [vmem:[#allocation3 + $0x28] sm:$0xf] %vm783_vm3, %v5281_v0  ;;  %v5662_v6 = vor.u32 %v5660_v59, %v5658_v24  ;;  %v5295_v49 = vrot.slane %v5293_v4, 7  ;;  %v20487_v53 = vld [vmem:[#allocation29_spill] sm:$0xff] }
 0x300   : > { %v14261_v18 = vpop.eup %14260  ;;  %v4998_v29 = vadd.f32 1.0, %v14259_v27  ;;  %v17354_v32 = vld [vmem:[#allocation3 + $0x20] sm:$0xff]   ;;  %5497 = vst.msk [vmem:[#allocation3 + $0x2c] sm:$0xf] %vm783_vm3, %v5290_v30  ;;  %v5304_v52 = vrot.slane %v5302_v15, 7  ;;  %v12442_v3 = vpack.c.bf16 %v5100_v1, %v5100_v1  ;;  %v5075_v8 = vmul.f32 %v17124_v46, %v20485_v61  ;;  %v20488_v15 = vld [vmem:[#allocation55_spill] sm:$0xff] }
 0x301   : > { %v17358_v33 = vpop.eup %14262  ;;  %v4999_v54 = vadd.f32 1.0, %v14261_v18  ;;  %v5320_v37 = vshrl.u32 %v12443_v55, 16  ;;  %13174 = vmatprep.mubr.msk.bf16.mxu0 %vm774_vm4, %v17354_v32  ;;  %v5664_v42 = vshll.u32 %v17354_v32, 16  ;;  %v5298_v2 = vor.u32 %v5296_v57, %v5295_v49  ;;  %v20489_v27 = vld [vmem:[#allocation12_spill] sm:$0xff] }
 0x302   : > { %v14265_v14 = vpop.eup %14264  ;;  %14268 = vrcp.f32 %v4998_v29  ;;  %v5323_v20 = vshll.u32 %v12443_v55, 16  ;;  %v5300_v16 = vrot.slane %v5295_v49, 4  ;;  %v5307_v36 = vor.u32 %v5305_v17, %v5304_v52  ;;  %v20490_v29 = vld [vmem:[#allocation28_spill] sm:$0xff] }
 0x303   : > { %v14267_v59 = vpop.eup %14266  ;;  %v5000_v24 = vadd.f32 1.0, %v14265_v14  ;;  %14270 = vrcp.f32 %v4999_v54  ;;  %v5666_v38 = vrot.slane %v5664_v42, 1  ;;  %v5299_v9 = vsel %vm16973_vm8, %v5291_v44, %v5298_v2 }
 0x304   : > { %v5001_v48 = vadd.f32 1.0, %v14267_v59  ;;  %v5309_v46 = vrot.slane %v5304_v52, 4  ;;  %v5308_v35 = vsel %vm16973_vm8, %v5300_v16, %v5307_v36  ;;  %5498 = vst.msk [vmem:[#allocation3 + $0x30] sm:$0xf] %vm783_vm3, %v5299_v9  ;;  %v5668_v39 = vshrl.u32 %v17354_v32, 16 }
 0x305   : > { %14272 = vrcp.f32 %v5000_v24  ;;  %v5311_v10 = vshrl.u32 %v12442_v3, 16  ;;  %v5667_v21 = vsel %vm899_vm0, %v5662_v6, %v5666_v38  ;;  %5499 = vst.msk [vmem:[#allocation3 + $0x34] sm:$0xf] %vm783_vm3, %v5308_v35  ;;  %v5314_v50 = vshll.u32 %v12442_v3, 16  ;;  %v17408_v35 = vld [vmem:[%s20089_s12 + $0x58] sm:$0xff]  }
 0x306   : > { %14274 = vrcp.f32 %v5001_v48  ;;  %v5322_v47 = vrot.slane %v5320_v37, 7  ;;  %13139 = vmatmul.mubr.msk.bf16.gmra.mxu1 %vm774_vm4, %v5667_v21  ;;  %v5670_v11 = vor.u32 %v5668_v39, %v5666_v38  ;;  %v5102_v62 = vmul.f32 %v5074_v23, %v20486_v5  ;;  %13290 = vmatprep.subr.bf16.mxu0 %v17408_v35 }
 0x307   : > { %v17373_v56 = vld [vmem:[#allocation3 + $0x28] sm:$0xff]   ;;  %v5313_v51 = vrot.slane %v5311_v10, 7  ;;  %v5103_v44 = vmul.f32 %v5075_v8, %v20487_v53  ;;  %v5076_v17 = vmul.f32 %v17184_v31, %v20488_v15  ;;  %v5105_v0 = vmul.f32 %v17257_v22, %v20489_v27 }
 0x308   : > { %v5325_v4 = vor.u32 %v5323_v20, %v5322_v47  ;;  %v5327_v57 = vrot.slane %v5322_v47, 4  ;;  %13175 = vmatmul.mubr.msk.bf16.gmra.mxu0 %vm774_vm4, %v17373_v56  ;;  %v5672_v30 = vshll.u32 %v17373_v56, 16  ;;  %v5676_v55 = vshrl.u32 %v17373_v56, 16 }
 0x309   : > { %v5316_v26 = vor.u32 %v5314_v50, %v5313_v51  ;;  %v5318_v1 = vrot.slane %v5313_v51, 4  ;;  %v12444_v23 = vpack.c.bf16 %v5102_v62, %v5102_v62  ;;  %v12445_v18 = vpack.c.bf16 %v5103_v44, %v5103_v44  ;;  %v20491_v51 = vld [vmem:[#allocation8_spill] sm:$0xff] }
 0x30a   : > { %v5104_v6 = vmul.f32 %v5076_v17, %v20490_v29  ;;  %v12447_v49 = vpack.c.bf16 %v5105_v0, %v5105_v0  ;;  %v5674_v52 = vrot.slane %v5672_v30, 1  ;;  %v5078_v54 = vmul.f32 %v17300_v45, %v17128_v34  ;;  %v20493_v17 = vld [vmem:[#allocation49_spill] sm:$0xff]  ;;  %v20494_v30 = vld [vmem:[#allocation43_spill] sm:$0xff] }
 0x30b   : > { %v5317_v31 = vsel %vm16973_vm8, %v5309_v46, %v5316_v26  ;;  %v5326_v22 = vsel %vm16973_vm8, %v5318_v1, %v5325_v4  ;;  %v5329_v3 = vshrl.u32 %v12444_v23, 16  ;;  %v5332_v37 = vshll.u32 %v12444_v23, 16  ;;  %v20492_v4 = vld [vmem:[#allocation13_spill] sm:$0xff] }
 0x30c   : > { %5500 = vst.msk [vmem:[#allocation3 + $0x38] sm:$0xf] %vm783_vm3, %v5317_v31  ;;  %5501 = vst.msk [vmem:[#allocation3 + $0x3c] sm:$0xf] %vm783_vm3, %v5326_v22  ;;  %v5338_v61 = vshrl.u32 %v12445_v18, 16  ;;  %v5341_v8 = vshll.u32 %v12445_v18, 16  ;;  %v5675_v42 = vsel %vm899_vm0, %v5670_v11, %v5674_v52  ;;  %v5678_v2 = vor.u32 %v5676_v55, %v5674_v52 }
 0x30d   : > { %v17395_v14 = vld [vmem:[#allocation3 + $0x30] sm:$0xff]   ;;  %v12446_v20 = vpack.c.bf16 %v5104_v6, %v5104_v6  ;;  %v5356_v59 = vshrl.u32 %v12447_v49, 16  ;;  %13142 = vmatprep.mubr.msk.bf16.mxu1 %vm774_vm4, %v5675_v42  ;;  %v5331_v24 = vrot.slane %v5329_v3, 7  ;;  %v5359_v34 = vshll.u32 %v12447_v49, 16  ;;  %v20495_v31 = vld [vmem:[#allocation50_spill] sm:$0xff] }
 0x30e   : > { %v5340_v16 = vrot.slane %v5338_v61, 7  ;;  %v5079_v45 = vmul.f32 %v17308_v19, %v17146_v60  ;;  %13178 = vmatprep.mubr.msk.bf16.mxu0 %vm774_vm4, %v17395_v14  ;;  %v5680_v48 = vshll.u32 %v17395_v14, 16  ;;  %v5684_v38 = vshrl.u32 %v17395_v14, 16 }
 0x30f   : > { %v14269_v36 = vpop.eup %14268  ;;  %v5347_v9 = vshrl.u32 %v12446_v20, 16  ;;  %v5350_v46 = vshll.u32 %v12446_v20, 16  ;;  %v5334_v10 = vor.u32 %v5332_v37, %v5331_v24  ;;  %v5336_v21 = vrot.slane %v5331_v24, 4 }
 0x310   : > { %v14271_v39 = vpop.eup %14270  ;;  %v5343_v50 = vor.u32 %v5341_v8, %v5340_v16  ;;  %v5345_v60 = vrot.slane %v5340_v16, 4  ;;  %v5682_v19 = vrot.slane %v5680_v48, 1  ;;  %v5358_v11 = vrot.slane %v5356_v59, 7 }
 0x311   : > { %v5349_v47 = vrot.slane %v5347_v9, 7  ;;  %v5106_v5 = vmul.f32 %v5078_v54, %v20491_v51  ;;  %v5335_v53 = vsel %vm16973_vm8, %v5327_v57, %v5334_v10  ;;  %v5107_v15 = vmul.f32 %v5079_v45, %v20492_v4 }
 0x312   : > { %v17412_v62 = vpop.eup %14272  ;;  %v5344_v44 = vsel %vm16973_vm8, %v5336_v21, %v5343_v50  ;;  %v5080_v27 = vmul.f32 %v17327_v25, %v20493_v17  ;;  %v5081_v26 = vmul.f32 %v17358_v33, %v20494_v30  ;;  %v5683_v55 = vsel %vm899_vm0, %v5678_v2, %v5682_v19  ;;  %5502 = vst.msk [vmem:[#allocation3 + $0x40] sm:$0xf] %vm783_vm3, %v5335_v53  ;;  %v20496_v2 = vld [vmem:[#allocation51_spill] sm:$0xff] }
 0x313   : > { %v17421_v0 = vpop.eup %14274  ;;  %v17425_v1 = vld [vmem:[#allocation3 + $0x38] sm:$0xff]   ;;  %5503 = vst.msk [vmem:[#allocation3 + $0x44] sm:$0xf] %vm783_vm3, %v5344_v44  ;;  %v5686_v57 = vor.u32 %v5684_v38, %v5682_v19  ;;  %v5352_v23 = vor.u32 %v5350_v46, %v5349_v47  ;;  %13143 = vmatmul.mubr.msk.bf16.gmra.mxu1 %vm774_vm4, %v5683_v55  ;;  %v5354_v18 = vrot.slane %v5349_v47, 4  ;;  %v5361_v29 = vor.u32 %v5359_v34, %v5358_v11  ;;  %v4757_v44 = vld [vmem:[#allocation2 + $0xfa] sm:$0xff] }
 0x314   : > { %v12448_v25 = vpack.c.bf16 %v5106_v5, %v5106_v5  ;;  %v12449_v6 = vpack.c.bf16 %v5107_v15, %v5107_v15  ;;  %13179 = vmatmul.mubr.msk.bf16.gmra.mxu0 %vm774_vm4, %v17425_v1  ;;  %v5688_v33 = vshll.u32 %v17425_v1, 16  ;;  %v5363_v52 = vrot.slane %v5358_v11, 4  ;;  %v20497_v19 = vld [vmem:[#allocation25_spill] sm:$0xff]  ;;  %v20498_v55 = vld [vmem:[#allocation52_spill] sm:$0xff] }
 0x315   : > { %v5353_v49 = vsel %vm16973_vm8, %v5345_v60, %v5352_v23  ;;  %v5108_v22 = vmul.f32 %v5080_v27, %v20495_v31  ;;  %v5692_v54 = vshrl.u32 %v17425_v1, 16  ;;  %v5362_v3 = vsel %vm16973_vm8, %v5354_v18, %v5361_v29  ;;  %v14314_v31 = vld [vmem:[%s20086_s9 + $0x8] ss:$0 sm:$0xff] }
 0x316   : > { %5504 = vst.msk [vmem:[#allocation3 + $0x48] sm:$0xf] %vm783_vm3, %v5353_v49  ;;  %v5365_v37 = vshrl.u32 %v12448_v25, 16  ;;  %v5374_v61 = vshrl.u32 %v12449_v6, 16  ;;  %v5690_v8 = vrot.slane %v5688_v33, 1  ;;  %v5368_v42 = vshll.u32 %v12448_v25, 16 }
 0x317   : > { %5505 = vst.msk [vmem:[#allocation3 + $0x4c] sm:$0xf] %vm783_vm3, %v5362_v3  ;;  %v5109_v20 = vmul.f32 %v5081_v26, %v20496_v2  ;;  %v12450_v59 = vpack.c.bf16 %v5108_v22, %v5108_v22  ;;  %v5377_v34 = vshll.u32 %v12449_v6, 16  ;;  %v5082_v45 = vmul.f32 %v14269_v36, %v17264_v40  ;;  %v20499_v49 = vld [vmem:[#allocation24_spill] sm:$0xff] }
 0x318   : > { %v5367_v24 = vrot.slane %v5365_v37, 7  ;;  %v5376_v16 = vrot.slane %v5374_v61, 7  ;;  %v5691_v48 = vsel %vm899_vm0, %v5686_v57, %v5690_v8  ;;  %v5083_v46 = vmul.f32 %v14271_v39, %v17274_v7  ;;  %v20500_v37 = vld [vmem:[#allocation6_spill] sm:$0xff]  ;;  %v17488_v2 = vld [vmem:[%s20088_s11] ss:$0 sm:$0xff] }
 0x319   : > { %v12451_v38 = vpack.c.bf16 %v5109_v20, %v5109_v20  ;;  %v5383_v9 = vshrl.u32 %v12450_v59, 16  ;;  %13146 = vmatprep.mubr.msk.bf16.mxu1 %vm774_vm4, %v5691_v48  ;;  %v5110_v47 = vmul.f32 %v5082_v45, %v20497_v19  ;;  %v5386_v5 = vshll.u32 %v12450_v59, 16 }
 0x31a   : > { %v17446_v10 = vld [vmem:[#allocation3 + $0x40] sm:$0xff]   ;;  %v5370_v21 = vor.u32 %v5368_v42, %v5367_v24  ;;  %v5372_v50 = vrot.slane %v5367_v24, 4  ;;  %v5379_v60 = vor.u32 %v5377_v34, %v5376_v16  ;;  %v5381_v11 = vrot.slane %v5376_v16, 4 }
 0x31b   : > { %v5385_v51 = vrot.slane %v5383_v9, 7  ;;  %v5392_v53 = vshrl.u32 %v12451_v38, 16  ;;  %13182 = vmatprep.mubr.msk.bf16.mxu0 %vm774_vm4, %v17446_v10  ;;  %v5694_v40 = vor.u32 %v5692_v54, %v5690_v8  ;;  %v5696_v36 = vshll.u32 %v17446_v10, 16  ;;  %v20501_v8 = vld [vmem:[#allocation15_spill] sm:$0xff] }
 0x31c   : > { %v5371_v7 = vsel %vm16973_vm8, %v5363_v52, %v5370_v21  ;;  %v5380_v39 = vsel %vm16973_vm8, %v5372_v50, %v5379_v60  ;;  %v5700_v4 = vshrl.u32 %v17446_v10, 16  ;;  %v5395_v27 = vshll.u32 %v12451_v38, 16 }
 0x31d   : > { %5506 = vst.msk [vmem:[#allocation3 + $0x50] sm:$0xf] %vm783_vm3, %v5371_v7  ;;  %5507 = vst.msk [vmem:[#allocation3 + $0x54] sm:$0xf] %vm783_vm3, %v5380_v39  ;;  %v5388_v15 = vor.u32 %v5386_v5, %v5385_v51  ;;  %v5394_v17 = vrot.slane %v5392_v53, 7  ;;  %v5698_v26 = vrot.slane %v5696_v36, 1  ;;  %v5111_v57 = vmul.f32 %v5083_v46, %v20498_v55 }
 0x31e   : > { %v17460_v30 = vld [vmem:[#allocation3 + $0x48] sm:$0xff]   ;;  %v12452_v23 = vpack.c.bf16 %v5110_v47, %v5110_v47  ;;  %v5084_v18 = vmul.f32 %v17412_v62, %v17267_v28  ;;  %v5390_v25 = vrot.slane %v5385_v51, 4  ;;  %v5085_v33 = vmul.f32 %v17421_v0, %v17281_v58 }
 0x31f   : > { %v5389_v29 = vsel %vm16973_vm8, %v5381_v11, %v5388_v15  ;;  %v5397_v6 = vor.u32 %v5395_v27, %v5394_v17  ;;  %v4755_v52 = vadd.f32 %v20499_v49, %v17270_v43  ;;  %v4793_v22 = vmul.f32 %v14314_v31, %v4757_v44  ;;  %13183 = vmatmul.mubr.msk.bf16.gmra.mxu0 %vm774_vm4, %v17460_v30 }
 0x320   : > { %v5699_v28 = vsel %vm899_vm0, %v5694_v40, %v5698_v26  ;;  %v5704_v62 = vshll.u32 %v17460_v30, 16  ;;  %5508 = vst.msk [vmem:[#allocation3 + $0x58] sm:$0xf] %vm783_vm3, %v5389_v29  ;;  %v5702_v58 = vor.u32 %v5700_v4, %v5698_v26  ;;  %v12453_v0 = vpack.c.bf16 %v5111_v57, %v5111_v57 }
 0x321   : > { %13147 = vmatmul.mubr.msk.bf16.gmra.mxu1 %vm774_vm4, %v5699_v28  ;;  %v5398_v43 = vsel %vm16973_vm8, %v5390_v25, %v5397_v6  ;;  %v5401_v54 = vshrl.u32 %v12452_v23, 16  ;;  %v5112_v61 = vmul.f32 %v5084_v18, %v20500_v37  ;;  %v5113_v42 = vmul.f32 %v5085_v33, %v20501_v8  ;;  %v14316_v8 = vld [vmem:[%s20087_s10] ss:$0 sm:$0xff] }
 0x322   : > { %v5706_v3 = vrot.slane %v5704_v62, 1  ;;  %5509 = vst.msk [vmem:[#allocation3 + $0x5c] sm:$0xf] %vm783_vm3, %v5398_v43  ;;  %v17492_v20 = vadd.f32 %v17488_v2, %v17319_v12  ;;  %v5399_v59 = vrot.slane %v5394_v17, 4  ;;  %v5404_v16 = vshll.u32 %v12452_v23, 16 }
 0x323   : > { %v5403_v24 = vrot.slane %v5401_v54, 7  ;;  %v5410_v34 = vshrl.u32 %v12453_v0, 16  ;;  %v5708_v38 = vshrl.u32 %v17460_v30, 16  ;;  %v12454_v9 = vpack.c.bf16 %v5112_v61, %v5112_v61 }
 0x324   : > { %v17494_v45 = vld [vmem:[#allocation3 + $0x50] sm:$0xff]   ;;  %v5707_v48 = vsel %vm899_vm0, %v5702_v58, %v5706_v3  ;;  %v12455_v46 = vpack.c.bf16 %v5113_v42, %v5113_v42  ;;  %v5413_v60 = vshll.u32 %v12453_v0, 16  ;;  %v4918_v12 = vsub.f32 0.0, %v17492_v20 }
 0x325   : > { %13150 = vmatprep.mubr.msk.bf16.mxu1 %vm774_vm4, %v5707_v48  ;;  %v5406_v21 = vor.u32 %v5404_v16, %v5403_v24  ;;  %v5412_v50 = vrot.slane %v5410_v34, 7  ;;  %13186 = vmatprep.mubr.msk.bf16.mxu0 %vm774_vm4, %v17494_v45  ;;  %v5710_v19 = vor.u32 %v5708_v38, %v5706_v3  ;;  %v5712_v47 = vshll.u32 %v17494_v45, 16 }
 0x326   : > { %v5408_v11 = vrot.slane %v5403_v24, 4  ;;  %v5419_v51 = vshrl.u32 %v12454_v9, 16  ;;  %v5422_v40 = vshll.u32 %v12454_v9, 16  ;;  %v5428_v36 = vshrl.u32 %v12455_v46, 16 }
 0x327   : > { %v5407_v5 = vsel %vm16973_vm8, %v5399_v59, %v5406_v21  ;;  %v5415_v53 = vor.u32 %v5413_v60, %v5412_v50  ;;  %v5714_v7 = vrot.slane %v5712_v47, 1  ;;  %v5417_v39 = vrot.slane %v5412_v50, 4  ;;  %v13892_v60 = vld [vmem:[#allocation3 + $0x8] sm:$0xff]  }
 0x328   : > { %5510 = vst.msk [vmem:[#allocation3 + $0x60] sm:$0xf] %vm783_vm3, %v5407_v5  ;;  %v5421_v44 = vrot.slane %v5419_v51, 7  ;;  %v4972_v4 = vmul.f32 1.442695, %v4918_v12  ;;  %v17508_v27 = vrot.slane %v5428_v36, 7  ;;  %v4821_v6 = vadd.f32 %v4793_v22, %v4755_v52 }
 0x329   : > { %v13888_v15 = vld [vmem:[#allocation3 + $0x58] sm:$0xff]   ;;  %v5416_v17 = vsel %vm16973_vm8, %v5408_v11, %v5415_v53  ;;  %v5431_v26 = vshll.u32 %v12455_v46, 16  ;;  %v5715_v55 = vsel %vm899_vm0, %v5710_v19, %v5714_v7  ;;  %v5716_v57 = vshrl.u32 %v17494_v45, 16 }
 0x32a   : > { %5511 = vst.msk [vmem:[#allocation3 + $0x64] sm:$0xf] %vm783_vm3, %v5416_v17  ;;  %v5424_v23 = vor.u32 %v5422_v40, %v5421_v44  ;;  %13187 = vmatmul.mubr.msk.bf16.gmra.mxu0 %vm774_vm4, %v13888_v15  ;;  %13151 = vmatmul.mubr.msk.bf16.gmra.mxu1 %vm774_vm4, %v5715_v55  ;;  %v5720_v18 = vshll.u32 %v13888_v15, 16  ;;  %v5426_v29 = vrot.slane %v5421_v44, 4  ;;  %14276 = vpow2.f32 %v4972_v4  ;;  %v13894_v4 = vld [vmem:[#allocation3 + $0x10] sm:$0xff]   ;;  %v13896_v17 = vld [vmem:[#allocation3 + $0x18] sm:$0xff]  }
 0x32b   : > { %v5433_v25 = vor.u32 %v5431_v26, %v17508_v27  ;;  %v6144_v33 = vrot.slane %v17189_v13, 1  ;;  %v5718_v49 = vor.u32 %v5716_v57, %v5714_v7  ;;  %v6146_v58 = vrot.slane %v17321_v63, 1  ;;  %v13897_v26 = vld [vmem:[#allocation3 + $0x20] sm:$0xff]   ;;  %v17598_v55 = vld [vmem:[%s20089_s12 + $0x78] sm:$0xff]   ;;  %v14319_v13 = vld [vmem:[%s20089_s12 + $0x48] sm:$0xff]  }
 0x32c   : > { %v5425_v31 = vsel %vm16973_vm8, %v5417_v39, %v5424_v23  ;;  %v5722_v28 = vrot.slane %v5720_v18, 1  ;;  %v6148_v43 = vrot.slane %v17354_v32, 1  ;;  %v6150_v52 = vrot.slane %v17373_v56, 1  ;;  %v13898_v57 = vld [vmem:[#allocation3 + $0x28] sm:$0xff]  }
 0x32d   : > { %v5434_v62 = vsel %vm16973_vm8, %v5426_v29, %v5433_v25  ;;  %5512 = vst.msk [vmem:[#allocation3 + $0x68] sm:$0xf] %vm783_vm3, %v5425_v31  ;;  %v6152_v22 = vrot.slane %v17395_v14, 1  ;;  %v6154_v0 = vrot.slane %v17425_v1, 1  ;;  %v6156_v54 = vrot.slane %v17446_v10, 1  ;;  %v20502_v25 = vld [vmem:[#allocation9_spill] sm:$0xff] }
 0x32e   : > { %5513 = vst.msk [vmem:[#allocation3 + $0x6c] sm:$0xf] %vm783_vm3, %v5434_v62  ;;  %v5723_v3 = vsel %vm899_vm0, %v5718_v49, %v5722_v28  ;;  %v17533_v37 = vsel %vm1396_vm2, %v6144_v33, %v6146_v58  ;;  %v17536_v63 = vsel %vm1396_vm2, %v6146_v58, %v6148_v43  ;;  %v17540_v32 = vsel %vm1396_vm2, %v6148_v43, %v6150_v52  ;;  %v13900_v31 = vld [vmem:[#allocation3 + $0x30] sm:$0xff]  }
 0x32f   : > { %13154 = vmatprep.mubr.msk.bf16.mxu1 %vm774_vm4, %v5723_v3  ;;  %v17543_v56 = vsel %vm1396_vm2, %v6150_v52, %v6152_v22  ;;  %v17546_v14 = vsel %vm1396_vm2, %v6152_v22, %v6154_v0  ;;  %v17549_v1 = vsel %vm1396_vm2, %v6154_v0, %v6156_v54  ;;  %v6158_v61 = vrot.slane %v17460_v30, 1 }
 0x330   : > { %v4856_v42 = vmul.f32 %v14316_v8, %v4821_v6  ;;  %v6160_v59 = vrot.slane %v17494_v45, 1  ;;  %v6162_v24 = vrot.slane %v13888_v15, 1  ;;  %v5724_v16 = vshrl.u32 %v13888_v15, 16  ;;  %v13914_v15 = vld [vmem:[%s20089_s12 + $0x50] sm:$0xff]   ;;  %v20503_v8 = vld [vmem:[#allocation20_spill] sm:$0xff] }
 0x331   : > { %v13889_v10 = vld [vmem:[#allocation3 + $0x60] sm:$0xff]   ;;  %v17558_v48 = vsel %vm1396_vm2, %v6156_v54, %v6158_v61  ;;  %v5435_v52 = vrot.slane %v17508_v27, 4  ;;  %v13903_v54 = vld [vmem:[#allocation3 + $0x48] sm:$0xff]  }
 0x332   : > { %13190 = vmatprep.mubr.msk.bf16.mxu0 %vm774_vm4, %v13889_v10  ;;  %v5728_v34 = vshll.u32 %v13889_v10, 16  ;;  %v17561_v38 = vadd.f32 %v17488_v2, %v4856_v42  ;;  %v17564_v30 = vsel %vm1396_vm2, %v6158_v61, %v6160_v59  ;;  %v17567_v9 = vsel %vm1396_vm2, %v6160_v59, %v6162_v24  ;;  %v6132_v61 = vld [vmem:[#allocation3] sm:$0xe]  ;;  %v14317_v59 = vld [vmem:[#allocation3 + $0x4] sm:$0xf] }
 0x333   : > { %v6164_v46 = vrot.slane %v13889_v10, 1  ;;  %v5726_v21 = vor.u32 %v5724_v16, %v5722_v28  ;;  %v5732_v47 = vshrl.u32 %v13889_v10, 16  ;;  %v13901_v28 = vld [vmem:[#allocation3 + $0x38] sm:$0xff]   ;;  %v12002_v27 = vcombine.low %v6132_v61, %v14317_v59 }
 0x334   : > { %v5730_v50 = vrot.slane %v5728_v34, 1  ;;  %v4919_v12 = vsub.f32 0.0, %v17561_v38  ;;  %v13905_v16 = vld [vmem:[#allocation3 + $0x58] sm:$0xff]  }
 0x335   : > { %v17569_v45 = vld [vmem:[#allocation3 + $0x68] sm:$0xff]   ;;  %v17573_v19 = vsel %vm1396_vm2, %v6162_v24, %v6164_v46  ;;  %v13904_v24 = vld [vmem:[#allocation3 + $0x50] sm:$0xff]  }
 0x336   : > { %13191 = vmatmul.mubr.msk.bf16.gmra.mxu0 %vm774_vm4, %v17569_v45  ;;  %v5731_v2 = vsel %vm899_vm0, %v5726_v21, %v5730_v50  ;;  %v5736_v11 = vshll.u32 %v17569_v45, 16  ;;  %v4974_v5 = vmul.f32 1.442695, %v4919_v12  ;;  %v6166_v53 = vrot.slane %v17569_v45, 1  ;;  %v8222_v12 = vld [vmem:[#allocation3 + $0x10] sm:$0xe] }
 0x337   : > { %v14277_v51 = vpop.eup %14276  ;;  %13155 = vmatmul.mubr.msk.bf16.gmra.mxu1 %vm774_vm4, %v5731_v2  ;;  %13230 = vmatprep.mubr.msk.bf16.mxu0 %vm774_vm4, %v13892_v60  ;;  %v5734_v40 = vor.u32 %v5732_v47, %v5730_v50  ;;  %v5740_v21 = vshrl.u32 %v17569_v45, 16  ;;  %v5518_v47 = vld [vmem:[#allocation3 + $0x78] sm:$0x1] }
 0x338   : > { %v5738_v36 = vrot.slane %v5736_v11, 1  ;;  %v5002_v7 = vadd.f32 1.0, %v14277_v51  ;;  %14278 = vpow2.f32 %v4974_v5  ;;  %v17585_v39 = vsel %vm1396_vm2, %v6164_v46, %v6166_v53  ;;  %v17615_v46 = vld [vmem:[#allocation3 + $0x14] sm:$0xf]  ;;  %v14318_v51 = vld [vmem:[#allocation3 + $0x8] sm:$0xff]  }
 0x339   : > { %v6141_v11 = vrot.slane %v12002_v27, 1  ;;  %v6142_v5 = vrot.slane %v14318_v51, 1 }
 0x33a   : > { %v5739_v44 = vsel %vm899_vm0, %v5734_v40, %v5738_v36  ;;  %14280 = vrcp.f32 %v5002_v7  ;;  %v5742_v2 = vor.u32 %v5740_v21, %v5738_v36  ;;  %v17630_v36 = vld [vmem:[#allocation3 + $0x20] sm:$0xff]  }
 0x33b   : > { %13158 = vmatprep.mubr.msk.bf16.mxu1 %vm774_vm4, %v5739_v44 }
 0x33e   : > { %13231 = vmatmul.mubr.msk.bf16.vlgmr.msra.gmra.mxu0 %vm774_vm4, %v13894_v4 }
 0x33f   : > { %13234 = vmatprep.mubr.msk.bf16.mxu0 %vm774_vm4, %v13896_v17  ;;  %13291 = vmatpush3.bf16.msra.mxu0 %v17408_v35  ;;  %v12182_v17 = vcombine.low %v8222_v12, %v17615_v46 }
 0x340   : > { %13292 = vmatprep.subr.bf16.mxu0 %v13914_v15 }
 0x343   : > { %13293 = vmatpush3.bf16.msra.mxu0 %v13914_v15  ;;  %v17628_v15 = vld [vmem:[#allocation3 + $0x18] sm:$0xff]  }
 0x344   : > { %13354 = vmatprep.subr.bf16.mxu0 %v17598_v55  ;;  %v8232_v41 = vrot.slane %v17628_v15, 1 }
 0x345   : > { %v14279_v23 = vpop.eup %14278 }
 0x346   : > { %13235 = vmatmul.mubr.msk.bf16.gmra.mxu0 %vm774_vm4, %v13897_v26  ;;  %v5003_v29 = vadd.f32 1.0, %v14279_v23 }
 0x347   : > { %v14281_v18 = vpop.eup %14280  ;;  %13238 = vmatprep.mubr.msk.bf16.mxu0 %vm774_vm4, %v13898_v57 }
 0x348   : > { %v5086_v35 = vmul.f32 %v14281_v18, %v17492_v20  ;;  %14282 = vrcp.f32 %v5003_v29  ;;  %v13902_v20 = vld [vmem:[#allocation3 + $0x40] sm:$0xff]   ;;  %v17633_v18 = vld [vmem:[#allocation3 + $0x28] sm:$0xff]   ;;  %v17635_v29 = vld [vmem:[#allocation3 + $0x30] sm:$0xff]  }
 0x349   : > { %v8238_v59 = vrot.slane %v17635_v29, 1 }
 0x34a   : > { %v5114_v6 = vmul.f32 %v5086_v35, %v20502_v25  ;;  %v17637_v35 = vld [vmem:[#allocation3 + $0x38] sm:$0xff]  }
 0x34b   : > { %v8240_v27 = vrot.slane %v17637_v35, 1 }
 0x34c   : > { %v12456_v49 = vpack.c.bf16 %v5114_v6, %v5114_v6  ;;  %v17640_v6 = vld [vmem:[#allocation3 + $0xc] sm:$0xf] }
 0x34e   : > { %v5437_v62 = vshrl.u32 %v12456_v49, 16  ;;  %13239 = vmatmul.mubr.msk.bf16.gmra.mxu0 %vm774_vm4, %v13900_v31  ;;  %v5440_v43 = vshll.u32 %v12456_v49, 16  ;;  %v17642_v49 = vld [vmem:[#allocation3 + $0x40] sm:$0xff]   ;;  %v17644_v31 = vld [vmem:[#allocation3 + $0x48] sm:$0xff]  }
 0x34f   : > { %13242 = vmatprep.mubr.msk.bf16.mxu0 %vm774_vm4, %v13901_v28  ;;  %v6143_v28 = vsel %vm1396_vm2, %v6141_v11, %v6142_v5  ;;  %v8242_v21 = vrot.slane %v17642_v49, 1 }
 0x350   : > { %v5439_v58 = vrot.slane %v5437_v62, 7 }
 0x351   : > { %v17691_v11 = vsel %vm1396_vm2, %v8240_v27, %v8242_v21 }
 0x352   : > { %v5442_v22 = vor.u32 %v5440_v43, %v5439_v58  ;;  %v5444_v26 = vrot.slane %v5439_v58, 4  ;;  %v7177_v58 = vld [vmem:[#allocation3 + $0x8] sm:$0xe] }
 0x353   : > { %v12092_v61 = vcombine.low %v7177_v58, %v17640_v6 }
 0x354   : > { %v5443_v0 = vsel %vm16973_vm8, %v5435_v52, %v5442_v22  ;;  %v17652_v52 = vld [vmem:[#allocation3 + $0x50] sm:$0xff]   ;;  %v13907_v22 = vld [vmem:[#allocation3 + $0x60] sm:$0xff]  }
 0x355   : > { %5514 = vst.msk [vmem:[#allocation3 + $0x70] sm:$0xf] %vm783_vm3, %v5443_v0  ;;  %v14283_v3 = vpop.eup %14282  ;;  %v17656_v0 = vld [vmem:[#allocation3 + $0x58] sm:$0xff]  }
 0x356   : > { %13243 = vmatmul.mubr.msk.bf16.gmra.mxu0 %vm774_vm4, %v13902_v20  ;;  %v5087_v10 = vmul.f32 %v14283_v3, %v17561_v38  ;;  %v17658_v20 = vld [vmem:[#allocation3 + $0x60] sm:$0xff]   ;;  %v8234_v3 = vrot.slane %v17630_v36, 1 }
 0x357   : > { %13246 = vmatprep.mubr.msk.bf16.mxu0 %vm774_vm4, %v13903_v54  ;;  %v8231_v54 = vrot.slane %v12182_v17, 1 }
 0x358   : > { %v5115_v42 = vmul.f32 %v5087_v10, %v20503_v8  ;;  %v13908_v10 = vld [vmem:[#allocation3 + $0x68] sm:$0xff]  }
 0x359   : > { %v17663_v8 = vld [vmem:[#allocation3 + $0x68] sm:$0xff]  }
 0x35a   : > { %v12457_v34 = vpack.c.bf16 %v5115_v42, %v5115_v42  ;;  %v8236_v42 = vrot.slane %v17633_v18, 1  ;;  %v8252_v17 = vrot.slane %v17663_v8, 1 }
 0x35c   : > { %v17618_v50 = vld [vmem:[#allocation3 + $0x70] ss:$0 sps:$4 sm:$0x11]   ;;  %v5446_v60 = vshrl.u32 %v12457_v34, 16  ;;  %v5449_v7 = vshll.u32 %v12457_v34, 16  ;;  %v17675_v34 = vsel %vm1396_vm2, %v8232_v41, %v8234_v3  ;;  %v17681_v12 = vsel %vm1396_vm2, %v8234_v3, %v8236_v42 }
 0x35d   : > { %v5744_v38 = vshll.u32 %v17618_v50, 16 }
 0x35e   : > { %13247 = vmatmul.mubr.msk.bf16.gmra.mxu0 %vm774_vm4, %v13904_v24  ;;  %v5448_v40 = vrot.slane %v5446_v60, 7  ;;  %v17669_v24 = vld [vmem:[#allocation3 + $0x10] sm:$0xff]   ;;  %v8244_v60 = vrot.slane %v17644_v31, 1 }
 0x35f   : > { %13250 = vmatprep.mubr.msk.bf16.mxu0 %vm774_vm4, %v13905_v16  ;;  %v5746_v44 = vrot.slane %v5744_v38, 1  ;;  %v17672_v16 = vsel %vm1396_vm2, %v8231_v54, %v8232_v41  ;;  %v17687_v38 = vsel %vm1396_vm2, %v8238_v59, %v8240_v27  ;;  %v6846_v45 = vshrl.u32 %v17669_v24, 16 }
 0x360   : > { %v5451_v57 = vor.u32 %v5449_v7, %v5448_v40  ;;  %v5453_v23 = vrot.slane %v5448_v40, 4  ;;  %v17694_v51 = vsel %vm1396_vm2, %v8242_v21, %v8244_v60  ;;  %v8248_v40 = vrot.slane %v17656_v0, 1  ;;  %v13933_v21 = vld [vmem:[%s20089_s12 + $0x70] sm:$0xff]  }
 0x361   : > { %v5747_v25 = vsel %vm899_vm0, %v5742_v2, %v5746_v44  ;;  %v17684_v2 = vsel %vm1396_vm2, %v8236_v42, %v8238_v59  ;;  %v8250_v7 = vrot.slane %v17658_v20, 1  ;;  %v13906_v44 = vld [vmem:[%s20089_s12 + $0x40] sm:$0xff]  }
 0x362   : > { %13159 = vmatmul.mubr.msk.bf16.gmra.mxu1 %vm774_vm4, %v5747_v25  ;;  %v5452_v62 = vsel %vm16973_vm8, %v5444_v26, %v5451_v57  ;;  %v5519_v43 = vsel %vm17624_vm11, %v5453_v23, %v5518_v47  ;;  %v8246_v47 = vrot.slane %v17652_v52, 1  ;;  %v6145_v26 = vsel %vm1396_vm2, %v6142_v5, %v6144_v33  ;;  %v17709_v23 = vld [vmem:[#allocation3 + $0x80] ss:$0 sps:$4 sm:$0x11]  }
 0x363   : > { %13198 = vmatprep.mubr.msk.bf16.mxu1 %vm774_vm4, %v6143_v28  ;;  %5515 = vst.msk [vmem:[#allocation3 + $0x74] sm:$0xf] %vm783_vm3, %v5452_v62  ;;  %5520 = vst [vmem:[#allocation3 + $0x78] sm:$0x1] %v5519_v43  ;;  %v7187_v57 = vrot.slane %v17669_v24, 1  ;;  %v17715_v28 = vsel %vm1396_vm2, %v8248_v40, %v8250_v7  ;;  %v17718_v62 = vld [vmem:[#allocation3 + $0x18] sm:$0xff]   ;;  %v17721_v58 = vsel %vm1396_vm2, %v8250_v7, %v8252_v17 }
 0x364   : > { %v17702_v4 = vsel %vm1396_vm2, %v8244_v60, %v8246_v47  ;;  %v17712_v25 = vsel %vm1396_vm2, %v8246_v47, %v8248_v40  ;;  %v7186_v5 = vrot.slane %v12092_v61, 1  ;;  %v17731_v43 = vld [vmem:[%s20089_s12 + $0x68] sm:$0xff]   ;;  %v8258_v3 = vrot.slane %v17709_v23, 1  ;;  %v17765_v7 = vld [vmem:[#allocation3 + $0x28] sm:$0xff]  }
 0x366   : > { %13251 = vmatmul.mubr.msk.bf16.gmra.mxu0 %vm774_vm4, %v13907_v22  ;;  %v7188_v54 = vsel %vm1396_vm2, %v7186_v5, %v7187_v57 }
 0x367   : > { %13254 = vmatprep.mubr.msk.bf16.mxu0 %vm774_vm4, %v13908_v10  ;;  %v7189_v10 = vrot.slane %v17718_v62, 1 }
 0x369   : > { %v7190_v40 = vsel %vm1396_vm2, %v7187_v57, %v7189_v10 }
 0x36a   : > { %13199 = vmatmul.mubr.msk.bf16.vlgmr.msra.gmra.mxu1 %vm774_vm4, %v6145_v26  ;;  %v13909_v33 = vld [vmem:[#allocation3 + $0x70] sm:$0xff]   ;;  %v17739_v41 = vld [vmem:[#allocation3 + $0x78] sm:$0xff]   ;;  %v20506_v26 = vmov 0  }
 0x36b   : > { %13202 = vmatprep.mubr.msk.bf16.mxu1 %vm774_vm4, %v17533_v37  ;;  %13259 = vmatpush3.bf16.msra.mxu1 %v14319_v13  ;;  %v17733_v22 = vld [vmem:[#allocation3 + $0x70] sm:$0xff]   ;;  %v17737_v37 = vld [vmem:[#allocation3 + $0x20] sm:$0xff]   ;;  %v8256_v59 = vrot.slane %v17739_v41, 1  ;;  %v17781_v13 = vld [vmem:[#allocation3 + $0x38] sm:$0xff]  }
 0x36c   : > { %13260 = vmatprep.subr.bf16.mxu1 %v13906_v44  ;;  %v8254_v61 = vrot.slane %v17733_v22, 1  ;;  %v7191_v42 = vrot.slane %v17737_v37, 1 }
 0x36d   : > { %v17762_v47 = vsel %vm1396_vm2, %v8256_v59, %v8258_v3 }
 0x36e   : > { %13255 = vmatmul.mubr.msk.bf16.gmra.mxu0 %vm774_vm4, %v13909_v33  ;;  %v17751_v27 = vsel %vm1396_vm2, %v8252_v17, %v8254_v61  ;;  %v17759_v60 = vsel %vm1396_vm2, %v8254_v61, %v8256_v59  ;;  %v17785_v33 = vld [vmem:[#allocation3 + $0x40] sm:$0xff]  }
 0x36f   : > { %13294 = vmatprep.mubr.msk.bf16.mxu0 %vm774_vm4, %v7188_v54  ;;  %13261 = vmatpush3.bf16.msra.mxu1 %v13906_v44  ;;  %v17769_v44 = vld [vmem:[#allocation3 + $0x30] sm:$0xff]   ;;  %v7199_v5 = vrot.slane %v17785_v33, 1  ;;  %v17795_v54 = vld [vmem:[#allocation3 + $0x48] sm:$0xff]  }
 0x370   : > { %13322 = vmatprep.subr.bf16.mxu1 %v17731_v43  ;;  %v7195_v17 = vrot.slane %v17769_v44, 1  ;;  %v7201_v61 = vrot.slane %v17795_v54, 1 }
 0x372   : > { %13203 = vmatmul.mubr.msk.bf16.gmra.mxu1 %vm774_vm4, %v17536_v63  ;;  %v7192_v63 = vsel %vm1396_vm2, %v7189_v10, %v7191_v42  ;;  %v17799_v10 = vld [vmem:[#allocation3 + $0x50] sm:$0xff]   ;;  %v7202_v59 = vsel %vm1396_vm2, %v7199_v5, %v7201_v61 }
 0x373   : > { %13206 = vmatprep.mubr.msk.bf16.mxu1 %vm774_vm4, %v17540_v32  ;;  %v7193_v32 = vrot.slane %v17765_v7, 1 }
 0x375   : > { %v7194_v57 = vsel %vm1396_vm2, %v7191_v42, %v7193_v32  ;;  %v6727_v42 = vld [vmem:[#allocation3 + $0x8] sm:$0xf] }
 0x376   : > { %13295 = vmatmul.mubr.msk.bf16.vlgmr.msra.gmra.mxu0 %vm774_vm4, %v7190_v40 }
 0x377   : > { %13298 = vmatprep.mubr.msk.bf16.mxu0 %vm774_vm4, %v7192_v63  ;;  %13355 = vmatpush3.bf16.msra.mxu0 %v17598_v55  ;;  %v7196_v55 = vsel %vm1396_vm2, %v7193_v32, %v7195_v17  ;;  %v17814_v63 = vld [vmem:[#allocation3 + $0x60] sm:$0xff]  }
 0x378   : > { %13356 = vmatprep.subr.bf16.mxu0 %v13933_v21 }
 0x37a   : > { %13207 = vmatmul.mubr.msk.bf16.gmra.mxu1 %vm774_vm4, %v17543_v56  ;;  %v7197_v56 = vrot.slane %v17781_v13, 1 }
 0x37b   : > { %13357 = vmatpush3.bf16.msra.mxu0 %v13933_v21  ;;  %13210 = vmatprep.mubr.msk.bf16.mxu1 %vm774_vm4, %v17546_v14  ;;  %v17810_v21 = vld [vmem:[#allocation3 + $0x58] sm:$0xff]  }
 0x37c   : > { %8740 = vmatprep.subr.bf16.mxu0 %v20506_v26  ;;  %v7198_v14 = vsel %vm1396_vm2, %v7195_v17, %v7197_v56  ;;  %v7200_v3 = vsel %vm1396_vm2, %v7197_v56, %v7199_v5  ;;  %v6842_v17 = vshll.u32 %v17669_v24, 16  ;;  %v17825_v56 = vld [vmem:[#allocation3 + $0x68] sm:$0xff]   ;;  %v7772_v5 = vld [vmem:[#allocation3 + $0x10] sm:$0xf] }
 0x37d   : > { %v13926_v24 = vld [vmem:[%s20089_s12 + $0x60] sm:$0xff]  }
 0x37e   : > { %13299 = vmatmul.mubr.msk.bf16.gmra.mxu0 %vm774_vm4, %v7194_v57 }
 0x37f   : > { %13302 = vmatprep.mubr.msk.bf16.mxu0 %vm774_vm4, %v7196_v55 }
 0x382   : > { %13211 = vmatmul.mubr.msk.bf16.gmra.mxu1 %vm774_vm4, %v17549_v1  ;;  %v7203_v1 = vrot.slane %v17799_v10, 1 }
 0x383   : > { %13214 = vmatprep.mubr.msk.bf16.mxu1 %vm774_vm4, %v17558_v48  ;;  %v12057_v48 = vcombine.low %v6727_v42, %v17640_v6  ;;  %v7207_v6 = vrot.slane %v17814_v63, 1 }
 0x384   : > { %v7204_v40 = vsel %vm1396_vm2, %v7201_v61, %v7203_v1  ;;  %v17830_v61 = vld [vmem:[#allocation3 + $0x70] sm:$0xff]  }
 0x385   : > { %v6837_v32 = vshll.u32 %v12057_v48, 16  ;;  %v6835_v57 = vshrl.u32 %v12057_v48, 16  ;;  %v7211_v48 = vrot.slane %v17830_v61, 1 }
 0x386   : > { %13303 = vmatmul.mubr.msk.bf16.gmra.mxu0 %vm774_vm4, %v7198_v14  ;;  %v6168_v14 = vrot.slane %v17618_v50, 1 }
 0x387   : > { %13306 = vmatprep.mubr.msk.bf16.mxu0 %vm774_vm4, %v7200_v3 }
 0x388   : > { %v6169_v50 = vsel %vm1396_vm2, %v6166_v53, %v6168_v14 }
 0x38a   : > { %13215 = vmatmul.mubr.msk.bf16.gmra.mxu1 %vm774_vm4, %v17564_v30  ;;  %v7205_v30 = vrot.slane %v17810_v21, 1 }
 0x38b   : > { %13218 = vmatprep.mubr.msk.bf16.mxu1 %vm774_vm4, %v17567_v9  ;;  %v6839_v9 = vrot.slane %v6837_v32, 1 }
 0x38c   : > { %v7206_v55 = vsel %vm1396_vm2, %v7203_v1, %v7205_v30  ;;  %v7208_v3 = vsel %vm1396_vm2, %v7205_v30, %v7207_v6  ;;  %v7209_v1 = vrot.slane %v17825_v56, 1 }
 0x38d   : > { %v6840_v42 = vor.u32 %v6839_v9, %v6835_v57 }
 0x38e   : > { %13307 = vmatmul.mubr.msk.bf16.gmra.mxu0 %vm774_vm4, %v7202_v59  ;;  %v6844_v59 = vrot.slane %v6842_v17, 1  ;;  %v7210_v9 = vsel %vm1396_vm2, %v7207_v6, %v7209_v1  ;;  %v17845_v17 = vld [vmem:[#allocation3 + $0x78] ss:$0 sps:$4 sm:$0x11]   ;;  %v7212_v53 = vsel %vm1396_vm2, %v7209_v1, %v7211_v48  ;;  %v6866_v6 = vshll.u32 %v17765_v7, 16 }
 0x38f   : > { %13310 = vmatprep.mubr.msk.bf16.mxu0 %vm774_vm4, %v7204_v40 }
 0x390   : > { %v6845_v32 = vsel %vm899_vm0, %v6840_v42, %v6844_v59 }
 0x392   : > { %13219 = vmatmul.mubr.msk.bf16.gmra.mxu1 %vm774_vm4, %v17573_v19  ;;  %v12147_v19 = vcombine.low %v7772_v5, %v17615_v46  ;;  %v6858_v46 = vshll.u32 %v17737_v37, 16  ;;  %v6854_v5 = vshrl.u32 %v17718_v62, 16 }
 0x393   : > { %13222 = vmatprep.mubr.msk.bf16.mxu1 %vm774_vm4, %v17585_v39  ;;  %v6850_v39 = vshll.u32 %v17718_v62, 16 }
 0x394   : > { %v7882_v40 = vshll.u32 %v12147_v19, 16  ;;  %v6860_v14 = vrot.slane %v6858_v46, 1  ;;  %v7880_v42 = vshrl.u32 %v12147_v19, 16  ;;  %v7895_v19 = vshll.u32 %v17630_v36, 16 }
 0x395   : > { %v6852_v30 = vrot.slane %v6850_v39, 1  ;;  %v6868_v46 = vrot.slane %v6866_v6, 1 }
 0x396   : > { %13311 = vmatmul.mubr.msk.bf16.gmra.mxu0 %vm774_vm4, %v7206_v55  ;;  %v7884_v57 = vrot.slane %v7882_v40, 1  ;;  %v7887_v55 = vshll.u32 %v17628_v15, 16 }
 0x397   : > { %13314 = vmatprep.mubr.msk.bf16.mxu0 %vm774_vm4, %v7208_v3  ;;  %v6848_v3 = vor.u32 %v6846_v45, %v6844_v59  ;;  %v6856_v39 = vor.u32 %v6854_v5, %v6852_v30  ;;  %v6874_v59 = vshll.u32 %v17769_v44, 16  ;;  %v6862_v45 = vshrl.u32 %v17737_v37, 16 }
 0x398   : > { %v7885_v40 = vor.u32 %v7884_v57, %v7880_v42  ;;  %v7903_v57 = vshll.u32 %v17633_v18, 16  ;;  %v7891_v37 = vshrl.u32 %v17628_v15, 16 }
 0x399   : > { %v6853_v1 = vsel %vm899_vm0, %v6848_v3, %v6852_v30  ;;  %v6861_v62 = vsel %vm899_vm0, %v6856_v39, %v6860_v14  ;;  %v17869_v30 = vld [vmem:[%s20089_s12 + $0x88] sm:$0xff]   ;;  %v6864_v5 = vor.u32 %v6862_v45, %v6860_v14  ;;  %v13168_v3 = vpop.f32.mrf.mxu0  ;;  %v6882_v39 = vshll.u32 %v17781_v13, 16 }
 0x39a   : > { %13223 = vmatmul.mubr.msk.bf16.gmra.mxu1 %vm774_vm4, %v6169_v50  ;;  %v7213_v50 = vrot.slane %v17845_v17, 1  ;;  %v6890_v14 = vshll.u32 %v17785_v33, 16  ;;  %v6886_v45 = vshrl.u32 %v17781_v13, 16 }
 0x39b   : > { %13262 = vmatprep.mubr.msk.bf16.mxu1 %vm774_vm4, %v6845_v32  ;;  %v7889_v32 = vrot.slane %v7887_v55, 1  ;;  %v6876_v55 = vrot.slane %v6874_v59, 1  ;;  %v6869_v6 = vsel %vm899_vm0, %v6864_v5, %v6868_v46  ;;  %v6021_v15 = vpop.f32.mrf.mxu0  ;;  %v6884_v59 = vrot.slane %v6882_v39, 1 }
 0x39c   : > { %v7915_v39 = vshrl.u32 %v17635_v29, 16 }
 0x39d   : > { %v6888_v5 = vor.u32 %v6886_v45, %v6884_v59 }
 0x39e   : > { %13315 = vmatmul.mubr.msk.bf16.gmra.mxu0 %vm774_vm4, %v7210_v9  ;;  %v7214_v9 = vsel %vm1396_vm2, %v7211_v48, %v7213_v50  ;;  %v7897_v48 = vrot.slane %v7895_v19, 1  ;;  %v7899_v50 = vshrl.u32 %v17630_v36, 16 }
 0x39f   : > { %13318 = vmatprep.mubr.msk.bf16.mxu0 %vm774_vm4, %v7212_v53  ;;  %v7890_v53 = vsel %vm899_vm0, %v7885_v40, %v7889_v32 }
 0x3a0   : > { %v7901_v40 = vor.u32 %v7899_v50, %v7897_v48 }
 0x3a2   : > { %13263 = vmatmul.mubr.msk.bf16.vlgmr.msra.gmra.mxu1 %vm774_vm4, %v6853_v1  ;;  %v7905_v1 = vrot.slane %v7903_v57, 1 }
 0x3a3   : > { %13266 = vmatprep.mubr.msk.bf16.mxu1 %vm774_vm4, %v6861_v62  ;;  %13323 = vmatpush3.bf16.msra.mxu1 %v17731_v43  ;;  %v6870_v43 = vshrl.u32 %v17765_v7, 16  ;;  %v7911_v62 = vshll.u32 %v17635_v29, 16 }
 0x3a4   : > { %13324 = vmatprep.subr.bf16.mxu1 %v13926_v24  ;;  %v7906_v36 = vsel %vm899_vm0, %v7901_v40, %v7905_v1 }
 0x3a5   : > { %v6872_v42 = vor.u32 %v6870_v43, %v6868_v46  ;;  %v6878_v46 = vshrl.u32 %v17769_v44, 16  ;;  %v7913_v57 = vrot.slane %v7911_v62, 1  ;;  %v13169_v43 = vpop.f32.mrf.mxu0 }
 0x3a6   : > { %13319 = vmatmul.mubr.msk.bf16.gmra.mxu0 %vm774_vm4, %v7214_v9  ;;  %v7919_v9 = vshll.u32 %v17637_v35, 16 }
 0x3a7   : > { %13358 = vmatprep.mubr.msk.bf16.mxu0 %vm774_vm4, %v7890_v53  ;;  %13325 = vmatpush3.bf16.msra.mxu1 %v13926_v24  ;;  %v6877_v7 = vsel %vm899_vm0, %v6872_v42, %v6876_v55  ;;  %v7893_v24 = vor.u32 %v7891_v37, %v7889_v32  ;;  %v6892_v32 = vrot.slane %v6890_v14, 1  ;;  %v6880_v53 = vor.u32 %v6878_v46, %v6876_v55 }
 0x3a8   : > { %13386 = vmatprep.subr.bf16.mxu1 %v17869_v30  ;;  %v6898_v42 = vshll.u32 %v17795_v54, 16  ;;  %v7921_v37 = vrot.slane %v7919_v9, 1  ;;  %v7927_v14 = vshll.u32 %v17642_v49, 16 }
 0x3a9   : > { %v7898_v19 = vsel %vm899_vm0, %v7893_v24, %v7897_v48  ;;  %v7907_v48 = vshrl.u32 %v17633_v18, 16  ;;  %v6885_v44 = vsel %vm899_vm0, %v6880_v53, %v6884_v59  ;;  %v6893_v13 = vsel %vm899_vm0, %v6888_v5, %v6892_v32  ;;  %v17903_v24 = vpop.f32.mrf.mxu0 }
 0x3aa   : > { %13267 = vmatmul.mubr.msk.bf16.gmra.mxu1 %vm774_vm4, %v6869_v6  ;;  %v6906_v6 = vshll.u32 %v17799_v10, 16  ;;  %20507 = vst [vmem:[#allocation36_spill] sm:$0xff] %v17903_v24  ;;  %v6900_v40 = vrot.slane %v6898_v42, 1  ;;  %v6894_v59 = vshrl.u32 %v17785_v33, 16  ;;  %v7929_v53 = vrot.slane %v7927_v14, 1 }
 0x3ab   : > { %13270 = vmatprep.mubr.msk.bf16.mxu1 %vm774_vm4, %v6877_v7  ;;  %v7909_v50 = vor.u32 %v7907_v48, %v7905_v1  ;;  %v7917_v7 = vor.u32 %v7915_v39, %v7913_v57  ;;  %v6914_v42 = vshll.u32 %v17810_v21, 16  ;;  %v7923_v48 = vshrl.u32 %v17637_v35, 16 }
 0x3ac   : > { %v6908_v9 = vrot.slane %v6906_v6, 1  ;;  %v6896_v45 = vor.u32 %v6894_v59, %v6892_v32  ;;  %v6922_v32 = vshll.u32 %v17814_v63, 16  ;;  %v7943_v6 = vshll.u32 %v17652_v52, 16 }
 0x3ad   : > { %v7914_v29 = vsel %vm899_vm0, %v7909_v50, %v7913_v57  ;;  %v7922_v1 = vsel %vm899_vm0, %v7917_v7, %v7921_v37  ;;  %v6910_v7 = vshrl.u32 %v17799_v10, 16  ;;  %v7951_v14 = vshll.u32 %v17656_v0, 16 }
 0x3ae   : > { %13359 = vmatmul.mubr.msk.bf16.vlgmr.msra.gmra.mxu0 %vm774_vm4, %v7898_v19  ;;  %v7935_v19 = vshll.u32 %v17644_v31, 16 }
 0x3af   : > { %13362 = vmatprep.mubr.msk.bf16.mxu0 %vm774_vm4, %v7906_v36  ;;  %v6902_v36 = vshrl.u32 %v17795_v54, 16 }
 0x3b0   : > { %v7937_v39 = vrot.slane %v7935_v19, 1  ;;  %v6930_v19 = vshll.u32 %v17825_v56, 16 }
 0x3b1   : > { %v6904_v33 = vor.u32 %v6902_v36, %v6900_v40  ;;  %v7939_v36 = vshrl.u32 %v17644_v31, 16 }
 0x3b2   : > { %13271 = vmatmul.mubr.msk.bf16.gmra.mxu1 %vm774_vm4, %v6885_v44  ;;  %v6901_v44 = vsel %vm899_vm0, %v6896_v45, %v6900_v40  ;;  %v6918_v40 = vshrl.u32 %v17810_v21, 16  ;;  %v7953_v45 = vrot.slane %v7951_v14, 1 }
 0x3b3   : > { %v13136_v55 = vpop.f32.mrf.mxu1  ;;  %13274 = vmatprep.mubr.msk.bf16.mxu1 %vm774_vm4, %v6893_v13  ;;  %v6909_v54 = vsel %vm899_vm0, %v6904_v33, %v6908_v9  ;;  %v7925_v13 = vor.u32 %v7923_v48, %v7921_v37  ;;  %v6924_v37 = vrot.slane %v6922_v32, 1  ;;  %v7941_v33 = vor.u32 %v7939_v36, %v7937_v39 }
 0x3b4   : > { %v17905_v18 = vadd.f32 %v13168_v3, %v13136_v55  ;;  %v6916_v55 = vrot.slane %v6914_v42, 1  ;;  %v7959_v48 = vshll.u32 %v17658_v20, 16  ;;  %v7967_v32 = vshll.u32 %v17663_v8, 16 }
 0x3b5   : > { %v5836_v62 = vpop.f32.mrf.mxu1  ;;  %v7930_v35 = vsel %vm899_vm0, %v7925_v13, %v7929_v53 }
 0x3b6   : > { %13363 = vmatmul.mubr.msk.bf16.gmra.mxu0 %vm774_vm4, %v7914_v29  ;;  %v17912_v46 = vadd.f32 %v6021_v15, %v5836_v62  ;;  %v7931_v15 = vshrl.u32 %v17642_v49, 16  ;;  %v6912_v29 = vor.u32 %v6910_v7, %v6908_v9  ;;  %v7945_v62 = vrot.slane %v7943_v6, 1 }
 0x3b7   : > { %13366 = vmatprep.mubr.msk.bf16.mxu0 %vm774_vm4, %v7922_v1  ;;  %v13137_v3 = vpop.f32.mrf.mxu1  ;;  %v6920_v1 = vor.u32 %v6918_v40, %v6916_v55  ;;  %v6938_v9 = vshll.u32 %v17830_v61, 16 }
 0x3b8   : > { %v13172_v57 = vpop.f32.mrf.mxu0  ;;  %v17916_v5 = vadd.f32 %v13169_v43, %v13137_v3  ;;  %v7933_v43 = vor.u32 %v7931_v15, %v7929_v53  ;;  %v6917_v10 = vsel %vm899_vm0, %v6912_v29, %v6916_v55  ;;  %v7947_v3 = vshrl.u32 %v17652_v52, 16 }
 0x3b9   : > { %v17938_v53 = vpop.f32.mrf.mxu1  ;;  %v6925_v21 = vsel %vm899_vm0, %v6920_v1, %v6924_v37  ;;  %v7946_v52 = vsel %vm899_vm0, %v7941_v33, %v7945_v62  ;;  %v6926_v15 = vshrl.u32 %v17814_v63, 16  ;;  %v7955_v63 = vshrl.u32 %v17656_v0, 16 }
 0x3ba   : > { %13275 = vmatmul.mubr.msk.bf16.gmra.mxu1 %vm774_vm4, %v6901_v44  ;;  %v6037_v50 = vpop.f32.mrf.mxu0  ;;  %v7938_v49 = vsel %vm899_vm0, %v7933_v43, %v7937_v39  ;;  %20508 = vst [vmem:[#allocation17_spill] sm:$0xff] %v17938_v53  ;;  %v7949_v42 = vor.u32 %v7947_v3, %v7945_v62  ;;  %v6932_v44 = vrot.slane %v6930_v19, 1  ;;  %v6934_v39 = vshrl.u32 %v17825_v56, 16 }
 0x3bb   : > { %13278 = vmatprep.mubr.msk.bf16.mxu1 %vm774_vm4, %v6909_v54  ;;  %v6940_v43 = vrot.slane %v6938_v9, 1  ;;  %v6928_v55 = vor.u32 %v6926_v15, %v6924_v37  ;;  %v7963_v62 = vshrl.u32 %v17658_v20, 16  ;;  %v7969_v1 = vrot.slane %v7967_v32, 1  ;;  %v13936_v15 = vld [vmem:[#allocation3 + $0x10] sm:$0xff]  }
 0x3bc   : > { %v13173_v59 = vpop.f32.mrf.mxu0  ;;  %v7954_v54 = vsel %vm899_vm0, %v7949_v42, %v7953_v45  ;;  %v6936_v14 = vor.u32 %v6934_v39, %v6932_v44  ;;  %v7975_v56 = vshll.u32 %v17733_v22, 16  ;;  %v7957_v37 = vor.u32 %v7955_v63, %v7953_v45 }
 0x3bd   : > { %v6933_v29 = vsel %vm899_vm0, %v6928_v55, %v6932_v44  ;;  %v6942_v0 = vshrl.u32 %v17830_v61, 16  ;;  %v7979_v61 = vshrl.u32 %v17733_v22, 16  ;;  %v7971_v44 = vshrl.u32 %v17663_v8, 16 }
 0x3be   : > { %13367 = vmatmul.mubr.msk.bf16.gmra.mxu0 %vm774_vm4, %v7930_v35  ;;  %v17945_v31 = vpop.f32.mrf.mxu0  ;;  %v7961_v35 = vrot.slane %v7959_v48, 1  ;;  %v7977_v42 = vrot.slane %v7975_v56, 1  ;;  %v7983_v48 = vshll.u32 %v17739_v41, 16  ;;  %v13938_v56 = vld [vmem:[#allocation3 + $0x18] sm:$0xff]  }
 0x3bf   : > { %13370 = vmatprep.mubr.msk.bf16.mxu0 %vm774_vm4, %v7938_v49  ;;  %v6944_v9 = vor.u32 %v6942_v0, %v6940_v43  ;;  %v7973_v32 = vor.u32 %v7971_v44, %v7969_v1 }
 0x3c0   : > { %v7965_v3 = vor.u32 %v7963_v62, %v7961_v35  ;;  %v7985_v39 = vrot.slane %v7983_v48, 1 }
 0x3c1   : > { %v7978_v22 = vsel %vm899_vm0, %v7973_v32, %v7977_v42  ;;  %v13949_v32 = vld [vmem:[#allocation3 + $0x40] sm:$0xff]  }
 0x3c2   : > { %13279 = vmatmul.mubr.msk.bf16.gmra.mxu1 %vm774_vm4, %v6917_v10  ;;  %v7970_v33 = vsel %vm899_vm0, %v7965_v3, %v7969_v1 }
 0x3c3   : > { %13282 = vmatprep.mubr.msk.bf16.mxu1 %vm774_vm4, %v6925_v21  ;;  %v7962_v21 = vsel %vm899_vm0, %v7957_v37, %v7961_v35  ;;  %v7991_v35 = vshll.u32 %v17709_v23, 16  ;;  %v13954_v23 = vld [vmem:[%s20089_s12 + $0x80] sm:$0xff]   ;;  %v13941_v37 = vld [vmem:[#allocation3 + $0x20] sm:$0xff]  }
 0x3c6   : > { %13371 = vmatmul.mubr.msk.bf16.gmra.mxu0 %vm774_vm4, %v7946_v52  ;;  %v13140_v13 = vpop.f32.mrf.mxu1 }
 0x3c7   : > { %13374 = vmatprep.mubr.msk.bf16.mxu0 %vm774_vm4, %v7954_v54  ;;  %v17954_v6 = vadd.f32 %v13172_v57, %v13140_v13  ;;  %v6941_v57 = vsel %vm899_vm0, %v6936_v14, %v6940_v43  ;;  %v7981_v54 = vor.u32 %v7979_v61, %v7977_v42  ;;  %v13945_v42 = vld [vmem:[#allocation3 + $0x30] sm:$0xff]  }
 0x3c8   : > { %v13176_v7 = vpop.f32.mrf.mxu0  ;;  %v5852_v49 = vpop.f32.mrf.mxu1 }
 0x3c9   : > { %v17957_v40 = vadd.f32 %v6037_v50, %v5852_v49  ;;  %v6946_v50 = vshll.u32 %v17845_v17, 16  ;;  %v7986_v8 = vsel %vm899_vm0, %v7981_v54, %v7985_v39  ;;  %v13947_v54 = vld [vmem:[#allocation3 + $0x38] sm:$0xff]  }
 0x3ca   : > { %v6053_v19 = vpop.f32.mrf.mxu0  ;;  %v13141_v36 = vpop.f32.mrf.mxu1  ;;  %13283 = vmatmul.mubr.msk.bf16.gmra.mxu1 %vm774_vm4, %v6933_v29  ;;  %v7987_v29 = vshrl.u32 %v17739_v41, 16 }
 0x3cb   : > { %v17964_v10 = vadd.f32 %v13173_v59, %v13141_v36  ;;  %13286 = vmatprep.mubr.msk.bf16.mxu1 %vm774_vm4, %v6941_v57  ;;  %v6948_v45 = vrot.slane %v6946_v50, 1  ;;  %v7993_v57 = vrot.slane %v7991_v35, 1 }
 0x3cc   : > { %v13177_v20 = vpop.f32.mrf.mxu0  ;;  %v17973_v59 = vpop.f32.mrf.mxu1  ;;  %v7989_v36 = vor.u32 %v7987_v29, %v7985_v39 }
 0x3cd   : > { %v6949_v52 = vsel %vm899_vm0, %v6944_v9, %v6948_v45 }
 0x3ce   : > { %13375 = vmatmul.mubr.msk.bf16.gmra.mxu0 %vm774_vm4, %v7962_v21  ;;  %v17977_v17 = vpop.f32.mrf.mxu0  ;;  %v7994_v0 = vsel %vm899_vm0, %v7989_v36, %v7993_v57 }
 0x3cf   : > { %13378 = vmatprep.mubr.msk.bf16.mxu0 %vm774_vm4, %v7970_v33  ;;  %v20509_v33 = vmov 0.0  }
 0x3d2   : > { %13287 = vmatmul.mubr.msk.bf16.gmra.mxu1 %vm774_vm4, %v6949_v52 }
 0x3d3   : > { %v13144_v13 = vpop.f32.mrf.mxu1  ;;  %13326 = vmatprep.mubr.msk.bf16.mxu1 %vm774_vm4, %v13936_v15 }
 0x3d4   : > { %v13180_v43 = vpop.f32.mrf.mxu0  ;;  %v17983_v55 = vadd.f32 %v13176_v7, %v13144_v13 }
 0x3d5   : > { %v5868_v49 = vpop.f32.mrf.mxu1 }
 0x3d6   : > { %13379 = vmatmul.mubr.msk.bf16.gmra.mxu0 %vm774_vm4, %v7978_v22  ;;  %v6069_v14 = vpop.f32.mrf.mxu0  ;;  %v17989_v63 = vadd.f32 %v6053_v19, %v5868_v49 }
 0x3d7   : > { %13382 = vmatprep.mubr.msk.bf16.mxu0 %vm774_vm4, %v7986_v8  ;;  %v13145_v62 = vpop.f32.mrf.mxu1 }
 0x3d8   : > { %v13181_v1 = vpop.f32.mrf.mxu0  ;;  %v17993_v7 = vadd.f32 %v13177_v20, %v13145_v62  ;;  %v13943_v20 = vld [vmem:[#allocation3 + $0x28] sm:$0xff]  }
 0x3d9   : > { %v18003_v41 = vpop.f32.mrf.mxu1  ;;  %v13951_v62 = vld [vmem:[#allocation3 + $0x48] sm:$0xff]  }
 0x3da   : > { %13327 = vmatmul.mubr.msk.bf16.vlgmr.msra.gmra.mxu1 %vm774_vm4, %v13938_v56  ;;  %v17999_v19 = vpop.f32.mrf.mxu0 }
 0x3db   : > { %13330 = vmatprep.mubr.msk.bf16.mxu1 %vm774_vm4, %v13941_v37  ;;  %13387 = vmatpush3.bf16.msra.mxu1 %v17869_v30 }
 0x3dc   : > { %13388 = vmatprep.subr.bf16.mxu1 %v13954_v23 }
 0x3de   : > { %13383 = vmatmul.mubr.msk.bf16.gmra.mxu0 %vm774_vm4, %v7994_v0 }
 0x3df   : > { %v13184_v50 = vpop.f32.mrf.mxu0  ;;  %13389 = vmatpush3.bf16.msra.mxu1 %v13954_v23 }
 0x3e0   : > { %13418 = vmatprep.subr.bf16.mxu1 %v20509_v33 }
 0x3e1   : > { %v13148_v3 = vpop.f32.mrf.mxu1  ;;  %v6085_v9 = vpop.f32.mrf.mxu0 }
 0x3e2   : > { %v18007_v21 = vadd.f32 %v13180_v43, %v13148_v3  ;;  %13331 = vmatmul.mubr.msk.bf16.gmra.mxu1 %vm774_vm4, %v13943_v20  ;;  %v13958_v20 = vld [vmem:[#allocation3 + $0x60] sm:$0xff]  }
 0x3e3   : > { %v5884_v45 = vpop.f32.mrf.mxu1  ;;  %v13185_v61 = vpop.f32.mrf.mxu0  ;;  %13334 = vmatprep.mubr.msk.bf16.mxu1 %vm774_vm4, %v13945_v42 }
 0x3e4   : > { %v18011_v30 = vadd.f32 %v6069_v14, %v5884_v45 }
 0x3e5   : > { %v13149_v48 = vpop.f32.mrf.mxu1  ;;  %v18016_v52 = vpop.f32.mrf.mxu0 }
 0x3e6   : > { %v18014_v44 = vadd.f32 %v13181_v1, %v13149_v48  ;;  %20510 = vst [vmem:[#allocation19_spill] sm:$0xff] %v18016_v52  ;;  %v13953_v1 = vld [vmem:[#allocation3 + $0x50] sm:$0xff]  }
 0x3e7   : > { %v18018_v15 = vpop.f32.mrf.mxu1 }
 0x3ea   : > { %v13188_v13 = vpop.f32.mrf.mxu0  ;;  %v13152_v39 = vpop.f32.mrf.mxu1  ;;  %13335 = vmatmul.mubr.msk.bf16.gmra.mxu1 %vm774_vm4, %v13947_v54 }
 0x3eb   : > { %v18021_v43 = vadd.f32 %v13184_v50, %v13152_v39  ;;  %13338 = vmatprep.mubr.msk.bf16.mxu1 %vm774_vm4, %v13949_v32  ;;  %v13956_v50 = vld [vmem:[#allocation3 + $0x58] sm:$0xff]   ;;  %v13961_v39 = vld [vmem:[#allocation3 + $0x70] sm:$0xff]  }
 0x3ec   : > { %v6101_v22 = vpop.f32.mrf.mxu0  ;;  %v5900_v35 = vpop.f32.mrf.mxu1 }
 0x3ed   : > { %v18024_v49 = vadd.f32 %v6085_v9, %v5900_v35 }
 0x3ee   : > { %v13189_v8 = vpop.f32.mrf.mxu0  ;;  %v13153_v14 = vpop.f32.mrf.mxu1 }
 0x3ef   : > { %v18026_v29 = vadd.f32 %v13185_v61, %v13153_v14 }
 0x3f0   : > { %v18028_v56 = vpop.f32.mrf.mxu0  ;;  %v18031_v23 = vpop.f32.mrf.mxu1 }
 0x3f1   : > { %20511 = vst [vmem:[#allocation7_spill] sm:$0xff] %v18028_v56  ;;  %20512 = vst [vmem:[#allocation40_spill] sm:$0xff] %v18031_v23 }
 0x3f2   : > { %13339 = vmatmul.mubr.msk.bf16.gmra.mxu1 %vm774_vm4, %v13951_v62 }
 0x3f3   : > { %13342 = vmatprep.mubr.msk.bf16.mxu1 %vm774_vm4, %v13953_v1  ;;  %v13962_v1 = vld [vmem:[#allocation3 + $0x78] sm:$0xff]  }
 0x3f6   : > { %v13192_v36 = vpop.f32.mrf.mxu0 }
 0x3f7   : > { %v13156_v57 = vpop.f32.mrf.mxu1 }
 0x3f8   : > { %v18034_v37 = vadd.f32 %v13188_v13, %v13156_v57  ;;  %v6117_v0 = vpop.f32.mrf.mxu0  ;;  %v13960_v13 = vld [vmem:[#allocation3 + $0x68] sm:$0xff]  }
 0x3f9   : > { %v5916_v3 = vpop.f32.mrf.mxu1 }
 0x3fa   : > { %v18036_v9 = vadd.f32 %v6101_v22, %v5916_v3  ;;  %v13193_v42 = vpop.f32.mrf.mxu0  ;;  %13343 = vmatmul.mubr.msk.bf16.gmra.mxu1 %vm774_vm4, %v13956_v50 }
 0x3fb   : > { %v13157_v45 = vpop.f32.mrf.mxu1  ;;  %13346 = vmatprep.mubr.msk.bf16.mxu1 %vm774_vm4, %v13958_v20 }
 0x3fc   : > { %v18040_v61 = vadd.f32 %v13189_v8, %v13157_v45  ;;  %v18042_v48 = vpop.f32.mrf.mxu0 }
 0x3fd   : > { %20513 = vst [vmem:[#allocation23_spill] sm:$0xff] %v18042_v48  ;;  %v18083_v26 = vpop.f32.mrf.mxu1 }
 0x3fe   : > { %v13232_v54 = vpop.f32.mrf.mxu0  ;;  %20516 = vst [vmem:[#allocation21_spill] sm:$0xff] %v18083_v26 }
 0x400   : > { %v6588_v32 = vpop.f32.mrf.mxu0 }
 0x402   : > { %v13233_v35 = vpop.f32.mrf.mxu0  ;;  %13347 = vmatmul.mubr.msk.bf16.gmra.mxu1 %vm774_vm4, %v13960_v13 }
 0x403   : > { %13350 = vmatprep.mubr.msk.bf16.mxu1 %vm774_vm4, %v13961_v39 }
 0x404   : > { %v18046_v22 = vpop.f32.mrf.mxu0 }
 0x405   : > { %20514 = vst [vmem:[#allocation11_spill] sm:$0xff] %v18046_v22 }
 0x406   : > { %v13236_v14 = vpop.f32.mrf.mxu0 }
 0x408   : > { %v18048_v62 = vpop.f32.mrf.mxu0 }
 0x40a   : > { %v18050_v57 = vpop.f32.mrf.mxu0  ;;  %13351 = vmatmul.mubr.msk.bf16.gmra.mxu1 %vm774_vm4, %v13962_v1 }
 0x40b   : > { %13390 = vmatprep.mubr.msk.bf16.mxu1 %vm774_vm4, %v17672_v16 }
 0x40c   : > { %v18055_v8 = vpop.f32.mrf.mxu0 }
 0x40d   : > { %20515 = vst [vmem:[#allocation45_spill] sm:$0xff] %v18055_v8 }
 0x40e   : > { %v18057_v50 = vpop.f32.mrf.mxu0 }
 0x410   : > { %v18059_v3 = vpop.f32.mrf.mxu0 }
 0x412   : > { %v18061_v20 = vpop.f32.mrf.mxu0  ;;  %13391 = vmatmul.mubr.msk.bf16.vlgmr.msra.gmra.mxu1 %vm774_vm4, %v17675_v34 }
 0x413   : > { %13394 = vmatprep.mubr.msk.bf16.mxu1 %vm774_vm4, %v17681_v12 }
 0x414   : > { %v18067_v45 = vpop.f32.mrf.mxu0 }
 0x416   : > { %v18069_v13 = vpop.f32.mrf.mxu0 }
 0x418   : > { %v18071_v39 = vpop.f32.mrf.mxu0 }
 0x41a   : > { %v18073_v16 = vpop.f32.mrf.mxu0  ;;  %13395 = vmatmul.mubr.msk.bf16.gmra.mxu1 %vm774_vm4, %v17684_v2 }
 0x41b   : > { %13398 = vmatprep.mubr.msk.bf16.mxu1 %vm774_vm4, %v17687_v38 }
 0x41c   : > { %v18079_v1 = vpop.f32.mrf.mxu0 }
 0x41e   : > { %v18081_v34 = vpop.f32.mrf.mxu0 }
 0x420   : > { %v18085_v12 = vpop.f32.mrf.mxu0 }
 0x422   : > { %v18087_v52 = vpop.f32.mrf.mxu0  ;;  %v13160_v23 = vpop.f32.mrf.mxu1  ;;  %13399 = vmatmul.mubr.msk.bf16.gmra.mxu1 %vm774_vm4, %v17691_v11 }
 0x423   : > { %v18091_v33 = vadd.f32 %v13192_v36, %v13160_v23  ;;  %13402 = vmatprep.mubr.msk.bf16.mxu1 %vm774_vm4, %v17694_v51 }
 0x424   : > { %v18095_v2 = vpop.f32.mrf.mxu0  ;;  %v5932_v38 = vpop.f32.mrf.mxu1 }
 0x425   : > { %20517 = vst [vmem:[#allocation16_spill] sm:$0xff] %v18095_v2  ;;  %v18097_v22 = vadd.f32 %v6117_v0, %v5932_v38 }
 0x426   : > { %v18099_v8 = vpop.f32.mrf.mxu0  ;;  %v13161_v48 = vpop.f32.mrf.mxu1 }
 0x427   : > { %v18101_v56 = vadd.f32 %v13193_v42, %v13161_v48 }
 0x428   : > { %v18103_v26 = vpop.f32.mrf.mxu0  ;;  %v18105_v24 = vpop.f32.mrf.mxu1 }
 0x429   : > { %20518 = vst [vmem:[#allocation18_spill] sm:$0xff] %v18105_v24 }
 0x42a   : > { %v18107_v11 = vpop.f32.mrf.mxu0  ;;  %v13200_v23 = vpop.f32.mrf.mxu1  ;;  %13403 = vmatmul.mubr.msk.bf16.gmra.mxu1 %vm774_vm4, %v17702_v4 }
 0x42b   : > { %v6371_v51 = vadd.f32 %v13200_v23, %v17905_v18  ;;  %13406 = vmatprep.mubr.msk.bf16.mxu1 %vm774_vm4, %v17712_v25 }
 0x42c   : > { %v18114_v36 = vpop.f32.mrf.mxu0  ;;  %v6258_v0 = vpop.f32.mrf.mxu1 }
 0x42d   : > { %20519 = vst [vmem:[#allocation22_spill] sm:$0xff] %v18114_v36  ;;  %v6369_v42 = vadd.f32 %v6258_v0, %v17912_v46  ;;  %v18119_v38 = vadd.f32 %v13232_v54, %v6371_v51 }
 0x42e   : > { %v18117_v48 = vpop.f32.mrf.mxu0  ;;  %v13201_v2 = vpop.f32.mrf.mxu1 }
 0x42f   : > { %v6372_v24 = vadd.f32 %v13201_v2, %v17916_v5  ;;  %v18124_v4 = vadd.f32 %v6588_v32, %v6369_v42 }
 0x430   : > { %v18122_v53 = vpop.f32.mrf.mxu0  ;;  %v18126_v18 = vpop.f32.mrf.mxu1 }
 0x431   : > { %v18130_v25 = vadd.f32 %v13233_v35, %v6372_v24 }
 0x432   : > { %v18128_v23 = vpop.f32.mrf.mxu0  ;;  %v13204_v36 = vpop.f32.mrf.mxu1  ;;  %13407 = vmatmul.mubr.msk.bf16.gmra.mxu1 %vm774_vm4, %v17715_v28 }
 0x433   : > { %v6375_v46 = vadd.f32 %v13204_v36, %v17954_v6  ;;  %13410 = vmatprep.mubr.msk.bf16.mxu1 %vm774_vm4, %v17721_v58 }
 0x434   : > { %v18137_v5 = vpop.f32.mrf.mxu0  ;;  %v6274_v54 = vpop.f32.mrf.mxu1 }
 0x435   : > { %20520 = vst [vmem:[#allocation26_spill] sm:$0xff] %v18137_v5  ;;  %v6373_v32 = vadd.f32 %v6274_v54, %v17957_v40  ;;  %v18142_v51 = vadd.f32 %v13236_v14, %v6375_v46 }
 0x436   : > { %v18140_v2 = vpop.f32.mrf.mxu0  ;;  %v13205_v24 = vpop.f32.mrf.mxu1 }
 0x437   : > { %v6376_v35 = vadd.f32 %v13205_v24, %v17964_v10  ;;  %v18148_v28 = vadd.f32 %v18048_v62, %v6373_v32 }
 0x438   : > { %v18145_v0 = vpop.f32.mrf.mxu0  ;;  %v18150_v6 = vpop.f32.mrf.mxu1 }
 0x439   : > { %v18155_v36 = vadd.f32 %v18050_v57, %v6376_v35 }
 0x43a   : > { %v18152_v58 = vpop.f32.mrf.mxu0  ;;  %v13208_v40 = vpop.f32.mrf.mxu1  ;;  %13411 = vmatmul.mubr.msk.bf16.gmra.mxu1 %vm774_vm4, %v17751_v27 }
 0x43b   : > { %v6379_v14 = vadd.f32 %v13208_v40, %v17983_v55  ;;  %13414 = vmatprep.mubr.msk.bf16.mxu1 %vm774_vm4, %v17759_v60 }
 0x43c   : > { %v18162_v10 = vpop.f32.mrf.mxu0  ;;  %v6290_v62 = vpop.f32.mrf.mxu1 }
 0x43d   : > { %20521 = vst [vmem:[#allocation48_spill] sm:$0xff] %v18162_v10  ;;  %v6377_v42 = vadd.f32 %v6290_v62, %v17989_v63  ;;  %v18168_v54 = vadd.f32 %v18057_v50, %v6379_v14 }
 0x43e   : > { %v18165_v46 = vpop.f32.mrf.mxu0  ;;  %v13209_v57 = vpop.f32.mrf.mxu1 }
 0x43f   : > { %v6380_v32 = vadd.f32 %v13209_v57, %v17993_v7  ;;  %v18174_v27 = vadd.f32 %v18059_v3, %v6377_v42 }
 0x440   : > { %v18171_v24 = vpop.f32.mrf.mxu0  ;;  %v18176_v55 = vpop.f32.mrf.mxu1 }
 0x441   : > { %v18179_v60 = vadd.f32 %v18061_v20, %v6380_v32 }
 0x442   : > { %v13212_v35 = vpop.f32.mrf.mxu1  ;;  %13415 = vmatmul.mubr.msk.bf16.gmra.mxu1 %vm774_vm4, %v17762_v47  ;;  %v18183_v63 = vpop.f32.mrf.mxu0 }
 0x443   : > { %v6383_v50 = vadd.f32 %v13212_v35, %v18007_v21 }
 0x444   : > { %v6306_v40 = vpop.f32.mrf.mxu1  ;;  %v18190_v62 = vpop.f32.mrf.mxu0 }
 0x445   : > { %v6381_v7 = vadd.f32 %v6306_v40, %v18011_v30  ;;  %v18188_v14 = vadd.f32 %v18069_v13, %v6383_v50 }
 0x446   : > { %v13213_v3 = vpop.f32.mrf.mxu1  ;;  %v18201_v32 = vpop.f32.mrf.mxu0 }
 0x447   : > { %v6384_v20 = vadd.f32 %v13213_v3, %v18014_v44  ;;  %v18194_v42 = vadd.f32 %v18071_v39, %v6381_v7 }
 0x448   : > { %v18196_v57 = vpop.f32.mrf.mxu1  ;;  %v7335_v40 = vpop.f32.mrf.mxu0 }
 0x449   : > { %v18199_v47 = vadd.f32 %v18073_v16, %v6384_v20 }
 0x44a   : > { %v13216_v21 = vpop.f32.mrf.mxu1 }
 0x44b   : > { %v6387_v30 = vadd.f32 %v13216_v21, %v18021_v43  ;;  %v13305_v43 = vpop.f32.mrf.mxu0 }
 0x44c   : > { %v6322_v13 = vpop.f32.mrf.mxu1 }
 0x44d   : > { %v6385_v35 = vadd.f32 %v6322_v13, %v18024_v49  ;;  %v18206_v50 = vadd.f32 %v18081_v34, %v6387_v30 }
 0x44e   : > { %v13217_v44 = vpop.f32.mrf.mxu1 }
 0x44f   : > { %v6388_v39 = vadd.f32 %v13217_v44, %v18026_v29  ;;  %v18210_v7 = vadd.f32 %v18085_v12, %v6385_v35  ;;  %v18222_v29 = vpop.f32.mrf.mxu0 }
 0x450   : > { %v18212_v16 = vpop.f32.mrf.mxu1 }
 0x451   : > { %20522 = vst [vmem:[#allocation41_spill] sm:$0xff] %v18212_v16  ;;  %v18215_v3 = vadd.f32 %v18087_v52, %v6388_v39  ;;  %v18233_v39 = vpop.f32.mrf.mxu0 }
 0x452   : > { %v13220_v20 = vpop.f32.mrf.mxu1 }
 0x453   : > { %v6391_v21 = vadd.f32 %v13220_v20, %v18034_v37 }
 0x454   : > { %v6338_v49 = vpop.f32.mrf.mxu1 }
 0x455   : > { %v6389_v34 = vadd.f32 %v6338_v49, %v18036_v9  ;;  %v18220_v30 = vadd.f32 %v18099_v8, %v6391_v21  ;;  %v18240_v49 = vpop.f32.mrf.mxu0 }
 0x456   : > { %v13221_v13 = vpop.f32.mrf.mxu1 }
 0x457   : > { %v6392_v12 = vadd.f32 %v13221_v13, %v18040_v61  ;;  %v18226_v35 = vadd.f32 %v18103_v26, %v6389_v34 }
 0x458   : > { %v18228_v52 = vpop.f32.mrf.mxu1 }
 0x459   : > { %v18231_v44 = vadd.f32 %v18107_v11, %v6392_v12  ;;  %v18251_v12 = vpop.f32.mrf.mxu0 }
 0x45a   : > { %v13224_v37 = vpop.f32.mrf.mxu1 }
 0x45b   : > { %v6395_v9 = vadd.f32 %v13224_v37, %v18091_v33 }
 0x45c   : > { %v6354_v8 = vpop.f32.mrf.mxu1 }
 0x45d   : > { %v6393_v20 = vadd.f32 %v6354_v8, %v18097_v22  ;;  %v18238_v21 = vadd.f32 %v18117_v48, %v6395_v9  ;;  %v18258_v8 = vpop.f32.mrf.mxu0 }
 0x45e   : > { %v13225_v61 = vpop.f32.mrf.mxu1 }
 0x45f   : > { %v6396_v26 = vadd.f32 %v13225_v61, %v18101_v56  ;;  %v18244_v34 = vadd.f32 %v18122_v53, %v6393_v20 }
 0x460   : > { %v18246_v11 = vpop.f32.mrf.mxu1 }
 0x461   : > { %v18249_v13 = vadd.f32 %v18128_v23, %v6396_v26  ;;  %v13312_v26 = vpop.f32.mrf.mxu0 }
 0x462   : > { %v13264_v33 = vpop.f32.mrf.mxu1 }
 0x463   : > { %v7151_v22 = vadd.f32 %v13264_v33, %v18119_v38 }
 0x464   : > { %v7038_v48 = vpop.f32.mrf.mxu1 }
 0x465   : > { %v7149_v37 = vadd.f32 %v7038_v48, %v18124_v4  ;;  %v18256_v9 = vadd.f32 %v18140_v2, %v7151_v22 }
 0x466   : > { %v13265_v56 = vpop.f32.mrf.mxu1 }
 0x467   : > { %v7152_v53 = vadd.f32 %v13265_v56, %v18130_v25  ;;  %v18262_v20 = vadd.f32 %v18145_v0, %v7149_v37  ;;  %v7367_v25 = vpop.f32.mrf.mxu0 }
 0x468   : > { %v18264_v23 = vpop.f32.mrf.mxu1 }
 0x469   : > { %v18267_v61 = vadd.f32 %v18152_v58, %v7152_v53 }
 0x46a   : > { %v13268_v38 = vpop.f32.mrf.mxu1 }
 0x46b   : > { %v7155_v4 = vadd.f32 %v13268_v38, %v18142_v51  ;;  %v13313_v51 = vpop.f32.mrf.mxu0 }
 0x46c   : > { %v7054_v33 = vpop.f32.mrf.mxu1 }
 0x46d   : > { %v7153_v2 = vadd.f32 %v7054_v33, %v18148_v28  ;;  %v18272_v22 = vadd.f32 %v18165_v46, %v7155_v4 }
 0x46e   : > { %v13269_v48 = vpop.f32.mrf.mxu1 }
 0x46f   : > { %v7156_v0 = vadd.f32 %v13269_v48, %v18155_v36  ;;  %v18276_v37 = vadd.f32 %v18171_v24, %v7153_v2  ;;  %v18288_v36 = vpop.f32.mrf.mxu0 }
 0x470   : > { %v18278_v56 = vpop.f32.mrf.mxu1  ;;  %20523 = vst [vmem:[#allocation38_spill] sm:$0xff] %v18288_v36 }
 0x471   : > { %v18281_v58 = vadd.f32 %v18183_v63, %v7156_v0  ;;  %v13316_v16 = vpop.f32.mrf.mxu0 }
 0x472   : > { %v13272_v53 = vpop.f32.mrf.mxu1 }
 0x473   : > { %v7159_v38 = vadd.f32 %v13272_v53, %v18168_v54 }
 0x474   : > { %v7070_v28 = vpop.f32.mrf.mxu1 }
 0x475   : > { %v7157_v46 = vadd.f32 %v7070_v28, %v18174_v27  ;;  %v18286_v4 = vadd.f32 %v18201_v32, %v7159_v38  ;;  %v7383_v38 = vpop.f32.mrf.mxu0 }
 0x476   : > { %v13273_v33 = vpop.f32.mrf.mxu1 }
 0x477   : > { %v7160_v24 = vadd.f32 %v13273_v33, %v18179_v60  ;;  %v18291_v2 = vadd.f32 %v7335_v40, %v7157_v46  ;;  %v13317_v46 = vpop.f32.mrf.mxu0 }
 0x478   : > { %v18293_v48 = vpop.f32.mrf.mxu1 }
 0x479   : > { %v18295_v63 = vadd.f32 %v13305_v43, %v7160_v24  ;;  %v18312_v36 = vpop.f32.mrf.mxu0 }
 0x47a   : > { %v13276_v0 = vpop.f32.mrf.mxu1  ;;  %20524 = vst [vmem:[#allocation35_spill] sm:$0xff] %v18312_v36 }
 0x47b   : > { %v18298_v54 = vadd.f32 %v13276_v0, %v18188_v14  ;;  %v13320_v10 = vpop.f32.mrf.mxu0 }
 0x47c   : > { %v7086_v27 = vpop.f32.mrf.mxu1 }
 0x47d   : > { %v18301_v32 = vadd.f32 %v7086_v27, %v18194_v42 }
 0x47e   : > { %v13277_v53 = vpop.f32.mrf.mxu1 }
 0x47f   : > { %v18304_v28 = vadd.f32 %v13277_v53, %v18199_v47 }
 0x480   : > { %v18306_v60 = vpop.f32.mrf.mxu1 }
 0x482   : > { %v13280_v40 = vpop.f32.mrf.mxu1 }
 0x483   : > { %v7167_v43 = vadd.f32 %v13280_v40, %v18206_v50 }
 0x484   : > { %v7102_v33 = vpop.f32.mrf.mxu1 }
 0x485   : > { %v7165_v24 = vadd.f32 %v7102_v33, %v18210_v7  ;;  %v18310_v14 = vadd.f32 %v13312_v26, %v7167_v43  ;;  %v7399_v43 = vpop.f32.mrf.mxu0 }
 0x486   : > { %v13281_v0 = vpop.f32.mrf.mxu1 }
 0x487   : > { %v7168_v42 = vadd.f32 %v13281_v0, %v18215_v3  ;;  %v18315_v27 = vadd.f32 %v7367_v25, %v7165_v24 }
 0x488   : > { %v18317_v47 = vpop.f32.mrf.mxu1 }
 0x489   : > { %20525 = vst [vmem:[#allocation14_spill] sm:$0xff] %v18317_v47  ;;  %v18319_v53 = vadd.f32 %v13313_v51, %v7168_v42  ;;  %v18332_v51 = vpop.f32.mrf.mxu0 }
 0x48a   : > { %v13284_v5 = vpop.f32.mrf.mxu1  ;;  %20526 = vst [vmem:[#allocation32_spill] sm:$0xff] %v18332_v51 }
 0x48b   : > { %v7171_v50 = vadd.f32 %v13284_v5, %v18220_v30  ;;  %v18336_v42 = vpop.f32.mrf.mxu0 }
 0x48c   : > { %v7118_v40 = vpop.f32.mrf.mxu1  ;;  %20527 = vst [vmem:[#allocation33_spill] sm:$0xff] %v18336_v42 }
 0x48d   : > { %v7169_v7 = vadd.f32 %v7118_v40, %v18226_v35  ;;  %v18323_v26 = vadd.f32 %v13316_v16, %v7171_v50 }
 0x48e   : > { %v13285_v33 = vpop.f32.mrf.mxu1 }
 0x48f   : > { %v7172_v36 = vadd.f32 %v13285_v33, %v18231_v44  ;;  %v18326_v3 = vadd.f32 %v7383_v38, %v7169_v7 }
 0x490   : > { %v18328_v25 = vpop.f32.mrf.mxu1 }
 0x491   : > { %v18330_v24 = vadd.f32 %v13317_v46, %v7172_v36  ;;  %v13360_v36 = vpop.f32.mrf.mxu0 }
 0x492   : > { %v13288_v0 = vpop.f32.mrf.mxu1 }
 0x493   : > { %v7175_v5 = vadd.f32 %v13288_v0, %v18238_v21  ;;  %v18347_v0 = vpop.f32.mrf.mxu0 }
 0x494   : > { %v7134_v30 = vpop.f32.mrf.mxu1  ;;  %20531 = vst [vmem:[#allocation46_spill] sm:$0xff] %v18347_v0 }
 0x495   : > { %v7173_v35 = vadd.f32 %v7134_v30, %v18244_v34  ;;  %v7440_v16 = vadd.f32 %v13320_v10, %v7175_v5 }
 0x496   : > { %v13289_v50 = vpop.f32.mrf.mxu1 }
 0x497   : > { %v18339_v44 = vadd.f32 %v13289_v50, %v18249_v13  ;;  %v7438_v38 = vadd.f32 %v7399_v43, %v7173_v35  ;;  %v13361_v13 = vpop.f32.mrf.mxu0 }
 0x498   : > { %v18341_v40 = vpop.f32.mrf.mxu1 }
 0x499   : > { %20528 = vst [vmem:[#allocation42_spill] sm:$0xff] %v18339_v44  ;;  %20529 = vst [vmem:[#allocation10_spill] sm:$0xff] %v18341_v40 }
 0x49a   : > { %v13328_v46 = vpop.f32.mrf.mxu1 }
 0x49b   : > { %v7746_v7 = vadd.f32 %v13328_v46, %v18256_v9  ;;  %v18358_v9 = vpop.f32.mrf.mxu0 }
 0x49c   : > { %v7633_v33 = vpop.f32.mrf.mxu1  ;;  %20534 = vst [vmem:[#allocation37_spill] sm:$0xff] %v18358_v9 }
 0x49d   : > { %v18345_v21 = vadd.f32 %v7633_v33, %v18262_v20 }
 0x49e   : > { %v13329_v10 = vpop.f32.mrf.mxu1 }
 0x49f   : > { %20530 = vst [vmem:[#allocation56_spill] sm:$0xff] %v18345_v21  ;;  %v7747_v34 = vadd.f32 %v13329_v10, %v18267_v61  ;;  %v13364_v61 = vpop.f32.mrf.mxu0 }
 0x4a0   : > { %v18350_v5 = vpop.f32.mrf.mxu1 }
 0x4a1   : > { %20532 = vst [vmem:[#allocation44_spill] sm:$0xff] %v18350_v5 }
 0x4a2   : > { %v13332_v30 = vpop.f32.mrf.mxu1 }
 0x4a3   : > { %v18353_v43 = vadd.f32 %v13332_v30, %v18272_v22  ;;  %v18371_v30 = vpop.f32.mrf.mxu0 }
 0x4a4   : > { %v7649_v35 = vpop.f32.mrf.mxu1  ;;  %20537 = vst [vmem:[#allocation31_spill] sm:$0xff] %v18371_v30 }
 0x4a5   : > { %v18356_v50 = vadd.f32 %v7649_v35, %v18276_v37  ;;  %v13966_v35 = vld [vmem:[%s20538_s25 + $0x4] ss:$8 sps:$4 sm:$0xff]  }
 0x4a6   : > { %v13333_v20 = vpop.f32.mrf.mxu1  ;;  %12221 = vmatprep.mubr.msk.bf16.mxu0 %vm8709_vm12, %v13966_v35 }
 0x4a7   : > { %20533 = vst [vmem:[#allocation27_spill] sm:$0xff] %v18356_v50  ;;  %v18361_v46 = vadd.f32 %v13333_v20, %v18281_v58 }
 0x4a8   : > { %v18363_v33 = vpop.f32.mrf.mxu1 }
 0x4a9   : > { %20535 = vst [vmem:[#allocation47_spill] sm:$0xff] %v18363_v33 }
 0x4aa   : > { %v13336_v10 = vpop.f32.mrf.mxu1 }
 0x4ab   : > { %v18366_v47 = vadd.f32 %v13336_v10, %v18286_v4  ;;  %v13365_v4 = vpop.f32.mrf.mxu0 }
 0x4ac   : > { %v7665_v0 = vpop.f32.mrf.mxu1 }
 0x4ad   : > { %v18369_v22 = vadd.f32 %v7665_v0, %v18291_v2  ;;  %v18386_v0 = vpop.f32.mrf.mxu0 }
 0x4ae   : > { %v13337_v37 = vpop.f32.mrf.mxu1  ;;  %20539 = vst [vmem:[#allocation30_spill] sm:$0xff] %v18386_v0 }
 0x4af   : > { %20536 = vst [vmem:[#allocation5_spill] sm:$0xff] %v18369_v22  ;;  %v18377_v58 = vadd.f32 %v13337_v37, %v18295_v63  ;;  %v13368_v42 = vpop.f32.mrf.mxu0 }
 0x4b0   : > { %v18379_v20 = vpop.f32.mrf.mxu1 }
 0x4b1   : > { %v18398_v35 = vpop.f32.mrf.mxu0 }
 0x4b2   : > { %v18382_v10 = vpop.f32.mrf.mxu1  ;;  %20541 = vst [vmem:[#allocation34_spill] sm:$0xff] %v18398_v35 }
 0x4b3   : > { %v18405_v44 = vpop.f32.mrf.mxu0 }
 0x4b4   : > { %v18384_v2 = vpop.f32.mrf.mxu1 }
 0x4b6   : > { %v18388_v9 = vpop.f32.mrf.mxu1 }
 0x4b8   : > { %v18390_v21 = vpop.f32.mrf.mxu1 }
 0x4ba   : > { %v13344_v30 = vpop.f32.mrf.mxu1 }
 0x4bb   : > { %v18393_v63 = vadd.f32 %v13344_v30, %v18310_v14 }
 0x4bc   : > { %v7697_v37 = vpop.f32.mrf.mxu1 }
 0x4bd   : > { %v18396_v50 = vadd.f32 %v7697_v37, %v18315_v27  ;;  %v18413_v27 = vpop.f32.mrf.mxu0 }
 0x4be   : > { %v13345_v5 = vpop.f32.mrf.mxu1 }
 0x4bf   : > { %20540 = vst [vmem:[#allocation53_spill] sm:$0xff] %v18396_v50  ;;  %v18401_v51 = vadd.f32 %v13345_v5, %v18319_v53  ;;  %v18420_v5 = vpop.f32.mrf.mxu0 }
 0x4c0   : > { %v18403_v0 = vpop.f32.mrf.mxu1 }
 0x4c1   : > { %20542 = vst [vmem:[#allocation54_spill] sm:$0xff] %v18401_v51  ;;  %20543 = vst [vmem:[#allocation39_spill] sm:$0xff] %v18403_v0 }
 0x4c2   : > { %v13348_v40 = vpop.f32.mrf.mxu1 }
 0x4c3   : > { %v18408_v33 = vadd.f32 %v13348_v40, %v18323_v26  ;;  %v18426_v40 = vpop.f32.mrf.mxu0 }
 0x4c4   : > { %v7713_v14 = vpop.f32.mrf.mxu1 }
 0x4c5   : > { %20544 = vst [vmem:[#allocation29_spill] sm:$0xff] %v18408_v33  ;;  %v18411_v30 = vadd.f32 %v7713_v14, %v18326_v3  ;;  %v18432_v33 = vpop.f32.mrf.mxu0 }
 0x4c6   : > { %v13349_v37 = vpop.f32.mrf.mxu1 }
 0x4c7   : > { %20545 = vst [vmem:[#allocation55_spill] sm:$0xff] %v18411_v30  ;;  %v18416_v50 = vadd.f32 %v13349_v37, %v18330_v24  ;;  %v8196_v30 = vadd.f32 %v13360_v36, %v7746_v7  ;;  %v18437_v37 = vld [vmem:[%s20090_s13] ss:$0 sm:$0xff] }
 0x4c8   : > { %v18418_v53 = vpop.f32.mrf.mxu1  ;;  %v18447_v36 = vld [vmem:[%s20091_s14] ss:$0 sm:$0xff] }
 0x4c9   : > { %20546 = vst [vmem:[#allocation12_spill] sm:$0xff] %v18416_v50  ;;  %20547 = vst [vmem:[#allocation28_spill] sm:$0xff] %v18418_v53  ;;  %v6073_v53 = vadd.f32 %v17999_v19, %v18018_v15  ;;  %v8204_v19 = vadd.f32 %v13368_v42, %v18366_v47 }
 0x4ca   : > { %v13352_v0 = vpop.f32.mrf.mxu1 }
 0x4cb   : > { %v18422_v51 = vadd.f32 %v13352_v0, %v7440_v16 }
 0x4cc   : > { %v7729_v35 = vpop.f32.mrf.mxu1 }
 0x4cd   : > { %20548 = vst [vmem:[#allocation8_spill] sm:$0xff] %v18422_v51  ;;  %v18424_v26 = vadd.f32 %v7729_v35, %v7438_v38  ;;  %v8197_v35 = vadd.f32 %v13361_v13, %v7747_v34 }
 0x4ce   : > { %v18428_v3 = vpop.f32.mrf.mxu1 }
 0x4cf   : > { %20549 = vst [vmem:[#allocation13_spill] sm:$0xff] %v18424_v26  ;;  %20550 = vst [vmem:[#allocation49_spill] sm:$0xff] %v18428_v3  ;;  %v18442_v26 = vpop.f32.mrf.mxu0 }
 0x4d0   : > { %v18430_v14 = vpop.f32.mrf.mxu1 }
 0x4d1   : > { %20551 = vst [vmem:[#allocation43_spill] sm:$0xff] %v18430_v14 }
 0x4d2   : > { %v13392_v24 = vpop.f32.mrf.mxu1 }
 0x4d3   : > { %v8461_v16 = vadd.f32 %v13392_v24, %v8196_v30  ;;  %v8200_v24 = vadd.f32 %v13364_v61, %v18353_v43  ;;  %v6382_v61 = vadd.f32 %v18196_v57, %v6073_v53  ;;  %v7428_v53 = vadd.f32 %v18233_v39, %v18298_v54 }
 0x4d4   : > { %v18439_v0 = vpop.f32.mrf.mxu1  ;;  %v7426_v39 = vadd.f32 %v18240_v49, %v18301_v32 }
 0x4d5   : > { %20552 = vst [vmem:[#allocation50_spill] sm:$0xff] %v18439_v0  ;;  %v8496_v38 = vmul.f32 %v18437_v37, %v8461_v16  ;;  %v18454_v0 = vpop.f32.mrf.mxu0  ;;  %v6712_v57 = vadd.f32 %v18079_v1, %v6382_v61  ;;  %v8205_v1 = vadd.f32 %v18405_v44, %v18377_v58 }
 0x4d6   : > { %v13393_v7 = vpop.f32.mrf.mxu1  ;;  %v7756_v44 = vadd.f32 %v18384_v2, %v7426_v39 }
 0x4d7   : > { %v8462_v14 = vadd.f32 %v13393_v7, %v8197_v35  ;;  %v8531_v3 = vadd.f32 %v18447_v36, %v8496_v38 }
 0x4d8   : > { %v18449_v51 = vpop.f32.mrf.mxu1 }
 0x4d9   : > { %20553 = vst [vmem:[#allocation51_spill] sm:$0xff] %v18449_v51  ;;  %v8497_v30 = vmul.f32 %v18437_v37, %v8462_v14  ;;  %v8559_v35 = vmax.f32 %v8531_v3, 0.0  ;;  %v18461_v51 = vpop.f32.mrf.mxu0  ;;  %v8201_v14 = vadd.f32 %v13365_v4, %v18361_v46 }
 0x4da   : > { %v13396_v34 = vpop.f32.mrf.mxu1 }
 0x4db   : > { %v8532_v13 = vadd.f32 %v18447_v36, %v8497_v30  ;;  %v8465_v16 = vadd.f32 %v13396_v34, %v8200_v24  ;;  %v6057_v30 = vadd.f32 %v17977_v17, %v18003_v41  ;;  %v18474_v3 = vpop.f32.mrf.mxu0  ;;  %v6041_v41 = vadd.f32 %v17945_v31, %v17973_v59 }
 0x4dc   : > { %v18457_v50 = vpop.f32.mrf.mxu1 }
 0x4dd   : > { %v8560_v7 = vmax.f32 %v8532_v13, 0.0  ;;  %v8500_v38 = vmul.f32 %v18437_v37, %v8465_v16  ;;  %v6378_v15 = vadd.f32 %v18176_v55, %v6057_v30  ;;  %v7162_v55 = vadd.f32 %v18306_v60, %v6712_v57  ;;  %v18494_v54 = vpop.f32.mrf.mxu0 }
 0x4de   : > { %v13397_v43 = vpop.f32.mrf.mxu1  ;;  %v7758_v16 = vadd.f32 %v18382_v10, %v7428_v53  ;;  %v6374_v10 = vadd.f32 %v18150_v6, %v6041_v41  ;;  %v20556_v6 = vld [vmem:[#allocation21_spill] sm:$0xff]  ;;  %v20558_v53 = vld [vmem:[#allocation18_spill] sm:$0xff] }
 0x4df   : > { %v18466_v22 = vpack.c.bf16 %v8560_v7, %v8559_v35  ;;  %v8466_v24 = vadd.f32 %v13397_v43, %v8201_v14  ;;  %v8535_v13 = vadd.f32 %v18447_v36, %v8500_v38  ;;  %v6708_v7 = vadd.f32 %v18067_v45, %v6378_v15  ;;  %v20554_v14 = vld [vmem:[#allocation17_spill] sm:$0xff]  ;;  %v20555_v43 = vld [vmem:[#allocation36_spill] sm:$0xff]  ;;  %v18512_v2 = vpop.f32.mrf.mxu0 }
 0x4e0   : > { %v18470_v34 = vpop.f32.mrf.mxu1  ;;  %v6025_v60 = vadd.f32 %v20555_v43, %v20554_v14  ;;  %v7429_v45 = vadd.f32 %v18251_v12, %v18304_v28  ;;  %v7427_v32 = vadd.f32 %v18258_v8, %v7162_v55  ;;  %v8208_v15 = vadd.f32 %v18420_v5, %v7758_v16  ;;  %v20560_v16 = vld [vmem:[#allocation45_spill] sm:$0xff] }
 0x4e1   : > { %v8501_v46 = vmul.f32 %v18437_v37, %v8466_v24  ;;  %v8563_v31 = vmax.f32 %v8535_v13, 0.0  ;;  %v7158_v30 = vadd.f32 %v18293_v48, %v6708_v7  ;;  %v20557_v13 = vld [vmem:[#allocation7_spill] sm:$0xff] }
 0x4e2   : > { %v13400_v4 = vpop.f32.mrf.mxu1  ;;  %v7759_v48 = vadd.f32 %v18388_v9, %v7429_v45  ;;  %v6370_v12 = vadd.f32 %v18126_v18, %v6025_v60  ;;  %v7757_v28 = vadd.f32 %v18390_v21, %v7427_v32  ;;  %v18524_v21 = vpop.f32.mrf.mxu0 }
 0x4e3   : > { %v8469_v17 = vadd.f32 %v13400_v4, %v8204_v19  ;;  %v8536_v47 = vadd.f32 %v18447_v36, %v8501_v46  ;;  %v6105_v46 = vadd.f32 %v20557_v13, %v20556_v6  ;;  %v7423_v5 = vadd.f32 %v18222_v29, %v7158_v30  ;;  %v20561_v29 = vld [vmem:[#allocation11_spill] sm:$0xff]  ;;  %v20562_v30 = vld [vmem:[#allocation22_spill] sm:$0xff] }
 0x4e4   : > { %v18484_v42 = vpop.f32.mrf.mxu1  ;;  %v6700_v14 = vadd.f32 %v20561_v29, %v6370_v12  ;;  %v18541_v32 = vpop.f32.mrf.mxu0  ;;  %v20563_v13 = vld [vmem:[#allocation26_spill] sm:$0xff] }
 0x4e5   : > { %v8504_v35 = vmul.f32 %v18437_v37, %v8469_v17  ;;  %v8564_v59 = vmax.f32 %v8536_v47, 0.0  ;;  %v20559_v17 = vld [vmem:[#allocation23_spill] sm:$0xff]  ;;  %v8206_v47 = vadd.f32 %v18426_v40, %v7756_v44  ;;  %v6390_v9 = vadd.f32 %v18228_v52, %v6105_v46 }
 0x4e6   : > { %v13401_v38 = vpop.f32.mrf.mxu1  ;;  %v6121_v41 = vadd.f32 %v20559_v17, %v20558_v53  ;;  %v7753_v18 = vadd.f32 %v18379_v20, %v7423_v5  ;;  %v8207_v52 = vadd.f32 %v18442_v26, %v7757_v28  ;;  %v20567_v53 = vld [vmem:[#allocation47_spill] sm:$0xff] }
 0x4e7   : > { %v8470_v61 = vadd.f32 %v13401_v38, %v8205_v1  ;;  %v18503_v58 = vpack.c.bf16 %v8564_v59, %v8563_v31  ;;  %v8539_v24 = vadd.f32 %v18447_v36, %v8504_v35  ;;  %v6704_v35 = vadd.f32 %v20560_v16, %v6374_v10 }
 0x4e8   : > { %v8383_v49 = vpop.f32.mrf.mxu1  ;;  %v8209_v59 = vadd.f32 %v18432_v33, %v7759_v48  ;;  %v6394_v60 = vadd.f32 %v18246_v11, %v6121_v41  ;;  %v6720_v44 = vadd.f32 %v20562_v30, %v6390_v9  ;;  %v8212_v33 = vadd.f32 %v18454_v0, %v18393_v63  ;;  %v20564_v48 = vld [vmem:[#allocation5_spill] sm:$0xff]  ;;  %v20568_v41 = vld [vmem:[#allocation54_spill] sm:$0xff] }
 0x4e9   : > { %v8505_v19 = vmul.f32 %v18437_v37, %v8470_v61  ;;  %v8567_v1 = vmax.f32 %v8539_v24, 0.0  ;;  %v7154_v40 = vadd.f32 %v18278_v56, %v6704_v35  ;;  %v7150_v61 = vadd.f32 %v18264_v23, %v6700_v14  ;;  %v13991_v56 = vld [vmem:[%s20092_s15 + $0x18] sm:$0xff]   ;;  %v20573_v14 = vld [vmem:[#allocation10_spill] sm:$0xff] }
 0x4ea   : > { %v13404_v4 = vpop.f32.mrf.mxu1  ;;  %v8203_v26 = vadd.f32 %v18413_v27, %v7753_v18  ;;  %13419 = vmatpush3.bf16.msra.mxu1 %v13991_v56  ;;  %v6724_v46 = vadd.f32 %v20563_v13, %v6394_v60  ;;  %v8213_v5 = vadd.f32 %v18474_v3, %v20568_v41  ;;  %v20577_v56 = vld [vmem:[#allocation44_spill] sm:$0xff]  ;;  %v20584_v41 = vld [vmem:[#allocation33_spill] sm:$0xff] }
 0x4eb   : > { %v8540_v8 = vadd.f32 %v18447_v36, %v8505_v19  ;;  %v8473_v57 = vadd.f32 %v13404_v4, %v8208_v15  ;;  %v7170_v15 = vadd.f32 %v18328_v25, %v6720_v44  ;;  %v7419_v6 = vadd.f32 %v18190_v62, %v7154_v40  ;;  %v20565_v4 = vld [vmem:[#allocation34_spill] sm:$0xff] }
 0x4ec   : > { %v8396_v55 = vpop.f32.mrf.mxu1  ;;  %v8202_v27 = vadd.f32 %v20565_v4, %v20564_v48  ;;  %v8468_v12 = vadd.f32 %v8383_v49, %v8203_v26  ;;  %v7174_v40 = vadd.f32 %v20573_v14, %v6724_v46  ;;  %v20580_v48 = vld [vmem:[#allocation55_spill] sm:$0xff] }
 0x4ed   : > { %v8568_v7 = vmax.f32 %v8540_v8, 0.0  ;;  %v8508_v39 = vmul.f32 %v18437_v37, %v8473_v57  ;;  %v8471_v31 = vadd.f32 %v8396_v55, %v8206_v47  ;;  %v20566_v57 = vmov 0.0   ;;  %v8166_v47 = vpop.f32.mrf.mxu0 }
 0x4ee   : > { %v13405_v38 = vpop.f32.mrf.mxu1  ;;  %13420 = vmatprep.subr.bf16.mxu1 %v20566_v57  ;;  %v7749_v25 = vadd.f32 %v20567_v53, %v7419_v6  ;;  %v8467_v55 = vadd.f32 %v18484_v42, %v8202_v27  ;;  %v8503_v3 = vmul.f32 %v18437_v37, %v8468_v12  ;;  %v8214_v4 = vadd.f32 %v18524_v21, %v20580_v48  ;;  %v20583_v12 = vld [vmem:[#allocation31_spill] sm:$0xff] }
 0x4ef   : > { %v18530_v43 = vpack.c.bf16 %v8568_v7, %v8567_v1  ;;  %v8474_v10 = vadd.f32 %v13405_v38, %v8209_v59  ;;  %v8543_v11 = vadd.f32 %v18447_v36, %v8508_v39  ;;  %v8506_v24 = vmul.f32 %v18437_v37, %v8471_v31  ;;  %v20569_v1 = vld [vmem:[#allocation40_spill] sm:$0xff]  ;;  %v20570_v7 = vld [vmem:[#allocation19_spill] sm:$0xff]  ;;  %13422 = vmatprep.mubr.msk.bf16.mxu1 %vm14330_vm13, %v20566_v57 }
 0x4f0   : > { %v8399_v20 = vpop.f32.mrf.mxu1  ;;  %v18566_v18 = vadd.f32 %v20570_v7, %v20569_v1  ;;  %v20571_v39 = vld [vmem:[#allocation48_spill] sm:$0xff]  ;;  %v20572_v59 = vld [vmem:[#allocation35_spill] sm:$0xff]  ;;  %v20581_v27 = vmov 0  }
 0x4f1   : > { %v8472_v45 = vadd.f32 %v8399_v20, %v8207_v52  ;;  %v8509_v23 = vmul.f32 %v18437_v37, %v8474_v10  ;;  %v8571_v9 = vmax.f32 %v8543_v11, 0.0  ;;  %v8541_v49 = vadd.f32 %v18447_v36, %v8506_v24  ;;  %v20574_v10 = vld [vmem:[#allocation42_spill] sm:$0xff]  ;;  %v20575_v20 = vld [vmem:[#allocation32_spill] sm:$0xff]  ;;  %v13384_v11 = vpop.f32.mrf.mxu0 }
 0x4f2   : > { %v13408_v19 = vpop.f32.mrf.mxu1  ;;  %v7415_v31 = vadd.f32 %v20571_v39, %v7150_v61  ;;  %v7435_v38 = vadd.f32 %v20572_v59, %v7170_v15  ;;  %v7441_v30 = vadd.f32 %v20575_v20, %v20574_v10  ;;  %v20578_v24 = vld [vmem:[#allocation30_spill] sm:$0xff]  ;;  %v20585_v7 = vld [vmem:[#allocation12_spill] sm:$0xff] }
 0x4f3   : > { %v8507_v63 = vmul.f32 %v18437_v37, %v8472_v45  ;;  %v8477_v0 = vadd.f32 %v13408_v19, %v8212_v33  ;;  %v8544_v28 = vadd.f32 %v18447_v36, %v8509_v23  ;;  %v20576_v33 = vld [vmem:[#allocation29_spill] sm:$0xff]  ;;  %v8199_v23 = vadd.f32 %v20578_v24, %v7749_v25  ;;  %v20587_v59 = vld [vmem:[#allocation46_spill] sm:$0xff] }
 0x4f4   : > { %v18554_v8 = vpop.f32.mrf.mxu1  ;;  %v8216_v61 = vadd.f32 %v18512_v2, %v20576_v33  ;;  %v7745_v26 = vadd.f32 %v20577_v56, %v7415_v31  ;;  %v8502_v19 = vmul.f32 %v18437_v37, %v8467_v55  ;;  %v8569_v15 = vmax.f32 %v8541_v49, 0.0  ;;  %v20582_v2 = vld [vmem:[#allocation27_spill] sm:$0xff]  ;;  %v20586_v31 = vld [vmem:[#allocation56_spill] sm:$0xff]  ;;  %v20591_v56 = vld [vmem:[#allocation13_spill] sm:$0xff] }
 0x4f5   : > { %v8542_v62 = vadd.f32 %v18447_v36, %v8507_v63  ;;  %v8512_v17 = vmul.f32 %v18437_v37, %v8477_v0  ;;  %v8572_v16 = vmax.f32 %v8544_v28, 0.0  ;;  %v20579_v63 = vld [vmem:[#allocation28_spill] sm:$0xff]  ;;  %v8198_v28 = vadd.f32 %v20583_v12, %v20582_v2 }
 0x4f6   : > { %v13409_v35 = vpop.f32.mrf.mxu1  ;;  %v7765_v0 = vadd.f32 %v20579_v63, %v7435_v38  ;;  %v8464_v53 = vadd.f32 %v18470_v34, %v8199_v23  ;;  %v8538_v25 = vadd.f32 %v18447_v36, %v8503_v3  ;;  %v8537_v21 = vadd.f32 %v18447_v36, %v8502_v19  ;;  %v20590_v33 = vld [vmem:[#allocation8_spill] sm:$0xff]  ;;  %v20592_v63 = vld [vmem:[#allocation43_spill] sm:$0xff] }
 0x4f7   : > { %v8478_v29 = vadd.f32 %v13409_v35, %v8213_v5  ;;  %v8612_v52 = vpack.c.bf16 %v8572_v16, %v8571_v9  ;;  %v8570_v42 = vmax.f32 %v8542_v62, 0.0  ;;  %v8547_v44 = vadd.f32 %v18447_v36, %v8512_v17  ;;  %v8179_v16 = vpop.f32.mrf.mxu0 }
 0x4f8   : > { %v18572_v60 = vpop.f32.mrf.mxu1  ;;  %v7439_v5 = vadd.f32 %v20584_v41, %v7174_v40  ;;  %v8463_v35 = vadd.f32 %v18457_v50, %v8198_v28  ;;  %v8217_v34 = vadd.f32 %v18541_v32, %v20585_v7  ;;  %v8194_v38 = vadd.f32 %v20587_v59, %v20586_v31  ;;  %v20594_v41 = vld [vmem:[#allocation50_spill] sm:$0xff] }
 0x4f9   : > { %v8513_v45 = vmul.f32 %v18437_v37, %v8478_v29  ;;  %8741 = vmatpush1.bf16.msra.mxu0 %v8612_v52  ;;  %v8611_v17 = vpack.c.bf16 %v8570_v42, %v8569_v15  ;;  %v8575_v55 = vmax.f32 %v8547_v44, 0.0  ;;  %v20588_v29 = vld [vmem:[#allocation37_spill] sm:$0xff]  ;;  %v8215_v3 = vadd.f32 %v8166_v47, %v7765_v0 }
 0x4fa   : > { %v13412_v6 = vpop.f32.mrf.mxu1  ;;  %8742 = vmatprep.subr.bf16.mxu0 %v20581_v27  ;;  %v8195_v14 = vadd.f32 %v20588_v29, %v7745_v26  ;;  %v8499_v50 = vmul.f32 %v18437_v37, %v8464_v53  ;;  %v8566_v52 = vmax.f32 %v8538_v25, 0.0  ;;  %v20589_v44 = vld [vmem:[#allocation49_spill] sm:$0xff]  ;;  %v8218_v24 = vadd.f32 %v8179_v16, %v20591_v56  ;;  %v13385_v26 = vpop.f32.mrf.mxu0 }
 0x4fb   : > { %v8548_v13 = vadd.f32 %v18447_v36, %v8513_v45  ;;  %v8481_v46 = vadd.f32 %v13412_v6, %v8216_v61  ;;  %v7771_v32 = vadd.f32 %v20589_v44, %v7441_v30  ;;  %v8220_v61 = vadd.f32 %v13384_v11, %v20590_v33 }
 0x4fc   : > { %v8428_v62 = vpop.f32.mrf.mxu1  ;;  %v8498_v23 = vmul.f32 %v18437_v37, %v8463_v35  ;;  %v8565_v47 = vmax.f32 %v8537_v21, 0.0  ;;  %v7769_v0 = vadd.f32 %v20592_v63, %v7439_v5  ;;  %v8534_v48 = vadd.f32 %v18447_v36, %v8499_v50  ;;  %v20595_v50 = vld [vmem:[#allocation41_spill] sm:$0xff] }
 0x4fd   : > { %v8576_v9 = vmax.f32 %v8548_v13, 0.0  ;;  %v8479_v49 = vadd.f32 %v8428_v62, %v8214_v4  ;;  %v8516_v1 = vmul.f32 %v18437_v37, %v8481_v46  ;;  %8743 = vmatpush1.bf16.msra.mxu0 %v8611_v17  ;;  %v20593_v13 = vld [vmem:[#allocation51_spill] sm:$0xff]  ;;  %v8221_v62 = vadd.f32 %v13385_v26, %v7771_v32  ;;  %v8182_v17 = vpop.f32.mrf.mxu0  ;;  %v20596_v26 = vld [vmem:[#allocation16_spill] sm:$0xff] }
 0x4fe   : > { %v13413_v39 = vpop.f32.mrf.mxu1  ;;  %8744 = vmatprep.subr.bf16.mxu0 %v20581_v27  ;;  %v8460_v30 = vadd.f32 %v20593_v13, %v8195_v14  ;;  %v8609_v28 = vpack.c.bf16 %v8566_v52, %v8565_v47  ;;  %v8459_v5 = vadd.f32 %v20594_v41, %v8194_v38  ;;  %v8219_v7 = vadd.f32 %v8182_v17, %v7769_v0  ;;  %v13967_v41 = vld [vmem:[%s20538_s25 + $0x14] ss:$8 sps:$4 sm:$0xff]  }
 0x4ff   : > { %v18601_v40 = vpack.c.bf16 %v8576_v9, %v8575_v55  ;;  %v8514_v42 = vmul.f32 %v18437_v37, %v8479_v49  ;;  %v8482_v10 = vadd.f32 %v13413_v39, %v8217_v34  ;;  %v8551_v19 = vadd.f32 %v18447_v36, %v8516_v1 }
 0x500   : > { %v8431_v20 = vpop.f32.mrf.mxu1  ;;  %v8533_v55 = vadd.f32 %v18447_v36, %v8498_v23  ;;  %v8495_v34 = vmul.f32 %v18437_v37, %v8460_v30  ;;  %v8562_v39 = vmax.f32 %v8534_v48, 0.0  ;;  %v6386_v52 = vadd.f32 %v20595_v50, %v18566_v18 }
 0x501   : > { %v8480_v45 = vadd.f32 %v8431_v20, %v8215_v3  ;;  %v8517_v15 = vmul.f32 %v18437_v37, %v8482_v10  ;;  %8745 = vmatpush1.bf16.msra.mxu0 %v18530_v43  ;;  %v8549_v4 = vadd.f32 %v18447_v36, %v8514_v42  ;;  %v8579_v9 = vmax.f32 %v8551_v19, 0.0 }
 0x502   : > { %v13416_v6 = vpop.f32.mrf.mxu1  ;;  %8746 = vmatprep.subr.bf16.mxu0 %v20581_v27  ;;  %v8494_v42 = vmul.f32 %v18437_v37, %v8459_v5  ;;  %v8561_v10 = vmax.f32 %v8533_v55, 0.0  ;;  %v8530_v33 = vadd.f32 %v18447_v36, %v8495_v34  ;;  %v6716_v23 = vadd.f32 %v20596_v26, %v6386_v52  ;;  %v13973_v5 = vld [vmem:[%s20538_s25 + $0x34] ss:$8 sps:$4 sm:$0xff]   ;;  %v13975_v55 = vld [vmem:[%s20538_s25 + $0x30] ss:$8 sps:$4 sm:$0xff]  }
 0x503   : > { %v8515_v46 = vmul.f32 %v18437_v37, %v8480_v45  ;;  %v8485_v11 = vadd.f32 %v13416_v6, %v8220_v61  ;;  %v8552_v2 = vadd.f32 %v18447_v36, %v8517_v15  ;;  %v8577_v31 = vmax.f32 %v8549_v4, 0.0  ;;  %v20597_v6 = vld [vmem:[#allocation14_spill] sm:$0xff]  ;;  %v20599_v4 = vld [vmem:[#allocation39_spill] sm:$0xff] }
 0x504   : > { %v8444_v12 = vpop.f32.mrf.mxu1  ;;  %v8607_v61 = vpack.c.bf16 %v8562_v39, %v8561_v10  ;;  %v7166_v63 = vadd.f32 %v20597_v6, %v6716_v23  ;;  %v8558_v0 = vmax.f32 %v8530_v33, 0.0  ;;  %v13987_v34 = vld [vmem:[%s20538_s25 + $0x70] ss:$8 sps:$4 sm:$0xff]   ;;  %v13988_v39 = vld [vmem:[%s20538_s25 + $0x84] ss:$8 sps:$4 sm:$0xff]  }
 0x505   : > { %v8550_v43 = vadd.f32 %v18447_v36, %v8515_v46  ;;  %v8520_v53 = vmul.f32 %v18437_v37, %v8485_v11  ;;  %v8483_v25 = vadd.f32 %v8444_v12, %v8218_v24  ;;  %v8580_v49 = vmax.f32 %v8552_v2, 0.0  ;;  %8747 = vmatpush1.bf16.msra.mxu0 %v8609_v28  ;;  %v20598_v46 = vld [vmem:[#allocation38_spill] sm:$0xff]  ;;  %v20600_v28 = vld [vmem:[#allocation53_spill] sm:$0xff] }
 0x506   : > { %v13417_v16 = vpop.f32.mrf.mxu1  ;;  %8748 = vmatprep.subr.bf16.mxu0 %v20581_v27  ;;  %v7431_v11 = vadd.f32 %v20598_v46, %v7166_v63 }
 0x507   : > { %v8578_v35 = vmax.f32 %v8550_v43, 0.0  ;;  %v8518_v21 = vmul.f32 %v18437_v37, %v8483_v25  ;;  %v8486_v1 = vadd.f32 %v13417_v16, %v8221_v62  ;;  %v8616_v59 = vpack.c.bf16 %v8580_v49, %v8579_v9  ;;  %v13976_v9 = vld [vmem:[%s20538_s25 + $0x44] ss:$8 sps:$4 sm:$0xff]   ;;  %v13978_v49 = vld [vmem:[%s20538_s25 + $0x40] ss:$8 sps:$4 sm:$0xff]  }
 0x508   : > { %v8447_v29 = vpop.f32.mrf.mxu1  ;;  %v8555_v38 = vadd.f32 %v18447_v36, %v8520_v53  ;;  %v7761_v2 = vadd.f32 %v20599_v4, %v7431_v11  ;;  %v8210_v43 = vadd.f32 %v18461_v51, %v20600_v28  ;;  %v13979_v16 = vld [vmem:[%s20538_s25 + $0x54] ss:$8 sps:$4 sm:$0xff]  }
 0x509   : > { %v8521_v14 = vmul.f32 %v18437_v37, %v8486_v1  ;;  %v8484_v3 = vadd.f32 %v8447_v29, %v8219_v7  ;;  %8749 = vmatpush1.bf16.msra.mxu0 %v18503_v58  ;;  %v8615_v20 = vpack.c.bf16 %v8578_v35, %v8577_v31  ;;  %v8553_v44 = vadd.f32 %v18447_v36, %v8518_v21  ;;  %v13981_v35 = vld [vmem:[%s20538_s25 + $0x50] ss:$8 sps:$4 sm:$0xff]   ;;  %v13982_v21 = vld [vmem:[%s20538_s25 + $0x64] ss:$8 sps:$4 sm:$0xff]   ;;  %v13984_v1 = vld [vmem:[%s20538_s25 + $0x60] ss:$8 sps:$4 sm:$0xff]  }
 0x50a   : > { %8750 = vmatprep.subr.bf16.mxu0 %v20581_v27  ;;  %v8583_v56 = vmax.f32 %v8555_v38, 0.0  ;;  %v8529_v58 = vadd.f32 %v18447_v36, %v8494_v42  ;;  %v8211_v12 = vadd.f32 %v18494_v54, %v7761_v2  ;;  %v8475_v53 = vadd.f32 %v18554_v8, %v8210_v43  ;;  %v13985_v7 = vld [vmem:[%s20538_s25 + $0x74] ss:$8 sps:$4 sm:$0xff]   ;;  %v13990_v31 = vld [vmem:[%s20538_s25 + $0x80] ss:$8 sps:$4 sm:$0xff]  }
 0x50b   : > { %v8556_v32 = vadd.f32 %v18447_v36, %v8521_v14  ;;  %v8519_v45 = vmul.f32 %v18437_v37, %v8484_v3  ;;  %v8581_v47 = vmax.f32 %v8553_v44, 0.0  ;;  %v13995_v29 = vld [vmem:[%s20092_s15 + $0x10] sm:$0xff]   ;;  %v13996_v14 = vld [vmem:[%s20092_s15 + $0x28] sm:$0xff]   ;;  %v13997_v3 = vld [vmem:[%s20092_s15 + $0x20] sm:$0xff]  }
 0x50c   : > { %v8557_v30 = vmax.f32 %v8529_v58, 0.0  ;;  %v8510_v62 = vmul.f32 %v18437_v37, %v8475_v53  ;;  %v13994_v38 = vld [vmem:[%s20538_s25 + $0x90] ss:$8 sps:$4 sm:$0xff]   ;;  %13421 = vmatpush3.bf16.msra.mxu1 %v13995_v29  ;;  %v14009_v43 = vld [vmem:[%s20092_s15 + $0x48] sm:$0xff]  }
 0x50d   : > { %v8584_v24 = vmax.f32 %v8556_v32, 0.0  ;;  %v8554_v18 = vadd.f32 %v18447_v36, %v8519_v45  ;;  %8751 = vmatpush1.bf16.msra.mxu0 %v8607_v61  ;;  %13450 = vmatprep.subr.bf16.mxu1 %v20566_v57 }
 0x50e   : > { %8752 = vmatprep.subr.bf16.mxu0 %v20581_v27  ;;  %v8605_v48 = vpack.c.bf16 %v8558_v0, %v8557_v30  ;;  %v8545_v17 = vadd.f32 %v18447_v36, %v8510_v62 }
 0x50f   : > { %v8618_v19 = vpack.c.bf16 %v8584_v24, %v8583_v56  ;;  %v8582_v15 = vmax.f32 %v8554_v18, 0.0 }
 0x511   : > { %v8617_v13 = vpack.c.bf16 %v8582_v15, %v8581_v47  ;;  %8753 = vmatpush1.bf16.msra.mxu0 %v18466_v22  ;;  %v8476_v22 = vadd.f32 %v18572_v60, %v8211_v12  ;;  %v8573_v60 = vmax.f32 %v8545_v17, 0.0 }
 0x512   : > { %8754 = vmatprep.subr.bf16.mxu0 %v20581_v27 }
 0x513   : > { %v8511_v25 = vmul.f32 %v18437_v37, %v8476_v22  ;;  %v13964_v37 = vld [vmem:[%s20538_s25] ss:$8 sps:$4 sm:$0xff]  }
 0x515   : > { %8755 = vmatpush1.bf16.msra.mxu0 %v8605_v48  ;;  %v8546_v54 = vadd.f32 %v18447_v36, %v8511_v25  ;;  %v13969_v36 = vld [vmem:[%s20538_s25 + $0x10] ss:$8 sps:$4 sm:$0xff]  }
 0x516   : > { %8760 = vmatprep.subr.bf16.mxu0 %v20581_v27 }
 0x517   : > { %v8574_v51 = vmax.f32 %v8546_v54, 0.0 }
 0x519   : > { %8761 = vmatpush2.bf16.msra.mxu0 %v8618_v19  ;;  %v8613_v8 = vpack.c.bf16 %v8574_v51, %v8573_v60  ;;  %v14001_v51 = vld [vmem:[%s20092_s15 + $0x8] sm:$0xff]  }
 0x51a   : > { %8762 = vmatprep.subr.bf16.mxu0 %v20581_v27 }
 0x51d   : > { %8763 = vmatpush2.bf16.msra.mxu0 %v8617_v13 }
 0x51e   : > { %8764 = vmatprep.subr.bf16.mxu0 %v20581_v27 }
 0x521   : > { %8765 = vmatpush2.bf16.msra.mxu0 %v8616_v59  ;;  %v13992_v59 = vld [vmem:[%s20538_s25 + $0x94] ss:$8 sps:$4 sm:$0xff]  }
 0x522   : > { %8766 = vmatprep.subr.bf16.mxu0 %v20581_v27 }
 0x525   : > { %8767 = vmatpush2.bf16.msra.mxu0 %v8615_v20 }
 0x526   : > { %8768 = vmatprep.subr.bf16.mxu0 %v20581_v27 }
 0x529   : > { %8769 = vmatpush2.bf16.msra.mxu0 %v18601_v40  ;;  %v13972_v40 = vld [vmem:[%s20538_s25 + $0x20] ss:$8 sps:$4 sm:$0xff]  }
 0x52a   : > { %8770 = vmatprep.subr.bf16.mxu0 %v20581_v27  ;;  %v13970_v27 = vld [vmem:[%s20538_s25 + $0x24] ss:$8 sps:$4 sm:$0xff]  }
 0x52d   : > { %8771 = vmatpush2.bf16.msra.mxu0 %v8613_v8 }
 0x52e   : > { %13482 = vmatprep.subr.bf16.mxu0 %v20566_v57 }
 0x530   : > { %8773 = vmatmul.mubr.bf16.vlgmr.msra.gmra.mxu0 %v13964_v37  ;;  %v14010_v37 = vld [vmem:[%s20092_s15 + $0x40] sm:$0xff]  }
 0x531   : > { %12222 = vmatprep.mubr.msk.bf16.mxu0 %vm8709_vm12, %v13967_v41  ;;  %13483 = vmatpush3.bf16.msra.mxu0 %v13996_v14 }
 0x532   : > { %13484 = vmatprep.subr.bf16.mxu0 %v20566_v57 }
 0x535   : > { %13485 = vmatpush3.bf16.msra.mxu0 %v13997_v3 }
 0x536   : > { %13546 = vmatprep.subr.bf16.mxu0 %v20566_v57 }
 0x538   : > { %8781 = vmatmul.mubr.bf16.gmra.mxu0 %v13969_v36 }
 0x539   : > { %12223 = vmatprep.mubr.msk.bf16.mxu0 %vm8709_vm12, %v13970_v27  ;;  %v14005_v27 = vld [vmem:[%s20092_s15] sm:$0xff]  }
 0x540   : > { %8789 = vmatmul.mubr.bf16.gmra.mxu0 %v13972_v40 }
 0x541   : > { %12224 = vmatprep.mubr.msk.bf16.mxu0 %vm8709_vm12, %v13973_v5 }
 0x548   : > { %8797 = vmatmul.mubr.bf16.gmra.mxu0 %v13975_v55 }
 0x549   : > { %12225 = vmatprep.mubr.msk.bf16.mxu0 %vm8709_vm12, %v13976_v9 }
 0x550   : > { %8805 = vmatmul.mubr.bf16.gmra.mxu0 %v13978_v49 }
 0x551   : > { %12226 = vmatprep.mubr.msk.bf16.mxu0 %vm8709_vm12, %v13979_v16 }
 0x558   : > { %8813 = vmatmul.mubr.bf16.gmra.mxu0 %v13981_v35 }
 0x559   : > { %12227 = vmatprep.mubr.msk.bf16.mxu0 %vm8709_vm12, %v13982_v21 }
 0x560   : > { %8821 = vmatmul.mubr.bf16.gmra.mxu0 %v13984_v1 }
 0x561   : > { %12228 = vmatprep.mubr.msk.bf16.mxu0 %vm8709_vm12, %v13985_v7 }
 0x568   : > { %8829 = vmatmul.mubr.bf16.gmra.mxu0 %v13987_v34 }
 0x569   : > { %12229 = vmatprep.mubr.msk.bf16.mxu0 %vm8709_vm12, %v13988_v39 }
 0x570   : > { %8837 = vmatmul.mubr.bf16.gmra.mxu0 %v13990_v31 }
 0x571   : > { %12230 = vmatprep.mubr.msk.bf16.mxu0 %vm8709_vm12, %v13992_v59 }
 0x578   : > { %8845 = vmatmul.mubr.bf16.gmra.mxu0 %v13994_v38 }
 0x579   : > { %13486 = vmatprep.mubr.msk.bf16.mxu0 %vm14330_vm13, %v20566_v57 }
 0x5f0   : > { %v8774_v50 = vpop.f32.mrf.mxu0 }
 0x5f1   : > { %v12458_v52 = vpack.c.bf16 %v8774_v50, %v8774_v50 }
 0x5f2   : > { %v8776_v42 = vpop.f32.mrf.mxu0 }
 0x5f3   : > { %8933 = vst.msk [vmem:[#allocation4] sm:$0xf] %vm783_vm3, %v12458_v52 }
 0x5f4   : > { %v8777_v10 = vpop.f32.mrf.mxu0 }
 0x5f5   : > { %v12459_v20 = vpack.c.bf16 %v8777_v10, %v8777_v10 }
 0x5f6   : > { %v8779_v44 = vpop.f32.mrf.mxu0 }
 0x5f7   : > { %8934 = vst.msk [vmem:[#allocation4 + $0x4] sm:$0xf] %vm783_vm3, %v12459_v20 }
 0x5f8   : > { %v8782_v32 = vpop.f32.mrf.mxu0 }
 0x5f9   : > { %v12460_v45 = vpack.c.bf16 %v8782_v32, %v8782_v32 }
 0x5fa   : > { %v8784_v33 = vpop.f32.mrf.mxu0  ;;  %v8953_v18 = vld [vmem:[#allocation4] sm:$0xf] }
 0x5fb   : > { %8935 = vst.msk [vmem:[#allocation4 + $0x8] sm:$0xf] %vm783_vm3, %v12460_v45  ;;  %v9312_v6 = vld [vmem:[#allocation4] sm:$0xe] }
 0x5fc   : > { %v8785_v61 = vpop.f32.mrf.mxu0 }
 0x5fd   : > { %v12461_v56 = vpack.c.bf16 %v8785_v61, %v8785_v61 }
 0x5fe   : > { %v8787_v24 = vpop.f32.mrf.mxu0  ;;  %v8954_v26 = vld [vmem:[#allocation4 + $0x4] sm:$0xf] }
 0x5ff   : > { %8936 = vst.msk [vmem:[#allocation4 + $0xc] sm:$0xf] %vm783_vm3, %v12461_v56  ;;  %v18750_v23 = vcombine.low %v8953_v18, %v8954_v26  ;;  %v12285_v0 = vcombine.low %v9312_v6, %v8954_v26 }
 0x600   : > { %v8790_v58 = vpop.f32.mrf.mxu0 }
 0x601   : > { %v12462_v47 = vpack.c.bf16 %v8790_v58, %v8790_v58  ;;  %v9018_v15 = vshll.u32 %v18750_v23, 16  ;;  %v9321_v4 = vrot.slane %v12285_v0, 1  ;;  %v9016_v12 = vshrl.u32 %v18750_v23, 16 }
 0x602   : > { %v8792_v19 = vpop.f32.mrf.mxu0  ;;  %v9916_v41 = vld [vmem:[#allocation4 + $0x8] sm:$0xe] }
 0x603   : > { %8937 = vst.msk [vmem:[#allocation4 + $0x10] sm:$0xf] %vm783_vm3, %v12462_v47  ;;  %v9020_v11 = vrot.slane %v9018_v15, 1 }
 0x604   : > { %v8793_v63 = vpop.f32.mrf.mxu0 }
 0x605   : > { %v12463_v13 = vpack.c.bf16 %v8793_v63, %v8793_v63  ;;  %v9021_v54 = vor.u32 %v9020_v11, %v9016_v12 }
 0x606   : > { %v8795_v30 = vpop.f32.mrf.mxu0  ;;  %v18754_v46 = vld [vmem:[#allocation4 + $0x8] sm:$0xff]  }
 0x607   : > { %8938 = vst.msk [vmem:[#allocation4 + $0x14] sm:$0xf] %vm783_vm3, %v12463_v13  ;;  %v9322_v2 = vrot.slane %v18754_v46, 1  ;;  %v9023_v28 = vshll.u32 %v18754_v46, 16  ;;  %v18763_v53 = vld [vmem:[#allocation4 + $0xc] sm:$0xf] }
 0x608   : > { %v8798_v48 = vpop.f32.mrf.mxu0  ;;  %v12340_v40 = vcombine.low %v9916_v41, %v18763_v53  ;;  %v9027_v35 = vshrl.u32 %v18754_v46, 16 }
 0x609   : > { %v12464_v22 = vpack.c.bf16 %v8798_v48, %v8798_v48  ;;  %v9323_v62 = vsel %vm1396_vm2, %v9321_v4, %v9322_v2  ;;  %v9025_v17 = vrot.slane %v9023_v28, 1 }
 0x60a   : > { %v8800_v25 = vpop.f32.mrf.mxu0  ;;  %13487 = vmatmul.mubr.msk.bf16.vlgmr.msra.gmra.mxu0 %vm774_vm4, %v9323_v62  ;;  %v9925_v7 = vrot.slane %v12340_v40, 1 }
 0x60b   : > { %8939 = vst.msk [vmem:[#allocation4 + $0x18] sm:$0xf] %vm783_vm3, %v12464_v22  ;;  %v9026_v8 = vsel %vm899_vm0, %v9021_v54, %v9025_v17  ;;  %13490 = vmatprep.mubr.msk.bf16.mxu0 %vm14330_vm13, %v20566_v57  ;;  %13547 = vmatpush3.bf16.msra.mxu0 %v14009_v43  ;;  %v9029_v59 = vor.u32 %v9027_v35, %v9025_v17 }
 0x60c   : > { %v8801_v60 = vpop.f32.mrf.mxu0  ;;  %13423 = vmatmul.mubr.msk.bf16.vlgmr.msra.gmra.mxu1 %vm774_vm4, %v9026_v8  ;;  %13548 = vmatprep.subr.bf16.mxu0 %v20566_v57 }
 0x60d   : > { %v12465_v36 = vpack.c.bf16 %v8801_v60, %v8801_v60  ;;  %13451 = vmatpush3.bf16.msra.mxu1 %v14001_v51  ;;  %13426 = vmatprep.mubr.msk.bf16.mxu1 %vm14330_vm13, %v20566_v57 }
 0x60e   : > { %v8803_v5 = vpop.f32.mrf.mxu0  ;;  %v18783_v55 = vld [vmem:[#allocation4 + $0x10] sm:$0xff]   ;;  %13452 = vmatprep.subr.bf16.mxu1 %v20566_v57 }
 0x60f   : > { %8940 = vst.msk [vmem:[#allocation4 + $0x1c] sm:$0xf] %vm783_vm3, %v12465_v36  ;;  %v18789_v9 = vld [vmem:[#allocation4 + $0x10] sm:$0xff]   ;;  %v9324_v16 = vrot.slane %v18783_v55, 1  ;;  %v9031_v21 = vshll.u32 %v18783_v55, 16  ;;  %13549 = vmatpush3.bf16.msra.mxu0 %v14010_v37  ;;  %v9035_v32 = vshrl.u32 %v18783_v55, 16 }
 0x610   : > { %v8806_v49 = vpop.f32.mrf.mxu0  ;;  %13610 = vmatprep.subr.bf16.mxu0 %v20566_v57  ;;  %v9926_v34 = vrot.slane %v18789_v9, 1 }
 0x611   : > { %v12466_v1 = vpack.c.bf16 %v8806_v49, %v8806_v49  ;;  %v9325_v31 = vsel %vm1396_vm2, %v9322_v2, %v9324_v16  ;;  %v9033_v29 = vrot.slane %v9031_v21, 1  ;;  %13453 = vmatpush3.bf16.msra.mxu1 %v14005_v27 }
 0x612   : > { %v8808_v39 = vpop.f32.mrf.mxu0  ;;  %13491 = vmatmul.mubr.msk.bf16.gmra.mxu0 %vm774_vm4, %v9325_v31  ;;  %13514 = vmatprep.subr.bf16.mxu1 %v20566_v57  ;;  %v18801_v38 = vsel %vm1396_vm2, %v9925_v7, %v9926_v34 }
 0x613   : > { %8941 = vst.msk [vmem:[#allocation4 + $0x20] sm:$0xf] %vm783_vm3, %v12466_v1  ;;  %v9034_v3 = vsel %vm899_vm0, %v9029_v59, %v9033_v29  ;;  %13494 = vmatprep.mubr.msk.bf16.mxu0 %vm14330_vm13, %v20566_v57  ;;  %v9037_v18 = vor.u32 %v9035_v32, %v9033_v29 }
 0x614   : > { %v8809_v14 = vpop.f32.mrf.mxu0  ;;  %13427 = vmatmul.mubr.msk.bf16.gmra.mxu1 %vm774_vm4, %v9034_v3 }
 0x615   : > { %v12467_v50 = vpack.c.bf16 %v8809_v14, %v8809_v14  ;;  %13430 = vmatprep.mubr.msk.bf16.mxu1 %vm14330_vm13, %v20566_v57 }
 0x616   : > { %v8811_v52 = vpop.f32.mrf.mxu0  ;;  %v18807_v42 = vld [vmem:[#allocation4 + $0x18] sm:$0xff]  }
 0x617   : > { %8942 = vst.msk [vmem:[#allocation4 + $0x24] sm:$0xf] %vm783_vm3, %v12467_v50  ;;  %v18812_v10 = vld [vmem:[#allocation4 + $0x18] sm:$0xff]   ;;  %v9326_v44 = vrot.slane %v18807_v42, 1  ;;  %v9039_v45 = vshll.u32 %v18807_v42, 16  ;;  %v9043_v11 = vshrl.u32 %v18807_v42, 16 }
 0x618   : > { %v8814_v20 = vpop.f32.mrf.mxu0  ;;  %v9928_v61 = vrot.slane %v18812_v10, 1 }
 0x619   : > { %v12468_v33 = vpack.c.bf16 %v8814_v20, %v8814_v20  ;;  %v9327_v24 = vsel %vm1396_vm2, %v9324_v16, %v9326_v44  ;;  %v9041_v26 = vrot.slane %v9039_v45, 1 }
 0x61a   : > { %v8816_v56 = vpop.f32.mrf.mxu0  ;;  %13495 = vmatmul.mubr.msk.bf16.gmra.mxu0 %vm774_vm4, %v9327_v24  ;;  %v18822_v58 = vsel %vm1396_vm2, %v9926_v34, %v9928_v61  ;;  %v9662_v24 = vld [vmem:[#allocation4 + $0x8] sm:$0xf] }
 0x61b   : > { %8943 = vst.msk [vmem:[#allocation4 + $0x28] sm:$0xf] %vm783_vm3, %v12468_v33  ;;  %v9042_v19 = vsel %vm899_vm0, %v9037_v18, %v9041_v26  ;;  %13498 = vmatprep.mubr.msk.bf16.mxu0 %vm14330_vm13, %v20566_v57  ;;  %v9045_v43 = vor.u32 %v9043_v11, %v9041_v26 }
 0x61c   : > { %v8817_v47 = vpop.f32.mrf.mxu0  ;;  %13431 = vmatmul.mubr.msk.bf16.gmra.mxu1 %vm774_vm4, %v9042_v19 }
 0x61d   : > { %v12469_v15 = vpack.c.bf16 %v8817_v47, %v8817_v47  ;;  %13434 = vmatprep.mubr.msk.bf16.mxu1 %vm14330_vm13, %v20566_v57 }
 0x61e   : > { %v8819_v6 = vpop.f32.mrf.mxu0  ;;  %v18828_v63 = vld [vmem:[#allocation4 + $0x20] sm:$0xff]  }
 0x61f   : > { %8944 = vst.msk [vmem:[#allocation4 + $0x2c] sm:$0xf] %vm783_vm3, %v12469_v15  ;;  %v18833_v0 = vld [vmem:[#allocation4 + $0x20] sm:$0xff]   ;;  %v9328_v30 = vrot.slane %v18828_v63, 1  ;;  %v9047_v48 = vshll.u32 %v18828_v63, 16  ;;  %v9051_v36 = vshrl.u32 %v18828_v63, 16  ;;  %v12319_v15 = vcombine.low %v9662_v24, %v18763_v53 }
 0x620   : > { %v8822_v13 = vpop.f32.mrf.mxu0  ;;  %v9930_v2 = vrot.slane %v18833_v0, 1 }
 0x621   : > { %v12470_v4 = vpack.c.bf16 %v8822_v13, %v8822_v13  ;;  %v9329_v28 = vsel %vm1396_vm2, %v9326_v44, %v9328_v30  ;;  %v9049_v22 = vrot.slane %v9047_v48, 1 }
 0x622   : > { %v8824_v12 = vpop.f32.mrf.mxu0  ;;  %13499 = vmatmul.mubr.msk.bf16.gmra.mxu0 %vm774_vm4, %v9329_v28  ;;  %v18843_v25 = vsel %vm1396_vm2, %v9928_v61, %v9930_v2 }
 0x623   : > { %8945 = vst.msk [vmem:[#allocation4 + $0x30] sm:$0xf] %vm783_vm3, %v12470_v4  ;;  %v9050_v54 = vsel %vm899_vm0, %v9045_v43, %v9049_v22  ;;  %13502 = vmatprep.mubr.msk.bf16.mxu0 %vm14330_vm13, %v20566_v57  ;;  %v9053_v35 = vor.u32 %v9051_v36, %v9049_v22 }
 0x624   : > { %v8825_v62 = vpop.f32.mrf.mxu0  ;;  %13435 = vmatmul.mubr.msk.bf16.gmra.mxu1 %vm774_vm4, %v9050_v54 }
 0x625   : > { %v12471_v17 = vpack.c.bf16 %v8825_v62, %v8825_v62  ;;  %13438 = vmatprep.mubr.msk.bf16.mxu1 %vm14330_vm13, %v20566_v57  ;;  %v9728_v62 = vshll.u32 %v18789_v9, 16 }
 0x626   : > { %v8827_v51 = vpop.f32.mrf.mxu0  ;;  %v18849_v60 = vld [vmem:[#allocation4 + $0x28] sm:$0xff]  }
 0x627   : > { %8946 = vst.msk [vmem:[#allocation4 + $0x34] sm:$0xf] %vm783_vm3, %v12471_v17  ;;  %v18854_v8 = vld [vmem:[#allocation4 + $0x28] sm:$0xff]   ;;  %v9330_v41 = vrot.slane %v18849_v60, 1  ;;  %v9055_v27 = vshll.u32 %v18849_v60, 16  ;;  %v9059_v50 = vshrl.u32 %v18849_v60, 16 }
 0x628   : > { %v8830_v37 = vpop.f32.mrf.mxu0  ;;  %v9932_v5 = vrot.slane %v18854_v8, 1 }
 0x629   : > { %v12472_v40 = vpack.c.bf16 %v8830_v37, %v8830_v37  ;;  %v9331_v16 = vsel %vm1396_vm2, %v9328_v30, %v9330_v41  ;;  %v9057_v21 = vrot.slane %v9055_v27, 1  ;;  %v9721_v27 = vshrl.u32 %v12319_v15, 16 }
 0x62a   : > { %v8832_v49 = vpop.f32.mrf.mxu0  ;;  %13503 = vmatmul.mubr.msk.bf16.gmra.mxu0 %vm774_vm4, %v9331_v16  ;;  %v18864_v1 = vsel %vm1396_vm2, %v9930_v2, %v9932_v5  ;;  %v9723_v2 = vshll.u32 %v12319_v15, 16  ;;  %v14021_v16 = vld [vmem:[%s20092_s15 + $0x68] sm:$0xff]  }
 0x62b   : > { %8947 = vst.msk [vmem:[#allocation4 + $0x38] sm:$0xf] %vm783_vm3, %v12472_v40  ;;  %v9058_v34 = vsel %vm899_vm0, %v9053_v35, %v9057_v21  ;;  %13506 = vmatprep.mubr.msk.bf16.mxu0 %vm14330_vm13, %v20566_v57  ;;  %v9061_v33 = vor.u32 %v9059_v50, %v9057_v21  ;;  %v9730_v40 = vrot.slane %v9728_v62, 1  ;;  %v14013_v21 = vld [vmem:[%s20092_s15 + $0x38] sm:$0xff]   ;;  %v14030_v62 = vld [vmem:[#allocation4 + $0x28] sm:$0xff]  }
 0x62c   : > { %v8833_v7 = vpop.f32.mrf.mxu0  ;;  %13439 = vmatmul.mubr.msk.bf16.gmra.mxu1 %vm774_vm4, %v9058_v34  ;;  %v14022_v34 = vld [vmem:[%s20092_s15 + $0x60] sm:$0xff]  }
 0x62d   : > { %v12473_v39 = vpack.c.bf16 %v8833_v7, %v8833_v7  ;;  %13442 = vmatprep.mubr.msk.bf16.mxu1 %vm14330_vm13, %v20566_v57  ;;  %v9736_v7 = vshll.u32 %v18812_v10, 16 }
 0x62e   : > { %v8835_v31 = vpop.f32.mrf.mxu0  ;;  %v18870_v59 = vld [vmem:[#allocation4 + $0x30] sm:$0xff]  }
 0x62f   : > { %8948 = vst.msk [vmem:[#allocation4 + $0x3c] sm:$0xf] %vm783_vm3, %v12473_v39  ;;  %v18875_v29 = vld [vmem:[#allocation4 + $0x30] sm:$0xff]   ;;  %v9332_v3 = vrot.slane %v18870_v59, 1  ;;  %v9063_v52 = vshll.u32 %v18870_v59, 16  ;;  %v9067_v48 = vshrl.u32 %v18870_v59, 16 }
 0x630   : > { %v8838_v14 = vpop.f32.mrf.mxu0  ;;  %v9934_v44 = vrot.slane %v18875_v29, 1  ;;  %v9732_v31 = vshrl.u32 %v18789_v9, 16  ;;  %v9740_v9 = vshrl.u32 %v18812_v10, 16  ;;  %v9760_v24 = vshll.u32 %v18875_v29, 16 }
 0x631   : > { %v12474_v20 = vpack.c.bf16 %v8838_v14, %v8838_v14  ;;  %v9333_v45 = vsel %vm1396_vm2, %v9330_v41, %v9332_v3  ;;  %v9065_v61 = vrot.slane %v9063_v52, 1  ;;  %v9725_v41 = vrot.slane %v9723_v2, 1  ;;  %v14024_v2 = vld [vmem:[#allocation4 + $0x8] sm:$0xff]  }
 0x632   : > { %v8840_v32 = vpop.f32.mrf.mxu0  ;;  %v14008_v56 = vld [vmem:[#allocation4 + $0x38] ss:$0 sps:$4 sm:$0x11]   ;;  %13507 = vmatmul.mubr.msk.bf16.gmra.mxu0 %vm774_vm4, %v9333_v45  ;;  %v18885_v18 = vsel %vm1396_vm2, %v9932_v5, %v9934_v44  ;;  %v9738_v14 = vrot.slane %v9736_v7, 1  ;;  %v9734_v52 = vor.u32 %v9732_v31, %v9730_v40  ;;  %v14044_v31 = vld [vmem:[%s20092_s15 + $0x78] sm:$0xff]  }
 0x633   : > { %8949 = vst.msk [vmem:[#allocation4 + $0x40] sm:$0xf] %vm783_vm3, %v12474_v20  ;;  %v9066_v47 = vsel %vm899_vm0, %v9061_v33, %v9065_v61  ;;  %13510 = vmatprep.mubr.msk.bf16.mxu0 %vm14330_vm13, %v20566_v57  ;;  %v9071_v19 = vshll.u32 %v14008_v56, 16  ;;  %v9334_v13 = vrot.slane %v14008_v56, 1  ;;  %v9069_v22 = vor.u32 %v9067_v48, %v9065_v61 }
 0x634   : > { %v8841_v26 = vpop.f32.mrf.mxu0  ;;  %13443 = vmatmul.mubr.msk.bf16.gmra.mxu1 %vm774_vm4, %v9066_v47  ;;  %v9726_v49 = vor.u32 %v9725_v41, %v9721_v27  ;;  %v9744_v20 = vshll.u32 %v18833_v0, 16  ;;  %v9742_v32 = vor.u32 %v9740_v9, %v9738_v14  ;;  %v9752_v33 = vshll.u32 %v18854_v8, 16  ;;  %v19096_v9 = vld [vmem:[#allocation4 + $0x30] sm:$0xff]  }
 0x635   : > { %v12475_v6 = vpack.c.bf16 %v8841_v26, %v8841_v26  ;;  %13446 = vmatprep.mubr.msk.bf16.mxu1 %vm14330_vm13, %v20566_v57  ;;  %v9073_v4 = vrot.slane %v9071_v19, 1  ;;  %v9335_v43 = vsel %vm1396_vm2, %v9332_v3, %v9334_v13  ;;  %v14017_v3 = vld [vmem:[%s20092_s15 + $0x30] sm:$0xff]  }
 0x636   : > { %v18894_v30 = vld [vmem:[#allocation4 + $0x38] sm:$0xff]   ;;  %v8843_v11 = vpop.f32.mrf.mxu0  ;;  %v9731_v35 = vsel %vm899_vm0, %v9726_v49, %v9730_v40  ;;  %v9754_v10 = vrot.slane %v9752_v33, 1  ;;  %v19053_v40 = vld [vmem:[#allocation4 + $0x14] sm:$0xf] }
 0x637   : > { %8950 = vst.msk [vmem:[#allocation4 + $0x44] sm:$0xf] %vm783_vm3, %v12475_v6  ;;  %v9936_v28 = vrot.slane %v18894_v30, 1  ;;  %v9074_v37 = vsel %vm899_vm0, %v9069_v22, %v9073_v4  ;;  %v9768_v19 = vshll.u32 %v18894_v30, 16  ;;  %v14025_v4 = vld [vmem:[%s20092_s15 + $0x58] sm:$0xff]   ;;  %v14029_v22 = vld [vmem:[#allocation4 + $0x18] sm:$0xff]  }
 0x638   : > { %v8846_v12 = vpop.f32.mrf.mxu0  ;;  %v14035_v41 = vld [vmem:[#allocation4 + $0x38] sm:$0xff]  }
 0x639   : > { %v12476_v53 = vpack.c.bf16 %v8846_v12, %v8846_v12  ;;  %v18904_v51 = vsel %vm1396_vm2, %v9934_v44, %v9936_v28  ;;  %v9746_v44 = vrot.slane %v9744_v20, 1  ;;  %v14032_v12 = vld [vmem:[%s20092_s15 + $0x50] sm:$0xff]  }
 0x63a   : > { %v18901_v54 = vld [vmem:[#allocation4 + $0x40] ss:$0 sps:$4 sm:$0x11]   ;;  %v8848_v17 = vpop.f32.mrf.mxu0  ;;  %13511 = vmatmul.mubr.msk.bf16.gmra.mxu0 %vm774_vm4, %v9335_v43  ;;  %v19055_v49 = vld [vmem:[#allocation4 + $0x18] sm:$0xff]  }
 0x63b   : > { %8951 = vst.msk [vmem:[#allocation4 + $0x48] sm:$0xf] %vm783_vm3, %v12476_v53  ;;  %13550 = vmatprep.mubr.msk.bf16.mxu0 %vm14330_vm13, %v20566_v57  ;;  %v9938_v36 = vrot.slane %v18901_v54, 1  ;;  %v9747_v45 = vsel %vm899_vm0, %v9742_v32, %v9746_v44  ;;  %v9776_v13 = vshll.u32 %v18901_v54, 16  ;;  %v14027_v53 = vld [vmem:[#allocation4 + $0x10] sm:$0xff]   ;;  %v14028_v43 = vld [vmem:[#allocation4 + $0x20] sm:$0xff]  }
 0x63c   : > { %13447 = vmatmul.mubr.msk.bf16.gmra.mxu1 %vm774_vm4, %v9074_v37  ;;  %v8849_v39 = vpop.f32.mrf.mxu0  ;;  %v14031_v54 = vld [vmem:[#allocation4 + $0x20] sm:$0xff]   ;;  %v14033_v17 = vld [vmem:[#allocation4 + $0x30] sm:$0xff]   ;;  %v14034_v37 = vld [vmem:[#allocation4 + $0x28] sm:$0xff]   ;;  %v10530_v7 = vrot.slane %v19055_v49, 1 }
 0x63d   : > { %13454 = vmatprep.mubr.msk.bf16.mxu1 %vm14330_vm13, %v20566_v57  ;;  %v18916_v5 = vsel %vm1396_vm2, %v9936_v28, %v9938_v36  ;;  %v14026_v28 = vld [vmem:[#allocation4 + $0x18] sm:$0xff]   ;;  %v14036_v36 = vld [vmem:[#allocation4 + $0x30] sm:$0xff]  }
 0x63e   : > { %v8851_v50 = vpop.f32.mrf.mxu0  ;;  %v14037_v27 = vld [vmem:[#allocation4 + $0x40] sm:$0xff]   ;;  %v19107_v32 = vld [vmem:[#allocation4 + $0x38] sm:$0xff]  }
 0x63f   : > { %v14048_v50 = vld [vmem:[%s20092_s15 + $0x70] sm:$0xff]  }
 0x642   : > { %13551 = vmatmul.mubr.msk.bf16.vlgmr.msra.gmra.mxu0 %vm774_vm4, %v9731_v35  ;;  %v10520_v35 = vld [vmem:[#allocation4 + $0x10] sm:$0xe] }
 0x643   : > { %13554 = vmatprep.mubr.msk.bf16.mxu0 %vm14330_vm13, %v20566_v57  ;;  %13611 = vmatpush3.bf16.msra.mxu0 %v14021_v16  ;;  %v14039_v16 = vld [vmem:[#allocation4 + $0x38] sm:$0xff]  }
 0x644   : > { %13455 = vmatmul.mubr.msk.bf16.vlgmr.msra.gmra.mxu1 %vm774_vm4, %v18750_v23  ;;  %13612 = vmatprep.subr.bf16.mxu0 %v20566_v57  ;;  %v9739_v23 = vsel %vm899_vm0, %v9734_v52, %v9738_v14  ;;  %v19069_v14 = vld [vmem:[#allocation4 + $0x20] sm:$0xff]  }
 0x645   : > { %13515 = vmatpush3.bf16.msra.mxu1 %v14013_v21  ;;  %13458 = vmatprep.mubr.msk.bf16.mxu1 %vm14330_vm13, %v20566_v57  ;;  %v12395_v21 = vcombine.low %v10520_v35, %v19053_v40 }
 0x646   : > { %13516 = vmatprep.subr.bf16.mxu1 %v20566_v57 }
 0x647   : > { %13613 = vmatpush3.bf16.msra.mxu0 %v14022_v34  ;;  %v10529_v34 = vrot.slane %v12395_v21, 1 }
 0x648   : > { %13674 = vmatprep.subr.bf16.mxu0 %v20566_v57 }
 0x649   : > { %13517 = vmatpush3.bf16.msra.mxu1 %v14017_v3  ;;  %v10531_v39 = vsel %vm1396_vm2, %v10529_v34, %v10530_v7  ;;  %v10532_v3 = vrot.slane %v19069_v14, 1 }
 0x64a   : > { %13555 = vmatmul.mubr.msk.bf16.gmra.mxu0 %vm774_vm4, %v9739_v23  ;;  %13578 = vmatprep.subr.bf16.mxu1 %v20566_v57  ;;  %v19084_v23 = vld [vmem:[#allocation4 + $0x28] sm:$0xff]  }
 0x64b   : > { %13558 = vmatprep.mubr.msk.bf16.mxu0 %vm14330_vm13, %v20566_v57  ;;  %v10533_v52 = vsel %vm1396_vm2, %v10530_v7, %v10532_v3 }
 0x64c   : > { %13459 = vmatmul.mubr.msk.bf16.gmra.mxu1 %vm774_vm4, %v18754_v46  ;;  %v9748_v46 = vshrl.u32 %v18833_v0, 16  ;;  %v9762_v0 = vrot.slane %v9760_v24, 1 }
 0x64d   : > { %13462 = vmatprep.mubr.msk.bf16.mxu1 %vm14330_vm13, %v20566_v57 }
 0x64e   : > { %v9750_v61 = vor.u32 %v9748_v46, %v9746_v44  ;;  %v10536_v44 = vrot.slane %v19096_v9, 1 }
 0x650   : > { %v9755_v56 = vsel %vm899_vm0, %v9750_v61, %v9754_v10 }
 0x652   : > { %13559 = vmatmul.mubr.msk.bf16.gmra.mxu0 %vm774_vm4, %v9747_v45 }
 0x653   : > { %13562 = vmatprep.mubr.msk.bf16.mxu0 %vm14330_vm13, %v20566_v57 }
 0x654   : > { %13463 = vmatmul.mubr.msk.bf16.gmra.mxu1 %vm774_vm4, %v18783_v55  ;;  %v9756_v55 = vshrl.u32 %v18854_v8, 16  ;;  %v9770_v8 = vrot.slane %v9768_v19, 1 }
 0x655   : > { %13466 = vmatprep.mubr.msk.bf16.mxu1 %vm14330_vm13, %v20566_v57 }
 0x656   : > { %v9758_v26 = vor.u32 %v9756_v55, %v9754_v10 }
 0x658   : > { %v9763_v47 = vsel %vm899_vm0, %v9758_v26, %v9762_v0 }
 0x65a   : > { %13563 = vmatmul.mubr.msk.bf16.gmra.mxu0 %vm774_vm4, %v9755_v56 }
 0x65b   : > { %13566 = vmatprep.mubr.msk.bf16.mxu0 %vm14330_vm13, %v20566_v57 }
 0x65c   : > { %13467 = vmatmul.mubr.msk.bf16.gmra.mxu1 %vm774_vm4, %v18807_v42  ;;  %v9764_v42 = vshrl.u32 %v18875_v29, 16  ;;  %v9778_v29 = vrot.slane %v9776_v13, 1 }
 0x65d   : > { %13470 = vmatprep.mubr.msk.bf16.mxu1 %vm14330_vm13, %v20566_v57 }
 0x65e   : > { %v9766_v15 = vor.u32 %v9764_v42, %v9762_v0  ;;  %v19126_v0 = vld [vmem:[#allocation4 + $0x40] sm:$0xff]  }
 0x65f   : > { %v10540_v42 = vrot.slane %v19126_v0, 1 }
 0x660   : > { %v9771_v6 = vsel %vm899_vm0, %v9766_v15, %v9770_v8 }
 0x662   : > { %13567 = vmatmul.mubr.msk.bf16.gmra.mxu0 %vm774_vm4, %v9763_v47 }
 0x663   : > { %13570 = vmatprep.mubr.msk.bf16.mxu0 %vm14330_vm13, %v20566_v57 }
 0x664   : > { %13471 = vmatmul.mubr.msk.bf16.gmra.mxu1 %vm774_vm4, %v18828_v63  ;;  %v9772_v63 = vshrl.u32 %v18894_v30, 16  ;;  %v14023_v30 = vld [vmem:[#allocation4 + $0x10] sm:$0xff]  }
 0x665   : > { %13474 = vmatprep.mubr.msk.bf16.mxu1 %vm14330_vm13, %v20566_v57 }
 0x666   : > { %v9774_v11 = vor.u32 %v9772_v63, %v9770_v8 }
 0x668   : > { %v9779_v48 = vsel %vm899_vm0, %v9774_v11, %v9778_v29  ;;  %v19145_v29 = vld [vmem:[#allocation4 + $0x48] ss:$0 sps:$4 sm:$0x11]  }
 0x66a   : > { %13571 = vmatmul.mubr.msk.bf16.gmra.mxu0 %vm774_vm4, %v9771_v6 }
 0x66b   : > { %13574 = vmatprep.mubr.msk.bf16.mxu0 %vm14330_vm13, %v20566_v57 }
 0x66c   : > { %13475 = vmatmul.mubr.msk.bf16.gmra.mxu1 %vm774_vm4, %v18849_v60  ;;  %v14038_v60 = vld [vmem:[%s20092_s15 + $0x88] sm:$0xff]  }
 0x66d   : > { %13478 = vmatprep.mubr.msk.bf16.mxu1 %vm14330_vm13, %v20566_v57 }
 0x672   : > { %13575 = vmatmul.mubr.msk.bf16.gmra.mxu0 %vm774_vm4, %v9779_v48 }
 0x673   : > { %13614 = vmatprep.mubr.msk.bf16.mxu0 %vm14330_vm13, %v20566_v57 }
 0x674   : > { %13479 = vmatmul.mubr.msk.bf16.gmra.mxu1 %vm774_vm4, %v18870_v59  ;;  %v14040_v59 = vld [vmem:[%s20092_s15 + $0x80] sm:$0xff]  }
 0x675   : > { %13518 = vmatprep.mubr.msk.bf16.mxu1 %vm14330_vm13, %v20566_v57 }
 0x67a   : > { %13615 = vmatmul.mubr.msk.bf16.vlgmr.msra.gmra.mxu0 %vm774_vm4, %v14023_v30 }
 0x67b   : > { %13618 = vmatprep.mubr.msk.bf16.mxu0 %vm14330_vm13, %v20566_v57  ;;  %13675 = vmatpush3.bf16.msra.mxu0 %v14038_v60 }
 0x67c   : > { %13519 = vmatmul.mubr.msk.bf16.vlgmr.msra.gmra.mxu1 %vm774_vm4, %v14024_v2  ;;  %13676 = vmatprep.subr.bf16.mxu0 %v20566_v57  ;;  %v10542_v2 = vrot.slane %v19145_v29, 1 }
 0x67d   : > { %13579 = vmatpush3.bf16.msra.mxu1 %v14025_v4  ;;  %13522 = vmatprep.mubr.msk.bf16.mxu1 %vm14330_vm13, %v20566_v57 }
 0x67e   : > { %13580 = vmatprep.subr.bf16.mxu1 %v20566_v57 }
 0x67f   : > { %13677 = vmatpush3.bf16.msra.mxu0 %v14040_v59 }
 0x681   : > { %13581 = vmatpush3.bf16.msra.mxu1 %v14032_v12 }
 0x682   : > { %13619 = vmatmul.mubr.msk.bf16.gmra.mxu0 %vm774_vm4, %v14026_v28  ;;  %13642 = vmatprep.subr.bf16.mxu1 %v20566_v57 }
 0x683   : > { %13622 = vmatprep.mubr.msk.bf16.mxu0 %vm14330_vm13, %v20566_v57 }
 0x684   : > { %13523 = vmatmul.mubr.msk.bf16.gmra.mxu1 %vm774_vm4, %v14027_v53 }
 0x685   : > { %13526 = vmatprep.mubr.msk.bf16.mxu1 %vm14330_vm13, %v20566_v57 }
 0x68a   : > { %13623 = vmatmul.mubr.msk.bf16.gmra.mxu0 %vm774_vm4, %v14028_v43  ;;  %v10543_v43 = vsel %vm1396_vm2, %v10540_v42, %v10542_v2 }
 0x68b   : > { %13626 = vmatprep.mubr.msk.bf16.mxu0 %vm14330_vm13, %v20566_v57 }
 0x68c   : > { %13527 = vmatmul.mubr.msk.bf16.gmra.mxu1 %vm774_vm4, %v14029_v22 }
 0x68d   : > { %13530 = vmatprep.mubr.msk.bf16.mxu1 %vm14330_vm13, %v20566_v57 }
 0x692   : > { %13627 = vmatmul.mubr.msk.bf16.gmra.mxu0 %vm774_vm4, %v14030_v62 }
 0x693   : > { %13630 = vmatprep.mubr.msk.bf16.mxu0 %vm14330_vm13, %v20566_v57 }
 0x694   : > { %13531 = vmatmul.mubr.msk.bf16.gmra.mxu1 %vm774_vm4, %v14031_v54 }
 0x695   : > { %13534 = vmatprep.mubr.msk.bf16.mxu1 %vm14330_vm13, %v20566_v57 }
 0x69a   : > { %13631 = vmatmul.mubr.msk.bf16.gmra.mxu0 %vm774_vm4, %v14033_v17 }
 0x69b   : > { %13634 = vmatprep.mubr.msk.bf16.mxu0 %vm14330_vm13, %v20566_v57 }
 0x69c   : > { %13535 = vmatmul.mubr.msk.bf16.gmra.mxu1 %vm774_vm4, %v14034_v37 }
 0x69d   : > { %13538 = vmatprep.mubr.msk.bf16.mxu1 %vm14330_vm13, %v20566_v57 }
 0x6a2   : > { %13635 = vmatmul.mubr.msk.bf16.gmra.mxu0 %vm774_vm4, %v14035_v41 }
 0x6a3   : > { %13638 = vmatprep.mubr.msk.bf16.mxu0 %vm14330_vm13, %v20566_v57 }
 0x6a4   : > { %13539 = vmatmul.mubr.msk.bf16.gmra.mxu1 %vm774_vm4, %v14036_v36 }
 0x6a5   : > { %13542 = vmatprep.mubr.msk.bf16.mxu1 %vm14330_vm13, %v20566_v57 }
 0x6aa   : > { %13639 = vmatmul.mubr.msk.bf16.gmra.mxu0 %vm774_vm4, %v14037_v27 }
 0x6ab   : > { %13678 = vmatprep.mubr.msk.bf16.mxu0 %vm14330_vm13, %v20566_v57 }
 0x6ac   : > { %13543 = vmatmul.mubr.msk.bf16.gmra.mxu1 %vm774_vm4, %v14039_v16 }
 0x6ad   : > { %13582 = vmatprep.mubr.msk.bf16.mxu1 %vm14330_vm13, %v20566_v57 }
 0x6b2   : > { %13679 = vmatmul.mubr.msk.bf16.vlgmr.msra.gmra.mxu0 %vm774_vm4, %v10531_v39 }
 0x6b3   : > { %13682 = vmatprep.mubr.msk.bf16.mxu0 %vm14330_vm13, %v20566_v57 }
 0x6b4   : > { %13583 = vmatmul.mubr.msk.bf16.vlgmr.msra.gmra.mxu1 %vm774_vm4, %v18801_v38  ;;  %v10534_v38 = vrot.slane %v19084_v23, 1 }
 0x6b5   : > { %13643 = vmatpush3.bf16.msra.mxu1 %v14044_v31  ;;  %13586 = vmatprep.mubr.msk.bf16.mxu1 %vm14330_vm13, %v20566_v57 }
 0x6b6   : > { %13644 = vmatprep.subr.bf16.mxu1 %v20566_v57  ;;  %v10535_v20 = vsel %vm1396_vm2, %v10532_v3, %v10534_v38 }
 0x6b9   : > { %13645 = vmatpush3.bf16.msra.mxu1 %v14048_v50 }
 0x6ba   : > { %13683 = vmatmul.mubr.msk.bf16.gmra.mxu0 %vm774_vm4, %v10533_v52  ;;  %13706 = vmatprep.subr.mxu1 %v20566_v57 }
 0x6bb   : > { %13686 = vmatprep.mubr.msk.bf16.mxu0 %vm14330_vm13, %v20566_v57 }
 0x6bc   : > { %13587 = vmatmul.mubr.msk.bf16.gmra.mxu1 %vm774_vm4, %v18822_v58  ;;  %v10537_v58 = vsel %vm1396_vm2, %v10534_v38, %v10536_v44 }
 0x6bd   : > { %13590 = vmatprep.mubr.msk.bf16.mxu1 %vm14330_vm13, %v20566_v57 }
 0x6c2   : > { %13687 = vmatmul.mubr.msk.bf16.gmra.mxu0 %vm774_vm4, %v10535_v20  ;;  %v10336_v20 = vshrl.u32 %v19055_v49, 16 }
 0x6c3   : > { %13690 = vmatprep.mubr.msk.bf16.mxu0 %vm14330_vm13, %v20566_v57 }
 0x6c4   : > { %13591 = vmatmul.mubr.msk.bf16.gmra.mxu1 %vm774_vm4, %v18843_v25  ;;  %v10538_v25 = vrot.slane %v19107_v32, 1 }
 0x6c5   : > { %13594 = vmatprep.mubr.msk.bf16.mxu1 %vm14330_vm13, %v20566_v57 }
 0x6c6   : > { %v10539_v55 = vsel %vm1396_vm2, %v10536_v44, %v10538_v25  ;;  %v10541_v63 = vsel %vm1396_vm2, %v10538_v25, %v10540_v42 }
 0x6ca   : > { %v19109_v45 = vpop.f32.mrf.mxu0  ;;  %13691 = vmatmul.mubr.msk.bf16.gmra.mxu0 %vm774_vm4, %v10537_v58 }
 0x6cb   : > { %13694 = vmatprep.mubr.msk.bf16.mxu0 %vm14330_vm13, %v20566_v57 }
 0x6cc   : > { %v19114_v33 = vpop.f32.mrf.mxu1  ;;  %v13488_v46 = vpop.f32.mrf.mxu0  ;;  %13595 = vmatmul.mubr.msk.bf16.gmra.mxu1 %vm774_vm4, %v18864_v1 }
 0x6cd   : > { %13598 = vmatprep.mubr.msk.bf16.mxu1 %vm14330_vm13, %v20566_v57 }
 0x6ce   : > { %v13424_v10 = vpop.f32.mrf.mxu1  ;;  %v19121_v61 = vpop.f32.mrf.mxu0 }
 0x6d0   : > { %v19123_v56 = vpop.f32.mrf.mxu1  ;;  %v13489_v24 = vpop.f32.mrf.mxu0 }
 0x6d2   : > { %v13425_v26 = vpop.f32.mrf.mxu1  ;;  %v19128_v47 = vpop.f32.mrf.mxu0  ;;  %13695 = vmatmul.mubr.msk.bf16.gmra.mxu0 %vm774_vm4, %v10539_v55 }
 0x6d3   : > { %13698 = vmatprep.mubr.msk.bf16.mxu0 %vm14330_vm13, %v20566_v57  ;;  %v10348_v26 = vshll.u32 %v19084_v23, 16 }
 0x6d4   : > { %v19133_v1 = vpop.f32.mrf.mxu1  ;;  %v13492_v19 = vpop.f32.mrf.mxu0  ;;  %13599 = vmatmul.mubr.msk.bf16.gmra.mxu1 %vm774_vm4, %v18885_v18  ;;  %v10266_v18 = vld [vmem:[#allocation4 + $0x10] sm:$0xf] }
 0x6d5   : > { %13602 = vmatprep.mubr.msk.bf16.mxu1 %vm14330_vm13, %v20566_v57  ;;  %v12374_v4 = vcombine.low %v10266_v18, %v19053_v40 }
 0x6d6   : > { %v13428_v8 = vpop.f32.mrf.mxu1  ;;  %v19140_v15 = vpop.f32.mrf.mxu0 }
 0x6d7   : > { %v10327_v22 = vshll.u32 %v12374_v4, 16  ;;  %v10325_v40 = vshrl.u32 %v12374_v4, 16 }
 0x6d8   : > { %v19142_v6 = vpop.f32.mrf.mxu1  ;;  %v13493_v13 = vpop.f32.mrf.mxu0 }
 0x6d9   : > { %v10329_v41 = vrot.slane %v10327_v22, 1  ;;  %v10344_v13 = vshrl.u32 %v19069_v14, 16 }
 0x6da   : > { %v13429_v11 = vpop.f32.mrf.mxu1  ;;  %v19147_v48 = vpop.f32.mrf.mxu0  ;;  %13699 = vmatmul.mubr.msk.bf16.gmra.mxu0 %vm774_vm4, %v10541_v63  ;;  %v10350_v63 = vrot.slane %v10348_v26, 1 }
 0x6db   : > { %13702 = vmatprep.mubr.msk.bf16.mxu0 %vm14330_vm13, %v20566_v57  ;;  %v10330_v7 = vor.u32 %v10329_v41, %v10325_v40 }
 0x6dc   : > { %v19152_v60 = vpop.f32.mrf.mxu1  ;;  %v13496_v30 = vpop.f32.mrf.mxu0  ;;  %13603 = vmatmul.mubr.msk.bf16.gmra.mxu1 %vm774_vm4, %v18904_v51  ;;  %v10332_v51 = vshll.u32 %v19055_v49, 16 }
 0x6dd   : > { %13606 = vmatprep.mubr.msk.bf16.mxu1 %vm14330_vm13, %v20566_v57 }
 0x6de   : > { %v13432_v59 = vpop.f32.mrf.mxu1  ;;  %v19160_v12 = vpop.f32.mrf.mxu0  ;;  %v10334_v16 = vrot.slane %v10332_v51, 1  ;;  %v10352_v51 = vshrl.u32 %v19084_v23, 16 }
 0x6e0   : > { %v19162_v28 = vpop.f32.mrf.mxu1  ;;  %v13497_v53 = vpop.f32.mrf.mxu0  ;;  %v10335_v31 = vsel %vm899_vm0, %v10330_v7, %v10334_v16  ;;  %v10338_v25 = vor.u32 %v10336_v20, %v10334_v16  ;;  %v10354_v40 = vor.u32 %v10352_v51, %v10350_v63  ;;  %v10360_v20 = vshrl.u32 %v19096_v9, 16 }
 0x6e1   : > { %v10356_v53 = vshll.u32 %v19096_v9, 16 }
 0x6e2   : > { %v13433_v62 = vpop.f32.mrf.mxu1  ;;  %v19165_v54 = vpop.f32.mrf.mxu0  ;;  %13703 = vmatmul.mubr.msk.bf16.gmra.mxu0 %vm774_vm4, %v10543_v43 }
 0x6e4   : > { %v19169_v17 = vpop.f32.mrf.mxu1  ;;  %v13500_v37 = vpop.f32.mrf.mxu0  ;;  %13607 = vmatmul.mubr.msk.bf16.gmra.mxu1 %vm774_vm4, %v18916_v5  ;;  %v10340_v5 = vshll.u32 %v19069_v14, 16 }
 0x6e5   : > { %13646 = vmatprep.mubr.msk.bf16.mxu1 %vm14330_vm13, %v20566_v57  ;;  %v10358_v37 = vrot.slane %v10356_v53, 1 }
 0x6e6   : > { %v13436_v36 = vpop.f32.mrf.mxu1  ;;  %v19175_v27 = vpop.f32.mrf.mxu0  ;;  %v10342_v44 = vrot.slane %v10340_v5, 1 }
 0x6e7   : > { %v10359_v7 = vsel %vm899_vm0, %v10354_v40, %v10358_v37  ;;  %v10362_v26 = vor.u32 %v10360_v20, %v10358_v37  ;;  %v10376_v40 = vshrl.u32 %v19126_v0, 16 }
 0x6e8   : > { %v19177_v35 = vpop.f32.mrf.mxu1  ;;  %v13501_v21 = vpop.f32.mrf.mxu0  ;;  %v10343_v55 = vsel %vm899_vm0, %v10338_v25, %v10342_v44  ;;  %v10346_v30 = vor.u32 %v10344_v13, %v10342_v44  ;;  %v10372_v13 = vshll.u32 %v19126_v0, 16 }
 0x6ea   : > { %v13437_v34 = vpop.f32.mrf.mxu1  ;;  %v19179_v39 = vpop.f32.mrf.mxu0  ;;  %v10351_v59 = vsel %vm899_vm0, %v10346_v30, %v10350_v63 }
 0x6eb   : > { %v10364_v34 = vshll.u32 %v19107_v32, 16 }
 0x6ec   : > { %v19183_v3 = vpop.f32.mrf.mxu1  ;;  %v13504_v50 = vpop.f32.mrf.mxu0  ;;  %13647 = vmatmul.mubr.msk.bf16.vlgmr.msra.gmra.mxu1 %vm774_vm4, %v10335_v31 }
 0x6ed   : > { %13650 = vmatprep.mubr.msk.bf16.mxu1 %vm14330_vm13, %v20566_v57  ;;  %v10366_v44 = vrot.slane %v10364_v34, 1 }
 0x6ee   : > { %v13440_v52 = vpop.f32.mrf.mxu1  ;;  %v19188_v38 = vpop.f32.mrf.mxu0 }
 0x6f0   : > { %v19191_v58 = vpop.f32.mrf.mxu1  ;;  %v13505_v46 = vpop.f32.mrf.mxu0 }
 0x6f2   : > { %v13441_v10 = vpop.f32.mrf.mxu1  ;;  %v19193_v24 = vpop.f32.mrf.mxu0 }
 0x6f4   : > { %v19197_v19 = vpop.f32.mrf.mxu1  ;;  %v13508_v42 = vpop.f32.mrf.mxu0  ;;  %13651 = vmatmul.mubr.msk.bf16.gmra.mxu1 %vm774_vm4, %v10343_v55 }
 0x6f5   : > { %13654 = vmatprep.mubr.msk.bf16.mxu1 %vm14330_vm13, %v20566_v57 }
 0x6f6   : > { %v13444_v49 = vpop.f32.mrf.mxu1  ;;  %v19202_v8 = vpop.f32.mrf.mxu0 }
 0x6f8   : > { %v19205_v11 = vpop.f32.mrf.mxu1  ;;  %v13509_v18 = vpop.f32.mrf.mxu0 }
 0x6fa   : > { %v13445_v4 = vpop.f32.mrf.mxu1  ;;  %v19207_v2 = vpop.f32.mrf.mxu0 }
 0x6fb   : > { %v10368_v4 = vshrl.u32 %v19107_v32, 16 }
 0x6fc   : > { %v19211_v43 = vpop.f32.mrf.mxu1  ;;  %v13512_v22 = vpop.f32.mrf.mxu0  ;;  %13655 = vmatmul.mubr.msk.bf16.gmra.mxu1 %vm774_vm4, %v10351_v59  ;;  %v10374_v59 = vrot.slane %v10372_v13, 1 }
 0x6fd   : > { %13658 = vmatprep.mubr.msk.bf16.mxu1 %vm14330_vm13, %v20566_v57  ;;  %v10370_v51 = vor.u32 %v10368_v4, %v10366_v44 }
 0x6fe   : > { %v13448_v14 = vpop.f32.mrf.mxu1  ;;  %v19216_v62 = vpop.f32.mrf.mxu0 }
 0x700   : > { %v19219_v41 = vpop.f32.mrf.mxu1  ;;  %v13513_v36 = vpop.f32.mrf.mxu0 }
 0x702   : > { %v13449_v16 = vpop.f32.mrf.mxu1  ;;  %v19221_v21 = vpop.f32.mrf.mxu0 }
 0x703   : > { %v10380_v16 = vshll.u32 %v19145_v29, 16 }
 0x704   : > { %v9257_v31 = vpop.f32.mrf.mxu1  ;;  %v13552_v5 = vpop.f32.mrf.mxu0  ;;  %13659 = vmatmul.mubr.msk.bf16.gmra.mxu1 %vm774_vm4, %v10359_v7 }
 0x705   : > { %v9258_v50 = vadd.f32 %v9257_v31, %v19114_v33  ;;  %13662 = vmatprep.mubr.msk.bf16.mxu1 %vm14330_vm13, %v20566_v57  ;;  %v10367_v33 = vsel %vm899_vm0, %v10362_v26, %v10366_v44  ;;  %v10378_v5 = vor.u32 %v10376_v40, %v10374_v59 }
 0x706   : > { %v13456_v23 = vpop.f32.mrf.mxu1  ;;  %v19229_v52 = vpop.f32.mrf.mxu0 }
 0x707   : > { %v19233_v46 = vadd.f32 %v19109_v45, %v9258_v50  ;;  %v10382_v50 = vrot.slane %v10380_v16, 1 }
 0x708   : > { %v9260_v25 = vpop.f32.mrf.mxu1  ;;  %v13553_v10 = vpop.f32.mrf.mxu0 }
 0x709   : > { %v9261_v55 = vadd.f32 %v9260_v25, %v19123_v56 }
 0x70a   : > { %v13457_v42 = vpop.f32.mrf.mxu1  ;;  %v19236_v49 = vpop.f32.mrf.mxu0 }
 0x70b   : > { %v19241_v63 = vadd.f32 %v19121_v61, %v9261_v55 }
 0x70c   : > { %v9265_v9 = vpop.f32.mrf.mxu1  ;;  %v13556_v18 = vpop.f32.mrf.mxu0  ;;  %13663 = vmatmul.mubr.msk.bf16.gmra.mxu1 %vm774_vm4, %v10367_v33 }
 0x70d   : > { %v9266_v45 = vadd.f32 %v9265_v9, %v19133_v1  ;;  %13666 = vmatprep.mubr.msk.bf16.mxu1 %vm14330_vm13, %v20566_v57  ;;  %v10375_v1 = vsel %vm899_vm0, %v10370_v51, %v10374_v59 }
 0x70e   : > { %v13460_v56 = vpop.f32.mrf.mxu1  ;;  %v19247_v30 = vpop.f32.mrf.mxu0 }
 0x70f   : > { %v19251_v53 = vadd.f32 %v19128_v47, %v9266_v45 }
 0x710   : > { %v9268_v61 = vpop.f32.mrf.mxu1  ;;  %v13557_v22 = vpop.f32.mrf.mxu0 }
 0x711   : > { %v9269_v14 = vadd.f32 %v9268_v61, %v19142_v6 }
 0x712   : > { %v13461_v37 = vpop.f32.mrf.mxu1  ;;  %v19254_v36 = vpop.f32.mrf.mxu0 }
 0x713   : > { %v19260_v32 = vadd.f32 %v19140_v15, %v9269_v14 }
 0x714   : > { %v9273_v7 = vpop.f32.mrf.mxu1  ;;  %v13560_v47 = vpop.f32.mrf.mxu0  ;;  %13667 = vmatmul.mubr.msk.bf16.gmra.mxu1 %vm774_vm4, %v10375_v1 }
 0x715   : > { %v9274_v34 = vadd.f32 %v9273_v7, %v19152_v60  ;;  %13670 = vmatprep.mubr.msk.bf16.mxu1 %vm14330_vm13, %v20566_v57  ;;  %v10383_v60 = vsel %vm899_vm0, %v10378_v5, %v10382_v50 }
 0x716   : > { %v13464_v6 = vpop.f32.mrf.mxu1  ;;  %v19266_v31 = vpop.f32.mrf.mxu0 }
 0x717   : > { %v19269_v0 = vadd.f32 %v19147_v48, %v9274_v34 }
 0x718   : > { %v9276_v29 = vpop.f32.mrf.mxu1  ;;  %v13561_v15 = vpop.f32.mrf.mxu0 }
 0x719   : > { %v9277_v23 = vadd.f32 %v9276_v29, %v19162_v28 }
 0x71a   : > { %v13465_v20 = vpop.f32.mrf.mxu1  ;;  %v19272_v44 = vpop.f32.mrf.mxu0 }
 0x71b   : > { %v19276_v25 = vadd.f32 %v19160_v12, %v9277_v23 }
 0x71c   : > { %v9281_v10 = vpop.f32.mrf.mxu1  ;;  %v13564_v55 = vpop.f32.mrf.mxu0  ;;  %13671 = vmatmul.mubr.msk.bf16.gmra.mxu1 %vm774_vm4, %v10383_v60 }
 0x71d   : > { %v9282_v26 = vadd.f32 %v9281_v10, %v19169_v17  ;;  %13714 = vmatprep.mubr.msk.f32.mxu1 %vm14330_vm13, %v20566_v57 }
 0x71e   : > { %v13468_v48 = vpop.f32.mrf.mxu1  ;;  %v19282_v42 = vpop.f32.mrf.mxu0 }
 0x71f   : > { %v19285_v28 = vadd.f32 %v19165_v54, %v9282_v26 }
 0x720   : > { %v9284_v33 = vpop.f32.mrf.mxu1  ;;  %v13565_v13 = vpop.f32.mrf.mxu0 }
 0x721   : > { %v9285_v12 = vadd.f32 %v9284_v33, %v19177_v35 }
 0x722   : > { %v13469_v9 = vpop.f32.mrf.mxu1  ;;  %v19288_v18 = vpop.f32.mrf.mxu0 }
 0x723   : > { %v19291_v45 = vadd.f32 %v19175_v27, %v9285_v12 }
 0x724   : > { %v9289_v17 = vpop.f32.mrf.mxu1  ;;  %v13568_v56 = vpop.f32.mrf.mxu0 }
 0x725   : > { %v9290_v4 = vadd.f32 %v9289_v17, %v19183_v3 }
 0x726   : > { %v13472_v59 = vpop.f32.mrf.mxu1  ;;  %v19294_v61 = vpop.f32.mrf.mxu0 }
 0x727   : > { %v19297_v54 = vadd.f32 %v19179_v39, %v9290_v4 }
 0x728   : > { %v9292_v22 = vpop.f32.mrf.mxu1  ;;  %v13569_v14 = vpop.f32.mrf.mxu0 }
 0x729   : > { %v9293_v35 = vadd.f32 %v9292_v22, %v19191_v58 }
 0x72a   : > { %v13473_v51 = vpop.f32.mrf.mxu1  ;;  %v19300_v37 = vpop.f32.mrf.mxu0 }
 0x72b   : > { %v19303_v27 = vadd.f32 %v19188_v38, %v9293_v35 }
 0x72c   : > { %v9297_v1 = vpop.f32.mrf.mxu1  ;;  %v13572_v40 = vpop.f32.mrf.mxu0 }
 0x72d   : > { %v9298_v3 = vadd.f32 %v9297_v1, %v19197_v19 }
 0x72e   : > { %v13476_v16 = vpop.f32.mrf.mxu1  ;;  %v19306_v7 = vpop.f32.mrf.mxu0 }
 0x72f   : > { %v19309_v39 = vadd.f32 %v19193_v24, %v9298_v3 }
 0x730   : > { %v9300_v47 = vpop.f32.mrf.mxu1  ;;  %v13573_v34 = vpop.f32.mrf.mxu0 }
 0x731   : > { %v9301_v58 = vadd.f32 %v9300_v47, %v19205_v11 }
 0x732   : > { %v13477_v6 = vpop.f32.mrf.mxu1  ;;  %v19312_v5 = vpop.f32.mrf.mxu0 }
 0x733   : > { %v19315_v38 = vadd.f32 %v19202_v8, %v9301_v58 }
 0x734   : > { %v9305_v50 = vpop.f32.mrf.mxu1  ;;  %v13576_v29 = vpop.f32.mrf.mxu0 }
 0x735   : > { %v9306_v19 = vadd.f32 %v9305_v50, %v19211_v43 }
 0x736   : > { %v13480_v15 = vpop.f32.mrf.mxu1  ;;  %v19318_v23 = vpop.f32.mrf.mxu0 }
 0x737   : > { %v19321_v24 = vadd.f32 %v19207_v2, %v9306_v19 }
 0x738   : > { %v9308_v20 = vpop.f32.mrf.mxu1  ;;  %v13577_v60 = vpop.f32.mrf.mxu0 }
 0x739   : > { %v9309_v11 = vadd.f32 %v9308_v20, %v19219_v41 }
 0x73a   : > { %v13481_v10 = vpop.f32.mrf.mxu1  ;;  %v19324_v55 = vpop.f32.mrf.mxu0 }
 0x73b   : > { %v19327_v8 = vadd.f32 %v19216_v62, %v9309_v11 }
 0x73c   : > { %v9593_v26 = vpop.f32.mrf.mxu1  ;;  %v13616_v48 = vpop.f32.mrf.mxu0 }
 0x73d   : > { %v9648_v43 = vadd.f32 %v9593_v26, %v19233_v46 }
 0x73e   : > { %v13520_v33 = vpop.f32.mrf.mxu1  ;;  %v19330_v13 = vpop.f32.mrf.mxu0 }
 0x73f   : > { %v19333_v2 = vadd.f32 %v19221_v21, %v9648_v43 }
 0x740   : > { %v9596_v12 = vpop.f32.mrf.mxu1  ;;  %v13617_v9 = vpop.f32.mrf.mxu0 }
 0x741   : > { %v9649_v41 = vadd.f32 %v9596_v12, %v19241_v63 }
 0x742   : > { %v13521_v17 = vpop.f32.mrf.mxu1  ;;  %v19336_v56 = vpop.f32.mrf.mxu0 }
 0x743   : > { %v19339_v62 = vadd.f32 %v19229_v52, %v9649_v41  ;;  %v10822_v52 = vld [vmem:[%s20096_s19 + $0x18] sm:$0xff] }
 0x744   : > { %v9601_v4 = vpop.f32.mrf.mxu1  ;;  %v13620_v59 = vpop.f32.mrf.mxu0  ;;  %13707 = vmatpush3.msra.mxu1 %v10822_v52 }
 0x745   : > { %v9650_v46 = vadd.f32 %v9601_v4, %v19251_v53  ;;  %13708 = vmatprep.subr.mxu1 %v20566_v57 }
 0x746   : > { %v13524_v22 = vpop.f32.mrf.mxu1  ;;  %v19342_v14 = vpop.f32.mrf.mxu0 }
 0x747   : > { %v19345_v21 = vadd.f32 %v19236_v49, %v9650_v46 }
 0x748   : > { %v9604_v35 = vpop.f32.mrf.mxu1  ;;  %v13621_v51 = vpop.f32.mrf.mxu0 }
 0x749   : > { %v9651_v63 = vadd.f32 %v9604_v35, %v19260_v32 }
 0x74a   : > { %v13525_v1 = vpop.f32.mrf.mxu1  ;;  %v19348_v40 = vpop.f32.mrf.mxu0 }
 0x74b   : > { %v19354_v3 = vadd.f32 %v19247_v30, %v9651_v63 }
 0x74c   : > { %v9609_v53 = vpop.f32.mrf.mxu1  ;;  %v13624_v16 = vpop.f32.mrf.mxu0 }
 0x74d   : > { %v9652_v49 = vadd.f32 %v9609_v53, %v19269_v0 }
 0x74e   : > { %v13528_v47 = vpop.f32.mrf.mxu1  ;;  %v19358_v34 = vpop.f32.mrf.mxu0 }
 0x74f   : > { %v19361_v32 = vadd.f32 %v19254_v36, %v9652_v49 }
 0x750   : > { %v9612_v58 = vpop.f32.mrf.mxu1  ;;  %v13625_v6 = vpop.f32.mrf.mxu0 }
 0x751   : > { %v9653_v50 = vadd.f32 %v9612_v58, %v19276_v25 }
 0x752   : > { %v13529_v29 = vpop.f32.mrf.mxu1  ;;  %v19364_v30 = vpop.f32.mrf.mxu0 }
 0x753   : > { %v19367_v19 = vadd.f32 %v19266_v31, %v9653_v50  ;;  %v10821_v31 = vld [vmem:[%s20096_s19 + $0x10] sm:$0xff] }
 0x754   : > { %v9617_v15 = vpop.f32.mrf.mxu1  ;;  %v13628_v20 = vpop.f32.mrf.mxu0  ;;  %13709 = vmatpush3.msra.mxu1 %v10821_v31 }
 0x755   : > { %v9654_v0 = vadd.f32 %v9617_v15, %v19285_v28  ;;  %13710 = vmatprep.subr.mxu1 %v20566_v57 }
 0x756   : > { %v13532_v60 = vpop.f32.mrf.mxu1  ;;  %v19370_v11 = vpop.f32.mrf.mxu0 }
 0x757   : > { %v19373_v36 = vadd.f32 %v19272_v44, %v9654_v0 }
 0x758   : > { %v9620_v10 = vpop.f32.mrf.mxu1  ;;  %v13629_v26 = vpop.f32.mrf.mxu0 }
 0x759   : > { %v9655_v25 = vadd.f32 %v9620_v10, %v19291_v45 }
 0x75a   : > { %v13533_v48 = vpop.f32.mrf.mxu1  ;;  %v19376_v43 = vpop.f32.mrf.mxu0 }
 0x75b   : > { %v19382_v33 = vadd.f32 %v19282_v42, %v9655_v25 }
 0x75c   : > { %v9625_v28 = vpop.f32.mrf.mxu1  ;;  %v13632_v12 = vpop.f32.mrf.mxu0 }
 0x75d   : > { %v9656_v44 = vadd.f32 %v9625_v28, %v19297_v54 }
 0x75e   : > { %v13536_v9 = vpop.f32.mrf.mxu1  ;;  %v19386_v41 = vpop.f32.mrf.mxu0 }
 0x75f   : > { %v19389_v45 = vadd.f32 %v19288_v18, %v9656_v44  ;;  %v10820_v18 = vld [vmem:[%s20096_s19 + $0x8] sm:$0xff] }
 0x760   : > { %v9628_v17 = vpop.f32.mrf.mxu1  ;;  %v13633_v4 = vpop.f32.mrf.mxu0  ;;  %13711 = vmatpush3.msra.mxu1 %v10820_v18 }
 0x761   : > { %v9657_v59 = vadd.f32 %v9628_v17, %v19303_v27  ;;  %13712 = vmatprep.subr.mxu1 %v20566_v57 }
 0x762   : > { %v13537_v46 = vpop.f32.mrf.mxu1  ;;  %v19392_v42 = vpop.f32.mrf.mxu0 }
 0x763   : > { %v19395_v22 = vadd.f32 %v19294_v61, %v9657_v59 }
 0x764   : > { %v9633_v35 = vpop.f32.mrf.mxu1  ;;  %v13636_v51 = vpop.f32.mrf.mxu0 }
 0x765   : > { %v9658_v54 = vadd.f32 %v9633_v35, %v19309_v39 }
 0x766   : > { %v13540_v63 = vpop.f32.mrf.mxu1  ;;  %v19398_v1 = vpop.f32.mrf.mxu0 }
 0x767   : > { %v19404_v52 = vadd.f32 %v19300_v37, %v9658_v54 }
 0x768   : > { %v9636_v27 = vpop.f32.mrf.mxu1  ;;  %v13637_v53 = vpop.f32.mrf.mxu0 }
 0x769   : > { %v9659_v61 = vadd.f32 %v9636_v27, %v19315_v38 }
 0x76a   : > { %v13541_v16 = vpop.f32.mrf.mxu1  ;;  %v19408_v49 = vpop.f32.mrf.mxu0 }
 0x76b   : > { %v19411_v39 = vadd.f32 %v19306_v7, %v9659_v61 }
 0x76c   : > { %v9641_v47 = vpop.f32.mrf.mxu1  ;;  %v13640_v58 = vpop.f32.mrf.mxu0 }
 0x76d   : > { %v9660_v6 = vadd.f32 %v9641_v47, %v19321_v24 }
 0x76e   : > { %v13544_v50 = vpop.f32.mrf.mxu1  ;;  %v19414_v37 = vpop.f32.mrf.mxu0 }
 0x76f   : > { %v19417_v29 = vadd.f32 %v19312_v5, %v9660_v6 }
 0x770   : > { %v9644_v15 = vpop.f32.mrf.mxu1  ;;  %v13641_v20 = vpop.f32.mrf.mxu0 }
 0x771   : > { %v9661_v38 = vadd.f32 %v9644_v15, %v19327_v8  ;;  %v10819_v8 = vld [vmem:[%s20096_s19] sm:$0xff] }
 0x772   : > { %v13545_v0 = vpop.f32.mrf.mxu1  ;;  %v19420_v60 = vpop.f32.mrf.mxu0  ;;  %13713 = vmatpush3.msra.mxu1 %v10819_v8 }
 0x773   : > { %v19423_v7 = vadd.f32 %v19318_v23, %v9661_v38  ;;  %13717 = vmatprep.subr.mxu1 %v20566_v57 }
 0x774   : > { %v10007_v10 = vpop.f32.mrf.mxu1  ;;  %v13680_v26 = vpop.f32.mrf.mxu0 }
 0x775   : > { %v10062_v24 = vadd.f32 %v10007_v10, %v19333_v2 }
 0x776   : > { %v13584_v25 = vpop.f32.mrf.mxu1  ;;  %v19426_v48 = vpop.f32.mrf.mxu0 }
 0x777   : > { %v19429_v5 = vadd.f32 %v19324_v55, %v10062_v24 }
 0x778   : > { %v10010_v31 = vpop.f32.mrf.mxu1  ;;  %v13681_v28 = vpop.f32.mrf.mxu0 }
 0x779   : > { %v10063_v12 = vadd.f32 %v10010_v31, %v19339_v62 }
 0x77a   : > { %v13585_v23 = vpop.f32.mrf.mxu1  ;;  %v19435_v44 = vpop.f32.mrf.mxu0 }
 0x77b   : > { %v19439_v2 = vadd.f32 %v19330_v13, %v10063_v12 }
 0x77c   : > { %v10015_v9 = vpop.f32.mrf.mxu1  ;;  %v13684_v55 = vpop.f32.mrf.mxu0 }
 0x77d   : > { %v10064_v17 = vadd.f32 %v10015_v9, %v19345_v21 }
 0x77e   : > { %v13588_v4 = vpop.f32.mrf.mxu1  ;;  %v19442_v59 = vpop.f32.mrf.mxu0 }
 0x77f   : > { %v19445_v46 = vadd.f32 %v19336_v56, %v10064_v17 }
 0x780   : > { %v10018_v62 = vpop.f32.mrf.mxu1  ;;  %v13685_v35 = vpop.f32.mrf.mxu0 }
 0x781   : > { %v10065_v51 = vadd.f32 %v10018_v62, %v19354_v3 }
 0x782   : > { %v13589_v54 = vpop.f32.mrf.mxu1  ;;  %v19448_v63 = vpop.f32.mrf.mxu0 }
 0x783   : > { %v19451_v13 = vadd.f32 %v19342_v14, %v10065_v51 }
 0x784   : > { %v10023_v18 = vpop.f32.mrf.mxu1  ;;  %v13688_v27 = vpop.f32.mrf.mxu0 }
 0x785   : > { %v10066_v21 = vadd.f32 %v10023_v18, %v19361_v32 }
 0x786   : > { %v13592_v53 = vpop.f32.mrf.mxu1  ;;  %v19454_v61 = vpop.f32.mrf.mxu0 }
 0x787   : > { %v19457_v56 = vadd.f32 %v19348_v40, %v10066_v21 }
 0x788   : > { %v10026_v16 = vpop.f32.mrf.mxu1  ;;  %v13689_v47 = vpop.f32.mrf.mxu0 }
 0x789   : > { %v10067_v3 = vadd.f32 %v10026_v16, %v19367_v19 }
 0x78a   : > { %v13593_v58 = vpop.f32.mrf.mxu1  ;;  %v19460_v6 = vpop.f32.mrf.mxu0 }
 0x78b   : > { %v19463_v14 = vadd.f32 %v19358_v34, %v10067_v3 }
 0x78c   : > { %v10031_v50 = vpop.f32.mrf.mxu1  ;;  %v13692_v15 = vpop.f32.mrf.mxu0 }
 0x78d   : > { %v10068_v32 = vadd.f32 %v10031_v50, %v19373_v36 }
 0x78e   : > { %v13596_v20 = vpop.f32.mrf.mxu1  ;;  %v19466_v38 = vpop.f32.mrf.mxu0 }
 0x78f   : > { %v19469_v40 = vadd.f32 %v19364_v30, %v10068_v32 }
 0x790   : > { %v10034_v0 = vpop.f32.mrf.mxu1  ;;  %v13693_v10 = vpop.f32.mrf.mxu0 }
 0x791   : > { %v10069_v19 = vadd.f32 %v10034_v0, %v19382_v33 }
 0x792   : > { %v13597_v26 = vpop.f32.mrf.mxu1  ;;  %v19472_v24 = vpop.f32.mrf.mxu0 }
 0x793   : > { %v19475_v34 = vadd.f32 %v19370_v11, %v10069_v19 }
 0x794   : > { %v10039_v25 = vpop.f32.mrf.mxu1  ;;  %v13696_v31 = vpop.f32.mrf.mxu0 }
 0x795   : > { %v10070_v36 = vadd.f32 %v10039_v25, %v19389_v45 }
 0x796   : > { %v13600_v28 = vpop.f32.mrf.mxu1  ;;  %v19478_v8 = vpop.f32.mrf.mxu0 }
 0x797   : > { %v19481_v30 = vadd.f32 %v19376_v43, %v10070_v36 }
 0x798   : > { %v10042_v12 = vpop.f32.mrf.mxu1  ;;  %v13697_v23 = vpop.f32.mrf.mxu0 }
 0x799   : > { %v10071_v33 = vadd.f32 %v10042_v12, %v19395_v22  ;;  %v19520_v23 = vpop.permute.xlu0 %10703 }
 0x79a   : > { %v13601_v9 = vpop.f32.mrf.mxu1  ;;  %v19484_v55 = vpop.f32.mrf.mxu0 }
 0x79b   : > { %v19487_v11 = vadd.f32 %v19386_v41, %v10071_v33  ;;  %v19523_v33 = vpop.permute.xlu1 %10708 }
 0x79c   : > { %v10047_v17 = vpop.f32.mrf.mxu1  ;;  %v13700_v4 = vpop.f32.mrf.mxu0 }
 0x79d   : > { %v10072_v45 = vadd.f32 %v10047_v17, %v19404_v52 }
 0x79e   : > { %v13604_v62 = vpop.f32.mrf.mxu1  ;;  %v19490_v35 = vpop.f32.mrf.mxu0 }
 0x79f   : > { %v19493_v43 = vadd.f32 %v19392_v42, %v10072_v45  ;;  %v19535_v45 = vpop.permute.xlu1 %10718 }
 0x7a0   : > { %v10050_v51 = vpop.f32.mrf.mxu1  ;;  %v13701_v54 = vpop.f32.mrf.mxu0 }
 0x7a1   : > { %v10073_v22 = vadd.f32 %v10050_v51, %v19411_v39 }
 0x7a2   : > { %v13605_v18 = vpop.f32.mrf.mxu1  ;;  %v19496_v27 = vpop.f32.mrf.mxu0 }
 0x7a3   : > { %v19499_v41 = vadd.f32 %v19398_v1, %v10073_v22 }
 0x7a4   : > { %v10055_v21 = vpop.f32.mrf.mxu1  ;;  %v13704_v53 = vpop.f32.mrf.mxu0 }
 0x7a5   : > { %v10074_v52 = vadd.f32 %v10055_v21, %v19417_v29 }
 0x7a6   : > { %v13608_v16 = vpop.f32.mrf.mxu1  ;;  %v19502_v47 = vpop.f32.mrf.mxu0 }
 0x7a7   : > { %v19505_v42 = vadd.f32 %v19408_v49, %v10074_v52  ;;  %v19549_v16 = vpop.permute.xlu1 %10728 }
 0x7a8   : > { %v10058_v3 = vpop.f32.mrf.mxu1  ;;  %v13705_v58 = vpop.f32.mrf.mxu0 }
 0x7a9   : > { %v10075_v39 = vadd.f32 %v10058_v3, %v19423_v7 }
 0x7aa   : > { %v13609_v50 = vpop.f32.mrf.mxu1 }
 0x7ab   : > { %v19509_v15 = vadd.f32 %v19414_v37, %v10075_v39 }
 0x7ac   : > { %v10451_v1 = vpop.f32.mrf.mxu1 }
 0x7ad   : > { %v10506_v32 = vadd.f32 %v10451_v1, %v19429_v5 }
 0x7ae   : > { %v13648_v20 = vpop.f32.mrf.mxu1 }
 0x7af   : > { %v10666_v29 = vadd.f32 %v19420_v60, %v10506_v32 }
 0x7b0   : > { %v10454_v0 = vpop.f32.mrf.mxu1 }
 0x7b1   : > { %v10507_v10 = vadd.f32 %v10454_v0, %v19439_v2 }
 0x7b2   : > { %v13649_v19 = vpop.f32.mrf.mxu1 }
 0x7b3   : > { %v10667_v49 = vadd.f32 %v19426_v48, %v10507_v10 }
 0x7b4   : > { %v10459_v26 = vpop.f32.mrf.mxu1 }
 0x7b5   : > { %v10508_v25 = vadd.f32 %v10459_v26, %v19445_v46 }
 0x7b6   : > { %v13652_v7 = vpop.f32.mrf.mxu1 }
 0x7b7   : > { %v10668_v31 = vadd.f32 %v19435_v44, %v10508_v25  ;;  %v19577_v25 = vpop.permute.xlu1 %10738 }
 0x7b8   : > { %v10462_v37 = vpop.f32.mrf.mxu1 }
 0x7b9   : > { %v10509_v36 = vadd.f32 %v10462_v37, %v19451_v13  ;;  %v19527_v13 = vpop.permute.xlu0 %10713 }
 0x7ba   : > { %v13653_v28 = vpop.f32.mrf.mxu1 }
 0x7bb   : > { %v10669_v5 = vadd.f32 %v19442_v59, %v10509_v36  ;;  %v19532_v59 = vld [vmem:[%s20093_s16] ss:$0 sm:$0xff] }
 0x7bc   : > { %v10467_v12 = vpop.f32.mrf.mxu1  ;;  %v10688_v62 = vadd.f32 %v19532_v59, %v10667_v49  ;;  %v10687_v51 = vadd.f32 %v19532_v59, %v10666_v29  ;;  %v10689_v54 = vadd.f32 %v19532_v59, %v10668_v31 }
 0x7bd   : > { %v10510_v60 = vadd.f32 %v10467_v12, %v19457_v56  ;;  %v19542_v18 = vpop.permute.xlu0 %10723 }
 0x7be   : > { %v13656_v2 = vpop.f32.mrf.mxu1  ;;  %v19545_v53 = vmul.f32 %v19523_v33, %v10688_v62  ;;  %v19555_v58 = vmul.f32 %v19527_v13, %v10689_v54 }
 0x7bf   : > { %v10670_v48 = vadd.f32 %v19448_v63, %v10510_v60 }
 0x7c0   : > { %v10470_v46 = vpop.f32.mrf.mxu1  ;;  %v10786_v1 = vsel %vm774_vm4, %v19545_v53, 0.0 }
 0x7c1   : > { %v10511_v9 = vadd.f32 %v10470_v46, %v19463_v14  ;;  %v19566_v29 = vpop.permute.xlu0 %10733 }
 0x7c2   : > { %v13657_v44 = vpop.f32.mrf.mxu1 }
 0x7c3   : > { %v10671_v17 = vadd.f32 %v19454_v61, %v10511_v9 }
 0x7c4   : > { %v10475_v4 = vpop.f32.mrf.mxu1 }
 0x7c5   : > { %v10512_v56 = vadd.f32 %v10475_v4, %v19469_v40  ;;  %v10690_v40 = vadd.f32 %v19532_v59, %v10669_v5  ;;  %v19593_v46 = vpop.permute.xlu0 %10743 }
 0x7c6   : > { %v13660_v63 = vpop.f32.mrf.mxu1 }
 0x7c7   : > { %v10672_v14 = vadd.f32 %v19460_v6, %v10512_v56  ;;  %v19552_v6 = vmul.f32 %v19520_v23, %v10687_v51  ;;  %v19562_v32 = vmul.f32 %v19535_v45, %v10690_v40  ;;  %v19602_v63 = vpop.permute.xlu1 %10748 }
 0x7c8   : > { %v10478_v61 = vpop.f32.mrf.mxu1 }
 0x7c9   : > { %v10513_v22 = vadd.f32 %v10478_v61, %v19475_v34  ;;  %v10691_v34 = vadd.f32 %v19532_v59, %v10670_v48  ;;  %v10785_v0 = vsel %vm774_vm4, %v19552_v6, 0.0  ;;  %v10693_v49 = vadd.f32 %v19532_v59, %v10672_v14 }
 0x7ca   : > { %v13661_v21 = vpop.f32.mrf.mxu1  ;;  %v10787_v7 = vadd.f32 %v10786_v1, %v10785_v0  ;;  %v10790_v31 = vsel %vm774_vm4, %v19562_v32, 0.0 }
 0x7cb   : > { %v10673_v52 = vadd.f32 %v19466_v38, %v10513_v22  ;;  %v10692_v38 = vadd.f32 %v19532_v59, %v10671_v17  ;;  %v19573_v19 = vmul.f32 %v19542_v18, %v10691_v34 }
 0x7cc   : > { %v10483_v3 = vpop.f32.mrf.mxu1 }
 0x7cd   : > { %v10514_v39 = vadd.f32 %v10483_v3, %v19481_v30  ;;  %v10788_v30 = vsel %vm774_vm4, %v19555_v58, 0.0  ;;  %v19582_v37 = vmul.f32 %v19549_v16, %v10692_v38  ;;  %v10694_v36 = vadd.f32 %v19532_v59, %v10673_v52  ;;  %v19617_v3 = vpop.permute.xlu0 %10753 }
 0x7ce   : > { %v13664_v50 = vpop.f32.mrf.mxu1  ;;  %v10789_v5 = vadd.f32 %v10788_v30, %v10787_v7  ;;  %v10792_v60 = vsel %vm774_vm4, %v19573_v19, 0.0 }
 0x7cf   : > { %v10674_v20 = vadd.f32 %v19472_v24, %v10514_v39  ;;  %v10794_v17 = vsel %vm774_vm4, %v19582_v37, 0.0 }
 0x7d0   : > { %v10486_v10 = vpop.f32.mrf.mxu1  ;;  %v10791_v9 = vadd.f32 %v10790_v31, %v10789_v5 }
 0x7d1   : > { %v10515_v26 = vadd.f32 %v10486_v10, %v19487_v11  ;;  %v19589_v11 = vmul.f32 %v19566_v29, %v10693_v49  ;;  %v10695_v2 = vadd.f32 %v19532_v59, %v10674_v20  ;;  %v19626_v20 = vpop.permute.xlu1 %10758 }
 0x7d2   : > { %v13665_v24 = vpop.f32.mrf.mxu1  ;;  %v10793_v62 = vadd.f32 %v10792_v60, %v10791_v9 }
 0x7d3   : > { %v10675_v28 = vadd.f32 %v19478_v8, %v10515_v26  ;;  %v19598_v8 = vmul.f32 %v19577_v25, %v10694_v36  ;;  %v19607_v51 = vmul.f32 %v19593_v46, %v10695_v2  ;;  %v19638_v36 = vpop.permute.xlu0 %10763 }
 0x7d4   : > { %v10491_v12 = vpop.f32.mrf.mxu1  ;;  %v10795_v22 = vadd.f32 %v10794_v17, %v10793_v62 }
 0x7d5   : > { %v10516_v48 = vadd.f32 %v10491_v12, %v19493_v43  ;;  %v10696_v4 = vadd.f32 %v19532_v59, %v10675_v28  ;;  %v10796_v43 = vsel %vm774_vm4, %v19589_v11, 0.0  ;;  %v10798_v40 = vsel %vm774_vm4, %v19598_v8, 0.0 }
 0x7d6   : > { %v13668_v44 = vpop.f32.mrf.mxu1  ;;  %v10797_v34 = vadd.f32 %v10796_v43, %v10795_v22  ;;  %v10800_v50 = vsel %vm774_vm4, %v19607_v51, 0.0 }
 0x7d7   : > { %v10676_v56 = vadd.f32 %v19484_v55, %v10516_v48  ;;  %v19614_v55 = vmul.f32 %v19602_v63, %v10696_v4  ;;  %v19649_v44 = vpop.permute.xlu1 %10768 }
 0x7d8   : > { %v10494_v14 = vpop.f32.mrf.mxu1  ;;  %v10799_v0 = vadd.f32 %v10798_v40, %v10797_v34 }
 0x7d9   : > { %v10697_v61 = vadd.f32 %v19532_v59, %v10676_v56  ;;  %v10517_v54 = vadd.f32 %v10494_v14, %v19499_v41 }
 0x7da   : > { %v13669_v21 = vpop.f32.mrf.mxu1  ;;  %v10801_v26 = vadd.f32 %v10800_v50, %v10799_v0  ;;  %v11063_v50 = vld [vmem:[%s20098_s21 + $0x10] sm:$0xff] }
 0x7db   : > { %v10677_v52 = vadd.f32 %v19490_v35, %v10517_v54  ;;  %v19622_v1 = vmul.f32 %v19617_v3, %v10697_v61  ;;  %v10802_v35 = vsel %vm774_vm4, %v19614_v55, 0.0 }
 0x7dc   : > { %v10499_v39 = vpop.f32.mrf.mxu1  ;;  %v10803_v28 = vadd.f32 %v10802_v35, %v10801_v26 }
 0x7dd   : > { %v10698_v41 = vadd.f32 %v19532_v59, %v10677_v52  ;;  %v10518_v38 = vadd.f32 %v10499_v39, %v19505_v42  ;;  %v10804_v24 = vsel %vm774_vm4, %v19622_v1, 0.0  ;;  %v11064_v39 = vld [vmem:[%s20098_s21 + $0x18] sm:$0xff] }
 0x7de   : > { %v13672_v10 = vpop.f32.mrf.mxu1  ;;  %v10805_v2 = vadd.f32 %v10804_v24, %v10803_v28  ;;  %v10982_v24 = vlaneseq }
 0x7df   : > { %v19631_v30 = vmul.f32 %v19626_v20, %v10698_v41  ;;  %v10678_v49 = vadd.f32 %v19496_v27, %v10518_v38  ;;  %v11062_v41 = vld [vmem:[%s20098_s21 + $0x8] sm:$0xff]  ;;  %v11061_v38 = vld [vmem:[%s20098_s21] sm:$0xff] }
 0x7e0   : > { %v10502_v7 = vpop.f32.mrf.mxu1 }
 0x7e1   : > { %v10699_v31 = vadd.f32 %v19532_v59, %v10678_v49  ;;  %v10519_v42 = vadd.f32 %v10502_v7, %v19509_v15  ;;  %v10806_v12 = vsel %vm774_vm4, %v19631_v30, 0.0 }
 0x7e2   : > { %v13673_v5 = vpop.f32.mrf.mxu1  ;;  %v10807_v15 = vadd.f32 %v10806_v12, %v10805_v2  ;;  %v11000_v2 = vld [vmem:[%s20601_s3] sm:$0xff] }
 0x7e3   : > { %v19643_v60 = vmul.f32 %v19638_v36, %v10699_v31  ;;  %v10679_v27 = vadd.f32 %v19502_v47, %v10519_v42  ;;  %v19683_v31 = vshrl.u32 %v10982_v24, 7 }
 0x7e5   : > { %v10808_v48 = vsel %vm774_vm4, %v19643_v60, 0.0  ;;  %v10700_v9 = vadd.f32 %v19532_v59, %v10679_v27  ;;  %v10897_v59 = vld [vmem:[%s20097_s20] sm:$0x3]  ;;  %v10984_v42 = vsub.s32 0, %v19683_v31 }
 0x7e6   : > { %v10809_v4 = vadd.f32 %v10808_v48, %v10807_v15  ;;  %v11001_v48 = vld [vmem:[%s20601_s3 + $0x8] sm:$0xff]  ;;  %v11002_v15 = vld [vmem:[%s20601_s3 + $0x10] sm:$0xff] }
 0x7e7   : > { %v19652_v17 = vmul.f32 %v19649_v44, %v10700_v9 }
 0x7e9   : > { %v10810_v56 = vsel %vm774_vm4, %v19652_v17, 0.0 }
 0x7ea   : > { %v10811_v62 = vadd.f32 %v10810_v56, %v10809_v4  ;;  %v11003_v56 = vld [vmem:[%s20601_s3 + $0x18] sm:$0xff] }
 0x7ec   : > { %v10812_v14 = vrot.slane %v10811_v62, 4 }
 0x7ee   : > { %v10813_v43 = vadd.f32 %v10812_v14, %v10811_v62  ;;  %v11004_v14 = vld [vmem:[%s20601_s3 + $0x20] sm:$0xff] }
 0x7f0   : > { %v10814_v47 = vrot.slane %v10813_v43, 2 }
 0x7f2   : > { %v10815_v61 = vadd.f32 %v10814_v47, %v10813_v43 }
 0x7f4   : > { %v10816_v54 = vrot.slane %v10815_v61, 1 }
 0x7f6   : > { %v10817_v22 = vadd.f32 %v10816_v54, %v10815_v61 }
 0x7f8   : > { %v10818_v21 = vmul.f32 0.020408163, %v10817_v22 }
 0x7fa   : > { %13715 = vmatmul.mubr.msk.f32.vlgmr.msra.gmra.mxu1 %vm774_vm4, %v10818_v21 }
 0x7fb   : > { %13719 = vmatprep.mubr.msk.f32.mxu1 %vm14330_vm13, %v20566_v57  ;;  %13718 = vmatpush3.msk.msra.mxu1 %vm10902_vm14, %v10897_v59 }
 0x7fc   : > { %13722 = vmatprep.subr.mxu1 %v20566_v57 }
 0x8ba   : > { %v10892_v40 = vpop.f32.mrf.mxu1 }
 0x8bb   : > { %v10896_v52 = vmax.f32 %v10892_v40, 0.0 }
 0x8bc   : > { %v13716_v34 = vpop.f32.mrf.mxu1 }
 0x8bd   : > { %13720 = vmatmul.mubr.msk.f32.vlgmr.msra.gmra.mxu1 %vm10898_vm15, %v10896_v52 }
 0x8be   : > { %13730 = vmatprep.mubr.msk.f32.mxu1 %vm14330_vm13, %v20566_v57  ;;  %13723 = vmatpush3.msra.mxu1 %v11064_v39 }
 0x8bf   : > { %13724 = vmatprep.subr.mxu1 %v20566_v57 }
 0x8c0   : > { %13725 = vmatpush3.msra.mxu1 %v11063_v50 }
 0x8c1   : > { %13726 = vmatprep.subr.mxu1 %v20566_v57 }
 0x8c2   : > { %13727 = vmatpush3.msra.mxu1 %v11062_v41 }
 0x8c3   : > { %13728 = vmatprep.subr.mxu1 %v20566_v57 }
 0x8c4   : > { %13729 = vmatpush3.msra.mxu1 %v11061_v38 }
 0x8c5   : > { %13733 = vmatprep.subr.mxu1 %v20566_v57 }
 0x97d   : > { %v10972_v0 = vpop.f32.mrf.mxu1 }
 0x97e   : > { %v10976_v10 = vsub.f32 0.0, %v10972_v0 }
 0x97f   : > { %v13721_v35 = vpop.f32.mrf.mxu1 }
 0x980   : > { %v10977_v49 = vmul.f32 1.442695, %v10976_v10 }
 0x982   : > { %14284 = vpow2.f32 %v10977_v49 }
 0x98f   : > { %v14285_v26 = vpop.eup %14284 }
 0x990   : > { %v10979_v7 = vadd.f32 1.0, %v14285_v26 }
 0x992   : > { %14286 = vrcp.f32 %v10979_v7 }
 0x99f   : > { %v14287_v28 = vpop.eup %14286 }
 0x9a0   : > { %v10985_v5 = vrot.slane %v14287_v28, %v10984_v42 }
 0x9a2   : > { %v19689_v12 = vmul.f32 %v10985_v5, %v19552_v6  ;;  %v19692_v27 = vmul.f32 %v10985_v5, %v19545_v53  ;;  %v19701_v9 = vmul.f32 %v10985_v5, %v19555_v58  ;;  %v19707_v6 = vmul.f32 %v10985_v5, %v19562_v32 }
 0x9a3   : > { %v19715_v62 = vmul.f32 %v10985_v5, %v19573_v19  ;;  %v19722_v32 = vmul.f32 %v10985_v5, %v19582_v37  ;;  %v11005_v19 = vld [vmem:[%s20601_s3 + $0x28] sm:$0xff]  ;;  %v19731_v22 = vmul.f32 %v10985_v5, %v19589_v11  ;;  %v11006_v37 = vld [vmem:[%s20601_s3 + $0x30] sm:$0xff]  ;;  %v19739_v52 = vmul.f32 %v10985_v5, %v19598_v8  ;;  %v11007_v11 = vld [vmem:[%s20601_s3 + $0x38] sm:$0xff] }
 0x9a4   : > { %v11014_v53 = vmul.f32 %v11000_v2, %v19689_v12  ;;  %v11015_v4 = vmul.f32 %v11001_v48, %v19692_v27  ;;  %v11016_v58 = vmul.f32 %v11002_v15, %v19701_v9  ;;  %v11017_v43 = vmul.f32 %v11003_v56, %v19707_v6  ;;  %v11008_v8 = vld [vmem:[%s20601_s3 + $0x40] sm:$0xff] }
 0x9a5   : > { %v11018_v21 = vmul.f32 %v11004_v14, %v19715_v62  ;;  %v11019_v34 = vmul.f32 %v11005_v19, %v19722_v32  ;;  %v19747_v41 = vmul.f32 %v10985_v5, %v19607_v51  ;;  %v11020_v38 = vmul.f32 %v11006_v37, %v19731_v22  ;;  %v11009_v51 = vld [vmem:[%s20601_s3 + $0x48] sm:$0xff] }
 0x9a6   : > { %v11028_v47 = vsel %vm774_vm4, %v11014_v53, 0.0  ;;  %v11029_v61 = vsel %vm774_vm4, %v11015_v4, 0.0  ;;  %v11031_v59 = vsel %vm774_vm4, %v11016_v58, 0.0  ;;  %v11033_v39 = vsel %vm774_vm4, %v11017_v43, 0.0 }
 0x9a7   : > { %v11030_v54 = vadd.f32 %v11029_v61, %v11028_v47  ;;  %v11035_v0 = vsel %vm774_vm4, %v11018_v21, 0.0  ;;  %v19755_v35 = vmul.f32 %v10985_v5, %v19614_v55  ;;  %v11021_v49 = vmul.f32 %v11007_v11, %v19739_v52  ;;  %v11010_v55 = vld [vmem:[%s20601_s3 + $0x50] sm:$0xff] }
 0x9a8   : > { %v11037_v26 = vsel %vm774_vm4, %v11019_v34, 0.0  ;;  %v19763_v24 = vmul.f32 %v10985_v5, %v19622_v1  ;;  %v11022_v28 = vmul.f32 %v11008_v8, %v19747_v41  ;;  %v11039_v2 = vsel %vm774_vm4, %v11020_v38, 0.0  ;;  %v11011_v1 = vld [vmem:[%s20601_s3 + $0x58] sm:$0xff] }
 0x9a9   : > { %v11032_v40 = vadd.f32 %v11031_v59, %v11030_v54  ;;  %v19771_v15 = vmul.f32 %v10985_v5, %v19631_v30  ;;  %v11023_v53 = vmul.f32 %v11009_v51, %v19755_v35  ;;  %v11041_v4 = vsel %vm774_vm4, %v11021_v49, 0.0  ;;  %v11012_v30 = vld [vmem:[%s20601_s3 + $0x60] sm:$0xff] }
 0x9aa   : > { %v19779_v58 = vmul.f32 %v10985_v5, %v19643_v60  ;;  %v11024_v14 = vmul.f32 %v11010_v55, %v19763_v24  ;;  %v11043_v43 = vsel %vm774_vm4, %v11022_v28, 0.0  ;;  %v19787_v61 = vmul.f32 %v10985_v5, %v19652_v17  ;;  %v11013_v60 = vld [vmem:[%s20601_s3 + $0x68] sm:$0xff] }
 0x9ab   : > { %v11034_v50 = vadd.f32 %v11033_v39, %v11032_v40  ;;  %v11025_v19 = vmul.f32 %v11011_v1, %v19771_v15  ;;  %v11045_v54 = vsel %vm774_vm4, %v11023_v53, 0.0  ;;  %v14053_v53 = vld [vmem:[%s725_s2] sm:$0xff]   ;;  %v14055_v1 = vld [vmem:[%s725_s2 + $0x10] sm:$0xff]  }
 0x9ac   : > { %v11026_v59 = vmul.f32 %v11012_v30, %v19779_v58  ;;  %v11047_v37 = vsel %vm774_vm4, %v11024_v14, 0.0  ;;  %v11027_v34 = vmul.f32 %v11013_v60, %v19787_v61  ;;  %v14057_v14 = vld [vmem:[%s725_s2 + $0x20] sm:$0xff]   ;;  %v14059_v30 = vld [vmem:[%s725_s2 + $0x30] sm:$0xff]  }
 0x9ad   : > { %v11036_v10 = vadd.f32 %v11035_v0, %v11034_v50  ;;  %v11049_v39 = vsel %vm774_vm4, %v11025_v19, 0.0 }
 0x9ae   : > { %v11051_v5 = vsel %vm774_vm4, %v11026_v59, 0.0  ;;  %v11053_v50 = vsel %vm774_vm4, %v11027_v34, 0.0 }
 0x9af   : > { %v11038_v7 = vadd.f32 %v11037_v26, %v11036_v10 }
 0x9b1   : > { %v11040_v48 = vadd.f32 %v11039_v2, %v11038_v7  ;;  %v11139_v7 = vld [vmem:[%s20099_s22] sm:$0x3] }
 0x9b2   : > { %v14052_v2 = vld [vmem:[%s20094_s17] sm:$0xff]  }
 0x9b3   : > { %v11042_v56 = vadd.f32 %v11041_v4, %v11040_v48  ;;  %v14054_v4 = vld [vmem:[%s725_s2 + $0x8] sm:$0xff]  }
 0x9b5   : > { %v11044_v47 = vadd.f32 %v11043_v43, %v11042_v56  ;;  %v14056_v56 = vld [vmem:[%s725_s2 + $0x18] sm:$0xff]   ;;  %v14058_v43 = vld [vmem:[%s725_s2 + $0x28] sm:$0xff]  }
 0x9b7   : > { %v11046_v21 = vadd.f32 %v11045_v54, %v11044_v47 }
 0x9b9   : > { %v11048_v40 = vadd.f32 %v11047_v37, %v11046_v21 }
 0x9bb   : > { %v11050_v17 = vadd.f32 %v11049_v39, %v11048_v40 }
 0x9bd   : > { %v11052_v11 = vadd.f32 %v11051_v5, %v11050_v17 }
 0x9bf   : > { %v11054_v38 = vadd.f32 %v11053_v50, %v11052_v11 }
 0x9c1   : > { %v11055_v0 = vrot.slane %v11054_v38, 4 }
 0x9c3   : > { %v11056_v8 = vadd.f32 %v11055_v0, %v11054_v38 }
 0x9c5   : > { %v11057_v10 = vrot.slane %v11056_v8, 2 }
 0x9c7   : > { %v11058_v49 = vadd.f32 %v11057_v10, %v11056_v8 }
 0x9c9   : > { %v11059_v26 = vrot.slane %v11058_v49, 1 }
 0x9cb   : > { %v11060_v51 = vadd.f32 %v11059_v26, %v11058_v49 }
 0x9cd   : > { %13731 = vmatmul.mubr.msk.f32.vlgmr.msra.gmra.mxu1 %vm774_vm4, %v11060_v51  ;;  %v19840_v51 = vld [vmem:[%s20095_s18] ss:$0 sm:$0xff] }
 0x9ce   : > { %13735 = vmatprep.mubr.msk.f32.mxu1 %vm14330_vm13, %v20566_v57  ;;  %13734 = vmatpush3.msk.msra.mxu1 %vm10902_vm14, %v11139_v7 }
 0x9cf   : > { %13738 = vmatprep.subr.bf16.mxu1 %v20566_v57 }
 0xa8d   : > { %v11134_v28 = vpop.f32.mrf.mxu1 }
 0xa8e   : > { %v11138_v55 = vmax.f32 %v11134_v28, 0.0 }
 0xa8f   : > { %v13732_v48 = vpop.f32.mrf.mxu1 }
 0xa90   : > { %13736 = vmatmul.mubr.msk.f32.vlgmr.msra.gmra.mxu1 %vm10898_vm15, %v11138_v55 }
 0xa91   : > { %13739 = vmatpush3.bf16.msra.mxu1 %v14052_v2  ;;  %13740 = vmatprep.mubr.msk.bf16.mxu1 %vm14330_vm13, %v20566_v57 }
 0xa94   : > { %13741 = vmatmul.mubr.msk.bf16.vlgmr.msra.gmra.mxu1 %vm1022_vm1, %v14053_v53 }
 0xa95   : > { %13744 = vmatprep.mubr.msk.bf16.mxu1 %vm14330_vm13, %v20566_v57 }
 0xa9c   : > { %13745 = vmatmul.mubr.msk.bf16.gmra.mxu1 %vm1022_vm1, %v14054_v4 }
 0xa9d   : > { %13748 = vmatprep.mubr.msk.bf16.mxu1 %vm14330_vm13, %v20566_v57 }
 0xaa4   : > { %13749 = vmatmul.mubr.msk.bf16.gmra.mxu1 %vm1022_vm1, %v14055_v1 }
 0xaa5   : > { %13752 = vmatprep.mubr.msk.bf16.mxu1 %vm14330_vm13, %v20566_v57 }
 0xaac   : > { %13753 = vmatmul.mubr.msk.bf16.gmra.mxu1 %vm1022_vm1, %v14056_v56 }
 0xaad   : > { %13756 = vmatprep.mubr.msk.bf16.mxu1 %vm14330_vm13, %v20566_v57 }
 0xab4   : > { %13757 = vmatmul.mubr.msk.bf16.gmra.mxu1 %vm1022_vm1, %v14057_v14 }
 0xab5   : > { %13760 = vmatprep.mubr.msk.bf16.mxu1 %vm14330_vm13, %v20566_v57 }
 0xabc   : > { %13761 = vmatmul.mubr.msk.bf16.gmra.mxu1 %vm1022_vm1, %v14058_v43 }
 0xabd   : > { %13764 = vmatprep.mubr.msk.bf16.mxu1 %vm14330_vm13, %v20566_v57 }
 0xac4   : > { %13765 = vmatmul.mubr.msk.bf16.gmra.mxu1 %vm1022_vm1, %v14059_v30 }
 0xb50   : > { %v11212_v47 = vpop.f32.mrf.mxu1 }
 0xb51   : > { %v11216_v19 = vsub.f32 0.0, %v11212_v47 }
 0xb52   : > { %v13737_v54 = vpop.f32.mrf.mxu1 }
 0xb53   : > { %v11217_v60 = vmul.f32 1.442695, %v11216_v19 }
 0xb54   : > { %v11359_v21 = vpop.f32.mrf.mxu1 }
 0xb55   : > { %14288 = vpow2.f32 %v11217_v60  ;;  %v11360_v55 = vadd.f32 %v19840_v51, %v11359_v21 }
 0xb56   : > { %v13742_v59 = vpop.f32.mrf.mxu1 }
 0xb58   : > { %v11362_v37 = vpop.f32.mrf.mxu1 }
 0xb59   : > { %v11363_v48 = vadd.f32 %v19840_v51, %v11362_v37 }
 0xb5a   : > { %v13743_v40 = vpop.f32.mrf.mxu1 }
 0xb5c   : > { %v11367_v34 = vpop.f32.mrf.mxu1 }
 0xb5d   : > { %v11368_v53 = vadd.f32 %v19840_v51, %v11367_v34 }
 0xb5e   : > { %v13746_v39 = vpop.f32.mrf.mxu1 }
 0xb60   : > { %v11370_v17 = vpop.f32.mrf.mxu1 }
 0xb61   : > { %v11371_v4 = vadd.f32 %v19840_v51, %v11370_v17 }
 0xb62   : > { %v14289_v5 = vpop.eup %14288  ;;  %v13747_v11 = vpop.f32.mrf.mxu1 }
 0xb63   : > { %v11219_v50 = vadd.f32 1.0, %v14289_v5 }
 0xb64   : > { %v11375_v38 = vpop.f32.mrf.mxu1 }
 0xb65   : > { %14290 = vrcp.f32 %v11219_v50  ;;  %v11376_v30 = vadd.f32 %v19840_v51, %v11375_v38 }
 0xb66   : > { %v13750_v57 = vpop.f32.mrf.mxu1 }
 0xb68   : > { %v11378_v0 = vpop.f32.mrf.mxu1 }
 0xb6a   : > { %v13751_v8 = vpop.f32.mrf.mxu1 }
 0xb6c   : > { %v11383_v10 = vpop.f32.mrf.mxu1 }
 0xb6d   : > { %v11384_v40 = vadd.f32 %v19840_v51, %v11383_v10 }
 0xb6e   : > { %v13754_v49 = vpop.f32.mrf.mxu1 }
 0xb70   : > { %v11386_v26 = vpop.f32.mrf.mxu1 }
 0xb71   : > { %v11387_v57 = vadd.f32 %v19840_v51, %v11386_v26 }
 0xb72   : > { %v14291_v7 = vpop.eup %14290  ;;  %v13755_v28 = vpop.f32.mrf.mxu1 }
 0xb73   : > { %v19844_v2 = vrot.slane %v14291_v7, %v10984_v42 }
 0xb74   : > { %v11391_v1 = vpop.f32.mrf.mxu1 }
 0xb75   : > { %v11226_v56 = vmul.f32 %v19844_v2, %v19689_v12  ;;  %v11227_v14 = vmul.f32 %v19844_v2, %v19692_v27  ;;  %v11228_v31 = vmul.f32 %v19844_v2, %v19701_v9  ;;  %v11229_v42 = vmul.f32 %v19844_v2, %v19707_v6 }
 0xb76   : > { %v11230_v43 = vmul.f32 %v19844_v2, %v19715_v62  ;;  %v11231_v47 = vmul.f32 %v19844_v2, %v19722_v32  ;;  %v13758_v19 = vpop.f32.mrf.mxu1  ;;  %v11379_v9 = vadd.f32 %v19840_v51, %v11378_v0  ;;  %v11232_v6 = vmul.f32 %v19844_v2, %v19731_v22 }
 0xb77   : > { %v19863_v54 = vadd.f32 %v11360_v55, %v11226_v56  ;;  %v19865_v12 = vadd.f32 %v11363_v48, %v11227_v14  ;;  %v19867_v27 = vadd.f32 %v11368_v53, %v11228_v31  ;;  %v19869_v60 = vadd.f32 %v11371_v4, %v11229_v42 }
 0xb78   : > { %v11394_v62 = vpop.f32.mrf.mxu1  ;;  %v19880_v37 = vadd.f32 %v11376_v30, %v11230_v43  ;;  %v11233_v34 = vmul.f32 %v19844_v2, %v19739_v52  ;;  %v19889_v11 = vadd.f32 %v11379_v9, %v11231_v47  ;;  %v19891_v38 = vadd.f32 %v11384_v40, %v11232_v6 }
 0xb79   : > { %v11428_v21 = vmul.f32 %v19863_v54, %v19520_v23  ;;  %v11429_v32 = vmul.f32 %v19865_v12, %v19523_v33  ;;  %v11430_v59 = vmul.f32 %v19867_v27, %v19527_v13  ;;  %v11431_v5 = vmul.f32 %v19869_v60, %v19535_v45 }
 0xb7a   : > { %v13759_v39 = vpop.f32.mrf.mxu1  ;;  %v11432_v52 = vmul.f32 %v19880_v37, %v19542_v18  ;;  %v11234_v10 = vmul.f32 %v19844_v2, %v19747_v41  ;;  %v11392_v49 = vadd.f32 %v19840_v51, %v11391_v1  ;;  %v19900_v28 = vadd.f32 %v11387_v57, %v11233_v34 }
 0xb7b   : > { %v11442_v22 = vsel %vm774_vm4, %v11428_v21, 0.0  ;;  %v11443_v17 = vsel %vm774_vm4, %v11429_v32, 0.0  ;;  %v11445_v8 = vsel %vm774_vm4, %v11430_v59, 0.0  ;;  %v11447_v48 = vsel %vm774_vm4, %v11431_v5, 0.0 }
 0xb7c   : > { %v11444_v50 = vadd.f32 %v11443_v17, %v11442_v22  ;;  %v11399_v0 = vpop.f32.mrf.mxu1  ;;  %v11433_v26 = vmul.f32 %v19889_v11, %v19549_v16  ;;  %v11395_v53 = vadd.f32 %v19840_v51, %v11394_v62  ;;  %v11434_v56 = vmul.f32 %v19891_v38, %v19566_v29 }
 0xb7d   : > { %v11449_v41 = vsel %vm774_vm4, %v11432_v52, 0.0  ;;  %v19909_v31 = vadd.f32 %v11392_v49, %v11234_v10  ;;  %v11235_v1 = vmul.f32 %v19844_v2, %v19755_v35  ;;  %v11400_v42 = vadd.f32 %v19840_v51, %v11399_v0 }
 0xb7e   : > { %v11446_v7 = vadd.f32 %v11445_v8, %v11444_v50  ;;  %v13762_v55 = vpop.f32.mrf.mxu1  ;;  %v11435_v30 = vmul.f32 %v19900_v28, %v19577_v25  ;;  %v11451_v19 = vsel %vm774_vm4, %v11433_v26, 0.0  ;;  %v11236_v6 = vmul.f32 %v19844_v2, %v19763_v24 }
 0xb7f   : > { %v19917_v9 = vadd.f32 %v11395_v53, %v11235_v1  ;;  %v11453_v32 = vsel %vm774_vm4, %v11434_v56, 0.0  ;;  %v11436_v59 = vmul.f32 %v19909_v31, %v19593_v46  ;;  %v11237_v34 = vmul.f32 %v19844_v2, %v19771_v15 }
 0xb80   : > { %v11448_v4 = vadd.f32 %v11447_v48, %v11446_v7  ;;  %v11402_v14 = vpop.f32.mrf.mxu1  ;;  %v19925_v40 = vadd.f32 %v11400_v42, %v11236_v6  ;;  %v11455_v24 = vsel %vm774_vm4, %v11435_v30, 0.0  ;;  %v11238_v57 = vmul.f32 %v19844_v2, %v19779_v58 }
 0xb81   : > { %v11403_v62 = vadd.f32 %v19840_v51, %v11402_v14  ;;  %v11437_v5 = vmul.f32 %v19917_v9, %v19602_v63  ;;  %v11239_v8 = vmul.f32 %v19844_v2, %v19787_v61  ;;  %v11457_v15 = vsel %vm774_vm4, %v11436_v59, 0.0 }
 0xb82   : > { %v11450_v43 = vadd.f32 %v11449_v41, %v11448_v4  ;;  %v13763_v47 = vpop.f32.mrf.mxu1  ;;  %v11438_v10 = vmul.f32 %v19925_v40, %v19617_v3 }
 0xb83   : > { %v19933_v50 = vadd.f32 %v11403_v62, %v11237_v34  ;;  %v11459_v26 = vsel %vm774_vm4, %v11437_v5, 0.0 }
 0xb84   : > { %v11452_v21 = vadd.f32 %v11451_v19, %v11450_v43  ;;  %v11407_v35 = vpop.f32.mrf.mxu1  ;;  %v11461_v2 = vsel %vm774_vm4, %v11438_v10, 0.0 }
 0xb85   : > { %v11408_v39 = vadd.f32 %v19840_v51, %v11407_v35  ;;  %v11439_v58 = vmul.f32 %v19933_v50, %v19626_v20 }
 0xb86   : > { %v11454_v22 = vadd.f32 %v11453_v32, %v11452_v21  ;;  %v13766_v17 = vpop.f32.mrf.mxu1 }
 0xb87   : > { %v19942_v49 = vadd.f32 %v11408_v39, %v11238_v57  ;;  %v11463_v14 = vsel %vm774_vm4, %v11439_v58, 0.0 }
 0xb88   : > { %v11456_v0 = vadd.f32 %v11455_v24, %v11454_v22  ;;  %v11410_v52 = vpop.f32.mrf.mxu1 }
 0xb89   : > { %v11411_v7 = vadd.f32 %v19840_v51, %v11410_v52  ;;  %v11440_v4 = vmul.f32 %v19942_v49, %v19638_v36 }
 0xb8a   : > { %v11458_v55 = vadd.f32 %v11457_v15, %v11456_v0  ;;  %v13767_v48 = vpop.f32.mrf.mxu1 }
 0xb8b   : > { %v19948_v53 = vadd.f32 %v11411_v7, %v11239_v8  ;;  %v11465_v1 = vsel %vm774_vm4, %v11440_v4, 0.0 }
 0xb8c   : > { %v11460_v61 = vadd.f32 %v11459_v26, %v11458_v55 }
 0xb8d   : > { %v11441_v51 = vmul.f32 %v19948_v53, %v19649_v44 }
 0xb8e   : > { %v11462_v56 = vadd.f32 %v11461_v2, %v11460_v61 }
 0xb8f   : > { %v11467_v43 = vsel %vm774_vm4, %v11441_v51, 0.0 }
 0xb90   : > { %v11464_v41 = vadd.f32 %v11463_v14, %v11462_v56 }
 0xb92   : > { %v11466_v42 = vadd.f32 %v11465_v1, %v11464_v41 }
 0xb94   : > { %v11468_v30 = vadd.f32 %v11467_v43, %v11466_v42 }
 0xb96   : > { %v11469_v47 = vrot.slane %v11468_v30, 4 }
 0xb98   : > { %v11470_v19 = vadd.f32 %v11469_v47, %v11468_v30 }
 0xb9a   : > { %v11471_v6 = vrot.slane %v11470_v19, 2 }
 0xb9c   : > { %v11472_v62 = vadd.f32 %v11471_v6, %v11470_v19 }
 0xb9e   : > { %v11473_v21 = vrot.slane %v11472_v62, 1 }
 0xba0   : > { %v11474_v32 = vadd.f32 %v11473_v21, %v11472_v62 }
 0xba2   : > { %v11475_v35 = vmul.f32 0.020408163, %v11474_v32 }
 0xba4   : > { %v19959_v59 = vsub.f32 %v19863_v54, %v11475_v35  ;;  %v19962_v34 = vsub.f32 %v19865_v12, %v11475_v35  ;;  %v19965_v39 = vsub.f32 %v19867_v27, %v11475_v35  ;;  %v19968_v22 = vsub.f32 %v19869_v60, %v11475_v35 }
 0xba5   : > { %v19975_v5 = vsub.f32 %v19880_v37, %v11475_v35  ;;  %v19980_v12 = vsub.f32 %v19889_v11, %v11475_v35  ;;  %v19985_v0 = vsub.f32 %v19891_v38, %v11475_v35  ;;  %v19990_v37 = vsub.f32 %v19900_v28, %v11475_v35 }
 0xba6   : > { %v11490_v17 = vmul.f32 %v19959_v59, %v19520_v23  ;;  %v11491_v24 = vmul.f32 %v19962_v34, %v19523_v33  ;;  %v11492_v54 = vmul.f32 %v19965_v39, %v19527_v13  ;;  %v11493_v27 = vmul.f32 %v19968_v22, %v19535_v45 }
 0xba7   : > { %v11494_v23 = vmul.f32 %v19975_v5, %v19542_v18  ;;  %v11495_v13 = vmul.f32 %v19980_v12, %v19549_v16  ;;  %v19997_v15 = vsub.f32 %v19909_v31, %v11475_v35  ;;  %v11496_v38 = vmul.f32 %v19985_v0, %v19566_v29 }
 0xba8   : > { %v11504_v60 = vmul.f32 %v11490_v17, %v11490_v17  ;;  %v11505_v57 = vmul.f32 %v11491_v24, %v11491_v24  ;;  %v11506_v33 = vmul.f32 %v11492_v54, %v11492_v54  ;;  %v11507_v11 = vmul.f32 %v11493_v27, %v11493_v27 }
 0xba9   : > { %v11508_v18 = vmul.f32 %v11494_v23, %v11494_v23  ;;  %v20003_v7 = vsub.f32 %v19917_v9, %v11475_v35  ;;  %v11497_v16 = vmul.f32 %v19990_v37, %v19577_v25  ;;  %v11509_v55 = vmul.f32 %v11495_v13, %v11495_v13 }
 0xbaa   : > { %v11518_v8 = vsel %vm774_vm4, %v11504_v60, 0.0  ;;  %v11519_v45 = vsel %vm774_vm4, %v11505_v57, 0.0  ;;  %v11521_v10 = vsel %vm774_vm4, %v11506_v33, 0.0  ;;  %v11523_v48 = vsel %vm774_vm4, %v11507_v11, 0.0 }
 0xbab   : > { %v11520_v52 = vadd.f32 %v11519_v45, %v11518_v8  ;;  %v11486_v31 = vsub.f32 %v19925_v40, %v11475_v35  ;;  %v11498_v58 = vmul.f32 %v19997_v15, %v19593_v46  ;;  %v11510_v29 = vmul.f32 %v11496_v38, %v11496_v38 }
 0xbac   : > { %v11525_v61 = vsel %vm774_vm4, %v11508_v18, 0.0  ;;  %v11487_v4 = vsub.f32 %v19933_v50, %v11475_v35  ;;  %v11499_v9 = vmul.f32 %v20003_v7, %v19602_v63  ;;  %v11511_v56 = vmul.f32 %v11497_v16, %v11497_v16 }
 0xbad   : > { %v11522_v28 = vadd.f32 %v11521_v10, %v11520_v52  ;;  %v11527_v25 = vsel %vm774_vm4, %v11509_v55, 0.0  ;;  %v11488_v51 = vsub.f32 %v19942_v49, %v11475_v35  ;;  %v11500_v40 = vmul.f32 %v11486_v31, %v19617_v3 }
 0xbae   : > { %v11512_v41 = vmul.f32 %v11498_v58, %v11498_v58  ;;  %v11529_v46 = vsel %vm774_vm4, %v11510_v29, 0.0  ;;  %v11489_v42 = vsub.f32 %v19948_v53, %v11475_v35  ;;  %v11501_v43 = vmul.f32 %v11487_v4, %v19626_v20 }
 0xbaf   : > { %v11524_v26 = vadd.f32 %v11523_v48, %v11522_v28  ;;  %v11513_v50 = vmul.f32 %v11499_v9, %v11499_v9  ;;  %v11531_v30 = vsel %vm774_vm4, %v11511_v56, 0.0  ;;  %v11502_v47 = vmul.f32 %v11488_v51, %v19638_v36 }
 0xbb0   : > { %v11514_v19 = vmul.f32 %v11500_v40, %v11500_v40  ;;  %v11533_v6 = vsel %vm774_vm4, %v11512_v41, 0.0  ;;  %v11503_v3 = vmul.f32 %v11489_v42, %v19649_v44  ;;  %v11515_v62 = vmul.f32 %v11501_v43, %v11501_v43 }
 0xbb1   : > { %v11526_v2 = vadd.f32 %v11525_v61, %v11524_v26  ;;  %v11535_v21 = vsel %vm774_vm4, %v11513_v50, 0.0  ;;  %v11516_v17 = vmul.f32 %v11502_v47, %v11502_v47 }
 0xbb2   : > { %v11537_v53 = vsel %vm774_vm4, %v11514_v19, 0.0  ;;  %v11517_v35 = vmul.f32 %v11503_v3, %v11503_v3  ;;  %v11539_v24 = vsel %vm774_vm4, %v11515_v62, 0.0 }
 0xbb3   : > { %v11528_v14 = vadd.f32 %v11527_v25, %v11526_v2  ;;  %v11541_v36 = vsel %vm774_vm4, %v11516_v17, 0.0 }
 0xbb4   : > { %v11543_v60 = vsel %vm774_vm4, %v11517_v35, 0.0 }
 0xbb5   : > { %v11530_v1 = vadd.f32 %v11529_v46, %v11528_v14 }
 0xbb7   : > { %v11532_v63 = vadd.f32 %v11531_v30, %v11530_v1 }
 0xbb9   : > { %v11534_v49 = vadd.f32 %v11533_v6, %v11532_v63 }
 0xbbb   : > { %v11536_v32 = vadd.f32 %v11535_v21, %v11534_v49 }
 0xbbd   : > { %v11538_v20 = vadd.f32 %v11537_v53, %v11536_v32 }
 0xbbf   : > { %v11540_v54 = vadd.f32 %v11539_v24, %v11538_v20 }
 0xbc1   : > { %v11542_v27 = vadd.f32 %v11541_v36, %v11540_v54 }
 0xbc3   : > { %v11544_v57 = vadd.f32 %v11543_v60, %v11542_v27 }
 0xbc5   : > { %v11545_v44 = vrot.slane %v11544_v57, 4 }
 0xbc7   : > { %v11546_v23 = vadd.f32 %v11545_v44, %v11544_v57 }
 0xbc9   : > { %v11547_v33 = vrot.slane %v11546_v23, 2 }
 0xbcb   : > { %v11548_v13 = vadd.f32 %v11547_v33, %v11546_v23 }
 0xbcd   : > { %v11549_v11 = vrot.slane %v11548_v13, 1 }
 0xbcf   : > { %v11550_v8 = vadd.f32 %v11549_v11, %v11548_v13 }
 0xbd1   : > { %v11551_v45 = vmul.f32 0.020408163, %v11550_v8 }
 0xbd3   : > { %v11552_v52 = vadd.f32 1e-05, %v11551_v45 }
 0xbd5   : > { %14292 = vrsqrt.f32 %v11552_v52 }
 0xbe2   : > { %v14293_v38 = vpop.eup %14292 }
 0xbe3   : > { %v11554_v18 = vmul.f32 %v14293_v38, %v19959_v59  ;;  %v11555_v10 = vmul.f32 %v14293_v38, %v19962_v34  ;;  %v11556_v28 = vmul.f32 %v14293_v38, %v19965_v39  ;;  %v11557_v16 = vmul.f32 %v14293_v38, %v19968_v22 }
 0xbe4   : > { %v11558_v55 = vmul.f32 %v14293_v38, %v19975_v5  ;;  %v11559_v48 = vmul.f32 %v14293_v38, %v19980_v12  ;;  %v11560_v26 = vmul.f32 %v14293_v38, %v19985_v0  ;;  %v11561_v58 = vmul.f32 %v14293_v38, %v19990_v37 }
 0xbe5   : > { %v11562_v59 = vmul.f32 %v14293_v38, %v19997_v15  ;;  %v11563_v34 = vmul.f32 %v14293_v38, %v20003_v7  ;;  %v11564_v39 = vmul.f32 %v14293_v38, %v11486_v31  ;;  %v11565_v22 = vmul.f32 %v14293_v38, %v11487_v4 }
 0xbe6   : > { %v11566_v5 = vmul.f32 %v14293_v38, %v11488_v51  ;;  %v11567_v29 = vmul.f32 %v14293_v38, %v11489_v42  ;;  %v11568_v12 = vmax.f32 %v11554_v18, 0.0  ;;  %v11569_v0 = vmax.f32 %v11555_v10, 0.0 }
 0xbe7   : > { %v11570_v37 = vmax.f32 %v11556_v28, 0.0  ;;  %v11571_v61 = vmax.f32 %v11557_v16, 0.0  ;;  %v11572_v2 = vmax.f32 %v11558_v55, 0.0  ;;  %v11573_v9 = vmax.f32 %v11559_v48, 0.0 }
 0xbe8   : > { %v11574_v15 = vmax.f32 %v11560_v26, 0.0  ;;  %v11575_v7 = vmax.f32 %v11561_v58, 0.0  ;;  %v11576_v31 = vmax.f32 %v11562_v59, 0.0  ;;  %v11577_v4 = vmax.f32 %v11563_v34, 0.0  ;;  %11582 = vst.msk [vmem:[%s20042_s30] sm:$0xff] %vm774_vm4, %v11568_v12  ;;  %11583 = vst.msk [vmem:[%s20042_s30 + $0x8] sm:$0xff] %vm774_vm4, %v11569_v0 }
 0xbe9   : > { %v11578_v56 = vmax.f32 %v11564_v39, 0.0  ;;  %v11579_v25 = vmax.f32 %v11565_v22, 0.0  ;;  %v11580_v14 = vmax.f32 %v11566_v5, 0.0  ;;  %v11581_v51 = vmax.f32 %v11567_v29, 0.0  ;;  %11584 = vst.msk [vmem:[%s20042_s30 + $0x10] sm:$0xff] %vm774_vm4, %v11570_v37  ;;  %11585 = vst.msk [vmem:[%s20042_s30 + $0x18] sm:$0xff] %vm774_vm4, %v11571_v61 }
 0xbea   : > { %11586 = vst.msk [vmem:[%s20042_s30 + $0x20] sm:$0xff] %vm774_vm4, %v11572_v2  ;;  %11587 = vst.msk [vmem:[%s20042_s30 + $0x28] sm:$0xff] %vm774_vm4, %v11573_v9 }
 0xbeb   : > { %11588 = vst.msk [vmem:[%s20042_s30 + $0x30] sm:$0xff] %vm774_vm4, %v11574_v15  ;;  %11589 = vst.msk [vmem:[%s20042_s30 + $0x38] sm:$0xff] %vm774_vm4, %v11575_v7 }
 0xbec   : > { %11590 = vst.msk [vmem:[%s20042_s30 + $0x40] sm:$0xff] %vm774_vm4, %v11576_v31  ;;  %11591 = vst.msk [vmem:[%s20042_s30 + $0x48] sm:$0xff] %vm774_vm4, %v11577_v4 }
 0xbed   : > { %11592 = vst.msk [vmem:[%s20042_s30 + $0x50] sm:$0xff] %vm774_vm4, %v11578_v56  ;;  %11593 = vst.msk [vmem:[%s20042_s30 + $0x58] sm:$0xff] %vm774_vm4, %v11579_v25 }
 0xbee   : > { %11594 = vst.msk [vmem:[%s20042_s30 + $0x60] sm:$0xff] %vm774_vm4, %v11580_v14  ;;  %11595 = vst.msk [vmem:[%s20042_s30 + $0x68] sm:$0xff] %vm774_vm4, %v11581_v51 }
 0xbef PF: > { %s33_s4 = sadd.s32 1, %s14326_s4  }
 0xbf0   : > { %p30_p4 = scmp.ge.s32.totalorder %s33_s4, 4  }
 0xbf2   :  { %32 = sbr.rel (!%p30_p4) target bundleno = 9 (0x9), region = 177 }

</bundles_post_ra>
